<compile_context>
chip_gen: v5e
topology: v5e:2x2
jax: 0.10.0
libtpu: 0.0.40
codegen_flags: <defaults>
</compile_context>

<pallas_src>
import functools
import math

import jax
import jax.numpy as jnp
from jax import lax
from jax.experimental import pallas as pl
from jax.experimental.pallas import tpu as pltpu

LEAKY_SLOPE = 0.01   # nn.LeakyReLU() default negative_slope
LANE = 128           # TPU lane width: conv out-channels / fused-head N padded to this

_COMPILER_PARAMS = pltpu.CompilerParams(
    dimension_semantics=("arbitrary",),
    vmem_limit_bytes=32 << 20,
)


# ----------------------------------------------------------------------------
# Pallas kernels (single grid step, full-array blocks, bf16 MXU / f32 epilogue)
# ----------------------------------------------------------------------------
def _matmul_bias_act_kernel(x_ref, w_ref, b_ref, o_ref, *, leaky):
    acc = jnp.dot(x_ref[...], w_ref[...], preferred_element_type=jnp.float32)
    acc = acc + b_ref[...]                       # (1, N) f32 bias broadcasts over M
    if leaky:
        acc = jnp.where(acc > 0, acc, LEAKY_SLOPE * acc)
    o_ref[...] = acc.astype(o_ref.dtype)


def _fc_heads_kernel(x_ref, w1_ref, b1_ref, w2_ref, b2_ref, o_ref):
    # fc (3136 -> 512) + LeakyReLU, then fused actor|critic heads while the
    # (M, 512) activation is still in VMEM.
    h = jnp.dot(x_ref[...], w1_ref[...], preferred_element_type=jnp.float32)
    h = h + b1_ref[...]
    h = jnp.where(h > 0, h, LEAKY_SLOPE * h)
    o = jnp.dot(h.astype(jnp.bfloat16), w2_ref[...],
                preferred_element_type=jnp.float32)
    o_ref[...] = (o + b2_ref[...]).astype(o_ref.dtype)


# ----------------------------------------------------------------------------
# pallas_call wrappers
# ----------------------------------------------------------------------------
def _pad_rows(x, mult=8):
    m = x.shape[0]
    m_pad = ((m + mult - 1) // mult) * mult
    if m_pad != m:
        x = jnp.pad(x, ((0, m_pad - m), (0, 0)))
    return x, m


def matmul_bias_act(x, w, b, *, leaky, out_dtype):
    """x: (M, K) bf16, w: (K, N) bf16, b: (1, N) f32 -> (M, N) out_dtype."""
    x_p, m = _pad_rows(x)
    mp, k = x_p.shape
    n = w.shape[1]
    out = pl.pallas_call(
        functools.partial(_matmul_bias_act_kernel, leaky=leaky),
        out_shape=jax.ShapeDtypeStruct((mp, n), out_dtype),
        grid_spec=pltpu.PrefetchScalarGridSpec(
            num_scalar_prefetch=0,
            grid=(1,),
            in_specs=[
                pl.BlockSpec((mp, k), lambda i: (0, 0)),
                pl.BlockSpec((k, n), lambda i: (0, 0)),
                pl.BlockSpec((1, n), lambda i: (0, 0)),
            ],
            out_specs=pl.BlockSpec((mp, n), lambda i: (0, 0)),
        ),
        compiler_params=_COMPILER_PARAMS,
    )(x_p, w, b)
    return out[:m]


def fc_heads(x, w1, b1, w2, b2):
    """x: (B, 3136) bf16 -> (B, 128) f32: fc+LeakyReLU then fused actor/critic."""
    x_p, m = _pad_rows(x)
    mp, k = x_p.shape
    h = w1.shape[1]
    n = w2.shape[1]
    out = pl.pallas_call(
        _fc_heads_kernel,
        out_shape=jax.ShapeDtypeStruct((mp, n), jnp.float32),
        grid_spec=pltpu.PrefetchScalarGridSpec(
            num_scalar_prefetch=0,
            grid=(1,),
            in_specs=[
                pl.BlockSpec((mp, k), lambda i: (0, 0)),
                pl.BlockSpec((k, h), lambda i: (0, 0)),
                pl.BlockSpec((1, h), lambda i: (0, 0)),
                pl.BlockSpec((h, n), lambda i: (0, 0)),
                pl.BlockSpec((1, n), lambda i: (0, 0)),
            ],
            out_specs=pl.BlockSpec((mp, n), lambda i: (0, 0)),
        ),
        compiler_params=_COMPILER_PARAMS,
    )(x_p, w1, b1, w2, b2)
    return out[:m]


# ----------------------------------------------------------------------------
# NHWC im2col glue (plain JAX): feature order (kh, kw, c), no transposes.
# ----------------------------------------------------------------------------
def _im2col_nhwc(x, kh, kw, stride):
    B, H, W, C = x.shape
    OH = (H - kh) // stride + 1
    OW = (W - kw) // stride + 1
    # TODO(synk): fold patch extraction into the Pallas kernel via an Element-style
    # index_map instead of XLA-level strided slices.
    patches = [
        x[:, i:i + stride * OH:stride, j:j + stride * OW:stride, :]
        for i in range(kh) for j in range(kw)
    ]
    cols = jnp.stack(patches, axis=3)              # (B, OH, OW, kh*kw, C)
    return cols.reshape(B * OH * OW, kh * kw * C), OH, OW


def conv_block(x_nhwc, w_mat, b_row, *, kh, kw, stride):
    B = x_nhwc.shape[0]
    cols, OH, OW = _im2col_nhwc(x_nhwc, kh, kw, stride)
    y = matmul_bias_act(cols, w_mat, b_row, leaky=True, out_dtype=jnp.bfloat16)
    return y.reshape(B, OH, OW, w_mat.shape[1])


# ----------------------------------------------------------------------------
# Parameters: raw PyTorch layout (kaiming_uniform_, zero bias), then one-time
# conversion into kernel layout.
# ----------------------------------------------------------------------------
def _kaiming_uniform(key, shape, fan_in, a):
    gain = math.sqrt(2.0 / (1.0 + a * a))
    bound = gain * math.sqrt(3.0 / fan_in)
    return jax.random.uniform(key, shape, jnp.float32, -bound, bound)


def init_raw_params(key, output_size):
    ks = jax.random.split(key, 6)
    return {
        "c1_w": _kaiming_uniform(ks[0], (32, 4, 8, 8), 4 * 8 * 8, 0.0),
        "c1_b": jnp.zeros((32,), jnp.float32),
        "c2_w": _kaiming_uniform(ks[1], (64, 32, 4, 4), 32 * 4 * 4, 0.0),
        "c2_b": jnp.zeros((64,), jnp.float32),
        "c3_w": _kaiming_uniform(ks[2], (64, 64, 3, 3), 64 * 3 * 3, 0.0),
        "c3_b": jnp.zeros((64,), jnp.float32),
        "fc_w": _kaiming_uniform(ks[3], (512, 7 * 7 * 64), 7 * 7 * 64, 1.0),
        "fc_b": jnp.zeros((512,), jnp.float32),
        "actor_w": _kaiming_uniform(ks[4], (output_size, 512), 512, 1.0),
        "actor_b": jnp.zeros((output_size,), jnp.float32),
        "critic_w": _kaiming_uniform(ks[5], (1, 512), 512, 1.0),
        "critic_b": jnp.zeros((1,), jnp.float32),
    }


def _prep_conv(w_oihw, b, c_in_pad, c_out_pad):
    O, C, KH, KW = w_oihw.shape
    w = jnp.transpose(w_oihw, (2, 3, 1, 0))                                  # (KH, KW, C, O)
    w = jnp.pad(w, ((0, 0), (0, 0), (0, c_in_pad - C), (0, c_out_pad - O)))
    w = w.reshape(KH * KW * c_in_pad, c_out_pad).astype(jnp.bfloat16)
    b = jnp.pad(b, (0, c_out_pad - O)).reshape(1, c_out_pad).astype(jnp.float32)
    return w, b


def prepare_params(raw, output_size):
    """(K, N) bf16 weights / f32 (1, N) biases. Conv out-channels and the fused
    head N are zero-padded to 128 lanes (padded columns stay exactly zero through
    LeakyReLU, and the matching zero weight rows in the next layer ignore them)."""
    n_heads = output_size + 1
    assert n_heads <= LANE
    p = {}
    p["c1_w"], p["c1_b"] = _prep_conv(raw["c1_w"], raw["c1_b"], 4, LANE)
    p["c2_w"], p["c2_b"] = _prep_conv(raw["c2_w"], raw["c2_b"], LANE, LANE)
    p["c3_w"], p["c3_b"] = _prep_conv(raw["c3_w"], raw["c3_b"], LANE, LANE)

    # fc: PyTorch Flatten order is (C, H, W); our flatten is NHWC (H, W, C).
    fc_w = raw["fc_w"].reshape(512, 64, 7, 7)          # (O, C, H, W)
    fc_w = jnp.transpose(fc_w, (2, 3, 1, 0))           # (H, W, C, O)
    p["fc_w"] = fc_w.reshape(7 * 7 * 64, 512).astype(jnp.bfloat16)
    p["fc_b"] = raw["fc_b"].reshape(1, 512).astype(jnp.float32)

    # actor + critic fused along N, padded to one lane-dense 128-wide output.
    head_w = jnp.concatenate([raw["actor_w"], raw["critic_w"]], axis=0).T    # (512, out+1)
    head_b = jnp.concatenate([raw["actor_b"], raw["critic_b"]], axis=0)      # (out+1,)
    p["head_w"] = jnp.pad(head_w, ((0, 0), (0, LANE - n_heads))).astype(jnp.bfloat16)
    p["head_b"] = jnp.pad(head_b, (0, LANE - n_heads)).reshape(1, LANE).astype(jnp.float32)
    return p


# ----------------------------------------------------------------------------
# Forward pass
# ----------------------------------------------------------------------------
def cnn_actor_critic_forward(prep, state, output_size):
    """state: (B, 4, 84, 84) f32 NCHW -> (policy (B, output_size), value (B, 1))."""
    B = state.shape[0]
    x = jnp.transpose(state, (0, 2, 3, 1)).astype(jnp.bfloat16)           # NHWC bf16 (once)
    x = conv_block(x, prep["c1_w"], prep["c1_b"], kh=8, kw=8, stride=4)   # (B, 20, 20, 128)
    x = conv_block(x, prep["c2_w"], prep["c2_b"], kh=4, kw=4, stride=2)   # (B,  9,  9, 128)
    x = conv_block(x, prep["c3_w"], prep["c3_b"], kh=3, kw=3, stride=1)   # (B,  7,  7, 128)
    x = x[..., :64].reshape(B, 7 * 7 * 64)                                # Flatten (H, W, C)
    out = fc_heads(x, prep["fc_w"], prep["fc_b"], prep["head_w"], prep["head_b"])
    policy = out[:, :output_size]
    value = out[:, output_size:output_size + 1]
    return policy, value


# Pure-JAX f32 reference in the original PyTorch layout (independent of the
# Pallas-path weight prep / im2col), for a correctness sanity check.
def _reference_forward(raw, state):
    def leaky(v):
        return jnp.where(v > 0, v, LEAKY_SLOPE * v)

    dn = ("NCHW", "OIHW", "NCHW")

    def conv(x, w, b, s):
        y = lax.conv_general_dilated(x, w, (s, s), "VALID", dimension_numbers=dn)
        return leaky(y + b[None, :, None, None])

    x = conv(state, raw["c1_w"], raw["c1_b"], 4)
    x = conv(x, raw["c2_w"], raw["c2_b"], 2)
    x = conv(x, raw["c3_w"], raw["c3_b"], 1)
    x = x.reshape(x.shape[0], -1)
    x = leaky(x @ raw["fc_w"].T + raw["fc_b"])
    policy = x @ raw["actor_w"].T + raw["actor_b"]
    value = x @ raw["critic_w"].T + raw["critic_b"]
    return policy, value


if __name__ == "__main__":
    key = jax.random.PRNGKey(0)
    k_param, k_in = jax.random.split(key)

    batch = 2
    output_size = 6  # spatial size is fixed to 84x84 by Flatten -> Linear(7*7*64, 512)

    raw = init_raw_params(k_param, output_size)
    prep = prepare_params(raw, output_size)
    state = jax.random.uniform(k_in, (batch, 4, 84, 84), jnp.float32)  # NCHW, like PyTorch

    fwd = jax.jit(functools.partial(cnn_actor_critic_forward, output_size=output_size))
    policy, value = fwd(prep, state)
    jax.block_until_ready((policy, value))

    assert policy.shape == (batch, output_size), policy.shape
    assert value.shape == (batch, 1), value.shape

    # bf16 MXU operands in the Pallas path -> loose tolerance vs the f32 reference.
    ref_policy, ref_value = _reference_forward(raw, state)
    assert jnp.allclose(policy, ref_policy, atol=5e-2, rtol=5e-2), (
        float(jnp.max(jnp.abs(policy - ref_policy))))
    assert jnp.allclose(value, ref_value, atol=5e-2, rtol=5e-2), (
        float(jnp.max(jnp.abs(value - ref_value))))

    print("KERNEL_OK")
</pallas_src>

<mosaic_0001>
module attributes {stable_mosaic.version = 11 : i64} {
  func.func @_matmul_bias_act_kernel(%arg0: i32, %arg1: memref<800x256xbf16, #tpu.memory_space<vmem>>, %arg2: memref<256x128xbf16, #tpu.memory_space<vmem>>, %arg3: memref<1x128xf32, #tpu.memory_space<vmem>>, %arg4: memref<800x128xbf16, #tpu.memory_space<vmem>>) attributes {dimension_semantics = [#tpu.dimension_semantics<arbitrary>], iteration_bounds = array<i64: 1>, scalar_prefetch = 0 : i64, scratch_operands = 0 : i64, tpu.core_type = #tpu.core_type<tc>, window_params = [{pipeline_mode = #tpu.pipeline_mode<synchronous>, transform_indices = @transform_0, window_bounds = array<i64: 800, 256>}, {pipeline_mode = #tpu.pipeline_mode<synchronous>, transform_indices = @transform_1, window_bounds = array<i64: 256, 128>}, {pipeline_mode = #tpu.pipeline_mode<synchronous>, transform_indices = @transform_2, window_bounds = array<i64: 1, 128>}, {pipeline_mode = #tpu.pipeline_mode<synchronous>, transform_indices = @transform_3, window_bounds = array<i64: 800, 128>}]} {
    %c0 = arith.constant 0 : index
    %c0_0 = arith.constant 0 : index
    %0 = vector.load %arg1[%c0, %c0_0] : memref<800x256xbf16, #tpu.memory_space<vmem>>, vector<800x256xbf16>
    %c0_1 = arith.constant 0 : index
    %c0_2 = arith.constant 0 : index
    %1 = vector.load %arg2[%c0_1, %c0_2] : memref<256x128xbf16, #tpu.memory_space<vmem>>, vector<256x128xbf16>
    %cst = arith.constant dense<0.000000e+00> : vector<800x128xf32>
    %2 = tpu.matmul %0, %1, %cst {dimension_numbers = #tpu.dot_dimension_numbers<[1], [0], [0], [1], [0, 0, 1, 1], [], []>} : vector<800x256xbf16>, vector<256x128xbf16>, vector<800x128xf32> -> vector<800x128xf32>
    %c0_3 = arith.constant 0 : index
    %c0_4 = arith.constant 0 : index
    %3 = vector.load %arg3[%c0_3, %c0_4] : memref<1x128xf32, #tpu.memory_space<vmem>>, vector<1x128xf32>
    %4 = vector.broadcast %3 : vector<1x128xf32> to vector<800x128xf32>
    %5 = arith.addf %2, %4 : vector<800x128xf32>
    %cst_5 = arith.constant 0.000000e+00 : f32
    %6 = vector.broadcast %cst_5 : f32 to vector<800x128xf32>
    %7 = arith.cmpf ogt, %5, %6 : vector<800x128xf32>
    %cst_6 = arith.constant 0.00999999977 : f32
    %8 = vector.broadcast %cst_6 : f32 to vector<800x128xf32>
    %9 = arith.mulf %8, %5 : vector<800x128xf32>
    %10 = arith.select %7, %5, %9 : vector<800x128xi1>, vector<800x128xf32>
    %11 = arith.truncf %10 : vector<800x128xf32> to vector<800x128xbf16>
    %c0_7 = arith.constant 0 : index
    %c0_8 = arith.constant 0 : index
    %12 = vector.load %arg4[%c0_7, %c0_8] : memref<800x128xbf16, #tpu.memory_space<vmem>>, vector<800x128xbf16>
    tpu.vector_store %arg4[%c0_7, %c0_8], %11 {strides = array<i32>} : memref<800x128xbf16, #tpu.memory_space<vmem>>, vector<800x128xbf16>,
    return
  }
  func.func @transform_0(%arg0: i32) -> (i32, i32) {
    %c0_i32 = arith.constant 0 : i32
    %c0_i32_0 = arith.constant 0 : i32
    %c0_i32_1 = arith.constant 0 : i32
    return %c0_i32, %c0_i32_0 : i32, i32
  }
  func.func @transform_1(%arg0: i32) -> (i32, i32) {
    %c0_i32 = arith.constant 0 : i32
    %c0_i32_0 = arith.constant 0 : i32
    %c0_i32_1 = arith.constant 0 : i32
    return %c0_i32, %c0_i32_0 : i32, i32
  }
  func.func @transform_2(%arg0: i32) -> (i32, i32) {
    %c0_i32 = arith.constant 0 : i32
    %c0_i32_0 = arith.constant 0 : i32
    %c0_i32_1 = arith.constant 0 : i32
    return %c0_i32, %c0_i32_0 : i32, i32
  }
  func.func @transform_3(%arg0: i32) -> (i32, i32) {
    %c0_i32 = arith.constant 0 : i32
    %c0_i32_0 = arith.constant 0 : i32
    %c0_i32_1 = arith.constant 0 : i32
    return %c0_i32, %c0_i32_0 : i32, i32
  }
}

module attributes {stable_mosaic.version = 11 : i64} {
  func.func @_matmul_bias_act_kernel(%arg0: i32, %arg1: memref<168x2048xbf16, #tpu.memory_space<vmem>>, %arg2: memref<2048x128xbf16, #tpu.memory_space<vmem>>, %arg3: memref<1x128xf32, #tpu.memory_space<vmem>>, %arg4: memref<168x128xbf16, #tpu.memory_space<vmem>>) attributes {dimension_semantics = [#tpu.dimension_semantics<arbitrary>], iteration_bounds = array<i64: 1>, scalar_prefetch = 0 : i64, scratch_operands = 0 : i64, tpu.core_type = #tpu.core_type<tc>, window_params = [{pipeline_mode = #tpu.pipeline_mode<synchronous>, transform_indices = @transform_0, window_bounds = array<i64: 168, 2048>}, {pipeline_mode = #tpu.pipeline_mode<synchronous>, transform_indices = @transform_1, window_bounds = array<i64: 2048, 128>}, {pipeline_mode = #tpu.pipeline_mode<synchronous>, transform_indices = @transform_2, window_bounds = array<i64: 1, 128>}, {pipeline_mode = #tpu.pipeline_mode<synchronous>, transform_indices = @transform_3, window_bounds = array<i64: 168, 128>}]} {
    %c0 = arith.constant 0 : index
    %c0_0 = arith.constant 0 : index
    %0 = vector.load %arg1[%c0, %c0_0] : memref<168x2048xbf16, #tpu.memory_space<vmem>>, vector<168x2048xbf16>
    %c0_1 = arith.constant 0 : index
    %c0_2 = arith.constant 0 : index
    %1 = vector.load %arg2[%c0_1, %c0_2] : memref<2048x128xbf16, #tpu.memory_space<vmem>>, vector<2048x128xbf16>
    %cst = arith.constant dense<0.000000e+00> : vector<168x128xf32>
    %2 = tpu.matmul %0, %1, %cst {dimension_numbers = #tpu.dot_dimension_numbers<[1], [0], [0], [1], [0, 0, 1, 1], [], []>} : vector<168x2048xbf16>, vector<2048x128xbf16>, vector<168x128xf32> -> vector<168x128xf32>
    %c0_3 = arith.constant 0 : index
    %c0_4 = arith.constant 0 : index
    %3 = vector.load %arg3[%c0_3, %c0_4] : memref<1x128xf32, #tpu.memory_space<vmem>>, vector<1x128xf32>
    %4 = vector.broadcast %3 : vector<1x128xf32> to vector<168x128xf32>
    %5 = arith.addf %2, %4 : vector<168x128xf32>
    %cst_5 = arith.constant 0.000000e+00 : f32
    %6 = vector.broadcast %cst_5 : f32 to vector<168x128xf32>
    %7 = arith.cmpf ogt, %5, %6 : vector<168x128xf32>
    %cst_6 = arith.constant 0.00999999977 : f32
    %8 = vector.broadcast %cst_6 : f32 to vector<168x128xf32>
    %9 = arith.mulf %8, %5 : vector<168x128xf32>
    %10 = arith.select %7, %5, %9 : vector<168x128xi1>, vector<168x128xf32>
    %11 = arith.truncf %10 : vector<168x128xf32> to vector<168x128xbf16>
    %c0_7 = arith.constant 0 : index
    %c0_8 = arith.constant 0 : index
    %12 = vector.load %arg4[%c0_7, %c0_8] : memref<168x128xbf16, #tpu.memory_space<vmem>>, vector<168x128xbf16>
    tpu.vector_store %arg4[%c0_7, %c0_8], %11 {strides = array<i32>} : memref<168x128xbf16, #tpu.memory_space<vmem>>, vector<168x128xbf16>,
    return
  }
  func.func @transform_0(%arg0: i32) -> (i32, i32) {
    %c0_i32 = arith.constant 0 : i32
    %c0_i32_0 = arith.constant 0 : i32
    %c0_i32_1 = arith.constant 0 : i32
    return %c0_i32, %c0_i32_0 : i32, i32
  }
  func.func @transform_1(%arg0: i32) -> (i32, i32) {
    %c0_i32 = arith.constant 0 : i32
    %c0_i32_0 = arith.constant 0 : i32
    %c0_i32_1 = arith.constant 0 : i32
    return %c0_i32, %c0_i32_0 : i32, i32
  }
  func.func @transform_2(%arg0: i32) -> (i32, i32) {
    %c0_i32 = arith.constant 0 : i32
    %c0_i32_0 = arith.constant 0 : i32
    %c0_i32_1 = arith.constant 0 : i32
    return %c0_i32, %c0_i32_0 : i32, i32
  }
  func.func @transform_3(%arg0: i32) -> (i32, i32) {
    %c0_i32 = arith.constant 0 : i32
    %c0_i32_0 = arith.constant 0 : i32
    %c0_i32_1 = arith.constant 0 : i32
    return %c0_i32, %c0_i32_0 : i32, i32
  }
}

module attributes {stable_mosaic.version = 11 : i64} {
  func.func @_matmul_bias_act_kernel(%arg0: i32, %arg1: memref<104x1152xbf16, #tpu.memory_space<vmem>>, %arg2: memref<1152x128xbf16, #tpu.memory_space<vmem>>, %arg3: memref<1x128xf32, #tpu.memory_space<vmem>>, %arg4: memref<104x128xbf16, #tpu.memory_space<vmem>>) attributes {dimension_semantics = [#tpu.dimension_semantics<arbitrary>], iteration_bounds = array<i64: 1>, scalar_prefetch = 0 : i64, scratch_operands = 0 : i64, tpu.core_type = #tpu.core_type<tc>, window_params = [{pipeline_mode = #tpu.pipeline_mode<synchronous>, transform_indices = @transform_0, window_bounds = array<i64: 104, 1152>}, {pipeline_mode = #tpu.pipeline_mode<synchronous>, transform_indices = @transform_1, window_bounds = array<i64: 1152, 128>}, {pipeline_mode = #tpu.pipeline_mode<synchronous>, transform_indices = @transform_2, window_bounds = array<i64: 1, 128>}, {pipeline_mode = #tpu.pipeline_mode<synchronous>, transform_indices = @transform_3, window_bounds = array<i64: 104, 128>}]} {
    %c0 = arith.constant 0 : index
    %c0_0 = arith.constant 0 : index
    %0 = vector.load %arg1[%c0, %c0_0] : memref<104x1152xbf16, #tpu.memory_space<vmem>>, vector<104x1152xbf16>
    %c0_1 = arith.constant 0 : index
    %c0_2 = arith.constant 0 : index
    %1 = vector.load %arg2[%c0_1, %c0_2] : memref<1152x128xbf16, #tpu.memory_space<vmem>>, vector<1152x128xbf16>
    %cst = arith.constant dense<0.000000e+00> : vector<104x128xf32>
    %2 = tpu.matmul %0, %1, %cst {dimension_numbers = #tpu.dot_dimension_numbers<[1], [0], [0], [1], [0, 0, 1, 1], [], []>} : vector<104x1152xbf16>, vector<1152x128xbf16>, vector<104x128xf32> -> vector<104x128xf32>
    %c0_3 = arith.constant 0 : index
    %c0_4 = arith.constant 0 : index
    %3 = vector.load %arg3[%c0_3, %c0_4] : memref<1x128xf32, #tpu.memory_space<vmem>>, vector<1x128xf32>
    %4 = vector.broadcast %3 : vector<1x128xf32> to vector<104x128xf32>
    %5 = arith.addf %2, %4 : vector<104x128xf32>
    %cst_5 = arith.constant 0.000000e+00 : f32
    %6 = vector.broadcast %cst_5 : f32 to vector<104x128xf32>
    %7 = arith.cmpf ogt, %5, %6 : vector<104x128xf32>
    %cst_6 = arith.constant 0.00999999977 : f32
    %8 = vector.broadcast %cst_6 : f32 to vector<104x128xf32>
    %9 = arith.mulf %8, %5 : vector<104x128xf32>
    %10 = arith.select %7, %5, %9 : vector<104x128xi1>, vector<104x128xf32>
    %11 = arith.truncf %10 : vector<104x128xf32> to vector<104x128xbf16>
    %c0_7 = arith.constant 0 : index
    %c0_8 = arith.constant 0 : index
    %12 = vector.load %arg4[%c0_7, %c0_8] : memref<104x128xbf16, #tpu.memory_space<vmem>>, vector<104x128xbf16>
    tpu.vector_store %arg4[%c0_7, %c0_8], %11 {strides = array<i32>} : memref<104x128xbf16, #tpu.memory_space<vmem>>, vector<104x128xbf16>,
    return
  }
  func.func @transform_0(%arg0: i32) -> (i32, i32) {
    %c0_i32 = arith.constant 0 : i32
    %c0_i32_0 = arith.constant 0 : i32
    %c0_i32_1 = arith.constant 0 : i32
    return %c0_i32, %c0_i32_0 : i32, i32
  }
  func.func @transform_1(%arg0: i32) -> (i32, i32) {
    %c0_i32 = arith.constant 0 : i32
    %c0_i32_0 = arith.constant 0 : i32
    %c0_i32_1 = arith.constant 0 : i32
    return %c0_i32, %c0_i32_0 : i32, i32
  }
  func.func @transform_2(%arg0: i32) -> (i32, i32) {
    %c0_i32 = arith.constant 0 : i32
    %c0_i32_0 = arith.constant 0 : i32
    %c0_i32_1 = arith.constant 0 : i32
    return %c0_i32, %c0_i32_0 : i32, i32
  }
  func.func @transform_3(%arg0: i32) -> (i32, i32) {
    %c0_i32 = arith.constant 0 : i32
    %c0_i32_0 = arith.constant 0 : i32
    %c0_i32_1 = arith.constant 0 : i32
    return %c0_i32, %c0_i32_0 : i32, i32
  }
}

module attributes {stable_mosaic.version = 11 : i64} {
  func.func @_fc_heads_kernel(%arg0: i32, %arg1: memref<8x3136xbf16, #tpu.memory_space<vmem>>, %arg2: memref<3136x512xbf16, #tpu.memory_space<vmem>>, %arg3: memref<1x512xf32, #tpu.memory_space<vmem>>, %arg4: memref<512x128xbf16, #tpu.memory_space<vmem>>, %arg5: memref<1x128xf32, #tpu.memory_space<vmem>>, %arg6: memref<8x128xf32, #tpu.memory_space<vmem>>) attributes {dimension_semantics = [#tpu.dimension_semantics<arbitrary>], iteration_bounds = array<i64: 1>, scalar_prefetch = 0 : i64, scratch_operands = 0 : i64, tpu.core_type = #tpu.core_type<tc>, window_params = [{pipeline_mode = #tpu.pipeline_mode<synchronous>, transform_indices = @transform_0, window_bounds = array<i64: 8, 3136>}, {pipeline_mode = #tpu.pipeline_mode<synchronous>, transform_indices = @transform_1, window_bounds = array<i64: 3136, 512>}, {pipeline_mode = #tpu.pipeline_mode<synchronous>, transform_indices = @transform_2, window_bounds = array<i64: 1, 512>}, {pipeline_mode = #tpu.pipeline_mode<synchronous>, transform_indices = @transform_3, window_bounds = array<i64: 512, 128>}, {pipeline_mode = #tpu.pipeline_mode<synchronous>, transform_indices = @transform_4, window_bounds = array<i64: 1, 128>}, {pipeline_mode = #tpu.pipeline_mode<synchronous>, transform_indices = @transform_5, window_bounds = array<i64: 8, 128>}]} {
    %c0 = arith.constant 0 : index
    %c0_0 = arith.constant 0 : index
    %0 = vector.load %arg1[%c0, %c0_0] : memref<8x3136xbf16, #tpu.memory_space<vmem>>, vector<8x3136xbf16>
    %c0_1 = arith.constant 0 : index
    %c0_2 = arith.constant 0 : index
    %1 = vector.load %arg2[%c0_1, %c0_2] : memref<3136x512xbf16, #tpu.memory_space<vmem>>, vector<3136x512xbf16>
    %cst = arith.constant dense<0.000000e+00> : vector<8x512xf32>
    %2 = tpu.matmul %0, %1, %cst {dimension_numbers = #tpu.dot_dimension_numbers<[1], [0], [0], [1], [0, 0, 1, 1], [], []>} : vector<8x3136xbf16>, vector<3136x512xbf16>, vector<8x512xf32> -> vector<8x512xf32>
    %c0_3 = arith.constant 0 : index
    %c0_4 = arith.constant 0 : index
    %3 = vector.load %arg3[%c0_3, %c0_4] : memref<1x512xf32, #tpu.memory_space<vmem>>, vector<1x512xf32>
    %4 = vector.broadcast %3 : vector<1x512xf32> to vector<8x512xf32>
    %5 = arith.addf %2, %4 : vector<8x512xf32>
    %cst_5 = arith.constant 0.000000e+00 : f32
    %6 = vector.broadcast %cst_5 : f32 to vector<8x512xf32>
    %7 = arith.cmpf ogt, %5, %6 : vector<8x512xf32>
    %cst_6 = arith.constant 0.00999999977 : f32
    %8 = vector.broadcast %cst_6 : f32 to vector<8x512xf32>
    %9 = arith.mulf %8, %5 : vector<8x512xf32>
    %10 = arith.select %7, %5, %9 : vector<8x512xi1>, vector<8x512xf32>
    %11 = arith.truncf %10 : vector<8x512xf32> to vector<8x512xbf16>
    %c0_7 = arith.constant 0 : index
    %c0_8 = arith.constant 0 : index
    %12 = vector.load %arg4[%c0_7, %c0_8] : memref<512x128xbf16, #tpu.memory_space<vmem>>, vector<512x128xbf16>
    %cst_9 = arith.constant dense<0.000000e+00> : vector<8x128xf32>
    %13 = tpu.matmul %11, %12, %cst_9 {dimension_numbers = #tpu.dot_dimension_numbers<[1], [0], [0], [1], [0, 0, 1, 1], [], []>} : vector<8x512xbf16>, vector<512x128xbf16>, vector<8x128xf32> -> vector<8x128xf32>
    %c0_10 = arith.constant 0 : index
    %c0_11 = arith.constant 0 : index
    %14 = vector.load %arg5[%c0_10, %c0_11] : memref<1x128xf32, #tpu.memory_space<vmem>>, vector<1x128xf32>
    %15 = vector.broadcast %14 : vector<1x128xf32> to vector<8x128xf32>
    %16 = arith.addf %13, %15 : vector<8x128xf32>
    %c0_12 = arith.constant 0 : index
    %c0_13 = arith.constant 0 : index
    %17 = vector.load %arg6[%c0_12, %c0_13] : memref<8x128xf32, #tpu.memory_space<vmem>>, vector<8x128xf32>
    tpu.vector_store %arg6[%c0_12, %c0_13], %16 {strides = array<i32>} : memref<8x128xf32, #tpu.memory_space<vmem>>, vector<8x128xf32>,
    return
  }
  func.func @transform_0(%arg0: i32) -> (i32, i32) {
    %c0_i32 = arith.constant 0 : i32
    %c0_i32_0 = arith.constant 0 : i32
    %c0_i32_1 = arith.constant 0 : i32
    return %c0_i32, %c0_i32_0 : i32, i32
  }
  func.func @transform_1(%arg0: i32) -> (i32, i32) {
    %c0_i32 = arith.constant 0 : i32
    %c0_i32_0 = arith.constant 0 : i32
    %c0_i32_1 = arith.constant 0 : i32
    return %c0_i32, %c0_i32_0 : i32, i32
  }
  func.func @transform_2(%arg0: i32) -> (i32, i32) {
    %c0_i32 = arith.constant 0 : i32
    %c0_i32_0 = arith.constant 0 : i32
    %c0_i32_1 = arith.constant 0 : i32
    return %c0_i32, %c0_i32_0 : i32, i32
  }
  func.func @transform_3(%arg0: i32) -> (i32, i32) {
    %c0_i32 = arith.constant 0 : i32
    %c0_i32_0 = arith.constant 0 : i32
    %c0_i32_1 = arith.constant 0 : i32
    return %c0_i32, %c0_i32_0 : i32, i32
  }
  func.func @transform_4(%arg0: i32) -> (i32, i32) {
    %c0_i32 = arith.constant 0 : i32
    %c0_i32_0 = arith.constant 0 : i32
    %c0_i32_1 = arith.constant 0 : i32
    return %c0_i32, %c0_i32_0 : i32, i32
  }
  func.func @transform_5(%arg0: i32) -> (i32, i32) {
    %c0_i32 = arith.constant 0 : i32
    %c0_i32_0 = arith.constant 0 : i32
    %c0_i32_1 = arith.constant 0 : i32
    return %c0_i32, %c0_i32_0 : i32, i32
  }
}

</mosaic_0001>

<bundles_post_ra>
// kernel: cnn_actor_critic_forward.4
= control target key start
LH: loop header
LB: loop body
LE: loop exit
PB: predicated region body
PF: predicated region fallthrough
CT: control target
= control target key end

     0   :  { %s3593_s1 = inlined_call_operand.vmem [shape: bf16[256,128], index: 1, kind: input, shape index: {}]   ;;  %s3594_s2 = inlined_call_operand.vmem [shape: f32[1,128], index: 2, kind: input, shape index: {}]   ;;  %s3595_s0 = inlined_call_operand.vmem [shape: bf16[800,256], index: 0, kind: input, shape index: {}]   ;;  %s3596_s3 = inlined_call_operand.vmem [shape: bf16[800,128], index: 3, kind: output, shape index: {}]  }
   0x1   :  { %v2339_v0 = vld [vmem:[%s3593_s1 + $0x38] sm:$0xff]  ;;  %v2338_v2 = vld [vmem:[%s3593_s1 + $0x30] sm:$0xff]  ;;  %v2337_v4 = vld [vmem:[%s3593_s1 + $0x28] sm:$0xff] }
   0x2   :  { %v2347_v1 = vld [vmem:[%s3593_s1 + $0x78] sm:$0xff]  ;;  %746 = vmatpush.bf16.msra.mxu0 %v2339_v0  ;;  %2647 = vmatpush.bf16.msra.mxu2 %v2339_v0  ;;  %v2346_v3 = vld [vmem:[%s3593_s1 + $0x70] sm:$0xff]  ;;  %v2345_v5 = vld [vmem:[%s3593_s1 + $0x68] sm:$0xff] }
   0x3   :  { %1005 = vmatpush.bf16.msra.mxu1 %v2347_v1  ;;  %2655 = vmatpush.bf16.msra.mxu3 %v2347_v1  ;;  %v2336_v6 = vld [vmem:[%s3593_s1 + $0x20] sm:$0xff]  ;;  %v2335_v8 = vld [vmem:[%s3593_s1 + $0x18] sm:$0xff]  ;;  %v2334_v10 = vld [vmem:[%s3593_s1 + $0x10] sm:$0xff] }
   0x4   :  { %v2344_v7 = vld [vmem:[%s3593_s1 + $0x60] sm:$0xff]  ;;  %v2343_v9 = vld [vmem:[%s3593_s1 + $0x58] sm:$0xff]  ;;  %v2342_v11 = vld [vmem:[%s3593_s1 + $0x50] sm:$0xff] }
   0x5   :  { %v2333_v12 = vld [vmem:[%s3593_s1 + $0x8] sm:$0xff]  ;;  %v2332_v14 = vld [vmem:[%s3593_s1] sm:$0xff]  ;;  %v1970_v18 = vld [vmem:[%s3595_s0 + $0x190] sm:$0xf] }
   0x6   :  { %747 = vmatpush.bf16.msra.mxu0 %v2338_v2  ;;  %2648 = vmatpush.bf16.msra.mxu2 %v2338_v2  ;;  %v2341_v13 = vld [vmem:[%s3593_s1 + $0x48] sm:$0xff]  ;;  %v2340_v15 = vld [vmem:[%s3593_s1 + $0x40] sm:$0xff]  ;;  %v2283_v19 = vld [vmem:[%s3595_s0 + $0x194] sm:$0xf0] }
   0x7   :  { %1006 = vmatpush.bf16.msra.mxu1 %v2346_v3  ;;  %2656 = vmatpush.bf16.msra.mxu3 %v2346_v3  ;;  %v1770_v16 = vld [vmem:[%s3595_s0] sm:$0xf]  ;;  %v2233_v17 = vld [vmem:[%s3595_s0 + $0x4] sm:$0xf0]  ;;  %v2232_v20 = vld [vmem:[%s3595_s0 + $0x4] sm:$0xf]  ;;  %v1971_v25 = vor.u32 %v2283_v19, %v1970_v18 }
   0x8   :  { %v1772_v21 = vld [vmem:[%s3595_s0 + $0x8] sm:$0xf0]  ;;  %v2282_v22 = vld [vmem:[%s3595_s0 + $0x194] sm:$0xf]  ;;  %v1972_v23 = vld [vmem:[%s3595_s0 + $0x198] sm:$0xf0]  ;;  %v1771_v24 = vor.u32 %v2233_v17, %v1770_v16 }
   0x9   :  { %v1775_v26 = vor.u32 %v2232_v20, %v1772_v21  ;;  %v1975_v27 = vor.u32 %v2282_v22, %v1972_v23  ;;  %v1778_v28 = vld [vmem:[%s3595_s0 + $0x10] sm:$0xf]  ;;  %v2235_v29 = vld [vmem:[%s3595_s0 + $0x14] sm:$0xf0]  ;;  %v1978_v30 = vld [vmem:[%s3595_s0 + $0x1a0] sm:$0xf] }
   0xa   :  { %748 = vmatpush.bf16.msra.mxu0 %v2337_v4  ;;  %2649 = vmatpush.bf16.msra.mxu2 %v2337_v4  ;;  %v2285_v31 = vld [vmem:[%s3595_s0 + $0x1a4] sm:$0xf0]  ;;  %v2234_v32 = vld [vmem:[%s3595_s0 + $0x14] sm:$0xf]  ;;  %v1780_v33 = vld [vmem:[%s3595_s0 + $0x18] sm:$0xf0]  ;;  %v1779_v36 = vor.u32 %v2235_v29, %v1778_v28 }
   0xb   :  { %1007 = vmatpush.bf16.msra.mxu1 %v2345_v5  ;;  %2657 = vmatpush.bf16.msra.mxu3 %v2345_v5  ;;  %v2284_v34 = vld [vmem:[%s3595_s0 + $0x1a4] sm:$0xf]  ;;  %v1980_v35 = vld [vmem:[%s3595_s0 + $0x1a8] sm:$0xf0]  ;;  %v1979_v37 = vor.u32 %v2285_v31, %v1978_v30  ;;  %v1783_v38 = vor.u32 %v2234_v32, %v1780_v33  ;;  %v1786_v40 = vld [vmem:[%s3595_s0 + $0x20] sm:$0xf] }
   0xc   :  { %v1983_v39 = vor.u32 %v2284_v34, %v1980_v35  ;;  %v2237_v41 = vld [vmem:[%s3595_s0 + $0x24] sm:$0xf0]  ;;  %v1986_v42 = vld [vmem:[%s3595_s0 + $0x1b0] sm:$0xf]  ;;  %v2287_v43 = vld [vmem:[%s3595_s0 + $0x1b4] sm:$0xf0] }
   0xd   :  { %v2236_v44 = vld [vmem:[%s3595_s0 + $0x24] sm:$0xf]  ;;  %v1788_v45 = vld [vmem:[%s3595_s0 + $0x28] sm:$0xf0]  ;;  %v2286_v46 = vld [vmem:[%s3595_s0 + $0x1b4] sm:$0xf]  ;;  %v1787_v48 = vor.u32 %v2237_v41, %v1786_v40  ;;  %v1987_v49 = vor.u32 %v2287_v43, %v1986_v42 }
   0xe   :  { %749 = vmatpush.bf16.msra.mxu0 %v2336_v6  ;;  %2650 = vmatpush.bf16.msra.mxu2 %v2336_v6  ;;  %v1988_v47 = vld [vmem:[%s3595_s0 + $0x1b8] sm:$0xf0]  ;;  %v1791_v50 = vor.u32 %v2236_v44, %v1788_v45  ;;  %v1794_v52 = vld [vmem:[%s3595_s0 + $0x30] sm:$0xf]  ;;  %v2239_v53 = vld [vmem:[%s3595_s0 + $0x34] sm:$0xf0] }
   0xf   :  { %1008 = vmatpush.bf16.msra.mxu1 %v2344_v7  ;;  %2658 = vmatpush.bf16.msra.mxu3 %v2344_v7  ;;  %v1991_v51 = vor.u32 %v2286_v46, %v1988_v47  ;;  %v1994_v54 = vld [vmem:[%s3595_s0 + $0x1c0] sm:$0xf]  ;;  %v2289_v55 = vld [vmem:[%s3595_s0 + $0x1c4] sm:$0xf0]  ;;  %v2238_v56 = vld [vmem:[%s3595_s0 + $0x34] sm:$0xf]  ;;  %v1795_v60 = vor.u32 %v2239_v53, %v1794_v52 }
  0x10   :  { %v1796_v57 = vld [vmem:[%s3595_s0 + $0x38] sm:$0xf0]  ;;  %v2288_v58 = vld [vmem:[%s3595_s0 + $0x1c4] sm:$0xf]  ;;  %v1996_v59 = vld [vmem:[%s3595_s0 + $0x1c8] sm:$0xf0]  ;;  %v1995_v61 = vor.u32 %v2289_v55, %v1994_v54 }
  0x11   :  { %v1799_v62 = vor.u32 %v2238_v56, %v1796_v57  ;;  %v1999_v63 = vor.u32 %v2288_v58, %v1996_v59  ;;  %v1802_v0 = vld [vmem:[%s3595_s0 + $0x40] sm:$0xf]  ;;  %v2241_v1 = vld [vmem:[%s3595_s0 + $0x44] sm:$0xf0]  ;;  %v2002_v2 = vld [vmem:[%s3595_s0 + $0x1d0] sm:$0xf] }
  0x12   :  { %750 = vmatpush.bf16.msra.mxu0 %v2335_v8  ;;  %2651 = vmatpush.bf16.msra.mxu2 %v2335_v8  ;;  %v2291_v3 = vld [vmem:[%s3595_s0 + $0x1d4] sm:$0xf0]  ;;  %v2240_v4 = vld [vmem:[%s3595_s0 + $0x44] sm:$0xf]  ;;  %v1804_v5 = vld [vmem:[%s3595_s0 + $0x48] sm:$0xf0]  ;;  %v1803_v8 = vor.u32 %v2241_v1, %v1802_v0 }
  0x13   :  { %1009 = vmatpush.bf16.msra.mxu1 %v2343_v9  ;;  %2659 = vmatpush.bf16.msra.mxu3 %v2343_v9  ;;  %v2290_v6 = vld [vmem:[%s3595_s0 + $0x1d4] sm:$0xf]  ;;  %v2004_v7 = vld [vmem:[%s3595_s0 + $0x1d8] sm:$0xf0]  ;;  %v2003_v9 = vor.u32 %v2291_v3, %v2002_v2  ;;  %v2292_v18 = vld [vmem:[%s3595_s0 + $0x1e4] sm:$0xf] }
  0x14   :  { %v2242_v16 = vld [vmem:[%s3595_s0 + $0x54] sm:$0xf]  ;;  %v1812_v17 = vld [vmem:[%s3595_s0 + $0x58] sm:$0xf0]  ;;  %v2012_v19 = vld [vmem:[%s3595_s0 + $0x1e8] sm:$0xf0] }
  0x15   :  { %v1815_v22 = vor.u32 %v2242_v16, %v1812_v17  ;;  %v2015_v23 = vor.u32 %v2292_v18, %v2012_v19  ;;  %v2244_v28 = vld [vmem:[%s3595_s0 + $0x64] sm:$0xf]  ;;  %v1820_v29 = vld [vmem:[%s3595_s0 + $0x68] sm:$0xf0]  ;;  %v2294_v30 = vld [vmem:[%s3595_s0 + $0x1f4] sm:$0xf] }
  0x16   :  { %751 = vmatpush.bf16.msra.mxu0 %v2334_v10  ;;  %2652 = vmatpush.bf16.msra.mxu2 %v2334_v10  ;;  %v1807_v10 = vor.u32 %v2240_v4, %v1804_v5  ;;  %v2020_v31 = vld [vmem:[%s3595_s0 + $0x1f8] sm:$0xf0]  ;;  %v1823_v34 = vor.u32 %v2244_v28, %v1820_v29  ;;  %v2246_v40 = vld [vmem:[%s3595_s0 + $0x74] sm:$0xf]  ;;  %v2296_v42 = vld [vmem:[%s3595_s0 + $0x204] sm:$0xf] }
  0x17   :  { %1010 = vmatpush.bf16.msra.mxu1 %v2342_v11  ;;  %2660 = vmatpush.bf16.msra.mxu3 %v2342_v11  ;;  %v2007_v11 = vor.u32 %v2290_v6, %v2004_v7  ;;  %v2023_v35 = vor.u32 %v2294_v30, %v2020_v31  ;;  %v1828_v41 = vld [vmem:[%s3595_s0 + $0x78] sm:$0xf0]  ;;  %v2028_v43 = vld [vmem:[%s3595_s0 + $0x208] sm:$0xf0]  ;;  %v2248_v52 = vld [vmem:[%s3595_s0 + $0x84] sm:$0xf] }
  0x18   :  { %v1831_v46 = vor.u32 %v2246_v40, %v1828_v41  ;;  %v2031_v47 = vor.u32 %v2296_v42, %v2028_v43  ;;  %v1836_v53 = vld [vmem:[%s3595_s0 + $0x88] sm:$0xf0]  ;;  %v2298_v54 = vld [vmem:[%s3595_s0 + $0x214] sm:$0xf]  ;;  %v2036_v55 = vld [vmem:[%s3595_s0 + $0x218] sm:$0xf0] }
  0x19   :  { %v2953_v56 = vld [vmem:[%s3594_s2] ss:$0 sm:$0xff]  ;;  %v1842_v7 = vld [vmem:[%s3595_s0 + $0x90] sm:$0xf]  ;;  %v2044_v18 = vld [vmem:[%s3595_s0 + $0x228] sm:$0xf0] }
  0x1a   :  { %752 = vmatpush.bf16.msra.mxu0 %v2333_v12  ;;  %2653 = vmatpush.bf16.msra.mxu2 %v2333_v12  ;;  %v1810_v12 = vld [vmem:[%s3595_s0 + $0x50] sm:$0xf] }
  0x1b   :  { %1011 = vmatpush.bf16.msra.mxu1 %v2341_v13  ;;  %2661 = vmatpush.bf16.msra.mxu3 %v2341_v13  ;;  %v2243_v13 = vld [vmem:[%s3595_s0 + $0x54] sm:$0xf0] }
  0x1c   :  { %v1811_v20 = vor.u32 %v2243_v13, %v1810_v12  ;;  %v2301_v12 = vld [vmem:[%s3595_s0 + $0x224] sm:$0xf0]  ;;  %v2250_v13 = vld [vmem:[%s3595_s0 + $0x94] sm:$0xf] }
  0x1e   :  { %753 = vmatpush.bf16.msra.mxu0 %v2332_v14  ;;  %2654 = vmatpush.bf16.msra.mxu2 %v2332_v14  ;;  %v2010_v14 = vld [vmem:[%s3595_s0 + $0x1e0] sm:$0xf] }
  0x1f   :  { %1012 = vmatpush.bf16.msra.mxu1 %v2340_v15  ;;  %2662 = vmatpush.bf16.msra.mxu3 %v2340_v15  ;;  %v2293_v15 = vld [vmem:[%s3595_s0 + $0x1e4] sm:$0xf0] }
  0x20   :  { %v2011_v21 = vor.u32 %v2293_v15, %v2010_v14  ;;  %v1844_v14 = vld [vmem:[%s3595_s0 + $0x98] sm:$0xf0]  ;;  %v2300_v15 = vld [vmem:[%s3595_s0 + $0x224] sm:$0xf] }
  0x21   :  { %754 = vmatmul.bf16.vlgmr.msra.gmra.mxu0 %v1771_v24  ;;  %879 = vmatmul.bf16.vlgmr.msra.gmra.mxu2 %v1971_v25  ;;  %v1818_v24 = vld [vmem:[%s3595_s0 + $0x60] sm:$0xf]  ;;  %v2245_v25 = vld [vmem:[%s3595_s0 + $0x64] sm:$0xf0]  ;;  %v1847_v28 = vor.u32 %v2250_v13, %v1844_v14  ;;  %v2047_v29 = vor.u32 %v2300_v15, %v2044_v18 }
  0x22   :  { %1013 = vmatmul.bf16.vlgmr.msra.gmra.mxu1 %v1775_v26  ;;  %1138 = vmatmul.bf16.vlgmr.msra.gmra.mxu3 %v1975_v27  ;;  %v2018_v26 = vld [vmem:[%s3595_s0 + $0x1f0] sm:$0xf]  ;;  %v2295_v27 = vld [vmem:[%s3595_s0 + $0x1f4] sm:$0xf0]  ;;  %v1819_v32 = vor.u32 %v2245_v25, %v1818_v24 }
  0x23   :  { %v2019_v33 = vor.u32 %v2295_v27, %v2018_v26 }
  0x31   :  { %759 = vmatmul.bf16.gmra.mxu0 %v1779_v36  ;;  %884 = vmatmul.bf16.gmra.mxu2 %v1979_v37  ;;  %v1826_v36 = vld [vmem:[%s3595_s0 + $0x70] sm:$0xf]  ;;  %v2247_v37 = vld [vmem:[%s3595_s0 + $0x74] sm:$0xf0] }
  0x32   :  { %1018 = vmatmul.bf16.gmra.mxu1 %v1783_v38  ;;  %1143 = vmatmul.bf16.gmra.mxu3 %v1983_v39  ;;  %v2026_v38 = vld [vmem:[%s3595_s0 + $0x200] sm:$0xf]  ;;  %v2297_v39 = vld [vmem:[%s3595_s0 + $0x204] sm:$0xf0]  ;;  %v1827_v44 = vor.u32 %v2247_v37, %v1826_v36 }
  0x33   :  { %v2027_v45 = vor.u32 %v2297_v39, %v2026_v38 }
  0x41   :  { %764 = vmatmul.bf16.gmra.mxu0 %v1787_v48  ;;  %889 = vmatmul.bf16.gmra.mxu2 %v1987_v49  ;;  %v1834_v48 = vld [vmem:[%s3595_s0 + $0x80] sm:$0xf]  ;;  %v2249_v49 = vld [vmem:[%s3595_s0 + $0x84] sm:$0xf0] }
  0x42   :  { %1023 = vmatmul.bf16.gmra.mxu1 %v1791_v50  ;;  %1148 = vmatmul.bf16.gmra.mxu3 %v1991_v51  ;;  %v2034_v50 = vld [vmem:[%s3595_s0 + $0x210] sm:$0xf]  ;;  %v2299_v51 = vld [vmem:[%s3595_s0 + $0x214] sm:$0xf0]  ;;  %v1835_v57 = vor.u32 %v2249_v49, %v1834_v48 }
  0x43   :  { %v2035_v58 = vor.u32 %v2299_v51, %v2034_v50  ;;  %v2303_v50 = vld [vmem:[%s3595_s0 + $0x234] sm:$0xf0]  ;;  %v2252_v51 = vld [vmem:[%s3595_s0 + $0xa4] sm:$0xf] }
  0x51   :  { %769 = vmatmul.bf16.gmra.mxu0 %v1795_v60  ;;  %894 = vmatmul.bf16.gmra.mxu2 %v1995_v61  ;;  %v1839_v60 = vor.u32 %v2248_v52, %v1836_v53  ;;  %v2039_v61 = vor.u32 %v2298_v54, %v2036_v55  ;;  %v1852_v52 = vld [vmem:[%s3595_s0 + $0xa8] sm:$0xf0]  ;;  %v2302_v53 = vld [vmem:[%s3595_s0 + $0x234] sm:$0xf] }
  0x52   :  { %1028 = vmatmul.bf16.gmra.mxu1 %v1799_v62  ;;  %1153 = vmatmul.bf16.gmra.mxu3 %v1999_v63 }
  0x61   :  { %774 = vmatmul.bf16.gmra.mxu0 %v1803_v8  ;;  %899 = vmatmul.bf16.gmra.mxu2 %v2003_v9  ;;  %v2251_v8 = vld [vmem:[%s3595_s0 + $0x94] sm:$0xf0]  ;;  %v2042_v9 = vld [vmem:[%s3595_s0 + $0x220] sm:$0xf] }
  0x62   :  { %1033 = vmatmul.bf16.gmra.mxu1 %v1807_v10  ;;  %1158 = vmatmul.bf16.gmra.mxu3 %v2007_v11  ;;  %v2043_v25 = vor.u32 %v2301_v12, %v2042_v9 }
  0x71   :  { %779 = vmatmul.bf16.gmra.mxu0 %v1811_v20  ;;  %904 = vmatmul.bf16.gmra.mxu2 %v2011_v21  ;;  %v1843_v20 = vor.u32 %v2251_v8, %v1842_v7 }
  0x72   :  { %1038 = vmatmul.bf16.gmra.mxu1 %v1815_v22  ;;  %1163 = vmatmul.bf16.gmra.mxu3 %v2015_v23 }
  0x81   :  { %784 = vmatmul.bf16.gmra.mxu0 %v1819_v32  ;;  %909 = vmatmul.bf16.gmra.mxu2 %v2019_v33 }
  0x82   :  { %1043 = vmatmul.bf16.gmra.mxu1 %v1823_v34  ;;  %1168 = vmatmul.bf16.gmra.mxu3 %v2023_v35 }
  0x91   :  { %789 = vmatmul.bf16.gmra.mxu0 %v1827_v44  ;;  %914 = vmatmul.bf16.gmra.mxu2 %v2027_v45  ;;  %v1850_v45 = vld [vmem:[%s3595_s0 + $0xa0] sm:$0xf] }
  0x92   :  { %1048 = vmatmul.bf16.gmra.mxu1 %v1831_v46  ;;  %1173 = vmatmul.bf16.gmra.mxu3 %v2031_v47  ;;  %v2253_v46 = vld [vmem:[%s3595_s0 + $0xa4] sm:$0xf0]  ;;  %v2050_v47 = vld [vmem:[%s3595_s0 + $0x230] sm:$0xf] }
  0x9e   :  { %v755_v59 = vpop.f32.mrf.mxu0 }
  0x9f   :  { %v1014_v62 = vpop.f32.mrf.mxu1  ;;  %v756_v63 = vadd.f32 %v2953_v56, %v755_v59  ;;  %v1851_v59 = vor.u32 %v2253_v46, %v1850_v45 }
  0xa1   :  { %794 = vmatmul.bf16.gmra.mxu0 %v1835_v57  ;;  %919 = vmatmul.bf16.gmra.mxu2 %v2035_v58  ;;  %v1015_v1 = vadd.f32 %v1014_v62, %v756_v63  ;;  %v2052_v57 = vld [vmem:[%s3595_s0 + $0x238] sm:$0xf0] }
  0xa2   :  { %1053 = vmatmul.bf16.gmra.mxu1 %v1839_v60  ;;  %1178 = vmatmul.bf16.gmra.mxu3 %v2039_v61 }
  0xa3   :  { %v1364_v10 = vmul.f32 0.01, %v1015_v1  ;;  %vm1264_vm0 = vcmp.gt.f32.partialorder %v1015_v1, 0.0 }
  0xa4   :  { %v880_v0 = vpop.f32.mrf.mxu2 }
  0xa5   :  { %v1139_v2 = vpop.f32.mrf.mxu3  ;;  %v881_v4 = vadd.f32 %v2953_v56, %v880_v0  ;;  %v1464_v21 = vsel %vm1264_vm0, %v1015_v1, %v1364_v10  ;;  %v2051_v0 = vor.u32 %v2303_v50, %v2050_v47 }
  0xa6   :  { %v757_v3 = vpop.f32.mrf.mxu0 }
  0xa7   :  { %v758_v5 = vadd.f32 %v2953_v56, %v757_v3  ;;  %v1016_v6 = vpop.f32.mrf.mxu1  ;;  %v1140_v16 = vadd.f32 %v1139_v2, %v881_v4  ;;  %v1855_v3 = vor.u32 %v2252_v51, %v1852_v52  ;;  %v2055_v4 = vor.u32 %v2302_v53, %v2052_v57 }
  0xa9   :  { %v1017_v11 = vadd.f32 %v1016_v6, %v758_v5  ;;  %v1414_v30 = vmul.f32 0.01, %v1140_v16  ;;  %vm1314_vm2 = vcmp.gt.f32.partialorder %v1140_v16, 0.0 }
  0xab   :  { %vm1265_vm1 = vcmp.gt.f32.partialorder %v1017_v11, 0.0  ;;  %v1365_v17 = vmul.f32 0.01, %v1017_v11  ;;  %v1514_v35 = vsel %vm1314_vm2, %v1140_v16, %v1414_v30 }
  0xac   :  { %v882_v19 = vpop.f32.mrf.mxu2 }
  0xad   :  { %v1465_v22 = vsel %vm1265_vm1, %v1017_v11, %v1365_v17  ;;  %v883_v23 = vadd.f32 %v2953_v56, %v882_v19  ;;  %v1141_v24 = vpop.f32.mrf.mxu3 }
  0xae   :  { %v2351_v26 = vpack.c.bf16 %v1465_v22, %v1464_v21  ;;  %v760_v27 = vpop.f32.mrf.mxu0  ;;  %v2255_v21 = vld [vmem:[%s3595_s0 + $0xb4] sm:$0xf0]  ;;  %v2058_v22 = vld [vmem:[%s3595_s0 + $0x240] sm:$0xf] }
  0xaf   :  { %v1142_v31 = vadd.f32 %v1141_v24, %v883_v23  ;;  %v1019_v32 = vpop.f32.mrf.mxu1  ;;  %v761_v34 = vadd.f32 %v2953_v56, %v760_v27  ;;  %v1860_v27 = vld [vmem:[%s3595_s0 + $0xb8] sm:$0xf0] }
  0xb0   :  { %2352 = vst [vmem:[%s3596_s3] sm:$0xff] %v2351_v26   ;;  %v2254_v26 = vld [vmem:[%s3595_s0 + $0xb4] sm:$0xf] }
  0xb1   :  { %vm1315_vm3 = vcmp.gt.f32.partialorder %v1142_v31, 0.0  ;;  %v1415_v33 = vmul.f32 0.01, %v1142_v31  ;;  %799 = vmatmul.bf16.gmra.mxu0 %v1843_v20  ;;  %924 = vmatmul.bf16.gmra.mxu2 %v2043_v25  ;;  %v1020_v39 = vadd.f32 %v1019_v32, %v761_v34  ;;  %v1858_v20 = vld [vmem:[%s3595_s0 + $0xb0] sm:$0xf] }
  0xb2   :  { %1058 = vmatmul.bf16.gmra.mxu1 %v1847_v28  ;;  %1183 = vmatmul.bf16.gmra.mxu3 %v2047_v29  ;;  %v2305_v25 = vld [vmem:[%s3595_s0 + $0x244] sm:$0xf0]  ;;  %v2304_v28 = vld [vmem:[%s3595_s0 + $0x244] sm:$0xf] }
  0xb3   :  { %v1515_v36 = vsel %vm1315_vm3, %v1142_v31, %v1415_v33  ;;  %v1366_v48 = vmul.f32 0.01, %v1020_v39  ;;  %vm1266_vm4 = vcmp.gt.f32.partialorder %v1020_v39, 0.0  ;;  %v2060_v31 = vld [vmem:[%s3595_s0 + $0x248] sm:$0xf0]  ;;  %v1859_v33 = vor.u32 %v2255_v21, %v1858_v20 }
  0xb4   :  { %v2476_v37 = vpack.c.bf16 %v1515_v36, %v1514_v35  ;;  %v885_v38 = vpop.f32.mrf.mxu2 }
  0xb5   :  { %v1144_v40 = vpop.f32.mrf.mxu3  ;;  %v886_v42 = vadd.f32 %v2953_v56, %v885_v38  ;;  %v1466_v60 = vsel %vm1266_vm4, %v1020_v39, %v1366_v48  ;;  %v2059_v38 = vor.u32 %v2305_v25, %v2058_v22 }
  0xb6   :  { %2622 = vst [vmem:[%s3596_s3 + $0xc8] sm:$0xff] %v2476_v37   ;;  %v762_v41 = vpop.f32.mrf.mxu0 }
  0xb7   :  { %v763_v43 = vadd.f32 %v2953_v56, %v762_v41  ;;  %v1021_v44 = vpop.f32.mrf.mxu1  ;;  %v1145_v54 = vadd.f32 %v1144_v40, %v886_v42  ;;  %v1863_v41 = vor.u32 %v2254_v26, %v1860_v27  ;;  %v2063_v42 = vor.u32 %v2304_v28, %v2060_v31 }
  0xb9   :  { %v1022_v49 = vadd.f32 %v1021_v44, %v763_v43  ;;  %v1416_v5 = vmul.f32 0.01, %v1145_v54  ;;  %vm1316_vm6 = vcmp.gt.f32.partialorder %v1145_v54, 0.0 }
  0xbb   :  { %vm1267_vm5 = vcmp.gt.f32.partialorder %v1022_v49, 0.0  ;;  %v1367_v55 = vmul.f32 0.01, %v1022_v49  ;;  %v1516_v10 = vsel %vm1316_vm6, %v1145_v54, %v1416_v5 }
  0xbc   :  { %v887_v58 = vpop.f32.mrf.mxu2 }
  0xbd   :  { %v1467_v61 = vsel %vm1267_vm5, %v1022_v49, %v1367_v55  ;;  %v888_v62 = vadd.f32 %v2953_v56, %v887_v58  ;;  %v1146_v63 = vpop.f32.mrf.mxu3 }
  0xbe   :  { %v2356_v1 = vpack.c.bf16 %v1467_v61, %v1466_v60  ;;  %v765_v2 = vpop.f32.mrf.mxu0  ;;  %v2257_v60 = vld [vmem:[%s3595_s0 + $0xc4] sm:$0xf0]  ;;  %v2066_v61 = vld [vmem:[%s3595_s0 + $0x250] sm:$0xf] }
  0xbf   :  { %v1147_v6 = vadd.f32 %v1146_v63, %v888_v62  ;;  %v1024_v7 = vpop.f32.mrf.mxu1  ;;  %v766_v9 = vadd.f32 %v2953_v56, %v765_v2  ;;  %v1868_v2 = vld [vmem:[%s3595_s0 + $0xc8] sm:$0xf0] }
  0xc0   :  { %2598 = vst [vmem:[%s3596_s3 + $0x8] sm:$0xff] %v2356_v1   ;;  %v2256_v1 = vld [vmem:[%s3595_s0 + $0xc4] sm:$0xf] }
  0xc1   :  { %vm1317_vm7 = vcmp.gt.f32.partialorder %v1147_v6, 0.0  ;;  %v1417_v8 = vmul.f32 0.01, %v1147_v6  ;;  %804 = vmatmul.bf16.gmra.mxu0 %v1851_v59  ;;  %929 = vmatmul.bf16.gmra.mxu2 %v2051_v0  ;;  %v1025_v14 = vadd.f32 %v1024_v7, %v766_v9  ;;  %v1866_v59 = vld [vmem:[%s3595_s0 + $0xc0] sm:$0xf] }
  0xc2   :  { %1063 = vmatmul.bf16.gmra.mxu1 %v1855_v3  ;;  %1188 = vmatmul.bf16.gmra.mxu3 %v2055_v4  ;;  %v2307_v0 = vld [vmem:[%s3595_s0 + $0x254] sm:$0xf0]  ;;  %v2306_v3 = vld [vmem:[%s3595_s0 + $0x254] sm:$0xf] }
  0xc3   :  { %v1517_v11 = vsel %vm1317_vm7, %v1147_v6, %v1417_v8  ;;  %v1368_v23 = vmul.f32 0.01, %v1025_v14  ;;  %vm1268_vm8 = vcmp.gt.f32.partialorder %v1025_v14, 0.0  ;;  %v2068_v6 = vld [vmem:[%s3595_s0 + $0x258] sm:$0xf0]  ;;  %v1867_v8 = vor.u32 %v2257_v60, %v1866_v59 }
  0xc4   :  { %v2481_v12 = vpack.c.bf16 %v1517_v11, %v1516_v10  ;;  %v890_v13 = vpop.f32.mrf.mxu2 }
  0xc5   :  { %v1149_v15 = vpop.f32.mrf.mxu3  ;;  %v891_v17 = vadd.f32 %v2953_v56, %v890_v13  ;;  %v1468_v34 = vsel %vm1268_vm8, %v1025_v14, %v1368_v23  ;;  %v2067_v13 = vor.u32 %v2307_v0, %v2066_v61 }
  0xc6   :  { %2623 = vst [vmem:[%s3596_s3 + $0xd0] sm:$0xff] %v2481_v12   ;;  %v767_v16 = vpop.f32.mrf.mxu0 }
  0xc7   :  { %v768_v18 = vadd.f32 %v2953_v56, %v767_v16  ;;  %v1026_v19 = vpop.f32.mrf.mxu1  ;;  %v1150_v29 = vadd.f32 %v1149_v15, %v891_v17  ;;  %v1871_v16 = vor.u32 %v2256_v1, %v1868_v2  ;;  %v2071_v17 = vor.u32 %v2306_v3, %v2068_v6 }
  0xc9   :  { %v1027_v24 = vadd.f32 %v1026_v19, %v768_v18  ;;  %v1418_v43 = vmul.f32 0.01, %v1150_v29  ;;  %vm1318_vm10 = vcmp.gt.f32.partialorder %v1150_v29, 0.0 }
  0xcb   :  { %vm1269_vm9 = vcmp.gt.f32.partialorder %v1027_v24, 0.0  ;;  %v1369_v30 = vmul.f32 0.01, %v1027_v24  ;;  %v1518_v48 = vsel %vm1318_vm10, %v1150_v29, %v1418_v43 }
  0xcc   :  { %v892_v32 = vpop.f32.mrf.mxu2 }
  0xcd   :  { %v1469_v35 = vsel %vm1269_vm9, %v1027_v24, %v1369_v30  ;;  %v893_v36 = vadd.f32 %v2953_v56, %v892_v32  ;;  %v1151_v37 = vpop.f32.mrf.mxu3 }
  0xce   :  { %v2361_v39 = vpack.c.bf16 %v1469_v35, %v1468_v34  ;;  %v770_v40 = vpop.f32.mrf.mxu0  ;;  %v2259_v34 = vld [vmem:[%s3595_s0 + $0xd4] sm:$0xf0]  ;;  %v2074_v35 = vld [vmem:[%s3595_s0 + $0x260] sm:$0xf] }
  0xcf   :  { %v1152_v44 = vadd.f32 %v1151_v37, %v893_v36  ;;  %v1029_v45 = vpop.f32.mrf.mxu1  ;;  %v771_v47 = vadd.f32 %v2953_v56, %v770_v40  ;;  %v1876_v40 = vld [vmem:[%s3595_s0 + $0xd8] sm:$0xf0] }
  0xd0   :  { %2599 = vst [vmem:[%s3596_s3 + $0x10] sm:$0xff] %v2361_v39   ;;  %v2258_v39 = vld [vmem:[%s3595_s0 + $0xd4] sm:$0xf] }
  0xd1   :  { %vm1319_vm11 = vcmp.gt.f32.partialorder %v1152_v44, 0.0  ;;  %v1419_v46 = vmul.f32 0.01, %v1152_v44  ;;  %809 = vmatmul.bf16.gmra.mxu0 %v1859_v33  ;;  %934 = vmatmul.bf16.gmra.mxu2 %v2059_v38  ;;  %v1030_v52 = vadd.f32 %v1029_v45, %v771_v47  ;;  %v1874_v33 = vld [vmem:[%s3595_s0 + $0xd0] sm:$0xf] }
  0xd2   :  { %1068 = vmatmul.bf16.gmra.mxu1 %v1863_v41  ;;  %1193 = vmatmul.bf16.gmra.mxu3 %v2063_v42  ;;  %v2309_v38 = vld [vmem:[%s3595_s0 + $0x264] sm:$0xf0]  ;;  %v2308_v41 = vld [vmem:[%s3595_s0 + $0x264] sm:$0xf] }
  0xd3   :  { %v1519_v49 = vsel %vm1319_vm11, %v1152_v44, %v1419_v46  ;;  %v1370_v62 = vmul.f32 0.01, %v1030_v52  ;;  %vm1270_vm12 = vcmp.gt.f32.partialorder %v1030_v52, 0.0  ;;  %v2076_v44 = vld [vmem:[%s3595_s0 + $0x268] sm:$0xf0]  ;;  %v1875_v46 = vor.u32 %v2259_v34, %v1874_v33 }
  0xd4   :  { %v2486_v50 = vpack.c.bf16 %v1519_v49, %v1518_v48  ;;  %v895_v51 = vpop.f32.mrf.mxu2 }
  0xd5   :  { %v1154_v53 = vpop.f32.mrf.mxu3  ;;  %v896_v55 = vadd.f32 %v2953_v56, %v895_v51  ;;  %v1470_v9 = vsel %vm1270_vm12, %v1030_v52, %v1370_v62  ;;  %v2075_v51 = vor.u32 %v2309_v38, %v2074_v35 }
  0xd6   :  { %2624 = vst [vmem:[%s3596_s3 + $0xd8] sm:$0xff] %v2486_v50   ;;  %v772_v54 = vpop.f32.mrf.mxu0 }
  0xd7   :  { %v773_v57 = vadd.f32 %v2953_v56, %v772_v54  ;;  %v1031_v58 = vpop.f32.mrf.mxu1  ;;  %v1155_v4 = vadd.f32 %v1154_v53, %v896_v55  ;;  %v1879_v54 = vor.u32 %v2258_v39, %v1876_v40  ;;  %v2079_v55 = vor.u32 %v2308_v41, %v2076_v44 }
  0xd9   :  { %v1032_v63 = vadd.f32 %v1031_v58, %v773_v57  ;;  %v1420_v18 = vmul.f32 0.01, %v1155_v4  ;;  %vm1320_vm14 = vcmp.gt.f32.partialorder %v1155_v4, 0.0 }
  0xdb   :  { %vm1271_vm13 = vcmp.gt.f32.partialorder %v1032_v63, 0.0  ;;  %v1371_v5 = vmul.f32 0.01, %v1032_v63  ;;  %v1520_v23 = vsel %vm1320_vm14, %v1155_v4, %v1420_v18 }
  0xdc   :  { %v897_v7 = vpop.f32.mrf.mxu2 }
  0xdd   :  { %v1471_v10 = vsel %vm1271_vm13, %v1032_v63, %v1371_v5  ;;  %v898_v11 = vadd.f32 %v2953_v56, %v897_v7  ;;  %v1156_v12 = vpop.f32.mrf.mxu3 }
  0xde   :  { %v2366_v14 = vpack.c.bf16 %v1471_v10, %v1470_v9  ;;  %v775_v15 = vpop.f32.mrf.mxu0  ;;  %v2261_v9 = vld [vmem:[%s3595_s0 + $0xe4] sm:$0xf0]  ;;  %v2082_v10 = vld [vmem:[%s3595_s0 + $0x270] sm:$0xf] }
  0xdf   :  { %v1157_v19 = vadd.f32 %v1156_v12, %v898_v11  ;;  %v1034_v20 = vpop.f32.mrf.mxu1  ;;  %v776_v22 = vadd.f32 %v2953_v56, %v775_v15  ;;  %v1884_v15 = vld [vmem:[%s3595_s0 + $0xe8] sm:$0xf0] }
  0xe0   :  { %2600 = vst [vmem:[%s3596_s3 + $0x18] sm:$0xff] %v2366_v14   ;;  %v2260_v14 = vld [vmem:[%s3595_s0 + $0xe4] sm:$0xf] }
  0xe1   :  { %vm1321_vm15 = vcmp.gt.f32.partialorder %v1157_v19, 0.0  ;;  %v1421_v21 = vmul.f32 0.01, %v1157_v19  ;;  %814 = vmatmul.bf16.gmra.mxu0 %v1867_v8  ;;  %939 = vmatmul.bf16.gmra.mxu2 %v2067_v13  ;;  %v1035_v27 = vadd.f32 %v1034_v20, %v776_v22  ;;  %v1882_v8 = vld [vmem:[%s3595_s0 + $0xe0] sm:$0xf] }
  0xe2   :  { %1073 = vmatmul.bf16.gmra.mxu1 %v1871_v16  ;;  %1198 = vmatmul.bf16.gmra.mxu3 %v2071_v17  ;;  %v2311_v13 = vld [vmem:[%s3595_s0 + $0x274] sm:$0xf0]  ;;  %v2310_v16 = vld [vmem:[%s3595_s0 + $0x274] sm:$0xf] }
  0xe3   :  { %v1521_v24 = vsel %vm1321_vm15, %v1157_v19, %v1421_v21  ;;  %v1372_v36 = vmul.f32 0.01, %v1035_v27  ;;  %vm1272_vm0 = vcmp.gt.f32.partialorder %v1035_v27, 0.0  ;;  %v2084_v19 = vld [vmem:[%s3595_s0 + $0x278] sm:$0xf0]  ;;  %v1883_v21 = vor.u32 %v2261_v9, %v1882_v8 }
  0xe4   :  { %v2491_v25 = vpack.c.bf16 %v1521_v24, %v1520_v23  ;;  %v900_v26 = vpop.f32.mrf.mxu2 }
  0xe5   :  { %v1159_v28 = vpop.f32.mrf.mxu3  ;;  %v901_v30 = vadd.f32 %v2953_v56, %v900_v26  ;;  %v1472_v47 = vsel %vm1272_vm0, %v1035_v27, %v1372_v36  ;;  %v2083_v26 = vor.u32 %v2311_v13, %v2082_v10 }
  0xe6   :  { %2625 = vst [vmem:[%s3596_s3 + $0xe0] sm:$0xff] %v2491_v25   ;;  %v777_v29 = vpop.f32.mrf.mxu0 }
  0xe7   :  { %v778_v31 = vadd.f32 %v2953_v56, %v777_v29  ;;  %v1036_v32 = vpop.f32.mrf.mxu1  ;;  %v1160_v42 = vadd.f32 %v1159_v28, %v901_v30  ;;  %v1887_v29 = vor.u32 %v2260_v14, %v1884_v15  ;;  %v2087_v30 = vor.u32 %v2310_v16, %v2084_v19 }
  0xe9   :  { %v1037_v37 = vadd.f32 %v1036_v32, %v778_v31  ;;  %v1422_v57 = vmul.f32 0.01, %v1160_v42  ;;  %vm1322_vm2 = vcmp.gt.f32.partialorder %v1160_v42, 0.0 }
  0xeb   :  { %vm1273_vm1 = vcmp.gt.f32.partialorder %v1037_v37, 0.0  ;;  %v1373_v43 = vmul.f32 0.01, %v1037_v37  ;;  %v1522_v62 = vsel %vm1322_vm2, %v1160_v42, %v1422_v57 }
  0xec   :  { %v902_v45 = vpop.f32.mrf.mxu2 }
  0xed   :  { %v1473_v48 = vsel %vm1273_vm1, %v1037_v37, %v1373_v43  ;;  %v903_v49 = vadd.f32 %v2953_v56, %v902_v45  ;;  %v1161_v50 = vpop.f32.mrf.mxu3 }
  0xee   :  { %v2371_v52 = vpack.c.bf16 %v1473_v48, %v1472_v47  ;;  %v780_v53 = vpop.f32.mrf.mxu0  ;;  %v2263_v47 = vld [vmem:[%s3595_s0 + $0xf4] sm:$0xf0]  ;;  %v2090_v48 = vld [vmem:[%s3595_s0 + $0x280] sm:$0xf] }
  0xef   :  { %v1162_v58 = vadd.f32 %v1161_v50, %v903_v49  ;;  %v1039_v59 = vpop.f32.mrf.mxu1  ;;  %v781_v61 = vadd.f32 %v2953_v56, %v780_v53  ;;  %v1892_v53 = vld [vmem:[%s3595_s0 + $0xf8] sm:$0xf0] }
  0xf0   :  { %2601 = vst [vmem:[%s3596_s3 + $0x20] sm:$0xff] %v2371_v52   ;;  %v2262_v52 = vld [vmem:[%s3595_s0 + $0xf4] sm:$0xf] }
  0xf1   :  { %vm1323_vm3 = vcmp.gt.f32.partialorder %v1162_v58, 0.0  ;;  %v1423_v60 = vmul.f32 0.01, %v1162_v58  ;;  %819 = vmatmul.bf16.gmra.mxu0 %v1875_v46  ;;  %944 = vmatmul.bf16.gmra.mxu2 %v2075_v51  ;;  %v1040_v2 = vadd.f32 %v1039_v59, %v781_v61  ;;  %v1890_v46 = vld [vmem:[%s3595_s0 + $0xf0] sm:$0xf] }
  0xf2   :  { %1078 = vmatmul.bf16.gmra.mxu1 %v1879_v54  ;;  %1203 = vmatmul.bf16.gmra.mxu3 %v2079_v55  ;;  %v2313_v51 = vld [vmem:[%s3595_s0 + $0x284] sm:$0xf0]  ;;  %v2312_v54 = vld [vmem:[%s3595_s0 + $0x284] sm:$0xf] }
  0xf3   :  { %v1523_v63 = vsel %vm1323_vm3, %v1162_v58, %v1423_v60  ;;  %v1374_v11 = vmul.f32 0.01, %v1040_v2  ;;  %vm1274_vm4 = vcmp.gt.f32.partialorder %v1040_v2, 0.0  ;;  %v2092_v58 = vld [vmem:[%s3595_s0 + $0x288] sm:$0xf0]  ;;  %v1891_v60 = vor.u32 %v2263_v47, %v1890_v46 }
  0xf4   :  { %v2496_v0 = vpack.c.bf16 %v1523_v63, %v1522_v62  ;;  %v905_v1 = vpop.f32.mrf.mxu2 }
  0xf5   :  { %v1164_v3 = vpop.f32.mrf.mxu3  ;;  %v906_v5 = vadd.f32 %v2953_v56, %v905_v1  ;;  %v1474_v22 = vsel %vm1274_vm4, %v1040_v2, %v1374_v11  ;;  %v2091_v1 = vor.u32 %v2313_v51, %v2090_v48 }
  0xf6   :  { %2626 = vst [vmem:[%s3596_s3 + $0xe8] sm:$0xff] %v2496_v0   ;;  %v782_v4 = vpop.f32.mrf.mxu0 }
  0xf7   :  { %v783_v6 = vadd.f32 %v2953_v56, %v782_v4  ;;  %v1041_v7 = vpop.f32.mrf.mxu1  ;;  %v1165_v17 = vadd.f32 %v1164_v3, %v906_v5  ;;  %v1895_v4 = vor.u32 %v2262_v52, %v1892_v53  ;;  %v2095_v5 = vor.u32 %v2312_v54, %v2092_v58 }
  0xf9   :  { %v1042_v12 = vadd.f32 %v1041_v7, %v783_v6  ;;  %v1424_v31 = vmul.f32 0.01, %v1165_v17  ;;  %vm1324_vm6 = vcmp.gt.f32.partialorder %v1165_v17, 0.0 }
  0xfb   :  { %vm1275_vm5 = vcmp.gt.f32.partialorder %v1042_v12, 0.0  ;;  %v1375_v18 = vmul.f32 0.01, %v1042_v12  ;;  %v1524_v36 = vsel %vm1324_vm6, %v1165_v17, %v1424_v31 }
  0xfc   :  { %v907_v20 = vpop.f32.mrf.mxu2 }
  0xfd   :  { %v1475_v23 = vsel %vm1275_vm5, %v1042_v12, %v1375_v18  ;;  %v908_v24 = vadd.f32 %v2953_v56, %v907_v20  ;;  %v1166_v25 = vpop.f32.mrf.mxu3 }
  0xfe   :  { %v2376_v27 = vpack.c.bf16 %v1475_v23, %v1474_v22  ;;  %v785_v28 = vpop.f32.mrf.mxu0  ;;  %v2265_v22 = vld [vmem:[%s3595_s0 + $0x104] sm:$0xf0]  ;;  %v2098_v23 = vld [vmem:[%s3595_s0 + $0x290] sm:$0xf] }
  0xff   :  { %v1167_v32 = vadd.f32 %v1166_v25, %v908_v24  ;;  %v1044_v33 = vpop.f32.mrf.mxu1  ;;  %v786_v35 = vadd.f32 %v2953_v56, %v785_v28  ;;  %v1900_v28 = vld [vmem:[%s3595_s0 + $0x108] sm:$0xf0] }
 0x100   :  { %2602 = vst [vmem:[%s3596_s3 + $0x28] sm:$0xff] %v2376_v27   ;;  %v2264_v27 = vld [vmem:[%s3595_s0 + $0x104] sm:$0xf] }
 0x101   :  { %vm1325_vm7 = vcmp.gt.f32.partialorder %v1167_v32, 0.0  ;;  %v1425_v34 = vmul.f32 0.01, %v1167_v32  ;;  %824 = vmatmul.bf16.gmra.mxu0 %v1883_v21  ;;  %949 = vmatmul.bf16.gmra.mxu2 %v2083_v26  ;;  %v1045_v40 = vadd.f32 %v1044_v33, %v786_v35  ;;  %v1898_v21 = vld [vmem:[%s3595_s0 + $0x100] sm:$0xf] }
 0x102   :  { %1083 = vmatmul.bf16.gmra.mxu1 %v1887_v29  ;;  %1208 = vmatmul.bf16.gmra.mxu3 %v2087_v30  ;;  %v2315_v26 = vld [vmem:[%s3595_s0 + $0x294] sm:$0xf0]  ;;  %v2314_v29 = vld [vmem:[%s3595_s0 + $0x294] sm:$0xf] }
 0x103   :  { %v1525_v37 = vsel %vm1325_vm7, %v1167_v32, %v1425_v34  ;;  %v1376_v49 = vmul.f32 0.01, %v1045_v40  ;;  %vm1276_vm8 = vcmp.gt.f32.partialorder %v1045_v40, 0.0  ;;  %v2100_v32 = vld [vmem:[%s3595_s0 + $0x298] sm:$0xf0]  ;;  %v1899_v34 = vor.u32 %v2265_v22, %v1898_v21 }
 0x104   :  { %v2501_v38 = vpack.c.bf16 %v1525_v37, %v1524_v36  ;;  %v910_v39 = vpop.f32.mrf.mxu2 }
 0x105   :  { %v1169_v41 = vpop.f32.mrf.mxu3  ;;  %v911_v43 = vadd.f32 %v2953_v56, %v910_v39  ;;  %v1476_v61 = vsel %vm1276_vm8, %v1045_v40, %v1376_v49  ;;  %v2099_v39 = vor.u32 %v2315_v26, %v2098_v23 }
 0x106   :  { %2627 = vst [vmem:[%s3596_s3 + $0xf0] sm:$0xff] %v2501_v38   ;;  %v787_v42 = vpop.f32.mrf.mxu0 }
 0x107   :  { %v788_v44 = vadd.f32 %v2953_v56, %v787_v42  ;;  %v1046_v45 = vpop.f32.mrf.mxu1  ;;  %v1170_v55 = vadd.f32 %v1169_v41, %v911_v43  ;;  %v1903_v42 = vor.u32 %v2264_v27, %v1900_v28  ;;  %v2103_v43 = vor.u32 %v2314_v29, %v2100_v32 }
 0x109   :  { %v1047_v50 = vadd.f32 %v1046_v45, %v788_v44  ;;  %v1426_v6 = vmul.f32 0.01, %v1170_v55  ;;  %vm1326_vm10 = vcmp.gt.f32.partialorder %v1170_v55, 0.0 }
 0x10b   :  { %vm1277_vm9 = vcmp.gt.f32.partialorder %v1047_v50, 0.0  ;;  %v1377_v57 = vmul.f32 0.01, %v1047_v50  ;;  %v1526_v11 = vsel %vm1326_vm10, %v1170_v55, %v1426_v6 }
 0x10c   :  { %v912_v59 = vpop.f32.mrf.mxu2 }
 0x10d   :  { %v1477_v62 = vsel %vm1277_vm9, %v1047_v50, %v1377_v57  ;;  %v913_v63 = vadd.f32 %v2953_v56, %v912_v59  ;;  %v1171_v0 = vpop.f32.mrf.mxu3 }
 0x10e   :  { %v2381_v2 = vpack.c.bf16 %v1477_v62, %v1476_v61  ;;  %v790_v3 = vpop.f32.mrf.mxu0  ;;  %v2267_v61 = vld [vmem:[%s3595_s0 + $0x114] sm:$0xf0]  ;;  %v2106_v62 = vld [vmem:[%s3595_s0 + $0x2a0] sm:$0xf] }
 0x10f   :  { %v1172_v7 = vadd.f32 %v1171_v0, %v913_v63  ;;  %v1049_v8 = vpop.f32.mrf.mxu1  ;;  %v791_v10 = vadd.f32 %v2953_v56, %v790_v3  ;;  %v1908_v3 = vld [vmem:[%s3595_s0 + $0x118] sm:$0xf0] }
 0x110   :  { %2603 = vst [vmem:[%s3596_s3 + $0x30] sm:$0xff] %v2381_v2   ;;  %v2266_v2 = vld [vmem:[%s3595_s0 + $0x114] sm:$0xf] }
 0x111   :  { %vm1327_vm11 = vcmp.gt.f32.partialorder %v1172_v7, 0.0  ;;  %v1427_v9 = vmul.f32 0.01, %v1172_v7  ;;  %829 = vmatmul.bf16.gmra.mxu0 %v1891_v60  ;;  %954 = vmatmul.bf16.gmra.mxu2 %v2091_v1  ;;  %v1050_v15 = vadd.f32 %v1049_v8, %v791_v10  ;;  %v1906_v60 = vld [vmem:[%s3595_s0 + $0x110] sm:$0xf] }
 0x112   :  { %1088 = vmatmul.bf16.gmra.mxu1 %v1895_v4  ;;  %1213 = vmatmul.bf16.gmra.mxu3 %v2095_v5  ;;  %v2317_v1 = vld [vmem:[%s3595_s0 + $0x2a4] sm:$0xf0]  ;;  %v2316_v4 = vld [vmem:[%s3595_s0 + $0x2a4] sm:$0xf] }
 0x113   :  { %v1527_v12 = vsel %vm1327_vm11, %v1172_v7, %v1427_v9  ;;  %v1378_v24 = vmul.f32 0.01, %v1050_v15  ;;  %vm1278_vm12 = vcmp.gt.f32.partialorder %v1050_v15, 0.0  ;;  %v2108_v7 = vld [vmem:[%s3595_s0 + $0x2a8] sm:$0xf0]  ;;  %v1907_v9 = vor.u32 %v2267_v61, %v1906_v60 }
 0x114   :  { %v2506_v13 = vpack.c.bf16 %v1527_v12, %v1526_v11  ;;  %v915_v14 = vpop.f32.mrf.mxu2 }
 0x115   :  { %v1174_v16 = vpop.f32.mrf.mxu3  ;;  %v916_v18 = vadd.f32 %v2953_v56, %v915_v14  ;;  %v1478_v35 = vsel %vm1278_vm12, %v1050_v15, %v1378_v24  ;;  %v2107_v14 = vor.u32 %v2317_v1, %v2106_v62 }
 0x116   :  { %2628 = vst [vmem:[%s3596_s3 + $0xf8] sm:$0xff] %v2506_v13   ;;  %v792_v17 = vpop.f32.mrf.mxu0 }
 0x117   :  { %v793_v19 = vadd.f32 %v2953_v56, %v792_v17  ;;  %v1051_v20 = vpop.f32.mrf.mxu1  ;;  %v1175_v30 = vadd.f32 %v1174_v16, %v916_v18  ;;  %v1911_v17 = vor.u32 %v2266_v2, %v1908_v3  ;;  %v2111_v18 = vor.u32 %v2316_v4, %v2108_v7 }
 0x119   :  { %v1052_v25 = vadd.f32 %v1051_v20, %v793_v19  ;;  %v1428_v44 = vmul.f32 0.01, %v1175_v30  ;;  %vm1328_vm14 = vcmp.gt.f32.partialorder %v1175_v30, 0.0 }
 0x11b   :  { %vm1279_vm13 = vcmp.gt.f32.partialorder %v1052_v25, 0.0  ;;  %v1379_v31 = vmul.f32 0.01, %v1052_v25  ;;  %v1528_v49 = vsel %vm1328_vm14, %v1175_v30, %v1428_v44 }
 0x11c   :  { %v917_v33 = vpop.f32.mrf.mxu2 }
 0x11d   :  { %v1479_v36 = vsel %vm1279_vm13, %v1052_v25, %v1379_v31  ;;  %v918_v37 = vadd.f32 %v2953_v56, %v917_v33  ;;  %v1176_v38 = vpop.f32.mrf.mxu3 }
 0x11e   :  { %v2386_v40 = vpack.c.bf16 %v1479_v36, %v1478_v35  ;;  %v795_v41 = vpop.f32.mrf.mxu0  ;;  %v2269_v35 = vld [vmem:[%s3595_s0 + $0x124] sm:$0xf0]  ;;  %v2114_v36 = vld [vmem:[%s3595_s0 + $0x2b0] sm:$0xf] }
 0x11f   :  { %v1177_v45 = vadd.f32 %v1176_v38, %v918_v37  ;;  %v1054_v46 = vpop.f32.mrf.mxu1  ;;  %v796_v48 = vadd.f32 %v2953_v56, %v795_v41  ;;  %v1916_v41 = vld [vmem:[%s3595_s0 + $0x128] sm:$0xf0] }
 0x120   :  { %2604 = vst [vmem:[%s3596_s3 + $0x38] sm:$0xff] %v2386_v40   ;;  %v2268_v40 = vld [vmem:[%s3595_s0 + $0x124] sm:$0xf] }
 0x121   :  { %vm1329_vm15 = vcmp.gt.f32.partialorder %v1177_v45, 0.0  ;;  %v1429_v47 = vmul.f32 0.01, %v1177_v45  ;;  %834 = vmatmul.bf16.gmra.mxu0 %v1899_v34  ;;  %959 = vmatmul.bf16.gmra.mxu2 %v2099_v39  ;;  %v1055_v53 = vadd.f32 %v1054_v46, %v796_v48  ;;  %v1914_v34 = vld [vmem:[%s3595_s0 + $0x120] sm:$0xf] }
 0x122   :  { %1093 = vmatmul.bf16.gmra.mxu1 %v1903_v42  ;;  %1218 = vmatmul.bf16.gmra.mxu3 %v2103_v43  ;;  %v2319_v39 = vld [vmem:[%s3595_s0 + $0x2b4] sm:$0xf0]  ;;  %v2318_v42 = vld [vmem:[%s3595_s0 + $0x2b4] sm:$0xf] }
 0x123   :  { %v1529_v50 = vsel %vm1329_vm15, %v1177_v45, %v1429_v47  ;;  %v1380_v63 = vmul.f32 0.01, %v1055_v53  ;;  %vm1280_vm0 = vcmp.gt.f32.partialorder %v1055_v53, 0.0  ;;  %v2116_v45 = vld [vmem:[%s3595_s0 + $0x2b8] sm:$0xf0]  ;;  %v1915_v47 = vor.u32 %v2269_v35, %v1914_v34 }
 0x124   :  { %v2511_v51 = vpack.c.bf16 %v1529_v50, %v1528_v49  ;;  %v920_v52 = vpop.f32.mrf.mxu2 }
 0x125   :  { %v1179_v54 = vpop.f32.mrf.mxu3  ;;  %v921_v57 = vadd.f32 %v2953_v56, %v920_v52  ;;  %v1480_v10 = vsel %vm1280_vm0, %v1055_v53, %v1380_v63  ;;  %v2115_v52 = vor.u32 %v2319_v39, %v2114_v36 }
 0x126   :  { %2629 = vst [vmem:[%s3596_s3 + $0x100] sm:$0xff] %v2511_v51   ;;  %v797_v55 = vpop.f32.mrf.mxu0 }
 0x127   :  { %v798_v58 = vadd.f32 %v2953_v56, %v797_v55  ;;  %v1056_v59 = vpop.f32.mrf.mxu1  ;;  %v1180_v5 = vadd.f32 %v1179_v54, %v921_v57  ;;  %v1919_v55 = vor.u32 %v2268_v40, %v1916_v41  ;;  %v2119_v57 = vor.u32 %v2318_v42, %v2116_v45 }
 0x129   :  { %v1057_v0 = vadd.f32 %v1056_v59, %v798_v58  ;;  %v1430_v19 = vmul.f32 0.01, %v1180_v5  ;;  %vm1330_vm2 = vcmp.gt.f32.partialorder %v1180_v5, 0.0 }
 0x12b   :  { %vm1281_vm1 = vcmp.gt.f32.partialorder %v1057_v0, 0.0  ;;  %v1381_v6 = vmul.f32 0.01, %v1057_v0  ;;  %v1530_v24 = vsel %vm1330_vm2, %v1180_v5, %v1430_v19  ;;  %v2124_v19 = vld [vmem:[%s3595_s0 + $0x2c8] sm:$0xf0] }
 0x12c   :  { %v922_v8 = vpop.f32.mrf.mxu2 }
 0x12d   :  { %v1481_v11 = vsel %vm1281_vm1, %v1057_v0, %v1381_v6  ;;  %v923_v12 = vadd.f32 %v2953_v56, %v922_v8  ;;  %v1181_v13 = vpop.f32.mrf.mxu3 }
 0x12e   :  { %v2391_v15 = vpack.c.bf16 %v1481_v11, %v1480_v10  ;;  %v800_v16 = vpop.f32.mrf.mxu0  ;;  %v2271_v10 = vld [vmem:[%s3595_s0 + $0x134] sm:$0xf0]  ;;  %v2122_v11 = vld [vmem:[%s3595_s0 + $0x2c0] sm:$0xf] }
 0x12f   :  { %v1182_v20 = vadd.f32 %v1181_v13, %v923_v12  ;;  %v1059_v21 = vpop.f32.mrf.mxu1  ;;  %v801_v23 = vadd.f32 %v2953_v56, %v800_v16  ;;  %v2320_v16 = vld [vmem:[%s3595_s0 + $0x2c4] sm:$0xf] }
 0x130   :  { %2605 = vst [vmem:[%s3596_s3 + $0x40] sm:$0xff] %v2391_v15   ;;  %v1924_v15 = vld [vmem:[%s3595_s0 + $0x138] sm:$0xf0] }
 0x131   :  { %vm1331_vm3 = vcmp.gt.f32.partialorder %v1182_v20, 0.0  ;;  %v1431_v22 = vmul.f32 0.01, %v1182_v20  ;;  %839 = vmatmul.bf16.gmra.mxu0 %v1907_v9  ;;  %964 = vmatmul.bf16.gmra.mxu2 %v2107_v14  ;;  %v1060_v28 = vadd.f32 %v1059_v21, %v801_v23  ;;  %v1922_v9 = vld [vmem:[%s3595_s0 + $0x130] sm:$0xf] }
 0x132   :  { %1098 = vmatmul.bf16.gmra.mxu1 %v1911_v17  ;;  %1223 = vmatmul.bf16.gmra.mxu3 %v2111_v18  ;;  %v2321_v14 = vld [vmem:[%s3595_s0 + $0x2c4] sm:$0xf0]  ;;  %v1923_v21 = vor.u32 %v2271_v10, %v1922_v9 }
 0x133   :  { %v1531_v25 = vsel %vm1331_vm3, %v1182_v20, %v1431_v22  ;;  %v1382_v37 = vmul.f32 0.01, %v1060_v28  ;;  %vm1282_vm4 = vcmp.gt.f32.partialorder %v1060_v28, 0.0 }
 0x134   :  { %v2516_v26 = vpack.c.bf16 %v1531_v25, %v1530_v24  ;;  %v925_v27 = vpop.f32.mrf.mxu2  ;;  %v3325_v24 = vld [vmem:[%s3594_s2] ss:$0 sm:$0xff] }
 0x135   :  { %v1184_v29 = vpop.f32.mrf.mxu3  ;;  %v926_v31 = vadd.f32 %v2953_v56, %v925_v27  ;;  %v1482_v48 = vsel %vm1282_vm4, %v1060_v28, %v1382_v37  ;;  %v2123_v27 = vor.u32 %v2321_v14, %v2122_v11 }
 0x136   :  { %2630 = vst [vmem:[%s3596_s3 + $0x108] sm:$0xff] %v2516_v26   ;;  %v802_v30 = vpop.f32.mrf.mxu0 }
 0x137   :  { %v803_v32 = vadd.f32 %v2953_v56, %v802_v30  ;;  %v1061_v33 = vpop.f32.mrf.mxu1  ;;  %v1185_v43 = vadd.f32 %v1184_v29, %v926_v31  ;;  %v2127_v31 = vor.u32 %v2320_v16, %v2124_v19 }
 0x139   :  { %v1062_v38 = vadd.f32 %v1061_v33, %v803_v32  ;;  %v1432_v58 = vmul.f32 0.01, %v1185_v43  ;;  %vm1332_vm6 = vcmp.gt.f32.partialorder %v1185_v43, 0.0 }
 0x13b   :  { %vm1283_vm5 = vcmp.gt.f32.partialorder %v1062_v38, 0.0  ;;  %v1383_v44 = vmul.f32 0.01, %v1062_v38  ;;  %v1532_v63 = vsel %vm1332_vm6, %v1185_v43, %v1432_v58 }
 0x13c   :  { %v927_v46 = vpop.f32.mrf.mxu2 }
 0x13d   :  { %v1483_v49 = vsel %vm1283_vm5, %v1062_v38, %v1383_v44  ;;  %v928_v50 = vadd.f32 %v2953_v56, %v927_v46  ;;  %v1186_v51 = vpop.f32.mrf.mxu3 }
 0x13e   :  { %v2396_v53 = vpack.c.bf16 %v1483_v49, %v1482_v48  ;;  %v805_v54 = vpop.f32.mrf.mxu0  ;;  %v2273_v48 = vld [vmem:[%s3595_s0 + $0x144] sm:$0xf0]  ;;  %v2130_v49 = vld [vmem:[%s3595_s0 + $0x2d0] sm:$0xf] }
 0x13f   :  { %v1187_v59 = vadd.f32 %v1186_v51, %v928_v50  ;;  %v1064_v60 = vpop.f32.mrf.mxu1  ;;  %v806_v62 = vadd.f32 %v2953_v56, %v805_v54  ;;  %v1932_v54 = vld [vmem:[%s3595_s0 + $0x148] sm:$0xf0] }
 0x140   :  { %2606 = vst [vmem:[%s3596_s3 + $0x48] sm:$0xff] %v2396_v53   ;;  %v2272_v53 = vld [vmem:[%s3595_s0 + $0x144] sm:$0xf] }
 0x141   :  { %vm1333_vm7 = vcmp.gt.f32.partialorder %v1187_v59, 0.0  ;;  %v1433_v61 = vmul.f32 0.01, %v1187_v59  ;;  %844 = vmatmul.bf16.gmra.mxu0 %v1915_v47  ;;  %969 = vmatmul.bf16.gmra.mxu2 %v2115_v52  ;;  %v1065_v3 = vadd.f32 %v1064_v60, %v806_v62  ;;  %v1930_v47 = vld [vmem:[%s3595_s0 + $0x140] sm:$0xf] }
 0x142   :  { %1103 = vmatmul.bf16.gmra.mxu1 %v1919_v55  ;;  %1228 = vmatmul.bf16.gmra.mxu3 %v2119_v57  ;;  %v2323_v52 = vld [vmem:[%s3595_s0 + $0x2d4] sm:$0xf0]  ;;  %v2322_v55 = vld [vmem:[%s3595_s0 + $0x2d4] sm:$0xf] }
 0x143   :  { %v1533_v0 = vsel %vm1333_vm7, %v1187_v59, %v1433_v61  ;;  %v1384_v12 = vmul.f32 0.01, %v1065_v3  ;;  %vm1284_vm8 = vcmp.gt.f32.partialorder %v1065_v3, 0.0  ;;  %v2132_v59 = vld [vmem:[%s3595_s0 + $0x2d8] sm:$0xf0]  ;;  %v1931_v61 = vor.u32 %v2273_v48, %v1930_v47 }
 0x144   :  { %v2521_v1 = vpack.c.bf16 %v1533_v0, %v1532_v63  ;;  %v930_v2 = vpop.f32.mrf.mxu2 }
 0x145   :  { %v1189_v4 = vpop.f32.mrf.mxu3  ;;  %v931_v6 = vadd.f32 %v2953_v56, %v930_v2  ;;  %v1484_v22 = vsel %vm1284_vm8, %v1065_v3, %v1384_v12  ;;  %v2131_v2 = vor.u32 %v2323_v52, %v2130_v49 }
 0x146   :  { %2631 = vst [vmem:[%s3596_s3 + $0x110] sm:$0xff] %v2521_v1   ;;  %v807_v5 = vpop.f32.mrf.mxu0 }
 0x147   :  { %v808_v7 = vadd.f32 %v2953_v56, %v807_v5  ;;  %v1066_v8 = vpop.f32.mrf.mxu1  ;;  %v2270_v56 = vld [vmem:[%s3595_s0 + $0x134] sm:$0xf]  ;;  %v1190_v17 = vadd.f32 %v1189_v4, %v931_v6  ;;  %v1935_v5 = vor.u32 %v2272_v53, %v1932_v54  ;;  %v2135_v6 = vor.u32 %v2322_v55, %v2132_v59 }
 0x148   :  { %v1927_v30 = vor.u32 %v2270_v56, %v1924_v15 }
 0x149   :  { %v1067_v13 = vadd.f32 %v1066_v8, %v808_v7  ;;  %v1434_v32 = vmul.f32 0.01, %v1190_v17  ;;  %vm1334_vm10 = vcmp.gt.f32.partialorder %v1190_v17, 0.0 }
 0x14b   :  { %vm1285_vm9 = vcmp.gt.f32.partialorder %v1067_v13, 0.0  ;;  %v1385_v18 = vmul.f32 0.01, %v1067_v13  ;;  %v1534_v37 = vsel %vm1334_vm10, %v1190_v17, %v1434_v32 }
 0x14c   :  { %v932_v20 = vpop.f32.mrf.mxu2 }
 0x14d   :  { %v1485_v23 = vsel %vm1285_vm9, %v1067_v13, %v1385_v18  ;;  %v933_v25 = vadd.f32 %v3325_v24, %v932_v20  ;;  %v1191_v26 = vpop.f32.mrf.mxu3 }
 0x14e   :  { %v2401_v28 = vpack.c.bf16 %v1485_v23, %v1484_v22  ;;  %v810_v29 = vpop.f32.mrf.mxu0  ;;  %v2275_v22 = vld [vmem:[%s3595_s0 + $0x154] sm:$0xf0]  ;;  %v2138_v23 = vld [vmem:[%s3595_s0 + $0x2e0] sm:$0xf] }
 0x14f   :  { %v1192_v33 = vadd.f32 %v1191_v26, %v933_v25  ;;  %v1069_v34 = vpop.f32.mrf.mxu1  ;;  %v811_v36 = vadd.f32 %v3325_v24, %v810_v29  ;;  %v1940_v29 = vld [vmem:[%s3595_s0 + $0x158] sm:$0xf0] }
 0x150   :  { %2607 = vst [vmem:[%s3596_s3 + $0x50] sm:$0xff] %v2401_v28   ;;  %v2274_v28 = vld [vmem:[%s3595_s0 + $0x154] sm:$0xf] }
 0x151   :  { %vm1335_vm11 = vcmp.gt.f32.partialorder %v1192_v33, 0.0  ;;  %v1435_v35 = vmul.f32 0.01, %v1192_v33  ;;  %849 = vmatmul.bf16.gmra.mxu0 %v1923_v21  ;;  %974 = vmatmul.bf16.gmra.mxu2 %v2123_v27  ;;  %v1070_v41 = vadd.f32 %v1069_v34, %v811_v36  ;;  %v1938_v21 = vld [vmem:[%s3595_s0 + $0x150] sm:$0xf] }
 0x152   :  { %1108 = vmatmul.bf16.gmra.mxu1 %v1927_v30  ;;  %1233 = vmatmul.bf16.gmra.mxu3 %v2127_v31  ;;  %v2325_v27 = vld [vmem:[%s3595_s0 + $0x2e4] sm:$0xf0]  ;;  %v2324_v30 = vld [vmem:[%s3595_s0 + $0x2e4] sm:$0xf] }
 0x153   :  { %v1535_v38 = vsel %vm1335_vm11, %v1192_v33, %v1435_v35  ;;  %v1386_v50 = vmul.f32 0.01, %v1070_v41  ;;  %vm1286_vm12 = vcmp.gt.f32.partialorder %v1070_v41, 0.0  ;;  %v2140_v33 = vld [vmem:[%s3595_s0 + $0x2e8] sm:$0xf0]  ;;  %v1939_v35 = vor.u32 %v2275_v22, %v1938_v21 }
 0x154   :  { %v2526_v39 = vpack.c.bf16 %v1535_v38, %v1534_v37  ;;  %v935_v40 = vpop.f32.mrf.mxu2 }
 0x155   :  { %v1194_v42 = vpop.f32.mrf.mxu3  ;;  %v936_v44 = vadd.f32 %v3325_v24, %v935_v40  ;;  %v1486_v62 = vsel %vm1286_vm12, %v1070_v41, %v1386_v50  ;;  %v2139_v40 = vor.u32 %v2325_v27, %v2138_v23 }
 0x156   :  { %2632 = vst [vmem:[%s3596_s3 + $0x118] sm:$0xff] %v2526_v39   ;;  %v812_v43 = vpop.f32.mrf.mxu0 }
 0x157   :  { %v813_v45 = vadd.f32 %v3325_v24, %v812_v43  ;;  %v1071_v46 = vpop.f32.mrf.mxu1  ;;  %v1195_v57 = vadd.f32 %v1194_v42, %v936_v44  ;;  %v1943_v43 = vor.u32 %v2274_v28, %v1940_v29  ;;  %v2143_v44 = vor.u32 %v2324_v30, %v2140_v33 }
 0x159   :  { %v1072_v51 = vadd.f32 %v1071_v46, %v813_v45  ;;  %v1436_v7 = vmul.f32 0.01, %v1195_v57  ;;  %vm1336_vm14 = vcmp.gt.f32.partialorder %v1195_v57, 0.0 }
 0x15b   :  { %vm1287_vm13 = vcmp.gt.f32.partialorder %v1072_v51, 0.0  ;;  %v1387_v58 = vmul.f32 0.01, %v1072_v51  ;;  %v1536_v12 = vsel %vm1336_vm14, %v1195_v57, %v1436_v7 }
 0x15c   :  { %v937_v60 = vpop.f32.mrf.mxu2 }
 0x15d   :  { %v1487_v63 = vsel %vm1287_vm13, %v1072_v51, %v1387_v58  ;;  %v938_v0 = vadd.f32 %v3325_v24, %v937_v60  ;;  %v1196_v1 = vpop.f32.mrf.mxu3 }
 0x15e   :  { %v2406_v3 = vpack.c.bf16 %v1487_v63, %v1486_v62  ;;  %v815_v4 = vpop.f32.mrf.mxu0  ;;  %v2277_v62 = vld [vmem:[%s3595_s0 + $0x164] sm:$0xf0]  ;;  %v2146_v63 = vld [vmem:[%s3595_s0 + $0x2f0] sm:$0xf] }
 0x15f   :  { %v1197_v8 = vadd.f32 %v1196_v1, %v938_v0  ;;  %v1074_v9 = vpop.f32.mrf.mxu1  ;;  %v816_v11 = vadd.f32 %v3325_v24, %v815_v4  ;;  %v1948_v4 = vld [vmem:[%s3595_s0 + $0x168] sm:$0xf0] }
 0x160   :  { %2608 = vst [vmem:[%s3596_s3 + $0x58] sm:$0xff] %v2406_v3   ;;  %v2276_v3 = vld [vmem:[%s3595_s0 + $0x164] sm:$0xf] }
 0x161   :  { %vm1337_vm15 = vcmp.gt.f32.partialorder %v1197_v8, 0.0  ;;  %v1437_v10 = vmul.f32 0.01, %v1197_v8  ;;  %854 = vmatmul.bf16.gmra.mxu0 %v1931_v61  ;;  %979 = vmatmul.bf16.gmra.mxu2 %v2131_v2  ;;  %v1075_v15 = vadd.f32 %v1074_v9, %v816_v11  ;;  %v1946_v61 = vld [vmem:[%s3595_s0 + $0x160] sm:$0xf] }
 0x162   :  { %1113 = vmatmul.bf16.gmra.mxu1 %v1935_v5  ;;  %1238 = vmatmul.bf16.gmra.mxu3 %v2135_v6  ;;  %v2327_v2 = vld [vmem:[%s3595_s0 + $0x2f4] sm:$0xf0]  ;;  %v2326_v5 = vld [vmem:[%s3595_s0 + $0x2f4] sm:$0xf] }
 0x163   :  { %v1537_v13 = vsel %vm1337_vm15, %v1197_v8, %v1437_v10  ;;  %v1388_v25 = vmul.f32 0.01, %v1075_v15  ;;  %vm1288_vm0 = vcmp.gt.f32.partialorder %v1075_v15, 0.0  ;;  %v2148_v8 = vld [vmem:[%s3595_s0 + $0x2f8] sm:$0xf0]  ;;  %v1947_v10 = vor.u32 %v2277_v62, %v1946_v61 }
 0x164   :  { %v2531_v14 = vpack.c.bf16 %v1537_v13, %v1536_v12  ;;  %v940_v56 = vpop.f32.mrf.mxu2 }
 0x165   :  { %v1199_v16 = vpop.f32.mrf.mxu3  ;;  %v941_v18 = vadd.f32 %v3325_v24, %v940_v56  ;;  %v1488_v36 = vsel %vm1288_vm0, %v1075_v15, %v1388_v25  ;;  %v2147_v56 = vor.u32 %v2327_v2, %v2146_v63 }
 0x166   :  { %2633 = vst [vmem:[%s3596_s3 + $0x120] sm:$0xff] %v2531_v14   ;;  %v817_v17 = vpop.f32.mrf.mxu0 }
 0x167   :  { %v818_v19 = vadd.f32 %v3325_v24, %v817_v17  ;;  %v1076_v20 = vpop.f32.mrf.mxu1  ;;  %v1200_v31 = vadd.f32 %v1199_v16, %v941_v18  ;;  %v1951_v17 = vor.u32 %v2276_v3, %v1948_v4  ;;  %v2151_v18 = vor.u32 %v2326_v5, %v2148_v8 }
 0x169   :  { %v1077_v26 = vadd.f32 %v1076_v20, %v818_v19  ;;  %v1438_v45 = vmul.f32 0.01, %v1200_v31  ;;  %vm1338_vm2 = vcmp.gt.f32.partialorder %v1200_v31, 0.0 }
 0x16b   :  { %vm1289_vm1 = vcmp.gt.f32.partialorder %v1077_v26, 0.0  ;;  %v1389_v32 = vmul.f32 0.01, %v1077_v26  ;;  %v1538_v50 = vsel %vm1338_vm2, %v1200_v31, %v1438_v45 }
 0x16c   :  { %v942_v34 = vpop.f32.mrf.mxu2 }
 0x16d   :  { %v1489_v37 = vsel %vm1289_vm1, %v1077_v26, %v1389_v32  ;;  %v943_v38 = vadd.f32 %v3325_v24, %v942_v34  ;;  %v1201_v39 = vpop.f32.mrf.mxu3 }
 0x16e   :  { %v2411_v41 = vpack.c.bf16 %v1489_v37, %v1488_v36  ;;  %v820_v42 = vpop.f32.mrf.mxu0  ;;  %v2279_v36 = vld [vmem:[%s3595_s0 + $0x174] sm:$0xf0]  ;;  %v2154_v37 = vld [vmem:[%s3595_s0 + $0x300] sm:$0xf] }
 0x16f   :  { %v1202_v46 = vadd.f32 %v1201_v39, %v943_v38  ;;  %v1079_v47 = vpop.f32.mrf.mxu1  ;;  %v821_v49 = vadd.f32 %v3325_v24, %v820_v42  ;;  %v1956_v42 = vld [vmem:[%s3595_s0 + $0x178] sm:$0xf0] }
 0x170   :  { %2609 = vst [vmem:[%s3596_s3 + $0x60] sm:$0xff] %v2411_v41   ;;  %v2278_v41 = vld [vmem:[%s3595_s0 + $0x174] sm:$0xf] }
 0x171   :  { %vm1339_vm3 = vcmp.gt.f32.partialorder %v1202_v46, 0.0  ;;  %v1439_v48 = vmul.f32 0.01, %v1202_v46  ;;  %859 = vmatmul.bf16.gmra.mxu0 %v1939_v35  ;;  %984 = vmatmul.bf16.gmra.mxu2 %v2139_v40  ;;  %v1080_v54 = vadd.f32 %v1079_v47, %v821_v49  ;;  %v1954_v35 = vld [vmem:[%s3595_s0 + $0x170] sm:$0xf] }
 0x172   :  { %1118 = vmatmul.bf16.gmra.mxu1 %v1943_v43  ;;  %1243 = vmatmul.bf16.gmra.mxu3 %v2143_v44  ;;  %v2329_v40 = vld [vmem:[%s3595_s0 + $0x304] sm:$0xf0]  ;;  %v2328_v43 = vld [vmem:[%s3595_s0 + $0x304] sm:$0xf] }
 0x173   :  { %v1539_v51 = vsel %vm1339_vm3, %v1202_v46, %v1439_v48  ;;  %v1390_v0 = vmul.f32 0.01, %v1080_v54  ;;  %vm1290_vm4 = vcmp.gt.f32.partialorder %v1080_v54, 0.0  ;;  %v2156_v46 = vld [vmem:[%s3595_s0 + $0x308] sm:$0xf0]  ;;  %v1955_v48 = vor.u32 %v2279_v36, %v1954_v35 }
 0x174   :  { %v2536_v52 = vpack.c.bf16 %v1539_v51, %v1538_v50  ;;  %v945_v53 = vpop.f32.mrf.mxu2 }
 0x175   :  { %v1204_v55 = vpop.f32.mrf.mxu3  ;;  %v946_v58 = vadd.f32 %v3325_v24, %v945_v53  ;;  %v1490_v11 = vsel %vm1290_vm4, %v1080_v54, %v1390_v0  ;;  %v2155_v53 = vor.u32 %v2329_v40, %v2154_v37 }
 0x176   :  { %2634 = vst [vmem:[%s3596_s3 + $0x128] sm:$0xff] %v2536_v52   ;;  %v822_v57 = vpop.f32.mrf.mxu0 }
 0x177   :  { %v823_v59 = vadd.f32 %v3325_v24, %v822_v57  ;;  %v1081_v60 = vpop.f32.mrf.mxu1  ;;  %v1205_v6 = vadd.f32 %v1204_v55, %v946_v58  ;;  %v1959_v57 = vor.u32 %v2278_v41, %v1956_v42  ;;  %v2159_v58 = vor.u32 %v2328_v43, %v2156_v46 }
 0x179   :  { %v1082_v1 = vadd.f32 %v1081_v60, %v823_v59  ;;  %v1440_v19 = vmul.f32 0.01, %v1205_v6  ;;  %vm1340_vm6 = vcmp.gt.f32.partialorder %v1205_v6, 0.0 }
 0x17b   :  { %vm1291_vm5 = vcmp.gt.f32.partialorder %v1082_v1, 0.0  ;;  %v1391_v7 = vmul.f32 0.01, %v1082_v1  ;;  %v1540_v25 = vsel %vm1340_vm6, %v1205_v6, %v1440_v19 }
 0x17c   :  { %v947_v9 = vpop.f32.mrf.mxu2 }
 0x17d   :  { %v1491_v12 = vsel %vm1291_vm5, %v1082_v1, %v1391_v7  ;;  %v948_v13 = vadd.f32 %v3325_v24, %v947_v9  ;;  %v1206_v14 = vpop.f32.mrf.mxu3 }
 0x17e   :  { %v2416_v15 = vpack.c.bf16 %v1491_v12, %v1490_v11  ;;  %v825_v16 = vpop.f32.mrf.mxu0  ;;  %v2281_v11 = vld [vmem:[%s3595_s0 + $0x184] sm:$0xf0]  ;;  %v2162_v12 = vld [vmem:[%s3595_s0 + $0x310] sm:$0xf] }
 0x17f   :  { %v1207_v20 = vadd.f32 %v1206_v14, %v948_v13  ;;  %v1084_v21 = vpop.f32.mrf.mxu1  ;;  %v826_v23 = vadd.f32 %v3325_v24, %v825_v16  ;;  %v1964_v16 = vld [vmem:[%s3595_s0 + $0x188] sm:$0xf0] }
 0x180   :  { %2610 = vst [vmem:[%s3596_s3 + $0x68] sm:$0xff] %v2416_v15   ;;  %v2280_v15 = vld [vmem:[%s3595_s0 + $0x184] sm:$0xf] }
 0x181   :  { %vm1341_vm7 = vcmp.gt.f32.partialorder %v1207_v20, 0.0  ;;  %v1441_v22 = vmul.f32 0.01, %v1207_v20  ;;  %864 = vmatmul.bf16.gmra.mxu0 %v1947_v10  ;;  %989 = vmatmul.bf16.gmra.mxu2 %v2147_v56  ;;  %v1085_v29 = vadd.f32 %v1084_v21, %v826_v23  ;;  %v1962_v10 = vld [vmem:[%s3595_s0 + $0x180] sm:$0xf] }
 0x182   :  { %1123 = vmatmul.bf16.gmra.mxu1 %v1951_v17  ;;  %1248 = vmatmul.bf16.gmra.mxu3 %v2151_v18  ;;  %v2331_v56 = vld [vmem:[%s3595_s0 + $0x314] sm:$0xf0]  ;;  %v2330_v17 = vld [vmem:[%s3595_s0 + $0x314] sm:$0xf] }
 0x183   :  { %v1541_v26 = vsel %vm1341_vm7, %v1207_v20, %v1441_v22  ;;  %v1392_v38 = vmul.f32 0.01, %v1085_v29  ;;  %vm1292_vm8 = vcmp.gt.f32.partialorder %v1085_v29, 0.0  ;;  %v2164_v20 = vld [vmem:[%s3595_s0 + $0x318] sm:$0xf0]  ;;  %v1963_v22 = vor.u32 %v2281_v11, %v1962_v10 }
 0x184   :  { %v2541_v27 = vpack.c.bf16 %v1541_v26, %v1540_v25  ;;  %v950_v28 = vpop.f32.mrf.mxu2 }
 0x185   :  { %v1209_v30 = vpop.f32.mrf.mxu3  ;;  %v951_v32 = vadd.f32 %v3325_v24, %v950_v28  ;;  %v1492_v49 = vsel %vm1292_vm8, %v1085_v29, %v1392_v38  ;;  %v2163_v28 = vor.u32 %v2331_v56, %v2162_v12 }
 0x186   :  { %2635 = vst [vmem:[%s3596_s3 + $0x130] sm:$0xff] %v2541_v27   ;;  %v827_v31 = vpop.f32.mrf.mxu0 }
 0x187   :  { %v828_v33 = vadd.f32 %v3325_v24, %v827_v31  ;;  %v1086_v34 = vpop.f32.mrf.mxu1  ;;  %v1210_v44 = vadd.f32 %v1209_v30, %v951_v32  ;;  %v1967_v31 = vor.u32 %v2280_v15, %v1964_v16  ;;  %v2167_v32 = vor.u32 %v2330_v17, %v2164_v20 }
 0x189   :  { %v1087_v39 = vadd.f32 %v1086_v34, %v828_v33  ;;  %v1442_v59 = vmul.f32 0.01, %v1210_v44  ;;  %vm1342_vm10 = vcmp.gt.f32.partialorder %v1210_v44, 0.0 }
 0x18b   :  { %vm1293_vm9 = vcmp.gt.f32.partialorder %v1087_v39, 0.0  ;;  %v1393_v45 = vmul.f32 0.01, %v1087_v39  ;;  %v1542_v0 = vsel %vm1342_vm10, %v1210_v44, %v1442_v59 }
 0x18c   :  { %v952_v47 = vpop.f32.mrf.mxu2 }
 0x18d   :  { %v1493_v50 = vsel %vm1293_vm9, %v1087_v39, %v1393_v45  ;;  %v953_v51 = vadd.f32 %v3325_v24, %v952_v47  ;;  %v1211_v52 = vpop.f32.mrf.mxu3 }
 0x18e   :  { %v2421_v54 = vpack.c.bf16 %v1493_v50, %v1492_v49  ;;  %v830_v55 = vpop.f32.mrf.mxu0 }
 0x18f   :  { %v1212_v60 = vadd.f32 %v1211_v52, %v953_v51  ;;  %v1089_v61 = vpop.f32.mrf.mxu1  ;;  %v831_v63 = vadd.f32 %v3325_v24, %v830_v55 }
 0x190   :  { %2611 = vst [vmem:[%s3596_s3 + $0x70] sm:$0xff] %v2421_v54  }
 0x191   :  { %vm1343_vm11 = vcmp.gt.f32.partialorder %v1212_v60, 0.0  ;;  %v1443_v62 = vmul.f32 0.01, %v1212_v60  ;;  %869 = vmatmul.bf16.gmra.mxu0 %v1955_v48  ;;  %994 = vmatmul.bf16.gmra.mxu2 %v2155_v53  ;;  %v1090_v4 = vadd.f32 %v1089_v61, %v831_v63 }
 0x192   :  { %1128 = vmatmul.bf16.gmra.mxu1 %v1959_v57  ;;  %1253 = vmatmul.bf16.gmra.mxu3 %v2159_v58 }
 0x193   :  { %v1543_v1 = vsel %vm1343_vm11, %v1212_v60, %v1443_v62  ;;  %v1394_v13 = vmul.f32 0.01, %v1090_v4  ;;  %vm1294_vm12 = vcmp.gt.f32.partialorder %v1090_v4, 0.0 }
 0x194   :  { %v2546_v2 = vpack.c.bf16 %v1543_v1, %v1542_v0  ;;  %v955_v3 = vpop.f32.mrf.mxu2 }
 0x195   :  { %v1214_v5 = vpop.f32.mrf.mxu3  ;;  %v956_v7 = vadd.f32 %v3325_v24, %v955_v3  ;;  %v1494_v23 = vsel %vm1294_vm12, %v1090_v4, %v1394_v13 }
 0x196   :  { %2636 = vst [vmem:[%s3596_s3 + $0x138] sm:$0xff] %v2546_v2   ;;  %v832_v6 = vpop.f32.mrf.mxu0 }
 0x197   :  { %v833_v8 = vadd.f32 %v3325_v24, %v832_v6  ;;  %v1091_v9 = vpop.f32.mrf.mxu1  ;;  %v1215_v18 = vadd.f32 %v1214_v5, %v956_v7 }
 0x199   :  { %v1092_v14 = vadd.f32 %v1091_v9, %v833_v8  ;;  %v1444_v33 = vmul.f32 0.01, %v1215_v18  ;;  %vm1344_vm14 = vcmp.gt.f32.partialorder %v1215_v18, 0.0 }
 0x19b   :  { %vm1295_vm13 = vcmp.gt.f32.partialorder %v1092_v14, 0.0  ;;  %v1395_v19 = vmul.f32 0.01, %v1092_v14  ;;  %v1544_v38 = vsel %vm1344_vm14, %v1215_v18, %v1444_v33 }
 0x19c   :  { %v957_v21 = vpop.f32.mrf.mxu2 }
 0x19d   :  { %v1495_v25 = vsel %vm1295_vm13, %v1092_v14, %v1395_v19  ;;  %v958_v26 = vadd.f32 %v3325_v24, %v957_v21  ;;  %v1216_v27 = vpop.f32.mrf.mxu3 }
 0x19e   :  { %v2426_v29 = vpack.c.bf16 %v1495_v25, %v1494_v23  ;;  %v835_v30 = vpop.f32.mrf.mxu0 }
 0x19f   :  { %v1217_v34 = vadd.f32 %v1216_v27, %v958_v26  ;;  %v1094_v35 = vpop.f32.mrf.mxu1  ;;  %v836_v37 = vadd.f32 %v3325_v24, %v835_v30 }
 0x1a0   :  { %2612 = vst [vmem:[%s3596_s3 + $0x78] sm:$0xff] %v2426_v29  }
 0x1a1   :  { %vm1345_vm15 = vcmp.gt.f32.partialorder %v1217_v34, 0.0  ;;  %v1445_v36 = vmul.f32 0.01, %v1217_v34  ;;  %874 = vmatmul.bf16.gmra.mxu0 %v1963_v22  ;;  %999 = vmatmul.bf16.gmra.mxu2 %v2163_v28  ;;  %v1095_v42 = vadd.f32 %v1094_v35, %v836_v37 }
 0x1a2   :  { %1133 = vmatmul.bf16.gmra.mxu1 %v1967_v31  ;;  %1258 = vmatmul.bf16.gmra.mxu3 %v2167_v32 }
 0x1a3   :  { %v1545_v39 = vsel %vm1345_vm15, %v1217_v34, %v1445_v36  ;;  %v1396_v48 = vmul.f32 0.01, %v1095_v42  ;;  %vm1296_vm0 = vcmp.gt.f32.partialorder %v1095_v42, 0.0 }
 0x1a4   :  { %v2551_v40 = vpack.c.bf16 %v1545_v39, %v1544_v38  ;;  %v960_v41 = vpop.f32.mrf.mxu2 }
 0x1a5   :  { %v1219_v43 = vpop.f32.mrf.mxu3  ;;  %v961_v45 = vadd.f32 %v3325_v24, %v960_v41  ;;  %v1496_v53 = vsel %vm1296_vm0, %v1095_v42, %v1396_v48 }
 0x1a6   :  { %2637 = vst [vmem:[%s3596_s3 + $0x140] sm:$0xff] %v2551_v40   ;;  %v837_v44 = vpop.f32.mrf.mxu0 }
 0x1a7   :  { %v838_v46 = vadd.f32 %v3325_v24, %v837_v44  ;;  %v1096_v47 = vpop.f32.mrf.mxu1  ;;  %v1220_v50 = vadd.f32 %v1219_v43, %v961_v45 }
 0x1a9   :  { %v1097_v49 = vadd.f32 %v1096_v47, %v838_v46  ;;  %v1446_v60 = vmul.f32 0.01, %v1220_v50  ;;  %vm1346_vm2 = vcmp.gt.f32.partialorder %v1220_v50, 0.0 }
 0x1ab   :  { %vm1297_vm1 = vcmp.gt.f32.partialorder %v1097_v49, 0.0  ;;  %v1397_v51 = vmul.f32 0.01, %v1097_v49  ;;  %v1546_v1 = vsel %vm1346_vm2, %v1220_v50, %v1446_v60 }
 0x1ac   :  { %v962_v52 = vpop.f32.mrf.mxu2 }
 0x1ad   :  { %v1497_v54 = vsel %vm1297_vm1, %v1097_v49, %v1397_v51  ;;  %v963_v55 = vadd.f32 %v3325_v24, %v962_v52  ;;  %v1221_v57 = vpop.f32.mrf.mxu3 }
 0x1ae   :  { %v2431_v58 = vpack.c.bf16 %v1497_v54, %v1496_v53  ;;  %v840_v59 = vpop.f32.mrf.mxu0 }
 0x1af   :  { %v1222_v61 = vadd.f32 %v1221_v57, %v963_v55  ;;  %v1099_v62 = vpop.f32.mrf.mxu1  ;;  %v841_v0 = vadd.f32 %v3325_v24, %v840_v59 }
 0x1b0   :  { %2613 = vst [vmem:[%s3596_s3 + $0x80] sm:$0xff] %v2431_v58  }
 0x1b1   :  { %vm1347_vm3 = vcmp.gt.f32.partialorder %v1222_v61, 0.0  ;;  %v1447_v63 = vmul.f32 0.01, %v1222_v61  ;;  %v1100_v5 = vadd.f32 %v1099_v62, %v841_v0 }
 0x1b3   :  { %v1547_v2 = vsel %vm1347_vm3, %v1222_v61, %v1447_v63  ;;  %v1398_v11 = vmul.f32 0.01, %v1100_v5  ;;  %vm1298_vm4 = vcmp.gt.f32.partialorder %v1100_v5, 0.0 }
 0x1b4   :  { %v2556_v3 = vpack.c.bf16 %v1547_v2, %v1546_v1  ;;  %v965_v4 = vpop.f32.mrf.mxu2 }
 0x1b5   :  { %v1224_v6 = vpop.f32.mrf.mxu3  ;;  %v966_v8 = vadd.f32 %v3325_v24, %v965_v4  ;;  %v1498_v15 = vsel %vm1298_vm4, %v1100_v5, %v1398_v11 }
 0x1b6   :  { %2638 = vst [vmem:[%s3596_s3 + $0x148] sm:$0xff] %v2556_v3   ;;  %v842_v7 = vpop.f32.mrf.mxu0 }
 0x1b7   :  { %v843_v9 = vadd.f32 %v3325_v24, %v842_v7  ;;  %v1101_v10 = vpop.f32.mrf.mxu1  ;;  %v1225_v13 = vadd.f32 %v1224_v6, %v966_v8 }
 0x1b9   :  { %v1102_v12 = vadd.f32 %v1101_v10, %v843_v9  ;;  %v1448_v21 = vmul.f32 0.01, %v1225_v13  ;;  %vm1348_vm6 = vcmp.gt.f32.partialorder %v1225_v13, 0.0 }
 0x1bb   :  { %vm1299_vm5 = vcmp.gt.f32.partialorder %v1102_v12, 0.0  ;;  %v1399_v14 = vmul.f32 0.01, %v1102_v12  ;;  %v1548_v27 = vsel %vm1348_vm6, %v1225_v13, %v1448_v21 }
 0x1bc   :  { %v967_v56 = vpop.f32.mrf.mxu2 }
 0x1bd   :  { %v1499_v16 = vsel %vm1299_vm5, %v1102_v12, %v1399_v14  ;;  %v968_v17 = vadd.f32 %v3325_v24, %v967_v56  ;;  %v1226_v18 = vpop.f32.mrf.mxu3 }
 0x1be   :  { %v2436_v19 = vpack.c.bf16 %v1499_v16, %v1498_v15  ;;  %v845_v20 = vpop.f32.mrf.mxu0 }
 0x1bf   :  { %v1227_v22 = vadd.f32 %v1226_v18, %v968_v17  ;;  %v1104_v23 = vpop.f32.mrf.mxu1  ;;  %v846_v26 = vadd.f32 %v3325_v24, %v845_v20 }
 0x1c0   :  { %2614 = vst [vmem:[%s3596_s3 + $0x88] sm:$0xff] %v2436_v19  }
 0x1c1   :  { %vm1349_vm7 = vcmp.gt.f32.partialorder %v1227_v22, 0.0  ;;  %v1449_v25 = vmul.f32 0.01, %v1227_v22  ;;  %v1105_v31 = vadd.f32 %v1104_v23, %v846_v26 }
 0x1c3   :  { %v1549_v28 = vsel %vm1349_vm7, %v1227_v22, %v1449_v25  ;;  %v1400_v37 = vmul.f32 0.01, %v1105_v31  ;;  %vm1300_vm8 = vcmp.gt.f32.partialorder %v1105_v31, 0.0 }
 0x1c4   :  { %v2561_v29 = vpack.c.bf16 %v1549_v28, %v1548_v27  ;;  %v970_v30 = vpop.f32.mrf.mxu2 }
 0x1c5   :  { %v1229_v32 = vpop.f32.mrf.mxu3  ;;  %v971_v34 = vadd.f32 %v3325_v24, %v970_v30  ;;  %v1500_v42 = vsel %vm1300_vm8, %v1105_v31, %v1400_v37 }
 0x1c6   :  { %2639 = vst [vmem:[%s3596_s3 + $0x150] sm:$0xff] %v2561_v29   ;;  %v847_v33 = vpop.f32.mrf.mxu0 }
 0x1c7   :  { %v848_v35 = vadd.f32 %v3325_v24, %v847_v33  ;;  %v1106_v36 = vpop.f32.mrf.mxu1  ;;  %v1230_v39 = vadd.f32 %v1229_v32, %v971_v34 }
 0x1c9   :  { %v1107_v38 = vadd.f32 %v1106_v36, %v848_v35  ;;  %v1450_v48 = vmul.f32 0.01, %v1230_v39  ;;  %vm1350_vm10 = vcmp.gt.f32.partialorder %v1230_v39, 0.0 }
 0x1cb   :  { %vm1301_vm9 = vcmp.gt.f32.partialorder %v1107_v38, 0.0  ;;  %v1401_v40 = vmul.f32 0.01, %v1107_v38  ;;  %v1550_v53 = vsel %vm1350_vm10, %v1230_v39, %v1450_v48 }
 0x1cc   :  { %v972_v41 = vpop.f32.mrf.mxu2 }
 0x1cd   :  { %v1501_v43 = vsel %vm1301_vm9, %v1107_v38, %v1401_v40  ;;  %v973_v44 = vadd.f32 %v3325_v24, %v972_v41  ;;  %v1231_v45 = vpop.f32.mrf.mxu3 }
 0x1ce   :  { %v2441_v46 = vpack.c.bf16 %v1501_v43, %v1500_v42  ;;  %v850_v47 = vpop.f32.mrf.mxu0 }
 0x1cf   :  { %v1232_v49 = vadd.f32 %v1231_v45, %v973_v44  ;;  %v1109_v50 = vpop.f32.mrf.mxu1  ;;  %v851_v52 = vadd.f32 %v3325_v24, %v850_v47 }
 0x1d0   :  { %2615 = vst [vmem:[%s3596_s3 + $0x90] sm:$0xff] %v2441_v46  }
 0x1d1   :  { %vm1351_vm11 = vcmp.gt.f32.partialorder %v1232_v49, 0.0  ;;  %v1451_v51 = vmul.f32 0.01, %v1232_v49  ;;  %v1110_v58 = vadd.f32 %v1109_v50, %v851_v52 }
 0x1d3   :  { %v1551_v54 = vsel %vm1351_vm11, %v1232_v49, %v1451_v51  ;;  %v1402_v0 = vmul.f32 0.01, %v1110_v58  ;;  %vm1302_vm12 = vcmp.gt.f32.partialorder %v1110_v58, 0.0 }
 0x1d4   :  { %v2566_v55 = vpack.c.bf16 %v1551_v54, %v1550_v53  ;;  %v975_v57 = vpop.f32.mrf.mxu2 }
 0x1d5   :  { %v1234_v59 = vpop.f32.mrf.mxu3  ;;  %v976_v61 = vadd.f32 %v3325_v24, %v975_v57  ;;  %v1502_v5 = vsel %vm1302_vm12, %v1110_v58, %v1402_v0 }
 0x1d6   :  { %2640 = vst [vmem:[%s3596_s3 + $0x158] sm:$0xff] %v2566_v55   ;;  %v852_v60 = vpop.f32.mrf.mxu0 }
 0x1d7   :  { %v853_v62 = vadd.f32 %v3325_v24, %v852_v60  ;;  %v1111_v63 = vpop.f32.mrf.mxu1  ;;  %v1235_v2 = vadd.f32 %v1234_v59, %v976_v61 }
 0x1d9   :  { %v1112_v1 = vadd.f32 %v1111_v63, %v853_v62  ;;  %v1452_v11 = vmul.f32 0.01, %v1235_v2  ;;  %vm1352_vm14 = vcmp.gt.f32.partialorder %v1235_v2, 0.0 }
 0x1db   :  { %vm1303_vm13 = vcmp.gt.f32.partialorder %v1112_v1, 0.0  ;;  %v1403_v3 = vmul.f32 0.01, %v1112_v1  ;;  %v1552_v15 = vsel %vm1352_vm14, %v1235_v2, %v1452_v11 }
 0x1dc   :  { %v977_v4 = vpop.f32.mrf.mxu2 }
 0x1dd   :  { %v1503_v6 = vsel %vm1303_vm13, %v1112_v1, %v1403_v3  ;;  %v978_v7 = vadd.f32 %v3325_v24, %v977_v4  ;;  %v1236_v8 = vpop.f32.mrf.mxu3 }
 0x1de   :  { %v2446_v9 = vpack.c.bf16 %v1503_v6, %v1502_v5  ;;  %v855_v10 = vpop.f32.mrf.mxu0 }
 0x1df   :  { %v1237_v12 = vadd.f32 %v1236_v8, %v978_v7  ;;  %v1114_v13 = vpop.f32.mrf.mxu1  ;;  %v856_v56 = vadd.f32 %v3325_v24, %v855_v10 }
 0x1e0   :  { %2616 = vst [vmem:[%s3596_s3 + $0x98] sm:$0xff] %v2446_v9  }
 0x1e1   :  { %vm1353_vm15 = vcmp.gt.f32.partialorder %v1237_v12, 0.0  ;;  %v1453_v14 = vmul.f32 0.01, %v1237_v12  ;;  %v1115_v19 = vadd.f32 %v1114_v13, %v856_v56 }
 0x1e3   :  { %v1553_v16 = vsel %vm1353_vm15, %v1237_v12, %v1453_v14  ;;  %v1404_v26 = vmul.f32 0.01, %v1115_v19  ;;  %vm1304_vm0 = vcmp.gt.f32.partialorder %v1115_v19, 0.0 }
 0x1e4   :  { %v2571_v17 = vpack.c.bf16 %v1553_v16, %v1552_v15  ;;  %v980_v18 = vpop.f32.mrf.mxu2 }
 0x1e5   :  { %v1239_v20 = vpop.f32.mrf.mxu3  ;;  %v981_v22 = vadd.f32 %v3325_v24, %v980_v18  ;;  %v1504_v31 = vsel %vm1304_vm0, %v1115_v19, %v1404_v26 }
 0x1e6   :  { %2641 = vst [vmem:[%s3596_s3 + $0x160] sm:$0xff] %v2571_v17   ;;  %v857_v21 = vpop.f32.mrf.mxu0 }
 0x1e7   :  { %v858_v23 = vadd.f32 %v3325_v24, %v857_v21  ;;  %v1116_v25 = vpop.f32.mrf.mxu1  ;;  %v1240_v28 = vadd.f32 %v1239_v20, %v981_v22 }
 0x1e9   :  { %v1117_v27 = vadd.f32 %v1116_v25, %v858_v23  ;;  %v1454_v37 = vmul.f32 0.01, %v1240_v28  ;;  %vm1354_vm2 = vcmp.gt.f32.partialorder %v1240_v28, 0.0 }
 0x1eb   :  { %vm1305_vm1 = vcmp.gt.f32.partialorder %v1117_v27, 0.0  ;;  %v1405_v29 = vmul.f32 0.01, %v1117_v27  ;;  %v1554_v42 = vsel %vm1354_vm2, %v1240_v28, %v1454_v37 }
 0x1ec   :  { %v982_v30 = vpop.f32.mrf.mxu2 }
 0x1ed   :  { %v1505_v32 = vsel %vm1305_vm1, %v1117_v27, %v1405_v29  ;;  %v983_v33 = vadd.f32 %v3325_v24, %v982_v30  ;;  %v1241_v34 = vpop.f32.mrf.mxu3 }
 0x1ee   :  { %v2451_v35 = vpack.c.bf16 %v1505_v32, %v1504_v31  ;;  %v860_v36 = vpop.f32.mrf.mxu0 }
 0x1ef   :  { %v1242_v38 = vadd.f32 %v1241_v34, %v983_v33  ;;  %v1119_v39 = vpop.f32.mrf.mxu1  ;;  %v861_v41 = vadd.f32 %v3325_v24, %v860_v36 }
 0x1f0   :  { %2617 = vst [vmem:[%s3596_s3 + $0xa0] sm:$0xff] %v2451_v35  }
 0x1f1   :  { %vm1355_vm3 = vcmp.gt.f32.partialorder %v1242_v38, 0.0  ;;  %v1455_v40 = vmul.f32 0.01, %v1242_v38  ;;  %v1120_v46 = vadd.f32 %v1119_v39, %v861_v41 }
 0x1f3   :  { %v1555_v43 = vsel %vm1355_vm3, %v1242_v38, %v1455_v40  ;;  %v1406_v52 = vmul.f32 0.01, %v1120_v46  ;;  %vm1306_vm4 = vcmp.gt.f32.partialorder %v1120_v46, 0.0 }
 0x1f4   :  { %v2576_v44 = vpack.c.bf16 %v1555_v43, %v1554_v42  ;;  %v985_v45 = vpop.f32.mrf.mxu2 }
 0x1f5   :  { %v1244_v47 = vpop.f32.mrf.mxu3  ;;  %v986_v49 = vadd.f32 %v3325_v24, %v985_v45  ;;  %v1506_v58 = vsel %vm1306_vm4, %v1120_v46, %v1406_v52 }
 0x1f6   :  { %2642 = vst [vmem:[%s3596_s3 + $0x168] sm:$0xff] %v2576_v44   ;;  %v862_v48 = vpop.f32.mrf.mxu0 }
 0x1f7   :  { %v863_v50 = vadd.f32 %v3325_v24, %v862_v48  ;;  %v1121_v51 = vpop.f32.mrf.mxu1  ;;  %v1245_v54 = vadd.f32 %v1244_v47, %v986_v49 }
 0x1f9   :  { %v1122_v53 = vadd.f32 %v1121_v51, %v863_v50  ;;  %v1456_v0 = vmul.f32 0.01, %v1245_v54  ;;  %vm1356_vm6 = vcmp.gt.f32.partialorder %v1245_v54, 0.0 }
 0x1fb   :  { %vm1307_vm5 = vcmp.gt.f32.partialorder %v1122_v53, 0.0  ;;  %v1407_v55 = vmul.f32 0.01, %v1122_v53  ;;  %v1556_v5 = vsel %vm1356_vm6, %v1245_v54, %v1456_v0 }
 0x1fc   :  { %v987_v57 = vpop.f32.mrf.mxu2 }
 0x1fd   :  { %v1507_v59 = vsel %vm1307_vm5, %v1122_v53, %v1407_v55  ;;  %v988_v60 = vadd.f32 %v3325_v24, %v987_v57  ;;  %v1246_v61 = vpop.f32.mrf.mxu3  ;;  %v2665_v57 = vld [vmem:[%s3594_s2] ss:$0 sm:$0xff] }
 0x1fe   :  { %v2456_v62 = vpack.c.bf16 %v1507_v59, %v1506_v58  ;;  %v865_v63 = vpop.f32.mrf.mxu0 }
 0x1ff   :  { %v1247_v1 = vadd.f32 %v1246_v61, %v988_v60  ;;  %v1124_v2 = vpop.f32.mrf.mxu1  ;;  %v866_v4 = vadd.f32 %v3325_v24, %v865_v63 }
 0x200   :  { %2618 = vst [vmem:[%s3596_s3 + $0xa8] sm:$0xff] %v2456_v62  }
 0x201   :  { %vm1357_vm7 = vcmp.gt.f32.partialorder %v1247_v1, 0.0  ;;  %v1457_v3 = vmul.f32 0.01, %v1247_v1  ;;  %v1125_v9 = vadd.f32 %v1124_v2, %v866_v4 }
 0x203   :  { %v1557_v6 = vsel %vm1357_vm7, %v1247_v1, %v1457_v3  ;;  %v1408_v56 = vmul.f32 0.01, %v1125_v9  ;;  %vm1308_vm8 = vcmp.gt.f32.partialorder %v1125_v9, 0.0 }
 0x204   :  { %v2581_v7 = vpack.c.bf16 %v1557_v6, %v1556_v5  ;;  %v990_v8 = vpop.f32.mrf.mxu2 }
 0x205   :  { %v1249_v10 = vpop.f32.mrf.mxu3  ;;  %v991_v12 = vadd.f32 %v3325_v24, %v990_v8  ;;  %v1508_v19 = vsel %vm1308_vm8, %v1125_v9, %v1408_v56 }
 0x206   :  { %2643 = vst [vmem:[%s3596_s3 + $0x170] sm:$0xff] %v2581_v7   ;;  %v867_v11 = vpop.f32.mrf.mxu0 }
 0x207   :  { %v868_v13 = vadd.f32 %v3325_v24, %v867_v11  ;;  %v1126_v14 = vpop.f32.mrf.mxu1  ;;  %v1250_v16 = vadd.f32 %v1249_v10, %v991_v12 }
 0x209   :  { %v1127_v15 = vadd.f32 %v1126_v14, %v868_v13  ;;  %v1458_v26 = vmul.f32 0.01, %v1250_v16  ;;  %vm1358_vm10 = vcmp.gt.f32.partialorder %v1250_v16, 0.0 }
 0x20b   :  { %vm1309_vm9 = vcmp.gt.f32.partialorder %v1127_v15, 0.0  ;;  %v1409_v17 = vmul.f32 0.01, %v1127_v15  ;;  %v1558_v31 = vsel %vm1358_vm10, %v1250_v16, %v1458_v26 }
 0x20c   :  { %v992_v18 = vpop.f32.mrf.mxu2 }
 0x20d   :  { %v1509_v20 = vsel %vm1309_vm9, %v1127_v15, %v1409_v17  ;;  %v993_v21 = vadd.f32 %v3325_v24, %v992_v18  ;;  %v1251_v22 = vpop.f32.mrf.mxu3 }
 0x20e   :  { %v2461_v23 = vpack.c.bf16 %v1509_v20, %v1508_v19  ;;  %v870_v25 = vpop.f32.mrf.mxu0 }
 0x20f   :  { %v1252_v27 = vadd.f32 %v1251_v22, %v993_v21  ;;  %v1129_v28 = vpop.f32.mrf.mxu1  ;;  %v871_v30 = vadd.f32 %v3325_v24, %v870_v25 }
 0x210   :  { %2619 = vst [vmem:[%s3596_s3 + $0xb0] sm:$0xff] %v2461_v23  }
 0x211   :  { %vm1359_vm11 = vcmp.gt.f32.partialorder %v1252_v27, 0.0  ;;  %v1459_v29 = vmul.f32 0.01, %v1252_v27  ;;  %v1130_v35 = vadd.f32 %v1129_v28, %v871_v30 }
 0x213   :  { %v1559_v32 = vsel %vm1359_vm11, %v1252_v27, %v1459_v29  ;;  %v1410_v41 = vmul.f32 0.01, %v1130_v35  ;;  %vm1310_vm12 = vcmp.gt.f32.partialorder %v1130_v35, 0.0 }
 0x214   :  { %v2586_v33 = vpack.c.bf16 %v1559_v32, %v1558_v31  ;;  %v995_v34 = vpop.f32.mrf.mxu2 }
 0x215   :  { %v1254_v36 = vpop.f32.mrf.mxu3  ;;  %v996_v38 = vadd.f32 %v3325_v24, %v995_v34  ;;  %v1510_v46 = vsel %vm1310_vm12, %v1130_v35, %v1410_v41 }
 0x216   :  { %2644 = vst [vmem:[%s3596_s3 + $0x178] sm:$0xff] %v2586_v33   ;;  %v872_v37 = vpop.f32.mrf.mxu0 }
 0x217   :  { %v873_v39 = vadd.f32 %v3325_v24, %v872_v37  ;;  %v1131_v40 = vpop.f32.mrf.mxu1  ;;  %v1255_v43 = vadd.f32 %v1254_v36, %v996_v38 }
 0x219   :  { %v1132_v42 = vadd.f32 %v1131_v40, %v873_v39  ;;  %v1460_v52 = vmul.f32 0.01, %v1255_v43  ;;  %vm1360_vm14 = vcmp.gt.f32.partialorder %v1255_v43, 0.0 }
 0x21b   :  { %vm1311_vm13 = vcmp.gt.f32.partialorder %v1132_v42, 0.0  ;;  %v1411_v44 = vmul.f32 0.01, %v1132_v42  ;;  %v1560_v59 = vsel %vm1360_vm14, %v1255_v43, %v1460_v52 }
 0x21c   :  { %v997_v45 = vpop.f32.mrf.mxu2 }
 0x21d   :  { %v1511_v47 = vsel %vm1311_vm13, %v1132_v42, %v1411_v44  ;;  %v998_v48 = vadd.f32 %v3325_v24, %v997_v45  ;;  %v1256_v49 = vpop.f32.mrf.mxu3 }
 0x21e   :  { %v2466_v50 = vpack.c.bf16 %v1511_v47, %v1510_v46  ;;  %v875_v51 = vpop.f32.mrf.mxu0 }
 0x21f   :  { %v1257_v53 = vadd.f32 %v1256_v49, %v998_v48  ;;  %v1134_v54 = vpop.f32.mrf.mxu1  ;;  %v876_v58 = vadd.f32 %v2665_v57, %v875_v51 }
 0x220   :  { %2620 = vst [vmem:[%s3596_s3 + $0xb8] sm:$0xff] %v2466_v50  }
 0x221   :  { %vm1361_vm15 = vcmp.gt.f32.partialorder %v1257_v53, 0.0  ;;  %v1461_v55 = vmul.f32 0.01, %v1257_v53  ;;  %v1135_v62 = vadd.f32 %v1134_v54, %v876_v58 }
 0x223   :  { %v1561_v24 = vsel %vm1361_vm15, %v1257_v53, %v1461_v55  ;;  %v1412_v4 = vmul.f32 0.01, %v1135_v62  ;;  %vm1312_vm0 = vcmp.gt.f32.partialorder %v1135_v62, 0.0 }
 0x224   :  { %v2591_v60 = vpack.c.bf16 %v1561_v24, %v1560_v59  ;;  %v1000_v61 = vpop.f32.mrf.mxu2 }
 0x225   :  { %v1259_v63 = vpop.f32.mrf.mxu3  ;;  %v1001_v1 = vadd.f32 %v2665_v57, %v1000_v61  ;;  %v1512_v9 = vsel %vm1312_vm0, %v1135_v62, %v1412_v4 }
 0x226   :  { %2645 = vst [vmem:[%s3596_s3 + $0x180] sm:$0xff] %v2591_v60   ;;  %v877_v0 = vpop.f32.mrf.mxu0 }
 0x227   :  { %v878_v2 = vadd.f32 %v2665_v57, %v877_v0  ;;  %v1136_v3 = vpop.f32.mrf.mxu1  ;;  %v1260_v6 = vadd.f32 %v1259_v63, %v1001_v1 }
 0x229   :  { %v1137_v5 = vadd.f32 %v1136_v3, %v878_v2  ;;  %v1462_v14 = vmul.f32 0.01, %v1260_v6  ;;  %vm1362_vm2 = vcmp.gt.f32.partialorder %v1260_v6, 0.0 }
 0x22b   :  { %vm1313_vm1 = vcmp.gt.f32.partialorder %v1137_v5, 0.0  ;;  %v1413_v7 = vmul.f32 0.01, %v1137_v5  ;;  %v1562_v16 = vsel %vm1362_vm2, %v1260_v6, %v1462_v14 }
 0x22c   :  { %v1002_v8 = vpop.f32.mrf.mxu2 }
 0x22d   :  { %v1513_v10 = vsel %vm1313_vm1, %v1137_v5, %v1413_v7  ;;  %v1003_v11 = vadd.f32 %v2665_v57, %v1002_v8  ;;  %v1261_v13 = vpop.f32.mrf.mxu3 }
 0x22e   :  { %v2471_v12 = vpack.c.bf16 %v1513_v10, %v1512_v9 }
 0x22f   :  { %v1262_v56 = vadd.f32 %v1261_v13, %v1003_v11 }
 0x230   :  { %2621 = vst [vmem:[%s3596_s3 + $0xc0] sm:$0xff] %v2471_v12  }
 0x231   :  { %vm1363_vm3 = vcmp.gt.f32.partialorder %v1262_v56, 0.0  ;;  %v1463_v15 = vmul.f32 0.01, %v1262_v56 }
 0x233   :  { %v1563_v17 = vsel %vm1363_vm3, %v1262_v56, %v1463_v15 }
 0x234   :  { %v2596_v18 = vpack.c.bf16 %v1563_v17, %v1562_v16 }
 0x236   :  { %2646 = vst [vmem:[%s3596_s3 + $0x188] sm:$0xff] %v2596_v18  }

// kernel: cnn_actor_critic_forward.5
= control target key start
LH: loop header
LB: loop body
LE: loop exit
PB: predicated region body
PF: predicated region fallthrough
CT: control target
= control target key end

     0   :  { %s6319_s1 = inlined_call_operand.vmem [shape: bf16[2048,128], index: 1, kind: input, shape index: {}]   ;;  %s6320_s2 = inlined_call_operand.vmem [shape: f32[1,128], index: 2, kind: input, shape index: {}]   ;;  %s6321_s0 = inlined_call_operand.vmem [shape: bf16[168,2048], index: 0, kind: input, shape index: {}]   ;;  %s6322_s3 = inlined_call_operand.vmem [shape: bf16[168,128], index: 3, kind: output, shape index: {}]  }
   0x1   :  { %v4502_v0 = vld [vmem:[%s6319_s1 + $0x38] sm:$0xff]  ;;  %v4501_v4 = vld [vmem:[%s6319_s1 + $0x30] sm:$0xff]  ;;  %v4500_v8 = vld [vmem:[%s6319_s1 + $0x28] sm:$0xff] }
   0x2   :  { %v4510_v1 = vld [vmem:[%s6319_s1 + $0x78] sm:$0xff]  ;;  %2066 = vmatpush.bf16.msra.mxu0 %v4502_v0  ;;  %v4509_v5 = vld [vmem:[%s6319_s1 + $0x70] sm:$0xff]  ;;  %v4508_v9 = vld [vmem:[%s6319_s1 + $0x68] sm:$0xff] }
   0x3   :  { %v4518_v2 = vld [vmem:[%s6319_s1 + $0xb8] sm:$0xff]  ;;  %2129 = vmatpush.bf16.msra.mxu1 %v4510_v1  ;;  %v4517_v6 = vld [vmem:[%s6319_s1 + $0xb0] sm:$0xff]  ;;  %v4516_v10 = vld [vmem:[%s6319_s1 + $0xa8] sm:$0xff] }
   0x4   :  { %v4526_v3 = vld [vmem:[%s6319_s1 + $0xf8] sm:$0xff]  ;;  %2192 = vmatpush.bf16.msra.mxu2 %v4518_v2  ;;  %v4525_v7 = vld [vmem:[%s6319_s1 + $0xf0] sm:$0xff]  ;;  %v4524_v11 = vld [vmem:[%s6319_s1 + $0xe8] sm:$0xff] }
   0x5   :  { %2255 = vmatpush.bf16.msra.mxu3 %v4526_v3  ;;  %v4499_v12 = vld [vmem:[%s6319_s1 + $0x20] sm:$0xff]  ;;  %v4498_v16 = vld [vmem:[%s6319_s1 + $0x18] sm:$0xff]  ;;  %v4497_v20 = vld [vmem:[%s6319_s1 + $0x10] sm:$0xff] }
   0x6   :  { %2067 = vmatpush.bf16.msra.mxu0 %v4501_v4  ;;  %v4507_v13 = vld [vmem:[%s6319_s1 + $0x60] sm:$0xff]  ;;  %v4506_v17 = vld [vmem:[%s6319_s1 + $0x58] sm:$0xff]  ;;  %v4505_v21 = vld [vmem:[%s6319_s1 + $0x50] sm:$0xff] }
   0x7   :  { %2130 = vmatpush.bf16.msra.mxu1 %v4509_v5  ;;  %v4515_v14 = vld [vmem:[%s6319_s1 + $0xa0] sm:$0xff]  ;;  %v4514_v18 = vld [vmem:[%s6319_s1 + $0x98] sm:$0xff]  ;;  %v4513_v22 = vld [vmem:[%s6319_s1 + $0x90] sm:$0xff] }
   0x8   :  { %2193 = vmatpush.bf16.msra.mxu2 %v4517_v6  ;;  %v4523_v15 = vld [vmem:[%s6319_s1 + $0xe0] sm:$0xff]  ;;  %v4522_v19 = vld [vmem:[%s6319_s1 + $0xd8] sm:$0xff]  ;;  %v4521_v23 = vld [vmem:[%s6319_s1 + $0xd0] sm:$0xff] }
   0x9   :  { %2256 = vmatpush.bf16.msra.mxu3 %v4525_v7  ;;  %v4496_v24 = vld [vmem:[%s6319_s1 + $0x8] sm:$0xff]  ;;  %v4495_v28 = vld [vmem:[%s6319_s1] sm:$0xff]  ;;  %v4550_v40 = vld [vmem:[%s6319_s1 + $0x1b8] sm:$0xff] }
   0xa   :  { %2068 = vmatpush.bf16.msra.mxu0 %v4500_v8  ;;  %v4504_v25 = vld [vmem:[%s6319_s1 + $0x48] sm:$0xff]  ;;  %v4503_v29 = vld [vmem:[%s6319_s1 + $0x40] sm:$0xff]  ;;  %v4534_v41 = vld [vmem:[%s6319_s1 + $0x138] sm:$0xff] }
   0xb   :  { %2131 = vmatpush.bf16.msra.mxu1 %v4508_v9  ;;  %v4512_v26 = vld [vmem:[%s6319_s1 + $0x88] sm:$0xff]  ;;  %v4511_v30 = vld [vmem:[%s6319_s1 + $0x80] sm:$0xff]  ;;  %v4558_v46 = vld [vmem:[%s6319_s1 + $0x1f8] sm:$0xff] }
   0xc   :  { %2194 = vmatpush.bf16.msra.mxu2 %v4516_v10  ;;  %v4520_v27 = vld [vmem:[%s6319_s1 + $0xc8] sm:$0xff]  ;;  %v4519_v31 = vld [vmem:[%s6319_s1 + $0xc0] sm:$0xff]  ;;  %v4542_v47 = vld [vmem:[%s6319_s1 + $0x178] sm:$0xff] }
   0xd   :  { %2257 = vmatpush.bf16.msra.mxu3 %v4524_v11  ;;  %v3185_v32 = vld [vmem:[%s6321_s0] sm:$0xf]  ;;  %v4335_v34 = vld [vmem:[%s6321_s0 + $0x4] sm:$0xf]  ;;  %v3193_v36 = vld [vmem:[%s6321_s0 + $0x8] sm:$0xf] }
   0xe   :  { %2069 = vmatpush.bf16.msra.mxu0 %v4499_v12  ;;  %v4343_v33 = vld [vmem:[%s6321_s0 + $0x3c] sm:$0xf0]  ;;  %v3187_v35 = vld [vmem:[%s6321_s0 + $0x40] sm:$0xf0]  ;;  %v4344_v37 = vld [vmem:[%s6321_s0 + $0x44] sm:$0xf0] }
   0xf   :  { %2132 = vmatpush.bf16.msra.mxu1 %v4507_v13  ;;  %v4336_v38 = vld [vmem:[%s6321_s0 + $0xc] sm:$0xf]  ;;  %v3186_v42 = vor.u32 %v4343_v33, %v3185_v32  ;;  %v3190_v43 = vor.u32 %v4335_v34, %v3187_v35  ;;  %v3194_v44 = vor.u32 %v4344_v37, %v3193_v36  ;;  %v4549_v48 = vld [vmem:[%s6319_s1 + $0x1b0] sm:$0xff]  ;;  %v3249_v55 = vld [vmem:[%s6321_s0 + $0x80] sm:$0xf] }
  0x10   :  { %2195 = vmatpush.bf16.msra.mxu2 %v4515_v14  ;;  %v3195_v39 = vld [vmem:[%s6321_s0 + $0x48] sm:$0xf0]  ;;  %v4533_v49 = vld [vmem:[%s6319_s1 + $0x130] sm:$0xff]  ;;  %v4359_v56 = vld [vmem:[%s6321_s0 + $0xbc] sm:$0xf0] }
  0x11   :  { %2258 = vmatpush.bf16.msra.mxu3 %v4523_v15  ;;  %v3198_v45 = vor.u32 %v4336_v38, %v3195_v39  ;;  %v4557_v50 = vld [vmem:[%s6319_s1 + $0x1f0] sm:$0xff]  ;;  %v4548_v52 = vld [vmem:[%s6319_s1 + $0x1a8] sm:$0xff]  ;;  %v4351_v57 = vld [vmem:[%s6321_s0 + $0x84] sm:$0xf]  ;;  %v3250_v63 = vor.u32 %v4359_v56, %v3249_v55 }
  0x12   :  { %2070 = vmatpush.bf16.msra.mxu0 %v4498_v16  ;;  %v4541_v51 = vld [vmem:[%s6319_s1 + $0x170] sm:$0xff]  ;;  %v4532_v53 = vld [vmem:[%s6319_s1 + $0x128] sm:$0xff]  ;;  %v3251_v58 = vld [vmem:[%s6321_s0 + $0xc0] sm:$0xf0] }
  0x13   :  { %2133 = vmatpush.bf16.msra.mxu1 %v4506_v17  ;;  %v4556_v54 = vld [vmem:[%s6319_s1 + $0x1e8] sm:$0xff]  ;;  %v3254_v0 = vor.u32 %v4351_v57, %v3251_v58  ;;  %v3313_v4 = vld [vmem:[%s6321_s0 + $0x100] sm:$0xf]  ;;  %v4367_v6 = vld [vmem:[%s6321_s0 + $0x104] sm:$0xf] }
  0x14   :  { %2196 = vmatpush.bf16.msra.mxu2 %v4514_v18  ;;  %v3257_v59 = vld [vmem:[%s6321_s0 + $0x88] sm:$0xf]  ;;  %v4352_v61 = vld [vmem:[%s6321_s0 + $0x8c] sm:$0xf]  ;;  %v4375_v5 = vld [vmem:[%s6321_s0 + $0x13c] sm:$0xf0] }
  0x15   :  { %2259 = vmatpush.bf16.msra.mxu3 %v4522_v19  ;;  %v4360_v60 = vld [vmem:[%s6321_s0 + $0xc4] sm:$0xf0]  ;;  %v3259_v62 = vld [vmem:[%s6321_s0 + $0xc8] sm:$0xf0]  ;;  %v3315_v7 = vld [vmem:[%s6321_s0 + $0x140] sm:$0xf0]  ;;  %v3314_v12 = vor.u32 %v4375_v5, %v3313_v4 }
  0x16   :  { %2071 = vmatpush.bf16.msra.mxu0 %v4497_v20  ;;  %v3258_v1 = vor.u32 %v4360_v60, %v3257_v59  ;;  %v3262_v2 = vor.u32 %v4352_v61, %v3259_v62  ;;  %v4540_v3 = vld [vmem:[%s6319_s1 + $0x168] sm:$0xff]  ;;  %v3318_v13 = vor.u32 %v4367_v6, %v3315_v7  ;;  %v4547_v16 = vld [vmem:[%s6319_s1 + $0x1a0] sm:$0xff]  ;;  %v4546_v32 = vld [vmem:[%s6319_s1 + $0x198] sm:$0xff] }
  0x17   :  { %2134 = vmatpush.bf16.msra.mxu1 %v4505_v21  ;;  %v3321_v8 = vld [vmem:[%s6321_s0 + $0x108] sm:$0xf]  ;;  %v4368_v10 = vld [vmem:[%s6321_s0 + $0x10c] sm:$0xf]  ;;  %v4531_v17 = vld [vmem:[%s6319_s1 + $0x120] sm:$0xff] }
  0x18   :  { %2197 = vmatpush.bf16.msra.mxu2 %v4513_v22  ;;  %v4376_v9 = vld [vmem:[%s6321_s0 + $0x144] sm:$0xf0]  ;;  %v3323_v11 = vld [vmem:[%s6321_s0 + $0x148] sm:$0xf0]  ;;  %v4555_v18 = vld [vmem:[%s6319_s1 + $0x1e0] sm:$0xff] }
  0x19   :  { %2260 = vmatpush.bf16.msra.mxu3 %v4521_v23  ;;  %v3322_v14 = vor.u32 %v4376_v9, %v3321_v8  ;;  %v3326_v15 = vor.u32 %v4368_v10, %v3323_v11  ;;  %v4539_v19 = vld [vmem:[%s6319_s1 + $0x160] sm:$0xff]  ;;  %v4530_v33 = vld [vmem:[%s6319_s1 + $0x118] sm:$0xff]  ;;  %v4416_v55 = vld [vmem:[%s6321_s0 + $0x28c] sm:$0xf] }
  0x1a   :  { %2072 = vmatpush.bf16.msra.mxu0 %v4496_v24  ;;  %v3377_v20 = vld [vmem:[%s6321_s0 + $0x180] sm:$0xf]  ;;  %v4383_v22 = vld [vmem:[%s6321_s0 + $0x184] sm:$0xf]  ;;  %v3385_v24 = vld [vmem:[%s6321_s0 + $0x188] sm:$0xf] }
  0x1b   :  { %2135 = vmatpush.bf16.msra.mxu1 %v4504_v25  ;;  %v4391_v21 = vld [vmem:[%s6321_s0 + $0x1bc] sm:$0xf0]  ;;  %v3379_v23 = vld [vmem:[%s6321_s0 + $0x1c0] sm:$0xf0]  ;;  %v4392_v25 = vld [vmem:[%s6321_s0 + $0x1c4] sm:$0xf0] }
  0x1c   :  { %2198 = vmatpush.bf16.msra.mxu2 %v4512_v26  ;;  %v4384_v26 = vld [vmem:[%s6321_s0 + $0x18c] sm:$0xf]  ;;  %v4554_v34 = vld [vmem:[%s6319_s1 + $0x1d8] sm:$0xff]  ;;  %v3441_v36 = vld [vmem:[%s6321_s0 + $0x200] sm:$0xf] }
  0x1d   :  { %2261 = vmatpush.bf16.msra.mxu3 %v4520_v27  ;;  %v3387_v27 = vld [vmem:[%s6321_s0 + $0x1c8] sm:$0xf0]  ;;  %v4538_v35 = vld [vmem:[%s6319_s1 + $0x158] sm:$0xff]  ;;  %v4407_v37 = vld [vmem:[%s6321_s0 + $0x23c] sm:$0xf0] }
  0x1e   :  { %2073 = vmatpush.bf16.msra.mxu0 %v4495_v28  ;;  %v3378_v28 = vor.u32 %v4391_v21, %v3377_v20  ;;  %v4399_v38 = vld [vmem:[%s6321_s0 + $0x204] sm:$0xf]  ;;  %v3515_v56 = vld [vmem:[%s6321_s0 + $0x2c8] sm:$0xf0]  ;;  %v4529_v61 = vld [vmem:[%s6319_s1 + $0x110] sm:$0xff] }
  0x1f   :  { %2136 = vmatpush.bf16.msra.mxu1 %v4503_v29  ;;  %v3382_v29 = vor.u32 %v4383_v22, %v3379_v23  ;;  %v3443_v39 = vld [vmem:[%s6321_s0 + $0x240] sm:$0xf0]  ;;  %v3518_v60 = vor.u32 %v4416_v55, %v3515_v56  ;;  %v4553_v62 = vld [vmem:[%s6319_s1 + $0x1d0] sm:$0xff]  ;;  %v3577_v4 = vld [vmem:[%s6321_s0 + $0x308] sm:$0xf] }
  0x20   :  { %2199 = vmatpush.bf16.msra.mxu2 %v4511_v30  ;;  %v3386_v30 = vor.u32 %v4392_v25, %v3385_v24  ;;  %v4440_v5 = vld [vmem:[%s6321_s0 + $0x344] sm:$0xf0]  ;;  %v4432_v6 = vld [vmem:[%s6321_s0 + $0x30c] sm:$0xf] }
  0x21   :  { %2262 = vmatpush.bf16.msra.mxu3 %v4519_v31  ;;  %2074 = vmatmul.bf16.vlgmr.msra.gmra.mxu0 %v3186_v42  ;;  %v3390_v31 = vor.u32 %v4384_v26, %v3387_v27  ;;  %v4400_v42 = vld [vmem:[%s6321_s0 + $0x20c] sm:$0xf]  ;;  %v3578_v10 = vor.u32 %v4440_v5, %v3577_v4  ;;  %v3641_v20 = vld [vmem:[%s6321_s0 + $0x388] sm:$0xf] }
  0x22   :  { %2318 = vmatpush.bf16.msrb.mxu0 %v4534_v41  ;;  %2137 = vmatmul.bf16.vlgmr.msra.gmra.mxu1 %v3190_v43  ;;  %v4408_v41 = vld [vmem:[%s6321_s0 + $0x244] sm:$0xf0]  ;;  %v3451_v43 = vld [vmem:[%s6321_s0 + $0x248] sm:$0xf0] }
  0x23   :  { %2200 = vmatmul.bf16.vlgmr.msra.gmra.mxu2 %v3194_v44  ;;  %2381 = vmatpush.bf16.msrb.mxu1 %v4542_v47  ;;  %v3442_v44 = vor.u32 %v4407_v37, %v3441_v36  ;;  %v3454_v47 = vor.u32 %v4400_v42, %v3451_v43  ;;  %v3579_v7 = vld [vmem:[%s6321_s0 + $0x348] sm:$0xf0]  ;;  %v4456_v21 = vld [vmem:[%s6321_s0 + $0x3c4] sm:$0xf0] }
  0x24   :  { %2444 = vmatpush.bf16.msrb.mxu2 %v4550_v40  ;;  %2263 = vmatmul.bf16.vlgmr.msra.gmra.mxu3 %v3198_v45  ;;  %v3449_v40 = vld [vmem:[%s6321_s0 + $0x208] sm:$0xf]  ;;  %v3446_v45 = vor.u32 %v4399_v38, %v3443_v39  ;;  %v3582_v11 = vor.u32 %v4432_v6, %v3579_v7  ;;  %v4448_v22 = vld [vmem:[%s6321_s0 + $0x38c] sm:$0xf]  ;;  %v3642_v26 = vor.u32 %v4456_v21, %v3641_v20  ;;  %v174_v21 = vld [vmem:[%s6321_s0 + $0x500] sm:$0xff] }
  0x25   :  { %2507 = vmatpush.bf16.msrb.mxu3 %v4558_v46  ;;  %v3450_v46 = vor.u32 %v4408_v41, %v3449_v40  ;;  %v3643_v23 = vld [vmem:[%s6321_s0 + $0x3c8] sm:$0xf0] }
  0x26   :  { %2319 = vmatpush.bf16.msrb.mxu0 %v4533_v49  ;;  %v3505_v49 = vld [vmem:[%s6321_s0 + $0x280] sm:$0xf]  ;;  %v3646_v27 = vor.u32 %v4448_v22, %v3643_v23  ;;  %v4464_v36 = vld [vmem:[%s6321_s0 + $0x40c] sm:$0xf] }
  0x27   :  { %2382 = vmatpush.bf16.msrb.mxu1 %v4541_v51  ;;  %v4415_v51 = vld [vmem:[%s6321_s0 + $0x284] sm:$0xf]  ;;  %v3707_v37 = vld [vmem:[%s6321_s0 + $0x448] sm:$0xf0] }
  0x28   :  { %2445 = vmatpush.bf16.msrb.mxu2 %v4549_v48  ;;  %v4545_v48 = vld [vmem:[%s6319_s1 + $0x190] sm:$0xff]  ;;  %v3710_v43 = vor.u32 %v4464_v36, %v3707_v37  ;;  %v175_v23 = vld [vmem:[%s6321_s0 + $0x508] sm:$0xff] }
  0x29   :  { %2508 = vmatpush.bf16.msrb.mxu3 %v4557_v50  ;;  %v4423_v50 = vld [vmem:[%s6321_s0 + $0x2bc] sm:$0xf0] }
  0x2a   :  { %2320 = vmatpush.bf16.msrb.mxu0 %v4532_v53  ;;  %v3513_v53 = vld [vmem:[%s6321_s0 + $0x288] sm:$0xf]  ;;  %v3506_v57 = vor.u32 %v4423_v50, %v3505_v49 }
  0x2b   :  { %2383 = vmatpush.bf16.msrb.mxu1 %v4540_v3  ;;  %v3571_v3 = vld [vmem:[%s6321_s0 + $0x340] sm:$0xf0] }
  0x2c   :  { %2446 = vmatpush.bf16.msrb.mxu2 %v4548_v52  ;;  %v3507_v52 = vld [vmem:[%s6321_s0 + $0x2c0] sm:$0xf0] }
  0x2d   :  { %2509 = vmatpush.bf16.msrb.mxu3 %v4556_v54  ;;  %v4424_v54 = vld [vmem:[%s6321_s0 + $0x2c4] sm:$0xf0]  ;;  %v3510_v58 = vor.u32 %v4415_v51, %v3507_v52 }
  0x2e   :  { %2321 = vmatpush.bf16.msrb.mxu0 %v4531_v17  ;;  %v3514_v59 = vor.u32 %v4424_v54, %v3513_v53  ;;  %v4536_v17 = vld [vmem:[%s6319_s1 + $0x148] sm:$0xff] }
  0x2f   :  { %2384 = vmatpush.bf16.msrb.mxu1 %v4539_v19  ;;  %v3635_v19 = vld [vmem:[%s6321_s0 + $0x3c0] sm:$0xf0] }
  0x30   :  { %2447 = vmatpush.bf16.msrb.mxu2 %v4547_v16  ;;  %v4552_v16 = vld [vmem:[%s6319_s1 + $0x1c8] sm:$0xff] }
  0x31   :  { %2079 = vmatmul.bf16.gmra.mxu0 %v3250_v63  ;;  %2510 = vmatpush.bf16.msrb.mxu3 %v4555_v18  ;;  %v4537_v63 = vld [vmem:[%s6319_s1 + $0x150] sm:$0xff]  ;;  %v4447_v18 = vld [vmem:[%s6321_s0 + $0x384] sm:$0xf] }
  0x32   :  { %2142 = vmatmul.bf16.gmra.mxu1 %v3254_v0  ;;  %2322 = vmatpush.bf16.msrb.mxu0 %v4530_v33  ;;  %v3569_v0 = vld [vmem:[%s6321_s0 + $0x300] sm:$0xf]  ;;  %v3638_v25 = vor.u32 %v4447_v18, %v3635_v19  ;;  %v3699_v33 = vld [vmem:[%s6321_s0 + $0x440] sm:$0xf0] }
  0x33   :  { %2205 = vmatmul.bf16.gmra.mxu2 %v3258_v1  ;;  %2385 = vmatpush.bf16.msrb.mxu1 %v4538_v35  ;;  %v4439_v1 = vld [vmem:[%s6321_s0 + $0x33c] sm:$0xf0]  ;;  %v4472_v35 = vld [vmem:[%s6321_s0 + $0x444] sm:$0xf0] }
  0x34   :  { %2268 = vmatmul.bf16.gmra.mxu3 %v3262_v2  ;;  %2448 = vmatpush.bf16.msrb.mxu2 %v4546_v32  ;;  %v4431_v2 = vld [vmem:[%s6321_s0 + $0x304] sm:$0xf]  ;;  %v3570_v8 = vor.u32 %v4439_v1, %v3569_v0  ;;  %v3771_v0 = vld [vmem:[%s6321_s0 + $0x4c8] sm:$0xf0] }
  0x35   :  { %2511 = vmatpush.bf16.msrb.mxu3 %v4554_v34  ;;  %v3574_v9 = vor.u32 %v4431_v2, %v3571_v3  ;;  %v4463_v32 = vld [vmem:[%s6321_s0 + $0x404] sm:$0xf]  ;;  %v3705_v34 = vld [vmem:[%s6321_s0 + $0x408] sm:$0xf] }
  0x36   :  { %2323 = vmatpush.bf16.msrb.mxu0 %v4529_v61  ;;  %v3702_v39 = vor.u32 %v4463_v32, %v3699_v33  ;;  %v3706_v42 = vor.u32 %v4472_v35, %v3705_v34  ;;  %v3769_v61 = vld [vmem:[%s6321_s0 + $0x488] sm:$0xf] }
  0x37   :  { %2386 = vmatpush.bf16.msrb.mxu1 %v4537_v63  ;;  %v4480_v63 = vld [vmem:[%s6321_s0 + $0x48c] sm:$0xf] }
  0x38   :  { %2449 = vmatpush.bf16.msrb.mxu2 %v4545_v48  ;;  %v4535_v48 = vld [vmem:[%s6319_s1 + $0x140] sm:$0xff] }
  0x39   :  { %2512 = vmatpush.bf16.msrb.mxu3 %v4553_v62  ;;  %v4488_v62 = vld [vmem:[%s6321_s0 + $0x4c4] sm:$0xf0] }
  0x3b   :  { %2387 = vmatpush.bf16.msrb.mxu1 %v4536_v17 }
  0x3d   :  { %2513 = vmatpush.bf16.msrb.mxu3 %v4552_v16 }
  0x3f   :  { %2388 = vmatpush.bf16.msrb.mxu1 %v4535_v48 }
  0x41   :  { %2084 = vmatmul.bf16.gmra.mxu0 %v3314_v12  ;;  %v3633_v12 = vld [vmem:[%s6321_s0 + $0x380] sm:$0xf] }
  0x42   :  { %2147 = vmatmul.bf16.gmra.mxu1 %v3318_v13  ;;  %v4455_v13 = vld [vmem:[%s6321_s0 + $0x3bc] sm:$0xf0] }
  0x43   :  { %2210 = vmatmul.bf16.gmra.mxu2 %v3322_v14  ;;  %v4544_v14 = vld [vmem:[%s6319_s1 + $0x188] sm:$0xff]  ;;  %v3634_v24 = vor.u32 %v4455_v13, %v3633_v12  ;;  %v4582_v13 = vld [vmem:[%s6319_s1 + $0x2b8] sm:$0xff] }
  0x44   :  { %2273 = vmatmul.bf16.gmra.mxu3 %v3326_v15  ;;  %v4528_v15 = vld [vmem:[%s6319_s1 + $0x108] sm:$0xff]  ;;  %2450 = vmatpush.bf16.msrb.mxu2 %v4544_v14  ;;  %v4566_v14 = vld [vmem:[%s6319_s1 + $0x238] sm:$0xff] }
  0x45   :  { %2324 = vmatpush.bf16.msrb.mxu0 %v4528_v15  ;;  %v4590_v15 = vld [vmem:[%s6319_s1 + $0x2f8] sm:$0xff] }
  0x51   :  { %2089 = vmatmul.bf16.gmra.mxu0 %v3378_v28  ;;  %v5078_v28 = vld [vmem:[%s6320_s2] ss:$0 sm:$0xff] }
  0x52   :  { %2152 = vmatmul.bf16.gmra.mxu1 %v3382_v29  ;;  %v3697_v29 = vld [vmem:[%s6321_s0 + $0x400] sm:$0xf] }
  0x53   :  { %2215 = vmatmul.bf16.gmra.mxu2 %v3386_v30  ;;  %v4471_v30 = vld [vmem:[%s6321_s0 + $0x43c] sm:$0xf0] }
  0x54   :  { %2278 = vmatmul.bf16.gmra.mxu3 %v3390_v31  ;;  %v4543_v31 = vld [vmem:[%s6319_s1 + $0x180] sm:$0xff]  ;;  %v3698_v38 = vor.u32 %v4471_v30, %v3697_v29  ;;  %v931_v29 = vunpack.c.h.b16 %v174_v21  ;;  %v932_v30 = vunpack.c.l.b16 %v175_v23 }
  0x55   :  { %2451 = vmatpush.bf16.msrb.mxu2 %v4543_v31  ;;  %v933_v31 = vunpack.c.h.b16 %v175_v23  ;;  %v4361_v23 = vld [vmem:[%s6321_s0 + $0xcc] sm:$0xf0] }
  0x56   :  { %v1107_v35 = vpack.c.b16 %v931_v29, %v931_v29  ;;  %v4362_v29 = vld [vmem:[%s6321_s0 + $0xd4] sm:$0xf0] }
  0x59   :  { %2696 = vmatpush.bf16.msra.mxu2 %v4582_v13 }
  0x61   :  { %2094 = vmatmul.bf16.gmra.mxu0 %v3442_v44 }
  0x62   :  { %2157 = vmatmul.bf16.gmra.mxu1 %v3446_v45  ;;  %v4527_v45 = vld [vmem:[%s6319_s1 + $0x100] sm:$0xff] }
  0x63   :  { %2220 = vmatmul.bf16.gmra.mxu2 %v3450_v46  ;;  %v4551_v46 = vld [vmem:[%s6319_s1 + $0x1c0] sm:$0xff]  ;;  %2325 = vmatpush.bf16.msrb.mxu0 %v4527_v45 }
  0x64   :  { %2283 = vmatmul.bf16.gmra.mxu3 %v3454_v47 }
  0x65   :  { %2514 = vmatpush.bf16.msrb.mxu3 %v4551_v46 }
  0x67   :  { %2570 = vmatpush.bf16.msra.mxu0 %v4566_v14 }
  0x69   :  { %2759 = vmatpush.bf16.msra.mxu3 %v4590_v15 }
  0x71   :  { %2099 = vmatmul.bf16.gmra.mxu0 %v3506_v57  ;;  %v3761_v57 = vld [vmem:[%s6321_s0 + $0x480] sm:$0xf] }
  0x72   :  { %2162 = vmatmul.bf16.gmra.mxu1 %v3510_v58  ;;  %v4487_v58 = vld [vmem:[%s6321_s0 + $0x4bc] sm:$0xf0] }
  0x73   :  { %2225 = vmatmul.bf16.gmra.mxu2 %v3514_v59  ;;  %v4479_v59 = vld [vmem:[%s6321_s0 + $0x484] sm:$0xf]  ;;  %v3762_v3 = vor.u32 %v4487_v58, %v3761_v57  ;;  %v4565_v57 = vld [vmem:[%s6319_s1 + $0x230] sm:$0xff] }
  0x74   :  { %2288 = vmatmul.bf16.gmra.mxu3 %v3518_v60  ;;  %v3763_v60 = vld [vmem:[%s6321_s0 + $0x4c0] sm:$0xf0]  ;;  %v4589_v58 = vld [vmem:[%s6319_s1 + $0x2f0] sm:$0xff]  ;;  %2571 = vmatpush.bf16.msra.mxu0 %v4565_v57 }
  0x75   :  { %v3766_v4 = vor.u32 %v4479_v59, %v3763_v60  ;;  %v3203_v59 = vld [vmem:[%s6321_s0 + $0x50] sm:$0xf0]  ;;  %v3209_v60 = vld [vmem:[%s6321_s0 + $0x18] sm:$0xf]  ;;  %2760 = vmatpush.bf16.msra.mxu3 %v4589_v58 }
  0x81   :  { %2104 = vmatmul.bf16.gmra.mxu0 %v3570_v8  ;;  %v3770_v8 = vor.u32 %v4488_v62, %v3769_v61  ;;  %v4573_v61 = vld [vmem:[%s6319_s1 + $0x270] sm:$0xff]  ;;  %v4346_v62 = vld [vmem:[%s6321_s0 + $0x54] sm:$0xf0] }
  0x82   :  { %2167 = vmatmul.bf16.gmra.mxu1 %v3574_v9  ;;  %v3774_v9 = vor.u32 %v4480_v63, %v3771_v0  ;;  %v4338_v63 = vld [vmem:[%s6321_s0 + $0x1c] sm:$0xf] }
  0x83   :  { %2230 = vmatmul.bf16.gmra.mxu2 %v3578_v10  ;;  %v3211_v0 = vld [vmem:[%s6321_s0 + $0x58] sm:$0xf0] }
  0x84   :  { %2293 = vmatmul.bf16.gmra.mxu3 %v3582_v11 }
  0x91   :  { %2109 = vmatmul.bf16.gmra.mxu0 %v3634_v24 }
  0x92   :  { %2172 = vmatmul.bf16.gmra.mxu1 %v3638_v25  ;;  %v4574_v25 = vld [vmem:[%s6319_s1 + $0x278] sm:$0xff] }
  0x93   :  { %2235 = vmatmul.bf16.gmra.mxu2 %v3642_v26  ;;  %2633 = vmatpush.bf16.msra.mxu1 %v4574_v25  ;;  %v4353_v25 = vld [vmem:[%s6321_s0 + $0x94] sm:$0xf] }
  0x94   :  { %2298 = vmatmul.bf16.gmra.mxu3 %v3646_v27  ;;  %v930_v27 = vunpack.c.l.b16 %v174_v21 }
  0x96   :  { %v1106_v34 = vpack.c.b16 %v930_v27, %v930_v27  ;;  %v3273_v27 = vld [vmem:[%s6321_s0 + $0x98] sm:$0xf] }
  0x97   :  { %2634 = vmatpush.bf16.msra.mxu1 %v4573_v61  ;;  %v4369_v61 = vld [vmem:[%s6321_s0 + $0x114] sm:$0xf] }
  0x9e   :  { %v2075_v40 = vpop.f32.mrf.mxu0 }
  0x9f   :  { %v2138_v41 = vpop.f32.mrf.mxu1  ;;  %v2076_v44 = vadd.f32 %v5078_v28, %v2075_v40  ;;  %v1109_v40 = vpack.c.b16 %v933_v31, %v933_v31  ;;  %v3275_v31 = vld [vmem:[%s6321_s0 + $0xd8] sm:$0xf0] }
  0xa1   :  { %v2139_v47 = vadd.f32 %v2138_v41, %v2076_v44  ;;  %2114 = vmatmul.bf16.gmra.mxu0 %v3698_v38 }
  0xa2   :  { %2177 = vmatmul.bf16.gmra.mxu1 %v3702_v39  ;;  %v1108_v39 = vpack.c.b16 %v932_v30, %v932_v30  ;;  %v4354_v30 = vld [vmem:[%s6321_s0 + $0x9c] sm:$0xf] }
  0xa3   :  { %2240 = vmatmul.bf16.gmra.mxu2 %v3706_v42 }
  0xa4   :  { %2303 = vmatmul.bf16.gmra.mxu3 %v3710_v43 }
  0xa6   :  { %v2201_v49 = vpop.f32.mrf.mxu2  ;;  %v2077_v52 = vpop.f32.mrf.mxu0 }
  0xa7   :  { %v2264_v50 = vpop.f32.mrf.mxu3  ;;  %v2202_v51 = vadd.f32 %v2201_v49, %v2139_v47  ;;  %v2140_v53 = vpop.f32.mrf.mxu1  ;;  %v2078_v54 = vadd.f32 %v5078_v28, %v2077_v52  ;;  %v4345_v52 = vld [vmem:[%s6321_s0 + $0x4c] sm:$0xf0] }
  0xa9   :  { %v5118_v55 = vadd.f32 %v2264_v50, %v2202_v51  ;;  %v2141_v56 = vadd.f32 %v2140_v53, %v2078_v54  ;;  %v3201_v51 = vld [vmem:[%s6321_s0 + $0x10] sm:$0xf]  ;;  %v4337_v53 = vld [vmem:[%s6321_s0 + $0x14] sm:$0xf] }
  0xae   :  { %v2203_v1 = vpop.f32.mrf.mxu2  ;;  %v2080_v6 = vpop.f32.mrf.mxu0 }
  0xaf   :  { %v2266_v2 = vpop.f32.mrf.mxu3  ;;  %v2204_v5 = vadd.f32 %v2203_v1, %v2141_v56  ;;  %v2143_v7 = vpop.f32.mrf.mxu1  ;;  %v2081_v10 = vadd.f32 %v5078_v28, %v2080_v6  ;;  %v4581_v56 = vld [vmem:[%s6319_s1 + $0x2b0] sm:$0xff] }
  0xb0   :  { %2697 = vmatpush.bf16.msra.mxu2 %v4581_v56 }
  0xb1   :  { %v5145_v11 = vadd.f32 %v2266_v2, %v2204_v5  ;;  %v2144_v12 = vadd.f32 %v2143_v7, %v2081_v10  ;;  %2119 = vmatmul.bf16.gmra.mxu0 %v3762_v3  ;;  %v3202_v3 = vor.u32 %v4345_v52, %v3201_v51 }
  0xb2   :  { %2182 = vmatmul.bf16.gmra.mxu1 %v3766_v4  ;;  %v3206_v4 = vor.u32 %v4337_v53, %v3203_v59  ;;  %v3329_v59 = vld [vmem:[%s6321_s0 + $0x110] sm:$0xf] }
  0xb3   :  { %2245 = vmatmul.bf16.gmra.mxu2 %v3770_v8  ;;  %v3210_v8 = vor.u32 %v4346_v62, %v3209_v60  ;;  %v4377_v60 = vld [vmem:[%s6321_s0 + $0x14c] sm:$0xf0]  ;;  %v3331_v62 = vld [vmem:[%s6321_s0 + $0x150] sm:$0xf0] }
  0xb4   :  { %2308 = vmatmul.bf16.gmra.mxu3 %v3774_v9  ;;  %v3214_v9 = vor.u32 %v4338_v63, %v3211_v0  ;;  %v3337_v63 = vld [vmem:[%s6321_s0 + $0x118] sm:$0xf] }
  0xb5   :  { %v4378_v0 = vld [vmem:[%s6321_s0 + $0x154] sm:$0xf0] }
  0xb6   :  { %v2206_v16 = vpop.f32.mrf.mxu2  ;;  %v2082_v19 = vpop.f32.mrf.mxu0 }
  0xb7   :  { %v2269_v17 = vpop.f32.mrf.mxu3  ;;  %v2207_v18 = vadd.f32 %v2206_v16, %v2144_v12  ;;  %v2145_v20 = vpop.f32.mrf.mxu1  ;;  %v2083_v22 = vadd.f32 %v5078_v28, %v2082_v19 }
  0xb9   :  { %v5163_v24 = vadd.f32 %v2269_v17, %v2207_v18  ;;  %v2146_v26 = vadd.f32 %v2145_v20, %v2083_v22  ;;  %v3265_v22 = vld [vmem:[%s6321_s0 + $0x90] sm:$0xf] }
  0xbe   :  { %v2208_v32 = vpop.f32.mrf.mxu2  ;;  %v2085_v37 = vpop.f32.mrf.mxu0 }
  0xbf   :  { %v2271_v33 = vpop.f32.mrf.mxu3  ;;  %v2209_v36 = vadd.f32 %v2208_v32, %v2146_v26  ;;  %v2148_v38 = vpop.f32.mrf.mxu1  ;;  %v2086_v41 = vadd.f32 %v5078_v28, %v2085_v37  ;;  %v3267_v26 = vld [vmem:[%s6321_s0 + $0xd0] sm:$0xf0] }
  0xc1   :  { %v5169_v42 = vadd.f32 %v2271_v33, %v2209_v36  ;;  %v2149_v43 = vadd.f32 %v2148_v38, %v2086_v41  ;;  %2124 = vmatmul.bf16.gmra.mxu0 %v1106_v34  ;;  %v3266_v34 = vor.u32 %v4361_v23, %v3265_v22 }
  0xc2   :  { %2187 = vmatmul.bf16.gmra.mxu1 %v1107_v35  ;;  %v3270_v35 = vor.u32 %v4353_v25, %v3267_v26 }
  0xc3   :  { %2250 = vmatmul.bf16.gmra.mxu2 %v1108_v39  ;;  %v3274_v39 = vor.u32 %v4362_v29, %v3273_v27  ;;  %v4563_v27 = vld [vmem:[%s6319_s1 + $0x220] sm:$0xff] }
  0xc4   :  { %2313 = vmatmul.bf16.gmra.mxu3 %v1109_v40  ;;  %v3278_v40 = vor.u32 %v4354_v30, %v3275_v31  ;;  %v4587_v29 = vld [vmem:[%s6319_s1 + $0x2e0] sm:$0xff]  ;;  %v3393_v31 = vld [vmem:[%s6321_s0 + $0x190] sm:$0xf] }
  0xc6   :  { %v2211_v44 = vpop.f32.mrf.mxu2  ;;  %v2087_v47 = vpop.f32.mrf.mxu0 }
  0xc7   :  { %v2274_v45 = vpop.f32.mrf.mxu3  ;;  %v2212_v46 = vadd.f32 %v2211_v44, %v2149_v43  ;;  %v2150_v48 = vpop.f32.mrf.mxu1  ;;  %v2088_v49 = vadd.f32 %v5078_v28, %v2087_v47  ;;  %v4580_v44 = vld [vmem:[%s6319_s1 + $0x2a8] sm:$0xff] }
  0xc8   :  { %v4588_v47 = vld [vmem:[%s6319_s1 + $0x2e8] sm:$0xff]  ;;  %2698 = vmatpush.bf16.msra.mxu2 %v4580_v44 }
  0xc9   :  { %v5172_v50 = vadd.f32 %v2274_v45, %v2212_v46  ;;  %v2151_v54 = vadd.f32 %v2150_v48, %v2088_v49  ;;  %v4564_v46 = vld [vmem:[%s6319_s1 + $0x228] sm:$0xff]  ;;  %2761 = vmatpush.bf16.msra.mxu3 %v4588_v47 }
  0xca   :  { %v4572_v48 = vld [vmem:[%s6319_s1 + $0x268] sm:$0xff]  ;;  %2572 = vmatpush.bf16.msra.mxu0 %v4564_v46 }
  0xcb   :  { %2635 = vmatpush.bf16.msra.mxu1 %v4572_v48 }
  0xcd   :  { %2762 = vmatpush.bf16.msra.mxu3 %v4587_v29 }
  0xce   :  { %v2213_v1 = vpop.f32.mrf.mxu2  ;;  %v2090_v6 = vpop.f32.mrf.mxu0  ;;  %2573 = vmatpush.bf16.msra.mxu0 %v4563_v27 }
  0xcf   :  { %v2276_v2 = vpop.f32.mrf.mxu3  ;;  %v2214_v5 = vadd.f32 %v2213_v1, %v2151_v54  ;;  %v2153_v7 = vpop.f32.mrf.mxu1  ;;  %v2091_v10 = vadd.f32 %v5078_v28, %v2090_v6  ;;  %v4370_v1 = vld [vmem:[%s6321_s0 + $0x11c] sm:$0xf]  ;;  %v3334_v6 = vor.u32 %v4369_v61, %v3331_v62 }
  0xd1   :  { %v5211_v12 = vadd.f32 %v2276_v2, %v2214_v5  ;;  %v2154_v13 = vadd.f32 %v2153_v7, %v2091_v10  ;;  %2326 = vmatmul.bf16.vlgmr.msrb.gmra.mxu0 %v3202_v3  ;;  %v3339_v2 = vld [vmem:[%s6321_s0 + $0x158] sm:$0xf0]  ;;  %v3330_v5 = vor.u32 %v4377_v60, %v3329_v59  ;;  %v3338_v10 = vor.u32 %v4378_v0, %v3337_v63  ;;  %v3457_v0 = vld [vmem:[%s6321_s0 + $0x210] sm:$0xf] }
  0xd2   :  { %2389 = vmatmul.bf16.vlgmr.msrb.gmra.mxu1 %v3206_v4 }
  0xd3   :  { %2452 = vmatmul.bf16.vlgmr.msrb.gmra.mxu2 %v3210_v8 }
  0xd4   :  { %2515 = vmatmul.bf16.vlgmr.msrb.gmra.mxu3 %v3214_v9 }
  0xd6   :  { %v2216_v14 = vpop.f32.mrf.mxu2  ;;  %v2092_v17 = vpop.f32.mrf.mxu0 }
  0xd7   :  { %v2279_v15 = vpop.f32.mrf.mxu3  ;;  %v2217_v16 = vadd.f32 %v2216_v14, %v2154_v13  ;;  %v2155_v18 = vpop.f32.mrf.mxu1  ;;  %v2093_v19 = vadd.f32 %v5078_v28, %v2092_v17  ;;  %v3342_v13 = vor.u32 %v4370_v1, %v3339_v2  ;;  %v4579_v17 = vld [vmem:[%s6319_s1 + $0x2a0] sm:$0xff]  ;;  %v4409_v1 = vld [vmem:[%s6321_s0 + $0x24c] sm:$0xf0] }
  0xd8   :  { %2699 = vmatpush.bf16.msra.mxu2 %v4579_v17  ;;  %v3458_v17 = vor.u32 %v4409_v1, %v3457_v0 }
  0xd9   :  { %v5214_v20 = vadd.f32 %v2279_v15, %v2217_v16  ;;  %v2156_v21 = vadd.f32 %v2155_v18, %v2093_v19 }
  0xde   :  { %v2218_v32 = vpop.f32.mrf.mxu2  ;;  %v2095_v37 = vpop.f32.mrf.mxu0 }
  0xdf   :  { %v2281_v33 = vpop.f32.mrf.mxu3  ;;  %v2219_v36 = vadd.f32 %v2218_v32, %v2156_v21  ;;  %v2158_v38 = vpop.f32.mrf.mxu1  ;;  %v2096_v41 = vadd.f32 %v5078_v28, %v2095_v37  ;;  %v4393_v32 = vld [vmem:[%s6321_s0 + $0x1cc] sm:$0xf0]  ;;  %v4394_v37 = vld [vmem:[%s6321_s0 + $0x1d4] sm:$0xf0] }
  0xe0   :  { %v3394_v44 = vor.u32 %v4393_v32, %v3393_v31 }
  0xe1   :  { %v5241_v43 = vadd.f32 %v2281_v33, %v2219_v36  ;;  %v2159_v45 = vadd.f32 %v2158_v38, %v2096_v41  ;;  %2331 = vmatmul.bf16.gmra.mxu0 %v3266_v34  ;;  %v4571_v33 = vld [vmem:[%s6319_s1 + $0x260] sm:$0xff]  ;;  %v4385_v34 = vld [vmem:[%s6321_s0 + $0x194] sm:$0xf]  ;;  %v3401_v36 = vld [vmem:[%s6321_s0 + $0x198] sm:$0xf] }
  0xe2   :  { %2394 = vmatmul.bf16.gmra.mxu1 %v3270_v35  ;;  %v3395_v35 = vld [vmem:[%s6321_s0 + $0x1d0] sm:$0xf0]  ;;  %v4386_v38 = vld [vmem:[%s6321_s0 + $0x19c] sm:$0xf] }
  0xe3   :  { %2457 = vmatmul.bf16.gmra.mxu2 %v3274_v39  ;;  %v3403_v39 = vld [vmem:[%s6321_s0 + $0x1d8] sm:$0xf0]  ;;  %2636 = vmatpush.bf16.msra.mxu1 %v4571_v33 }
  0xe4   :  { %2520 = vmatmul.bf16.gmra.mxu3 %v3278_v40 }
  0xe6   :  { %v2221_v49 = vpop.f32.mrf.mxu2  ;;  %v2097_v53 = vpop.f32.mrf.mxu0 }
  0xe7   :  { %v2284_v51 = vpop.f32.mrf.mxu3  ;;  %v2222_v52 = vadd.f32 %v2221_v49, %v2159_v45  ;;  %v2160_v54 = vpop.f32.mrf.mxu1  ;;  %v2098_v56 = vadd.f32 %v5078_v28, %v2097_v53  ;;  %v3398_v45 = vor.u32 %v4385_v34, %v3395_v35  ;;  %v3402_v49 = vor.u32 %v4394_v37, %v3401_v36 }
  0xe9   :  { %v5256_v57 = vadd.f32 %v2284_v51, %v2222_v52  ;;  %v2161_v58 = vadd.f32 %v2160_v54, %v2098_v56  ;;  %v3406_v51 = vor.u32 %v4386_v38, %v3403_v39 }
  0xee   :  { %v2223_v3 = vpop.f32.mrf.mxu2  ;;  %v2100_v8 = vpop.f32.mrf.mxu0 }
  0xef   :  { %v2286_v4 = vpop.f32.mrf.mxu3  ;;  %v2224_v7 = vadd.f32 %v2223_v3, %v2161_v58  ;;  %v2163_v9 = vpop.f32.mrf.mxu1  ;;  %v2101_v14 = vadd.f32 %v5078_v28, %v2100_v8  ;;  %v4578_v3 = vld [vmem:[%s6319_s1 + $0x298] sm:$0xff] }
  0xf0   :  { %v3465_v8 = vld [vmem:[%s6321_s0 + $0x218] sm:$0xf]  ;;  %2700 = vmatpush.bf16.msra.mxu2 %v4578_v3  ;;  %v4577_v3 = vld [vmem:[%s6319_s1 + $0x290] sm:$0xff] }
  0xf1   :  { %v5283_v15 = vadd.f32 %v2286_v4, %v2224_v7  ;;  %v2164_v16 = vadd.f32 %v2163_v9, %v2101_v14  ;;  %2336 = vmatmul.bf16.gmra.mxu0 %v3330_v5  ;;  %v4562_v4 = vld [vmem:[%s6319_s1 + $0x218] sm:$0xff]  ;;  %v3459_v7 = vld [vmem:[%s6321_s0 + $0x250] sm:$0xf0] }
  0xf2   :  { %2399 = vmatmul.bf16.gmra.mxu1 %v3334_v6  ;;  %v4586_v5 = vld [vmem:[%s6319_s1 + $0x2d8] sm:$0xff]  ;;  %v4401_v6 = vld [vmem:[%s6321_s0 + $0x214] sm:$0xf]  ;;  %2574 = vmatpush.bf16.msra.mxu0 %v4562_v4 }
  0xf3   :  { %2462 = vmatmul.bf16.gmra.mxu2 %v3338_v10  ;;  %v4410_v9 = vld [vmem:[%s6321_s0 + $0x254] sm:$0xf0]  ;;  %v4402_v10 = vld [vmem:[%s6321_s0 + $0x21c] sm:$0xf]  ;;  %2763 = vmatpush.bf16.msra.mxu3 %v4586_v5  ;;  %v4561_v4 = vld [vmem:[%s6319_s1 + $0x210] sm:$0xff] }
  0xf4   :  { %2525 = vmatmul.bf16.gmra.mxu3 %v3342_v13  ;;  %v3467_v13 = vld [vmem:[%s6321_s0 + $0x258] sm:$0xf0]  ;;  %v4585_v5 = vld [vmem:[%s6319_s1 + $0x2d0] sm:$0xff]  ;;  %2701 = vmatpush.bf16.msra.mxu2 %v4577_v3 }
  0xf5   :  { %v3651_v3 = vld [vmem:[%s6321_s0 + $0x3d0] sm:$0xf0] }
  0xf6   :  { %v2226_v18 = vpop.f32.mrf.mxu2  ;;  %v2102_v22 = vpop.f32.mrf.mxu0  ;;  %2575 = vmatpush.bf16.msra.mxu0 %v4561_v4  ;;  %v3657_v4 = vld [vmem:[%s6321_s0 + $0x398] sm:$0xf] }
  0xf7   :  { %v2289_v19 = vpop.f32.mrf.mxu3  ;;  %v2227_v21 = vadd.f32 %v2226_v18, %v2164_v16  ;;  %v2165_v23 = vpop.f32.mrf.mxu1  ;;  %v2103_v25 = vadd.f32 %v5078_v28, %v2102_v22  ;;  %v3462_v18 = vor.u32 %v4401_v6, %v3459_v7  ;;  %v4569_v6 = vld [vmem:[%s6319_s1 + $0x250] sm:$0xff]  ;;  %2764 = vmatpush.bf16.msra.mxu3 %v4585_v5  ;;  %v4458_v5 = vld [vmem:[%s6321_s0 + $0x3d4] sm:$0xf0] }
  0xf9   :  { %v5289_v26 = vadd.f32 %v2289_v19, %v2227_v21  ;;  %v2166_v30 = vadd.f32 %v2165_v23, %v2103_v25  ;;  %v3466_v23 = vor.u32 %v4410_v9, %v3465_v8  ;;  %v3470_v25 = vor.u32 %v4402_v10, %v3467_v13 }
  0xfe   :  { %v2228_v40 = vpop.f32.mrf.mxu2  ;;  %v2105_v47 = vpop.f32.mrf.mxu0 }
  0xff   :  { %v2291_v41 = vpop.f32.mrf.mxu3  ;;  %v2229_v46 = vadd.f32 %v2228_v40, %v2166_v30  ;;  %v2168_v48 = vpop.f32.mrf.mxu1  ;;  %v2106_v52 = vadd.f32 %v5078_v28, %v2105_v47  ;;  %v4570_v30 = vld [vmem:[%s6319_s1 + $0x258] sm:$0xff]  ;;  %v3521_v40 = vld [vmem:[%s6321_s0 + $0x290] sm:$0xf] }
 0x100   :  { %2637 = vmatpush.bf16.msra.mxu1 %v4570_v30  ;;  %v4426_v47 = vld [vmem:[%s6321_s0 + $0x2d4] sm:$0xf0]  ;;  %v3595_v30 = vld [vmem:[%s6321_s0 + $0x358] sm:$0xf0] }
 0x101   :  { %v5325_v53 = vadd.f32 %v2291_v41, %v2229_v46  ;;  %v2169_v54 = vadd.f32 %v2168_v48, %v2106_v52  ;;  %2341 = vmatmul.bf16.gmra.mxu0 %v3394_v44  ;;  %v4425_v41 = vld [vmem:[%s6321_s0 + $0x2cc] sm:$0xf0]  ;;  %v4417_v44 = vld [vmem:[%s6321_s0 + $0x294] sm:$0xf]  ;;  %v3529_v46 = vld [vmem:[%s6321_s0 + $0x298] sm:$0xf] }
 0x102   :  { %2404 = vmatmul.bf16.gmra.mxu1 %v3398_v45  ;;  %v3523_v45 = vld [vmem:[%s6321_s0 + $0x2d0] sm:$0xf0]  ;;  %v4418_v48 = vld [vmem:[%s6321_s0 + $0x29c] sm:$0xf] }
 0x103   :  { %2467 = vmatmul.bf16.gmra.mxu2 %v3402_v49  ;;  %v3531_v49 = vld [vmem:[%s6321_s0 + $0x2d8] sm:$0xf0] }
 0x104   :  { %2530 = vmatmul.bf16.gmra.mxu3 %v3406_v51  ;;  %2638 = vmatpush.bf16.msra.mxu1 %v4569_v6  ;;  %v4450_v6 = vld [vmem:[%s6321_s0 + $0x39c] sm:$0xf] }
 0x106   :  { %v2231_v56 = vpop.f32.mrf.mxu2  ;;  %v2107_v60 = vpop.f32.mrf.mxu0 }
 0x107   :  { %v2294_v58 = vpop.f32.mrf.mxu3  ;;  %v2232_v59 = vadd.f32 %v2231_v56, %v2169_v54  ;;  %v2170_v61 = vpop.f32.mrf.mxu1  ;;  %v2108_v62 = vadd.f32 %v5078_v28, %v2107_v60  ;;  %v3522_v54 = vor.u32 %v4425_v41, %v3521_v40  ;;  %v3526_v56 = vor.u32 %v4417_v44, %v3523_v45 }
 0x109   :  { %v5328_v63 = vadd.f32 %v2294_v58, %v2232_v59  ;;  %v2171_v2 = vadd.f32 %v2170_v61, %v2108_v62  ;;  %v3530_v61 = vor.u32 %v4426_v47, %v3529_v46  ;;  %v3534_v62 = vor.u32 %v4418_v48, %v3531_v49 }
 0x10e   :  { %v2233_v14 = vpop.f32.mrf.mxu2  ;;  %v2110_v21 = vpop.f32.mrf.mxu0 }
 0x10f   :  { %v2296_v16 = vpop.f32.mrf.mxu3  ;;  %v2234_v19 = vadd.f32 %v2233_v14, %v2171_v2  ;;  %v2173_v22 = vpop.f32.mrf.mxu1  ;;  %v2111_v27 = vadd.f32 %v5078_v28, %v2110_v21  ;;  %v4433_v21 = vld [vmem:[%s6321_s0 + $0x314] sm:$0xf] }
 0x111   :  { %v5364_v29 = vadd.f32 %v2296_v16, %v2234_v19  ;;  %v2174_v31 = vadd.f32 %v2173_v22, %v2111_v27  ;;  %2346 = vmatmul.bf16.gmra.mxu0 %v3458_v17  ;;  %v4441_v19 = vld [vmem:[%s6321_s0 + $0x34c] sm:$0xf0]  ;;  %v3587_v22 = vld [vmem:[%s6321_s0 + $0x350] sm:$0xf0]  ;;  %v4434_v27 = vld [vmem:[%s6321_s0 + $0x31c] sm:$0xf] }
 0x112   :  { %2409 = vmatmul.bf16.gmra.mxu1 %v3462_v18  ;;  %v3585_v18 = vld [vmem:[%s6321_s0 + $0x310] sm:$0xf]  ;;  %v3598_v40 = vor.u32 %v4434_v27, %v3595_v30 }
 0x113   :  { %2472 = vmatmul.bf16.gmra.mxu2 %v3466_v23  ;;  %v3593_v23 = vld [vmem:[%s6321_s0 + $0x318] sm:$0xf] }
 0x114   :  { %2535 = vmatmul.bf16.gmra.mxu3 %v3470_v25  ;;  %v4442_v25 = vld [vmem:[%s6321_s0 + $0x354] sm:$0xf0] }
 0x116   :  { %v2236_v32 = vpop.f32.mrf.mxu2  ;;  %v2112_v35 = vpop.f32.mrf.mxu0 }
 0x117   :  { %v2299_v33 = vpop.f32.mrf.mxu3  ;;  %v2237_v34 = vadd.f32 %v2236_v32, %v2174_v31  ;;  %v2175_v36 = vpop.f32.mrf.mxu1  ;;  %v2113_v37 = vadd.f32 %v5078_v28, %v2112_v35 }
 0x119   :  { %v5370_v38 = vadd.f32 %v2299_v33, %v2237_v34  ;;  %v2176_v39 = vadd.f32 %v2175_v36, %v2113_v37  ;;  %v3586_v33 = vor.u32 %v4441_v19, %v3585_v18  ;;  %v3590_v34 = vor.u32 %v4433_v21, %v3587_v22 }
 0x11a   :  { %v3658_v19 = vor.u32 %v4458_v5, %v3657_v4 }
 0x11e   :  { %v2238_v51 = vpop.f32.mrf.mxu2  ;;  %v2115_v59 = vpop.f32.mrf.mxu0 }
 0x11f   :  { %v2301_v52 = vpop.f32.mrf.mxu3  ;;  %v2239_v58 = vadd.f32 %v2238_v51, %v2176_v39  ;;  %v2178_v60 = vpop.f32.mrf.mxu1  ;;  %v2116_v0 = vadd.f32 %v5078_v28, %v2115_v59  ;;  %v3594_v39 = vor.u32 %v4442_v25, %v3593_v23  ;;  %v4576_v59 = vld [vmem:[%s6319_s1 + $0x288] sm:$0xff] }
 0x120   :  { %2702 = vmatpush.bf16.msra.mxu2 %v4576_v59 }
 0x121   :  { %v5397_v1 = vadd.f32 %v2301_v52, %v2239_v58  ;;  %v2179_v2 = vadd.f32 %v2178_v60, %v2116_v0  ;;  %2351 = vmatmul.bf16.gmra.mxu0 %v3522_v54  ;;  %v4457_v58 = vld [vmem:[%s6321_s0 + $0x3cc] sm:$0xf0]  ;;  %v4568_v0 = vld [vmem:[%s6319_s1 + $0x248] sm:$0xff] }
 0x122   :  { %2414 = vmatmul.bf16.gmra.mxu1 %v3526_v56  ;;  %v3649_v56 = vld [vmem:[%s6321_s0 + $0x390] sm:$0xf] }
 0x123   :  { %2477 = vmatmul.bf16.gmra.mxu2 %v3530_v61  ;;  %v4560_v61 = vld [vmem:[%s6319_s1 + $0x208] sm:$0xff]  ;;  %2639 = vmatpush.bf16.msra.mxu1 %v4568_v0 }
 0x124   :  { %2540 = vmatmul.bf16.gmra.mxu3 %v3534_v62  ;;  %v4584_v62 = vld [vmem:[%s6319_s1 + $0x2c8] sm:$0xff]  ;;  %2576 = vmatpush.bf16.msra.mxu0 %v4560_v61  ;;  %v4559_v61 = vld [vmem:[%s6319_s1 + $0x200] sm:$0xff] }
 0x125   :  { %2765 = vmatpush.bf16.msra.mxu3 %v4584_v62  ;;  %v4583_v62 = vld [vmem:[%s6319_s1 + $0x2c0] sm:$0xff] }
 0x126   :  { %v2241_v7 = vpop.f32.mrf.mxu2  ;;  %v2117_v10 = vpop.f32.mrf.mxu0 }
 0x127   :  { %v2304_v8 = vpop.f32.mrf.mxu3  ;;  %v2242_v9 = vadd.f32 %v2241_v7, %v2179_v2  ;;  %v2180_v13 = vpop.f32.mrf.mxu1  ;;  %v2118_v14 = vadd.f32 %v5078_v28, %v2117_v10  ;;  %v4449_v2 = vld [vmem:[%s6321_s0 + $0x394] sm:$0xf]  ;;  %v3659_v7 = vld [vmem:[%s6321_s0 + $0x3d8] sm:$0xf0]  ;;  %v3650_v10 = vor.u32 %v4457_v58, %v3649_v56 }
 0x128   :  { %v3662_v21 = vor.u32 %v4450_v6, %v3659_v7  ;;  %2577 = vmatpush.bf16.msra.mxu0 %v4559_v61 }
 0x129   :  { %v5412_v16 = vadd.f32 %v2304_v8, %v2242_v9  ;;  %v2181_v17 = vadd.f32 %v2180_v13, %v2118_v14  ;;  %v3654_v13 = vor.u32 %v4449_v2, %v3651_v3  ;;  %v4567_v2 = vld [vmem:[%s6319_s1 + $0x240] sm:$0xff]  ;;  %2766 = vmatpush.bf16.msra.mxu3 %v4583_v62 }
 0x12a   :  { %2640 = vmatpush.bf16.msra.mxu1 %v4567_v2 }
 0x12e   :  { %v2243_v31 = vpop.f32.mrf.mxu2  ;;  %v2120_v36 = vpop.f32.mrf.mxu0 }
 0x12f   :  { %v2306_v32 = vpop.f32.mrf.mxu3  ;;  %v2244_v35 = vadd.f32 %v2243_v31, %v2181_v17  ;;  %v2183_v37 = vpop.f32.mrf.mxu1  ;;  %v2121_v41 = vadd.f32 %v5078_v28, %v2120_v36  ;;  %v4575_v36 = vld [vmem:[%s6319_s1 + $0x280] sm:$0xff] }
 0x130   :  { %2703 = vmatpush.bf16.msra.mxu2 %v4575_v36 }
 0x131   :  { %v5439_v44 = vadd.f32 %v2306_v32, %v2244_v35  ;;  %v2184_v45 = vadd.f32 %v2183_v37, %v2121_v41  ;;  %2356 = vmatmul.bf16.gmra.mxu0 %v3586_v33  ;;  %v3713_v35 = vld [vmem:[%s6321_s0 + $0x410] sm:$0xf]  ;;  %v4465_v37 = vld [vmem:[%s6321_s0 + $0x414] sm:$0xf]  ;;  %v4474_v41 = vld [vmem:[%s6321_s0 + $0x454] sm:$0xf0] }
 0x132   :  { %2419 = vmatmul.bf16.gmra.mxu1 %v3590_v34 }
 0x133   :  { %2482 = vmatmul.bf16.gmra.mxu2 %v3594_v39  ;;  %v3715_v39 = vld [vmem:[%s6321_s0 + $0x450] sm:$0xf0] }
 0x134   :  { %2545 = vmatmul.bf16.gmra.mxu3 %v3598_v40  ;;  %v3721_v40 = vld [vmem:[%s6321_s0 + $0x418] sm:$0xf] }
 0x135   :  { %v3722_v58 = vor.u32 %v4474_v41, %v3721_v40  ;;  %v4614_v40 = vld [vmem:[%s6319_s1 + $0x3b8] sm:$0xff] }
 0x136   :  { %v2246_v46 = vpop.f32.mrf.mxu2  ;;  %v2122_v49 = vpop.f32.mrf.mxu0  ;;  %v4598_v41 = vld [vmem:[%s6319_s1 + $0x338] sm:$0xff]  ;;  %2948 = vmatpush.bf16.msrb.mxu2 %v4614_v40  ;;  %v4348_v40 = vld [vmem:[%s6321_s0 + $0x64] sm:$0xf0] }
 0x137   :  { %v2309_v47 = vpop.f32.mrf.mxu3  ;;  %v2247_v48 = vadd.f32 %v2246_v46, %v2184_v45  ;;  %v2185_v51 = vpop.f32.mrf.mxu1  ;;  %v2123_v52 = vadd.f32 %v5078_v28, %v2122_v49  ;;  %v4466_v45 = vld [vmem:[%s6321_s0 + $0x41c] sm:$0xf]  ;;  %2822 = vmatpush.bf16.msrb.mxu0 %v4598_v41  ;;  %v4340_v41 = vld [vmem:[%s6321_s0 + $0x2c] sm:$0xf] }
 0x138   :  { %v3723_v46 = vld [vmem:[%s6321_s0 + $0x458] sm:$0xf0] }
 0x139   :  { %v5442_v54 = vadd.f32 %v2309_v47, %v2247_v48  ;;  %v2186_v60 = vadd.f32 %v2185_v51, %v2123_v52  ;;  %v3718_v51 = vor.u32 %v4465_v37, %v3715_v39  ;;  %v3726_v59 = vor.u32 %v4466_v45, %v3723_v46  ;;  %v4622_v45 = vld [vmem:[%s6319_s1 + $0x3f8] sm:$0xff] }
 0x13a   :  { %3011 = vmatpush.bf16.msrb.mxu3 %v4622_v45  ;;  %v3227_v45 = vld [vmem:[%s6321_s0 + $0x68] sm:$0xf0] }
 0x13e   :  { %v2248_v8 = vpop.f32.mrf.mxu2  ;;  %v2125_v17 = vpop.f32.mrf.mxu0 }
 0x13f   :  { %v2311_v9 = vpop.f32.mrf.mxu3  ;;  %v2249_v14 = vadd.f32 %v2248_v8, %v2186_v60  ;;  %v2188_v18 = vpop.f32.mrf.mxu1  ;;  %v2126_v22 = vadd.f32 %v5078_v28, %v2125_v17  ;;  %v4473_v28 = vld [vmem:[%s6321_s0 + $0x44c] sm:$0xf0]  ;;  %v3779_v17 = vld [vmem:[%s6321_s0 + $0x4d0] sm:$0xf0] }
 0x140   :  { %v3714_v49 = vor.u32 %v4473_v28, %v3713_v35 }
 0x141   :  { %v5481_v23 = vadd.f32 %v2311_v9, %v2249_v14  ;;  %v2189_v25 = vadd.f32 %v2188_v18, %v2126_v22  ;;  %2361 = vmatmul.bf16.gmra.mxu0 %v3650_v10  ;;  %v3777_v10 = vld [vmem:[%s6321_s0 + $0x490] sm:$0xf]  ;;  %v4481_v14 = vld [vmem:[%s6321_s0 + $0x494] sm:$0xf]  ;;  %v4490_v18 = vld [vmem:[%s6321_s0 + $0x4d4] sm:$0xf0] }
 0x142   :  { %2424 = vmatmul.bf16.gmra.mxu1 %v3654_v13  ;;  %v4489_v13 = vld [vmem:[%s6321_s0 + $0x4cc] sm:$0xf0] }
 0x143   :  { %2487 = vmatmul.bf16.gmra.mxu2 %v3658_v19  ;;  %v4482_v19 = vld [vmem:[%s6321_s0 + $0x49c] sm:$0xf] }
 0x144   :  { %2550 = vmatmul.bf16.gmra.mxu3 %v3662_v21  ;;  %v3787_v21 = vld [vmem:[%s6321_s0 + $0x4d8] sm:$0xf0] }
 0x145   :  { %v3790_v28 = vor.u32 %v4482_v19, %v3787_v21 }
 0x146   :  { %v2251_v27 = vpop.f32.mrf.mxu2  ;;  %v2127_v32 = vpop.f32.mrf.mxu0 }
 0x147   :  { %v2314_v30 = vpop.f32.mrf.mxu3  ;;  %v2252_v31 = vadd.f32 %v2251_v27, %v2189_v25  ;;  %v2190_v33 = vpop.f32.mrf.mxu1  ;;  %v3778_v27 = vor.u32 %v4489_v13, %v3777_v10 }
 0x149   :  { %v5483_v34 = vadd.f32 %v2314_v30, %v2252_v31  ;;  %v3782_v30 = vor.u32 %v4481_v14, %v3779_v17 }
 0x14e   :  { %v2253_v47 = vpop.f32.mrf.mxu2  ;;  %v2327_v52 = vpop.f32.mrf.mxu0 }
 0x14f   :  { %v2316_v48 = vpop.f32.mrf.mxu3  ;;  %v2390_v56 = vpop.f32.mrf.mxu1  ;;  %v2328_v60 = vadd.f32 %v2327_v52, %v5118_v55 }
 0x151   :  { %v2391_v0 = vadd.f32 %v2390_v56, %v2328_v60  ;;  %2366 = vmatmul.bf16.gmra.mxu0 %v3714_v49  ;;  %v177_v56 = vld [vmem:[%s6321_s0 + $0x518] sm:$0xff] }
 0x152   :  { %2429 = vmatmul.bf16.gmra.mxu1 %v3718_v51  ;;  %v176_v51 = vld [vmem:[%s6321_s0 + $0x510] sm:$0xff]  ;;  %v937_v2 = vunpack.c.h.b16 %v177_v56 }
 0x153   :  { %2492 = vmatmul.bf16.gmra.mxu2 %v3722_v58  ;;  %v934_v61 = vunpack.c.l.b16 %v176_v51  ;;  %v935_v62 = vunpack.c.h.b16 %v176_v51 }
 0x154   :  { %2555 = vmatmul.bf16.gmra.mxu3 %v3726_v59  ;;  %v4606_v59 = vld [vmem:[%s6319_s1 + $0x378] sm:$0xff]  ;;  %v1113_v10 = vpack.c.b16 %v937_v2, %v937_v2 }
 0x155   :  { %2885 = vmatpush.bf16.msrb.mxu1 %v4606_v59  ;;  %v3230_v59 = vor.u32 %v4340_v41, %v3227_v45 }
 0x156   :  { %v2453_v55 = vpop.f32.mrf.mxu2  ;;  %v2329_v5 = vpop.f32.mrf.mxu0 }
 0x157   :  { %v2516_v3 = vpop.f32.mrf.mxu3  ;;  %v2454_v4 = vadd.f32 %v2453_v55, %v2391_v0  ;;  %v2392_v6 = vpop.f32.mrf.mxu1  ;;  %v2330_v7 = vadd.f32 %v2329_v5, %v5145_v11  ;;  %v3785_v11 = vld [vmem:[%s6321_s0 + $0x498] sm:$0xf]  ;;  %v936_v0 = vunpack.c.l.b16 %v177_v56 }
 0x158   :  { %v3786_v35 = vor.u32 %v4490_v18, %v3785_v11 }
 0x159   :  { %v5523_v8 = vadd.f32 %v2516_v3, %v2454_v4  ;;  %v2393_v9 = vadd.f32 %v2392_v6, %v2330_v7  ;;  %v1110_v4 = vpack.c.b16 %v934_v61, %v934_v61 }
 0x15e   :  { %v2455_v22 = vpop.f32.mrf.mxu2  ;;  %v2332_v32 = vpop.f32.mrf.mxu0 }
 0x15f   :  { %v2518_v25 = vpop.f32.mrf.mxu3  ;;  %v2456_v31 = vadd.f32 %v2455_v22, %v2393_v9  ;;  %v2395_v33 = vpop.f32.mrf.mxu1  ;;  %v2333_v36 = vadd.f32 %v2332_v32, %v5163_v24  ;;  %v1112_v9 = vpack.c.b16 %v936_v0, %v936_v0 }
 0x161   :  { %v5550_v37 = vadd.f32 %v2518_v25, %v2456_v31  ;;  %v2396_v39 = vadd.f32 %v2395_v33, %v2333_v36  ;;  %2371 = vmatmul.bf16.gmra.mxu0 %v3778_v27  ;;  %v4339_v31 = vld [vmem:[%s6321_s0 + $0x24] sm:$0xf]  ;;  %v4613_v33 = vld [vmem:[%s6319_s1 + $0x3b0] sm:$0xff]  ;;  %v3225_v36 = vld [vmem:[%s6321_s0 + $0x28] sm:$0xf] }
 0x162   :  { %2434 = vmatmul.bf16.gmra.mxu1 %v3782_v30  ;;  %v4347_v30 = vld [vmem:[%s6321_s0 + $0x5c] sm:$0xf0]  ;;  %2949 = vmatpush.bf16.msrb.mxu2 %v4613_v33  ;;  %v3226_v56 = vor.u32 %v4348_v40, %v3225_v36  ;;  %v4596_v36 = vld [vmem:[%s6319_s1 + $0x328] sm:$0xff] }
 0x163   :  { %2497 = vmatmul.bf16.gmra.mxu2 %v3786_v35  ;;  %v4621_v35 = vld [vmem:[%s6319_s1 + $0x3f0] sm:$0xff] }
 0x164   :  { %2560 = vmatmul.bf16.gmra.mxu3 %v3790_v28  ;;  %v3219_v28 = vld [vmem:[%s6321_s0 + $0x60] sm:$0xf0] }
 0x165   :  { %3012 = vmatpush.bf16.msrb.mxu3 %v4621_v35  ;;  %v4612_v35 = vld [vmem:[%s6319_s1 + $0x3a8] sm:$0xff] }
 0x166   :  { %v2458_v24 = vpop.f32.mrf.mxu2  ;;  %v2334_v48 = vpop.f32.mrf.mxu0  ;;  %2950 = vmatpush.bf16.msrb.mxu2 %v4612_v35  ;;  %v4387_v35 = vld [vmem:[%s6321_s0 + $0x1a4] sm:$0xf] }
 0x167   :  { %v2521_v46 = vpop.f32.mrf.mxu3  ;;  %v2459_v47 = vadd.f32 %v2458_v24, %v2396_v39  ;;  %v2397_v49 = vpop.f32.mrf.mxu1  ;;  %v2335_v52 = vadd.f32 %v2334_v48, %v5169_v42  ;;  %v1111_v42 = vpack.c.b16 %v935_v62, %v935_v62  ;;  %v4605_v39 = vld [vmem:[%s6319_s1 + $0x370] sm:$0xff]  ;;  %v3222_v48 = vor.u32 %v4339_v31, %v3219_v28 }
 0x168   :  { %2886 = vmatpush.bf16.msrb.mxu1 %v4605_v39  ;;  %v4620_v39 = vld [vmem:[%s6319_s1 + $0x3e8] sm:$0xff] }
 0x169   :  { %v5568_v58 = vadd.f32 %v2521_v46, %v2459_v47  ;;  %v2398_v60 = vadd.f32 %v2397_v49, %v2335_v52  ;;  %3013 = vmatpush.bf16.msrb.mxu3 %v4620_v39  ;;  %v4396_v39 = vld [vmem:[%s6321_s0 + $0x1e4] sm:$0xf0] }
 0x16e   :  { %v2460_v55 = vpop.f32.mrf.mxu2  ;;  %v2337_v6 = vpop.f32.mrf.mxu0 }
 0x16f   :  { %v2523_v3 = vpop.f32.mrf.mxu3  ;;  %v2461_v5 = vadd.f32 %v2460_v55, %v2398_v60  ;;  %v2400_v7 = vpop.f32.mrf.mxu1  ;;  %v2338_v13 = vadd.f32 %v2337_v6, %v5172_v50  ;;  %v3217_v50 = vld [vmem:[%s6321_s0 + $0x20] sm:$0xf] }
 0x170   :  { %v3218_v47 = vor.u32 %v4347_v30, %v3217_v50 }
 0x171   :  { %v5574_v14 = vadd.f32 %v2523_v3, %v2461_v5  ;;  %v2401_v17 = vadd.f32 %v2400_v7, %v2338_v13  ;;  %2376 = vmatmul.bf16.gmra.mxu0 %v1110_v4  ;;  %v4363_v7 = vld [vmem:[%s6321_s0 + $0xdc] sm:$0xf0]  ;;  %v4364_v13 = vld [vmem:[%s6321_s0 + $0xe4] sm:$0xf0] }
 0x172   :  { %2439 = vmatmul.bf16.gmra.mxu1 %v1111_v42 }
 0x173   :  { %2502 = vmatmul.bf16.gmra.mxu2 %v1112_v9  ;;  %v4355_v9 = vld [vmem:[%s6321_s0 + $0xa4] sm:$0xf] }
 0x174   :  { %2565 = vmatmul.bf16.gmra.mxu3 %v1113_v10  ;;  %v3283_v10 = vld [vmem:[%s6321_s0 + $0xe0] sm:$0xf0] }
 0x176   :  { %v2463_v11 = vpop.f32.mrf.mxu2  ;;  %v2339_v21 = vpop.f32.mrf.mxu0 }
 0x177   :  { %v2526_v18 = vpop.f32.mrf.mxu3  ;;  %v2464_v19 = vadd.f32 %v2463_v11, %v2401_v17  ;;  %v2402_v22 = vpop.f32.mrf.mxu1  ;;  %v2340_v25 = vadd.f32 %v2339_v21, %v5211_v12  ;;  %v4597_v12 = vld [vmem:[%s6319_s1 + $0x330] sm:$0xff]  ;;  %v4356_v17 = vld [vmem:[%s6321_s0 + $0xac] sm:$0xf] }
 0x178   :  { %2823 = vmatpush.bf16.msrb.mxu0 %v4597_v12  ;;  %v3291_v11 = vld [vmem:[%s6321_s0 + $0xe8] sm:$0xf0] }
 0x179   :  { %v5577_v27 = vadd.f32 %v2526_v18, %v2464_v19  ;;  %v2403_v32 = vadd.f32 %v2402_v22, %v2340_v25  ;;  %v3286_v22 = vor.u32 %v4355_v9, %v3283_v10 }
 0x17c   :  { %2824 = vmatpush.bf16.msrb.mxu0 %v4596_v36  ;;  %v3417_v36 = vld [vmem:[%s6321_s0 + $0x1a8] sm:$0xf] }
 0x17e   :  { %v2465_v24 = vpop.f32.mrf.mxu2  ;;  %v2342_v51 = vpop.f32.mrf.mxu0 }
 0x17f   :  { %v2528_v46 = vpop.f32.mrf.mxu3  ;;  %v2466_v49 = vadd.f32 %v2465_v24, %v2403_v32  ;;  %v2405_v52 = vpop.f32.mrf.mxu1  ;;  %v2343_v60 = vadd.f32 %v2342_v51, %v5214_v20  ;;  %v3281_v20 = vld [vmem:[%s6321_s0 + $0xa0] sm:$0xf]  ;;  %v3294_v32 = vor.u32 %v4356_v17, %v3291_v11 }
 0x180   :  { %v3282_v21 = vor.u32 %v4363_v7, %v3281_v20  ;;  %v3345_v51 = vld [vmem:[%s6321_s0 + $0x120] sm:$0xf] }
 0x181   :  { %v5616_v61 = vadd.f32 %v2528_v46, %v2466_v49  ;;  %v2406_v62 = vadd.f32 %v2405_v52, %v2343_v60  ;;  %2578 = vmatmul.bf16.vlgmr.msra.gmra.mxu0 %v3218_v47  ;;  %v4379_v52 = vld [vmem:[%s6321_s0 + $0x15c] sm:$0xf0]  ;;  %v4380_v60 = vld [vmem:[%s6321_s0 + $0x164] sm:$0xf0] }
 0x182   :  { %2641 = vmatmul.bf16.vlgmr.msra.gmra.mxu1 %v3222_v48  ;;  %v4611_v17 = vld [vmem:[%s6319_s1 + $0x3a0] sm:$0xff] }
 0x183   :  { %2704 = vmatmul.bf16.vlgmr.msra.gmra.mxu2 %v3226_v56  ;;  %v4371_v56 = vld [vmem:[%s6321_s0 + $0x124] sm:$0xf] }
 0x184   :  { %2767 = vmatmul.bf16.vlgmr.msra.gmra.mxu3 %v3230_v59  ;;  %v3347_v59 = vld [vmem:[%s6321_s0 + $0x160] sm:$0xf0]  ;;  %2951 = vmatpush.bf16.msrb.mxu2 %v4611_v17  ;;  %v3481_v17 = vld [vmem:[%s6321_s0 + $0x228] sm:$0xf] }
 0x186   :  { %v2468_v0 = vpop.f32.mrf.mxu2  ;;  %v2344_v3 = vpop.f32.mrf.mxu0 }
 0x187   :  { %v2531_v2 = vpop.f32.mrf.mxu3  ;;  %v2469_v55 = vadd.f32 %v2468_v0, %v2406_v62  ;;  %v2407_v4 = vpop.f32.mrf.mxu1  ;;  %v2345_v42 = vadd.f32 %v2344_v3, %v5241_v43  ;;  %v3289_v43 = vld [vmem:[%s6321_s0 + $0xa8] sm:$0xf]  ;;  %v4372_v62 = vld [vmem:[%s6321_s0 + $0x12c] sm:$0xf]  ;;  %v3346_v3 = vor.u32 %v4379_v52, %v3345_v51  ;;  %v3418_v52 = vor.u32 %v4396_v39, %v3417_v36  ;;  %v4602_v36 = vld [vmem:[%s6319_s1 + $0x358] sm:$0xff] }
 0x188   :  { %v3290_v31 = vor.u32 %v4364_v13, %v3289_v43  ;;  %v3355_v0 = vld [vmem:[%s6321_s0 + $0x168] sm:$0xf0] }
 0x189   :  { %v5619_v5 = vadd.f32 %v2531_v2, %v2469_v55  ;;  %v2408_v6 = vadd.f32 %v2407_v4, %v2345_v42  ;;  %v3350_v4 = vor.u32 %v4371_v56, %v3347_v59  ;;  %v3358_v9 = vor.u32 %v4372_v62, %v3355_v0 }
 0x18e   :  { %v2470_v18 = vpop.f32.mrf.mxu2  ;;  %v2347_v50 = vpop.f32.mrf.mxu0 }
 0x18f   :  { %v2533_v19 = vpop.f32.mrf.mxu3  ;;  %v2471_v25 = vadd.f32 %v2470_v18, %v2408_v6  ;;  %v2410_v30 = vpop.f32.mrf.mxu1  ;;  %v2348_v33 = vadd.f32 %v2347_v50, %v5256_v57  ;;  %v4604_v57 = vld [vmem:[%s6319_s1 + $0x368] sm:$0xff]  ;;  %v4595_v50 = vld [vmem:[%s6319_s1 + $0x320] sm:$0xff] }
 0x190   :  { %2887 = vmatpush.bf16.msrb.mxu1 %v4604_v57  ;;  %2825 = vmatpush.bf16.msrb.mxu0 %v4595_v50  ;;  %v4388_v57 = vld [vmem:[%s6321_s0 + $0x1ac] sm:$0xf] }
 0x191   :  { %v5646_v12 = vadd.f32 %v2533_v19, %v2471_v25  ;;  %v2411_v28 = vadd.f32 %v2410_v30, %v2348_v33  ;;  %2583 = vmatmul.bf16.gmra.mxu0 %v3282_v21  ;;  %v4619_v30 = vld [vmem:[%s6319_s1 + $0x3e0] sm:$0xff] }
 0x192   :  { %2646 = vmatmul.bf16.gmra.mxu1 %v3286_v22  ;;  %v4395_v33 = vld [vmem:[%s6321_s0 + $0x1dc] sm:$0xf0]  ;;  %3014 = vmatpush.bf16.msrb.mxu3 %v4619_v30 }
 0x193   :  { %2709 = vmatmul.bf16.gmra.mxu2 %v3290_v31 }
 0x194   :  { %2772 = vmatmul.bf16.gmra.mxu3 %v3294_v32  ;;  %v3409_v32 = vld [vmem:[%s6321_s0 + $0x1a0] sm:$0xf] }
 0x196   :  { %v2473_v40 = vpop.f32.mrf.mxu2  ;;  %v2349_v24 = vpop.f32.mrf.mxu0 }
 0x197   :  { %v2536_v41 = vpop.f32.mrf.mxu3  ;;  %v2474_v45 = vadd.f32 %v2473_v40, %v2411_v28  ;;  %v2412_v46 = vpop.f32.mrf.mxu1  ;;  %v2350_v47 = vadd.f32 %v2349_v24, %v5283_v15  ;;  %v3353_v15 = vld [vmem:[%s6321_s0 + $0x128] sm:$0xf]  ;;  %v3411_v28 = vld [vmem:[%s6321_s0 + $0x1e0] sm:$0xf0]  ;;  %v3419_v40 = vld [vmem:[%s6321_s0 + $0x1e8] sm:$0xf0]  ;;  %v3410_v24 = vor.u32 %v4395_v33, %v3409_v32 }
 0x198   :  { %v3354_v7 = vor.u32 %v4380_v60, %v3353_v15  ;;  %v3422_v56 = vor.u32 %v4388_v57, %v3419_v40 }
 0x199   :  { %v5661_v48 = vadd.f32 %v2536_v41, %v2474_v45  ;;  %v2413_v49 = vadd.f32 %v2412_v46, %v2350_v47  ;;  %v3414_v46 = vor.u32 %v4387_v35, %v3411_v28 }
 0x19e   :  { %v2475_v2 = vpop.f32.mrf.mxu2  ;;  %v2352_v6 = vpop.f32.mrf.mxu0 }
 0x19f   :  { %v2538_v55 = vpop.f32.mrf.mxu3  ;;  %v2476_v42 = vadd.f32 %v2475_v2, %v2413_v49  ;;  %v2415_v20 = vpop.f32.mrf.mxu1  ;;  %v2353_v10 = vadd.f32 %v2352_v6, %v5289_v26  ;;  %v4411_v6 = vld [vmem:[%s6321_s0 + $0x25c] sm:$0xf0] }
 0x1a1   :  { %v5688_v43 = vadd.f32 %v2538_v55, %v2476_v42  ;;  %v2416_v13 = vadd.f32 %v2415_v20, %v2353_v10  ;;  %2588 = vmatmul.bf16.gmra.mxu0 %v3346_v3  ;;  %v4403_v10 = vld [vmem:[%s6321_s0 + $0x224] sm:$0xf] }
 0x1a2   :  { %2651 = vmatmul.bf16.gmra.mxu1 %v3350_v4 }
 0x1a3   :  { %2714 = vmatmul.bf16.gmra.mxu2 %v3354_v7  ;;  %v4610_v7 = vld [vmem:[%s6319_s1 + $0x398] sm:$0xff] }
 0x1a4   :  { %2777 = vmatmul.bf16.gmra.mxu3 %v3358_v9  ;;  %v4594_v9 = vld [vmem:[%s6319_s1 + $0x318] sm:$0xff]  ;;  %2952 = vmatpush.bf16.msrb.mxu2 %v4610_v7 }
 0x1a5   :  { %2826 = vmatpush.bf16.msrb.mxu0 %v4594_v9 }
 0x1a6   :  { %v2478_v11 = vpop.f32.mrf.mxu2  ;;  %v2354_v21 = vpop.f32.mrf.mxu0 }
 0x1a7   :  { %v2541_v18 = vpop.f32.mrf.mxu3  ;;  %v2479_v19 = vadd.f32 %v2478_v11, %v2416_v13  ;;  %v2417_v22 = vpop.f32.mrf.mxu1  ;;  %v2355_v25 = vadd.f32 %v2354_v21, %v5325_v53  ;;  %v4603_v53 = vld [vmem:[%s6319_s1 + $0x360] sm:$0xff]  ;;  %v4412_v11 = vld [vmem:[%s6321_s0 + $0x264] sm:$0xf0] }
 0x1a8   :  { %2888 = vmatpush.bf16.msrb.mxu1 %v4603_v53  ;;  %v3475_v13 = vld [vmem:[%s6321_s0 + $0x260] sm:$0xf0]  ;;  %v3482_v33 = vor.u32 %v4412_v11, %v3481_v17  ;;  %v4593_v17 = vld [vmem:[%s6319_s1 + $0x310] sm:$0xff] }
 0x1a9   :  { %v5694_v26 = vadd.f32 %v2541_v18, %v2479_v19  ;;  %v2418_v31 = vadd.f32 %v2417_v22, %v2355_v25  ;;  %v4404_v18 = vld [vmem:[%s6321_s0 + $0x22c] sm:$0xf]  ;;  %v3478_v50 = vor.u32 %v4403_v10, %v3475_v13  ;;  %v4609_v13 = vld [vmem:[%s6319_s1 + $0x390] sm:$0xff]  ;;  %2827 = vmatpush.bf16.msrb.mxu0 %v4593_v17  ;;  %v3673_v17 = vld [vmem:[%s6321_s0 + $0x3a8] sm:$0xf] }
 0x1aa   :  { %v3483_v19 = vld [vmem:[%s6321_s0 + $0x268] sm:$0xf0]  ;;  %v4617_v11 = vld [vmem:[%s6319_s1 + $0x3d0] sm:$0xff]  ;;  %2953 = vmatpush.bf16.msrb.mxu2 %v4609_v13  ;;  %v3667_v13 = vld [vmem:[%s6321_s0 + $0x3e0] sm:$0xf0] }
 0x1ab   :  { %v3486_v53 = vor.u32 %v4404_v18, %v3483_v19 }
 0x1ac   :  { %2889 = vmatpush.bf16.msrb.mxu1 %v4602_v36  ;;  %v4444_v36 = vld [vmem:[%s6321_s0 + $0x364] sm:$0xf0] }
 0x1ae   :  { %v2480_v41 = vpop.f32.mrf.mxu2  ;;  %v2357_v49 = vpop.f32.mrf.mxu0 }
 0x1af   :  { %v2543_v45 = vpop.f32.mrf.mxu3  ;;  %v2481_v47 = vadd.f32 %v2480_v41, %v2418_v31  ;;  %v2420_v51 = vpop.f32.mrf.mxu1  ;;  %v2358_v59 = vadd.f32 %v2357_v49, %v5328_v63  ;;  %v3473_v63 = vld [vmem:[%s6321_s0 + $0x220] sm:$0xf] }
 0x1b0   :  { %v3474_v25 = vor.u32 %v4411_v6, %v3473_v63  ;;  %v3537_v49 = vld [vmem:[%s6321_s0 + $0x2a0] sm:$0xf] }
 0x1b1   :  { %v5730_v15 = vadd.f32 %v2543_v45, %v2481_v47  ;;  %v2421_v60 = vadd.f32 %v2420_v51, %v2358_v59  ;;  %2593 = vmatmul.bf16.gmra.mxu0 %v3410_v24  ;;  %v4427_v51 = vld [vmem:[%s6321_s0 + $0x2dc] sm:$0xf0]  ;;  %v4428_v59 = vld [vmem:[%s6321_s0 + $0x2e4] sm:$0xf0] }
 0x1b2   :  { %2656 = vmatmul.bf16.gmra.mxu1 %v3414_v46 }
 0x1b3   :  { %2719 = vmatmul.bf16.gmra.mxu2 %v3418_v52  ;;  %v4419_v52 = vld [vmem:[%s6321_s0 + $0x2a4] sm:$0xf] }
 0x1b4   :  { %2782 = vmatmul.bf16.gmra.mxu3 %v3422_v56  ;;  %v3539_v56 = vld [vmem:[%s6321_s0 + $0x2e0] sm:$0xf0] }
 0x1b6   :  { %v2483_v62 = vpop.f32.mrf.mxu2  ;;  %v2359_v55 = vpop.f32.mrf.mxu0 }
 0x1b7   :  { %v2546_v0 = vpop.f32.mrf.mxu3  ;;  %v2484_v2 = vadd.f32 %v2483_v62, %v2421_v60  ;;  %v2422_v3 = vpop.f32.mrf.mxu1  ;;  %v2360_v4 = vadd.f32 %v2359_v55, %v5364_v29  ;;  %v4618_v29 = vld [vmem:[%s6319_s1 + $0x3d8] sm:$0xff]  ;;  %v4420_v60 = vld [vmem:[%s6321_s0 + $0x2ac] sm:$0xf]  ;;  %v3538_v55 = vor.u32 %v4427_v51, %v3537_v49 }
 0x1b8   :  { %3015 = vmatpush.bf16.msrb.mxu3 %v4618_v29  ;;  %v3547_v62 = vld [vmem:[%s6321_s0 + $0x2e8] sm:$0xf0] }
 0x1b9   :  { %v5733_v42 = vadd.f32 %v2546_v0, %v2484_v2  ;;  %v2423_v20 = vadd.f32 %v2422_v3, %v2360_v4  ;;  %v3542_v3 = vor.u32 %v4419_v52, %v3539_v56  ;;  %v3550_v7 = vor.u32 %v4420_v60, %v3547_v62 }
 0x1bc   :  { %3016 = vmatpush.bf16.msrb.mxu3 %v4617_v11  ;;  %v4460_v11 = vld [vmem:[%s6321_s0 + $0x3e4] sm:$0xf0] }
 0x1be   :  { %v2485_v21 = vpop.f32.mrf.mxu2  ;;  %v2362_v31 = vpop.f32.mrf.mxu0 }
 0x1bf   :  { %v2548_v22 = vpop.f32.mrf.mxu3  ;;  %v2486_v30 = vadd.f32 %v2485_v21, %v2423_v20  ;;  %v2425_v32 = vpop.f32.mrf.mxu1  ;;  %v2363_v35 = vadd.f32 %v2362_v31, %v5370_v38 }
 0x1c1   :  { %v5769_v28 = vadd.f32 %v2548_v22, %v2486_v30  ;;  %v2426_v39 = vadd.f32 %v2425_v32, %v2363_v35  ;;  %2598 = vmatmul.bf16.gmra.mxu0 %v3474_v25  ;;  %v3601_v32 = vld [vmem:[%s6321_s0 + $0x320] sm:$0xf]  ;;  %v3603_v35 = vld [vmem:[%s6321_s0 + $0x360] sm:$0xf0] }
 0x1c2   :  { %2661 = vmatmul.bf16.gmra.mxu1 %v3478_v50 }
 0x1c3   :  { %2724 = vmatmul.bf16.gmra.mxu2 %v3482_v33  ;;  %v4443_v33 = vld [vmem:[%s6321_s0 + $0x35c] sm:$0xf0] }
 0x1c4   :  { %2787 = vmatmul.bf16.gmra.mxu3 %v3486_v53  ;;  %v4435_v53 = vld [vmem:[%s6321_s0 + $0x324] sm:$0xf] }
 0x1c6   :  { %v2488_v57 = vpop.f32.mrf.mxu2  ;;  %v2364_v45 = vpop.f32.mrf.mxu0 }
 0x1c7   :  { %v2551_v40 = vpop.f32.mrf.mxu3  ;;  %v2489_v41 = vadd.f32 %v2488_v57, %v2426_v39  ;;  %v2427_v24 = vpop.f32.mrf.mxu1  ;;  %v2365_v46 = vadd.f32 %v2364_v45, %v5397_v1  ;;  %v3545_v1 = vld [vmem:[%s6321_s0 + $0x2a8] sm:$0xf]  ;;  %v4436_v39 = vld [vmem:[%s6321_s0 + $0x32c] sm:$0xf]  ;;  %v3602_v45 = vor.u32 %v4443_v33, %v3601_v32  ;;  %v3674_v33 = vor.u32 %v4460_v11, %v3673_v17 }
 0x1c8   :  { %v3546_v20 = vor.u32 %v4428_v59, %v3545_v1  ;;  %v3611_v57 = vld [vmem:[%s6321_s0 + $0x368] sm:$0xf0] }
 0x1c9   :  { %v5775_v38 = vadd.f32 %v2551_v40, %v2489_v41  ;;  %v2428_v47 = vadd.f32 %v2427_v24, %v2365_v46  ;;  %v3606_v24 = vor.u32 %v4435_v53, %v3603_v35  ;;  %v3614_v52 = vor.u32 %v4436_v39, %v3611_v57 }
 0x1ce   :  { %v2490_v0 = vpop.f32.mrf.mxu2  ;;  %v2367_v63 = vpop.f32.mrf.mxu0 }
 0x1cf   :  { %v2553_v2 = vpop.f32.mrf.mxu3  ;;  %v2491_v4 = vadd.f32 %v2490_v0, %v2428_v47  ;;  %v2430_v6 = vpop.f32.mrf.mxu1  ;;  %v2368_v9 = vadd.f32 %v2367_v63, %v5412_v16  ;;  %v4601_v16 = vld [vmem:[%s6319_s1 + $0x350] sm:$0xff]  ;;  %v4459_v63 = vld [vmem:[%s6321_s0 + $0x3dc] sm:$0xf0] }
 0x1d0   :  { %2890 = vmatpush.bf16.msrb.mxu1 %v4601_v16  ;;  %v4452_v16 = vld [vmem:[%s6321_s0 + $0x3ac] sm:$0xf] }
 0x1d1   :  { %v5802_v29 = vadd.f32 %v2553_v2, %v2491_v4  ;;  %v2431_v10 = vadd.f32 %v2430_v6, %v2368_v9  ;;  %2603 = vmatmul.bf16.gmra.mxu0 %v3538_v55  ;;  %v4608_v6 = vld [vmem:[%s6319_s1 + $0x388] sm:$0xff] }
 0x1d2   :  { %2666 = vmatmul.bf16.gmra.mxu1 %v3542_v3  ;;  %v4600_v9 = vld [vmem:[%s6319_s1 + $0x348] sm:$0xff]  ;;  %2954 = vmatpush.bf16.msrb.mxu2 %v4608_v6 }
 0x1d3   :  { %2729 = vmatmul.bf16.gmra.mxu2 %v3546_v20 }
 0x1d4   :  { %2792 = vmatmul.bf16.gmra.mxu3 %v3550_v7  ;;  %v4592_v7 = vld [vmem:[%s6319_s1 + $0x308] sm:$0xff]  ;;  %2891 = vmatpush.bf16.msrb.mxu1 %v4600_v9 }
 0x1d5   :  { %2828 = vmatpush.bf16.msrb.mxu0 %v4592_v7  ;;  %v4591_v7 = vld [vmem:[%s6319_s1 + $0x300] sm:$0xff] }
 0x1d6   :  { %v2493_v18 = vpop.f32.mrf.mxu2  ;;  %v2369_v22 = vpop.f32.mrf.mxu0 }
 0x1d7   :  { %v2556_v19 = vpop.f32.mrf.mxu3  ;;  %v2494_v21 = vadd.f32 %v2493_v18, %v2431_v10  ;;  %v2432_v25 = vpop.f32.mrf.mxu1  ;;  %v2370_v50 = vadd.f32 %v2369_v22, %v5439_v44  ;;  %v3609_v44 = vld [vmem:[%s6321_s0 + $0x328] sm:$0xf]  ;;  %v4451_v10 = vld [vmem:[%s6321_s0 + $0x3a4] sm:$0xf]  ;;  %v3675_v18 = vld [vmem:[%s6321_s0 + $0x3e8] sm:$0xf0] }
 0x1d8   :  { %v3610_v51 = vor.u32 %v4444_v36, %v3609_v44  ;;  %v3678_v53 = vor.u32 %v4452_v16, %v3675_v18 }
 0x1d9   :  { %v5817_v30 = vadd.f32 %v2556_v19, %v2494_v21  ;;  %v2433_v31 = vadd.f32 %v2432_v25, %v2370_v50  ;;  %v3670_v25 = vor.u32 %v4451_v10, %v3667_v13  ;;  %v4599_v10 = vld [vmem:[%s6319_s1 + $0x340] sm:$0xff]  ;;  %2829 = vmatpush.bf16.msrb.mxu0 %v4591_v7 }
 0x1da   :  { %2892 = vmatpush.bf16.msrb.mxu1 %v4599_v10 }
 0x1de   :  { %v2495_v40 = vpop.f32.mrf.mxu2  ;;  %v2372_v47 = vpop.f32.mrf.mxu0 }
 0x1df   :  { %v2558_v41 = vpop.f32.mrf.mxu3  ;;  %v2496_v46 = vadd.f32 %v2495_v40, %v2433_v31  ;;  %v2435_v49 = vpop.f32.mrf.mxu1  ;;  %v2373_v56 = vadd.f32 %v2372_v47, %v5442_v54  ;;  %v3665_v54 = vld [vmem:[%s6321_s0 + $0x3a0] sm:$0xf] }
 0x1e0   :  { %v3666_v22 = vor.u32 %v4459_v63, %v3665_v54  ;;  %v4607_v47 = vld [vmem:[%s6319_s1 + $0x380] sm:$0xff] }
 0x1e1   :  { %v5844_v1 = vadd.f32 %v2558_v41, %v2496_v46  ;;  %v2436_v59 = vadd.f32 %v2435_v49, %v2373_v56  ;;  %2608 = vmatmul.bf16.gmra.mxu0 %v3602_v45  ;;  %v3729_v46 = vld [vmem:[%s6321_s0 + $0x420] sm:$0xf]  ;;  %v4467_v49 = vld [vmem:[%s6321_s0 + $0x424] sm:$0xf]  ;;  %v4476_v56 = vld [vmem:[%s6321_s0 + $0x464] sm:$0xf0]  ;;  %2955 = vmatpush.bf16.msrb.mxu2 %v4607_v47 }
 0x1e2   :  { %2671 = vmatmul.bf16.gmra.mxu1 %v3606_v24 }
 0x1e3   :  { %2734 = vmatmul.bf16.gmra.mxu2 %v3610_v51  ;;  %v3731_v51 = vld [vmem:[%s6321_s0 + $0x460] sm:$0xf0] }
 0x1e4   :  { %2797 = vmatmul.bf16.gmra.mxu3 %v3614_v52  ;;  %v3737_v52 = vld [vmem:[%s6321_s0 + $0x428] sm:$0xf] }
 0x1e5   :  { %v3738_v63 = vor.u32 %v4476_v56, %v3737_v52 }
 0x1e6   :  { %v2498_v60 = vpop.f32.mrf.mxu2  ;;  %v2374_v2 = vpop.f32.mrf.mxu0 }
 0x1e7   :  { %v2561_v62 = vpop.f32.mrf.mxu3  ;;  %v2499_v0 = vadd.f32 %v2498_v60, %v2436_v59  ;;  %v2437_v55 = vpop.f32.mrf.mxu1  ;;  %v2375_v3 = vadd.f32 %v2374_v2, %v5481_v23  ;;  %v4616_v23 = vld [vmem:[%s6319_s1 + $0x3c8] sm:$0xff] }
 0x1e8   :  { %3017 = vmatpush.bf16.msrb.mxu3 %v4616_v23  ;;  %v4468_v59 = vld [vmem:[%s6321_s0 + $0x42c] sm:$0xf]  ;;  %v4615_v23 = vld [vmem:[%s6319_s1 + $0x3c0] sm:$0xff] }
 0x1e9   :  { %v5847_v4 = vadd.f32 %v2561_v62, %v2499_v0  ;;  %v2438_v20 = vadd.f32 %v2437_v55, %v2375_v3  ;;  %v3739_v60 = vld [vmem:[%s6321_s0 + $0x468] sm:$0xf0]  ;;  %v3734_v55 = vor.u32 %v4467_v49, %v3731_v51 }
 0x1ea   :  { %v3742_v6 = vor.u32 %v4468_v59, %v3739_v60 }
 0x1ec   :  { %3018 = vmatpush.bf16.msrb.mxu3 %v4615_v23 }
 0x1ee   :  { %v2500_v19 = vpop.f32.mrf.mxu2  ;;  %v2377_v31 = vpop.f32.mrf.mxu0 }
 0x1ef   :  { %v2563_v21 = vpop.f32.mrf.mxu3  ;;  %v2501_v50 = vadd.f32 %v2500_v19, %v2438_v20  ;;  %v2440_v32 = vpop.f32.mrf.mxu1  ;;  %v2378_v35 = vadd.f32 %v2377_v31, %v5483_v34  ;;  %v4475_v34 = vld [vmem:[%s6321_s0 + $0x45c] sm:$0xf0]  ;;  %v3795_v31 = vld [vmem:[%s6321_s0 + $0x4e0] sm:$0xf0] }
 0x1f0   :  { %v3730_v2 = vor.u32 %v4475_v34, %v3729_v46 }
 0x1f1   :  { %v5886_v44 = vadd.f32 %v2563_v21, %v2501_v50  ;;  %v2441_v36 = vadd.f32 %v2440_v32, %v2378_v35  ;;  %2613 = vmatmul.bf16.gmra.mxu0 %v3666_v22  ;;  %v3793_v22 = vld [vmem:[%s6321_s0 + $0x4a0] sm:$0xf]  ;;  %v4483_v50 = vld [vmem:[%s6321_s0 + $0x4a4] sm:$0xf]  ;;  %v4492_v32 = vld [vmem:[%s6321_s0 + $0x4e4] sm:$0xf0] }
 0x1f2   :  { %2676 = vmatmul.bf16.gmra.mxu1 %v3670_v25  ;;  %v4491_v25 = vld [vmem:[%s6321_s0 + $0x4dc] sm:$0xf0] }
 0x1f3   :  { %2739 = vmatmul.bf16.gmra.mxu2 %v3674_v33  ;;  %v4484_v33 = vld [vmem:[%s6321_s0 + $0x4ac] sm:$0xf] }
 0x1f4   :  { %2802 = vmatmul.bf16.gmra.mxu3 %v3678_v53  ;;  %v3803_v53 = vld [vmem:[%s6321_s0 + $0x4e8] sm:$0xf0] }
 0x1f5   :  { %v3806_v34 = vor.u32 %v4484_v33, %v3803_v53 }
 0x1f6   :  { %v2503_v39 = vpop.f32.mrf.mxu2  ;;  %v2379_v41 = vpop.f32.mrf.mxu0 }
 0x1f7   :  { %v2566_v57 = vpop.f32.mrf.mxu3  ;;  %v2504_v40 = vadd.f32 %v2503_v39, %v2441_v36  ;;  %v2442_v45 = vpop.f32.mrf.mxu1  ;;  %v3794_v39 = vor.u32 %v4491_v25, %v3793_v22 }
 0x1f9   :  { %v5888_v24 = vadd.f32 %v2566_v57, %v2504_v40  ;;  %v3798_v57 = vor.u32 %v4483_v50, %v3795_v31 }
 0x1fe   :  { %v2505_v62 = vpop.f32.mrf.mxu2  ;;  %v2579_v3 = vpop.f32.mrf.mxu0 }
 0x1ff   :  { %v2568_v0 = vpop.f32.mrf.mxu3  ;;  %v2642_v54 = vpop.f32.mrf.mxu1  ;;  %v2580_v20 = vadd.f32 %v2579_v3, %v5523_v8 }
 0x200   :  { %v178_v0 = vld [vmem:[%s6321_s0 + $0x520] sm:$0xff] }
 0x201   :  { %v2643_v9 = vadd.f32 %v2642_v54, %v2580_v20  ;;  %2618 = vmatmul.bf16.gmra.mxu0 %v3730_v2  ;;  %v938_v54 = vunpack.c.l.b16 %v178_v0 }
 0x202   :  { %2681 = vmatmul.bf16.gmra.mxu1 %v3734_v55 }
 0x203   :  { %2744 = vmatmul.bf16.gmra.mxu2 %v3738_v63  ;;  %v939_v63 = vunpack.c.h.b16 %v178_v0 }
 0x204   :  { %2807 = vmatmul.bf16.gmra.mxu3 %v3742_v6 }
 0x205   :  { %v1115_v10 = vpack.c.b16 %v939_v63, %v939_v63 }
 0x206   :  { %v2705_v8 = vpop.f32.mrf.mxu2  ;;  %v2581_v11 = vpop.f32.mrf.mxu0 }
 0x207   :  { %v2768_v13 = vpop.f32.mrf.mxu3  ;;  %v2706_v17 = vadd.f32 %v2705_v8, %v2643_v9  ;;  %v2644_v16 = vpop.f32.mrf.mxu1  ;;  %v2582_v18 = vadd.f32 %v2581_v11, %v5550_v37  ;;  %v3801_v37 = vld [vmem:[%s6321_s0 + $0x4a8] sm:$0xf]  ;;  %v1114_v9 = vpack.c.b16 %v938_v54, %v938_v54 }
 0x208   :  { %v3802_v46 = vor.u32 %v4492_v32, %v3801_v37 }
 0x209   :  { %v5928_v19 = vadd.f32 %v2768_v13, %v2706_v17  ;;  %v2645_v21 = vadd.f32 %v2644_v16, %v2582_v18 }
 0x20e   :  { %v2707_v35 = vpop.f32.mrf.mxu2  ;;  %v2584_v41 = vpop.f32.mrf.mxu0 }
 0x20f   :  { %v2770_v36 = vpop.f32.mrf.mxu3  ;;  %v2708_v40 = vadd.f32 %v2707_v35, %v2645_v21  ;;  %v2647_v45 = vpop.f32.mrf.mxu1  ;;  %v2585_v47 = vadd.f32 %v2584_v41, %v5568_v58  ;;  %v179_v58 = vld [vmem:[%s6321_s0 + $0x528] sm:$0xff]  ;;  %v4349_v35 = vld [vmem:[%s6321_s0 + $0x6c] sm:$0xf0]  ;;  %v3243_v41 = vld [vmem:[%s6321_s0 + $0x78] sm:$0xf0] }
 0x210   :  { %v940_v6 = vunpack.c.l.b16 %v179_v58  ;;  %v941_v20 = vunpack.c.h.b16 %v179_v58 }
 0x211   :  { %v5955_v49 = vadd.f32 %v2770_v36, %v2708_v40  ;;  %v2648_v51 = vadd.f32 %v2647_v45, %v2585_v47  ;;  %2623 = vmatmul.bf16.gmra.mxu0 %v3794_v39  ;;  %v4341_v36 = vld [vmem:[%s6321_s0 + $0x34] sm:$0xf]  ;;  %v4342_v40 = vld [vmem:[%s6321_s0 + $0x3c] sm:$0xf] }
 0x212   :  { %2686 = vmatmul.bf16.gmra.mxu1 %v3798_v57  ;;  %v1116_v11 = vpack.c.b16 %v940_v6, %v940_v6  ;;  %v3235_v39 = vld [vmem:[%s6321_s0 + $0x70] sm:$0xf0]  ;;  %v4350_v57 = vld [vmem:[%s6321_s0 + $0x74] sm:$0xf0] }
 0x213   :  { %2749 = vmatmul.bf16.gmra.mxu2 %v3802_v46  ;;  %v3238_v47 = vor.u32 %v4341_v36, %v3235_v39 }
 0x214   :  { %2812 = vmatmul.bf16.gmra.mxu3 %v3806_v34 }
 0x216   :  { %v2710_v52 = vpop.f32.mrf.mxu2  ;;  %v2586_v60 = vpop.f32.mrf.mxu0 }
 0x217   :  { %v2773_v56 = vpop.f32.mrf.mxu3  ;;  %v2711_v59 = vadd.f32 %v2710_v52, %v2648_v51  ;;  %v2649_v62 = vpop.f32.mrf.mxu1  ;;  %v2587_v2 = vadd.f32 %v2586_v60, %v5574_v14  ;;  %v1117_v14 = vpack.c.b16 %v941_v20, %v941_v20  ;;  %v3246_v60 = vor.u32 %v4342_v40, %v3243_v41 }
 0x219   :  { %v5964_v55 = vadd.f32 %v2773_v56, %v2711_v59  ;;  %v2650_v3 = vadd.f32 %v2649_v62, %v2587_v2 }
 0x21e   :  { %v2712_v7 = vpop.f32.mrf.mxu2  ;;  %v2589_v13 = vpop.f32.mrf.mxu0 }
 0x21f   :  { %v2775_v23 = vpop.f32.mrf.mxu3  ;;  %v2713_v8 = vadd.f32 %v2712_v7, %v2650_v3  ;;  %v2652_v17 = vpop.f32.mrf.mxu1  ;;  %v2590_v16 = vadd.f32 %v2589_v13, %v5577_v27  ;;  %v3233_v27 = vld [vmem:[%s6321_s0 + $0x30] sm:$0xf]  ;;  %v4366_v13 = vld [vmem:[%s6321_s0 + $0xf4] sm:$0xf0] }
 0x220   :  { %v3234_v34 = vor.u32 %v4349_v35, %v3233_v27 }
 0x221   :  { %v5967_v18 = vadd.f32 %v2775_v23, %v2713_v8  ;;  %v2653_v21 = vadd.f32 %v2652_v17, %v2590_v16  ;;  %2628 = vmatmul.bf16.gmra.mxu0 %v1114_v9  ;;  %v4365_v9 = vld [vmem:[%s6321_s0 + $0xec] sm:$0xf0]  ;;  %v3299_v8 = vld [vmem:[%s6321_s0 + $0xf0] sm:$0xf0]  ;;  %v4358_v17 = vld [vmem:[%s6321_s0 + $0xbc] sm:$0xf] }
 0x222   :  { %2691 = vmatmul.bf16.gmra.mxu1 %v1115_v10  ;;  %v4357_v10 = vld [vmem:[%s6321_s0 + $0xb4] sm:$0xf] }
 0x223   :  { %2754 = vmatmul.bf16.gmra.mxu2 %v1116_v11  ;;  %v3307_v11 = vld [vmem:[%s6321_s0 + $0xf8] sm:$0xf0] }
 0x224   :  { %2817 = vmatmul.bf16.gmra.mxu3 %v1117_v14 }
 0x226   :  { %v2715_v22 = vpop.f32.mrf.mxu2  ;;  %v2591_v31 = vpop.f32.mrf.mxu0 }
 0x227   :  { %v2778_v25 = vpop.f32.mrf.mxu3  ;;  %v2716_v50 = vadd.f32 %v2715_v22, %v2653_v21  ;;  %v2654_v37 = vpop.f32.mrf.mxu1  ;;  %v2592_v32 = vadd.f32 %v2591_v31, %v5616_v61  ;;  %v3241_v61 = vld [vmem:[%s6321_s0 + $0x38] sm:$0xf]  ;;  %v3302_v22 = vor.u32 %v4357_v10, %v3299_v8 }
 0x228   :  { %v3242_v59 = vor.u32 %v4350_v57, %v3241_v61 }
 0x229   :  { %v5970_v33 = vadd.f32 %v2778_v25, %v2716_v50  ;;  %v2655_v53 = vadd.f32 %v2654_v37, %v2592_v32  ;;  %v3310_v32 = vor.u32 %v4358_v17, %v3307_v11 }
 0x22e   :  { %v2717_v45 = vpop.f32.mrf.mxu2  ;;  %v2594_v52 = vpop.f32.mrf.mxu0 }
 0x22f   :  { %v2780_v46 = vpop.f32.mrf.mxu3  ;;  %v2718_v51 = vadd.f32 %v2717_v45, %v2655_v53  ;;  %v2657_v56 = vpop.f32.mrf.mxu1  ;;  %v2595_v62 = vadd.f32 %v2594_v52, %v5619_v5  ;;  %v3297_v5 = vld [vmem:[%s6321_s0 + $0xb0] sm:$0xf]  ;;  %v4382_v52 = vld [vmem:[%s6321_s0 + $0x174] sm:$0xf0] }
 0x230   :  { %v3298_v21 = vor.u32 %v4365_v9, %v3297_v5 }
 0x231   :  { %v5997_v0 = vadd.f32 %v2780_v46, %v2718_v51  ;;  %v2658_v2 = vadd.f32 %v2657_v56, %v2595_v62  ;;  %2830 = vmatmul.bf16.vlgmr.msrb.gmra.mxu0 %v3234_v34  ;;  %v4381_v34 = vld [vmem:[%s6321_s0 + $0x16c] sm:$0xf0]  ;;  %v3363_v51 = vld [vmem:[%s6321_s0 + $0x170] sm:$0xf0]  ;;  %v4374_v56 = vld [vmem:[%s6321_s0 + $0x13c] sm:$0xf] }
 0x232   :  { %2893 = vmatmul.bf16.vlgmr.msrb.gmra.mxu1 %v3238_v47  ;;  %v4373_v47 = vld [vmem:[%s6321_s0 + $0x134] sm:$0xf] }
 0x233   :  { %2956 = vmatmul.bf16.vlgmr.msrb.gmra.mxu2 %v3242_v59  ;;  %v3371_v59 = vld [vmem:[%s6321_s0 + $0x178] sm:$0xf0] }
 0x234   :  { %3019 = vmatmul.bf16.vlgmr.msrb.gmra.mxu3 %v3246_v60 }
 0x236   :  { %v2720_v58 = vpop.f32.mrf.mxu2  ;;  %v2596_v63 = vpop.f32.mrf.mxu0 }
 0x237   :  { %v2783_v3 = vpop.f32.mrf.mxu3  ;;  %v2721_v54 = vadd.f32 %v2720_v58, %v2658_v2  ;;  %v2659_v6 = vpop.f32.mrf.mxu1  ;;  %v2597_v20 = vadd.f32 %v2596_v63, %v5646_v12  ;;  %v3305_v12 = vld [vmem:[%s6321_s0 + $0xb8] sm:$0xf]  ;;  %v3366_v58 = vor.u32 %v4373_v47, %v3363_v51 }
 0x238   :  { %v3306_v37 = vor.u32 %v4366_v13, %v3305_v12 }
 0x239   :  { %v6000_v7 = vadd.f32 %v2783_v3, %v2721_v54  ;;  %v2660_v23 = vadd.f32 %v2659_v6, %v2597_v20  ;;  %v3374_v20 = vor.u32 %v4374_v56, %v3371_v59 }
 0x23e   :  { %v2722_v14 = vpop.f32.mrf.mxu2  ;;  %v2599_v50 = vpop.f32.mrf.mxu0 }
 0x23f   :  { %v2785_v16 = vpop.f32.mrf.mxu3  ;;  %v2723_v25 = vadd.f32 %v2722_v14, %v2660_v23  ;;  %v2662_v31 = vpop.f32.mrf.mxu1  ;;  %v2600_v53 = vadd.f32 %v2599_v50, %v5661_v48  ;;  %v3361_v48 = vld [vmem:[%s6321_s0 + $0x130] sm:$0xf]  ;;  %v4398_v50 = vld [vmem:[%s6321_s0 + $0x1f4] sm:$0xf0] }
 0x240   :  { %v3362_v2 = vor.u32 %v4381_v34, %v3361_v48 }
 0x241   :  { %v6027_v27 = vadd.f32 %v2785_v16, %v2723_v25  ;;  %v2663_v35 = vadd.f32 %v2662_v31, %v2600_v53  ;;  %2835 = vmatmul.bf16.gmra.mxu0 %v3298_v21  ;;  %v4397_v21 = vld [vmem:[%s6321_s0 + $0x1ec] sm:$0xf0]  ;;  %v3427_v25 = vld [vmem:[%s6321_s0 + $0x1f0] sm:$0xf0]  ;;  %v4390_v31 = vld [vmem:[%s6321_s0 + $0x1bc] sm:$0xf] }
 0x242   :  { %2898 = vmatmul.bf16.gmra.mxu1 %v3302_v22  ;;  %v4389_v22 = vld [vmem:[%s6321_s0 + $0x1b4] sm:$0xf] }
 0x243   :  { %2961 = vmatmul.bf16.gmra.mxu2 %v3306_v37  ;;  %v3435_v37 = vld [vmem:[%s6321_s0 + $0x1f8] sm:$0xf0] }
 0x244   :  { %3024 = vmatmul.bf16.gmra.mxu3 %v3310_v32 }
 0x246   :  { %v2725_v36 = vpop.f32.mrf.mxu2  ;;  %v2601_v57 = vpop.f32.mrf.mxu0 }
 0x247   :  { %v2788_v39 = vpop.f32.mrf.mxu3  ;;  %v2726_v61 = vadd.f32 %v2725_v36, %v2663_v35  ;;  %v2664_v40 = vpop.f32.mrf.mxu1  ;;  %v2602_v41 = vadd.f32 %v2601_v57, %v5688_v43  ;;  %v3369_v43 = vld [vmem:[%s6321_s0 + $0x138] sm:$0xf]  ;;  %v3430_v36 = vor.u32 %v4389_v22, %v3427_v25 }
 0x248   :  { %v3370_v6 = vor.u32 %v4382_v52, %v3369_v43 }
 0x249   :  { %v6030_v45 = vadd.f32 %v2788_v39, %v2726_v61  ;;  %v2665_v46 = vadd.f32 %v2664_v40, %v2602_v41  ;;  %v3438_v41 = vor.u32 %v4390_v31, %v3435_v37 }
 0x24e   :  { %v2727_v60 = vpop.f32.mrf.mxu2  ;;  %v2604_v54 = vpop.f32.mrf.mxu0 }
 0x24f   :  { %v2790_v62 = vpop.f32.mrf.mxu3  ;;  %v2728_v3 = vadd.f32 %v2727_v60, %v2665_v46  ;;  %v2667_v63 = vpop.f32.mrf.mxu1  ;;  %v2605_v23 = vadd.f32 %v2604_v54, %v5694_v26  ;;  %v3425_v26 = vld [vmem:[%s6321_s0 + $0x1b0] sm:$0xf]  ;;  %v4414_v54 = vld [vmem:[%s6321_s0 + $0x274] sm:$0xf0] }
 0x250   :  { %v3426_v35 = vor.u32 %v4397_v21, %v3425_v26 }
 0x251   :  { %v6057_v5 = vadd.f32 %v2790_v62, %v2728_v3  ;;  %v2668_v9 = vadd.f32 %v2667_v63, %v2605_v23  ;;  %2840 = vmatmul.bf16.gmra.mxu0 %v3362_v2  ;;  %v4413_v2 = vld [vmem:[%s6321_s0 + $0x26c] sm:$0xf0]  ;;  %v3491_v3 = vld [vmem:[%s6321_s0 + $0x270] sm:$0xf0]  ;;  %v4406_v63 = vld [vmem:[%s6321_s0 + $0x23c] sm:$0xf] }
 0x252   :  { %2903 = vmatmul.bf16.gmra.mxu1 %v3366_v58  ;;  %v4405_v58 = vld [vmem:[%s6321_s0 + $0x234] sm:$0xf] }
 0x253   :  { %2966 = vmatmul.bf16.gmra.mxu2 %v3370_v6  ;;  %v3499_v6 = vld [vmem:[%s6321_s0 + $0x278] sm:$0xf0] }
 0x254   :  { %3029 = vmatmul.bf16.gmra.mxu3 %v3374_v20 }
 0x256   :  { %v2730_v10 = vpop.f32.mrf.mxu2  ;;  %v2606_v13 = vpop.f32.mrf.mxu0 }
 0x257   :  { %v2793_v8 = vpop.f32.mrf.mxu3  ;;  %v2731_v12 = vadd.f32 %v2730_v10, %v2668_v9  ;;  %v2669_v17 = vpop.f32.mrf.mxu1  ;;  %v2607_v11 = vadd.f32 %v2606_v13, %v5730_v15  ;;  %v3433_v15 = vld [vmem:[%s6321_s0 + $0x1b8] sm:$0xf]  ;;  %v3494_v10 = vor.u32 %v4405_v58, %v3491_v3 }
 0x258   :  { %v3434_v40 = vor.u32 %v4398_v50, %v3433_v15 }
 0x259   :  { %v6060_v14 = vadd.f32 %v2793_v8, %v2731_v12  ;;  %v2670_v16 = vadd.f32 %v2669_v17, %v2607_v11  ;;  %v3502_v11 = vor.u32 %v4406_v63, %v3499_v6 }
 0x25e   :  { %v2732_v32 = vpop.f32.mrf.mxu2  ;;  %v2609_v61 = vpop.f32.mrf.mxu0 }
 0x25f   :  { %v2795_v53 = vpop.f32.mrf.mxu3  ;;  %v2733_v39 = vadd.f32 %v2732_v32, %v2670_v16  ;;  %v2672_v57 = vpop.f32.mrf.mxu1  ;;  %v2610_v46 = vadd.f32 %v2609_v61, %v5733_v42  ;;  %v3489_v42 = vld [vmem:[%s6321_s0 + $0x230] sm:$0xf]  ;;  %v4430_v61 = vld [vmem:[%s6321_s0 + $0x2f4] sm:$0xf0] }
 0x260   :  { %v3490_v9 = vor.u32 %v4413_v2, %v3489_v42 }
 0x261   :  { %v6087_v48 = vadd.f32 %v2795_v53, %v2733_v39  ;;  %v2673_v34 = vadd.f32 %v2672_v57, %v2610_v46  ;;  %2845 = vmatmul.bf16.gmra.mxu0 %v3426_v35  ;;  %v4429_v35 = vld [vmem:[%s6321_s0 + $0x2ec] sm:$0xf0]  ;;  %v3555_v39 = vld [vmem:[%s6321_s0 + $0x2f0] sm:$0xf0]  ;;  %v4422_v57 = vld [vmem:[%s6321_s0 + $0x2bc] sm:$0xf] }
 0x262   :  { %2908 = vmatmul.bf16.gmra.mxu1 %v3430_v36  ;;  %v4421_v36 = vld [vmem:[%s6321_s0 + $0x2b4] sm:$0xf] }
 0x263   :  { %2971 = vmatmul.bf16.gmra.mxu2 %v3434_v40  ;;  %v3563_v40 = vld [vmem:[%s6321_s0 + $0x2f8] sm:$0xf0] }
 0x264   :  { %3034 = vmatmul.bf16.gmra.mxu3 %v3438_v41 }
 0x266   :  { %v2735_v47 = vpop.f32.mrf.mxu2  ;;  %v2611_v52 = vpop.f32.mrf.mxu0 }
 0x267   :  { %v2798_v51 = vpop.f32.mrf.mxu3  ;;  %v2736_v43 = vadd.f32 %v2735_v47, %v2673_v34  ;;  %v2674_v56 = vpop.f32.mrf.mxu1  ;;  %v2612_v59 = vadd.f32 %v2611_v52, %v5769_v28  ;;  %v3497_v28 = vld [vmem:[%s6321_s0 + $0x238] sm:$0xf]  ;;  %v3558_v47 = vor.u32 %v4421_v36, %v3555_v39 }
 0x268   :  { %v3498_v17 = vor.u32 %v4414_v54, %v3497_v28 }
 0x269   :  { %v6090_v60 = vadd.f32 %v2798_v51, %v2736_v43  ;;  %v2675_v62 = vadd.f32 %v2674_v56, %v2612_v59  ;;  %v3566_v59 = vor.u32 %v4422_v57, %v3563_v40 }
 0x26e   :  { %v2737_v20 = vpop.f32.mrf.mxu2  ;;  %v2614_v12 = vpop.f32.mrf.mxu0 }
 0x26f   :  { %v2800_v23 = vpop.f32.mrf.mxu3  ;;  %v2738_v8 = vadd.f32 %v2737_v20, %v2675_v62  ;;  %v2677_v13 = vpop.f32.mrf.mxu1  ;;  %v2615_v16 = vadd.f32 %v2614_v12, %v5775_v38  ;;  %v3553_v38 = vld [vmem:[%s6321_s0 + $0x2b0] sm:$0xf]  ;;  %v4446_v12 = vld [vmem:[%s6321_s0 + $0x374] sm:$0xf0] }
 0x270   :  { %v3554_v34 = vor.u32 %v4429_v35, %v3553_v38 }
 0x271   :  { %v6117_v26 = vadd.f32 %v2800_v23, %v2738_v8  ;;  %v2678_v21 = vadd.f32 %v2677_v13, %v2615_v16  ;;  %2850 = vmatmul.bf16.gmra.mxu0 %v3490_v9  ;;  %v4445_v9 = vld [vmem:[%s6321_s0 + $0x36c] sm:$0xf0]  ;;  %v3619_v8 = vld [vmem:[%s6321_s0 + $0x370] sm:$0xf0]  ;;  %v4438_v13 = vld [vmem:[%s6321_s0 + $0x33c] sm:$0xf] }
 0x272   :  { %2913 = vmatmul.bf16.gmra.mxu1 %v3494_v10  ;;  %v4437_v10 = vld [vmem:[%s6321_s0 + $0x334] sm:$0xf] }
 0x273   :  { %2976 = vmatmul.bf16.gmra.mxu2 %v3498_v17  ;;  %v3627_v17 = vld [vmem:[%s6321_s0 + $0x378] sm:$0xf0] }
 0x274   :  { %3039 = vmatmul.bf16.gmra.mxu3 %v3502_v11 }
 0x276   :  { %v2740_v22 = vpop.f32.mrf.mxu2  ;;  %v2616_v50 = vpop.f32.mrf.mxu0 }
 0x277   :  { %v2803_v25 = vpop.f32.mrf.mxu3  ;;  %v2741_v15 = vadd.f32 %v2740_v22, %v2678_v21  ;;  %v2679_v31 = vpop.f32.mrf.mxu1  ;;  %v2617_v37 = vadd.f32 %v2616_v50, %v5802_v29  ;;  %v3561_v29 = vld [vmem:[%s6321_s0 + $0x2b8] sm:$0xf]  ;;  %v3622_v22 = vor.u32 %v4437_v10, %v3619_v8 }
 0x278   :  { %v3562_v56 = vor.u32 %v4430_v61, %v3561_v29 }
 0x279   :  { %v6120_v32 = vadd.f32 %v2803_v25, %v2741_v15  ;;  %v2680_v53 = vadd.f32 %v2679_v31, %v2617_v37  ;;  %v3630_v37 = vor.u32 %v4438_v13, %v3627_v17 }
 0x27e   :  { %v2742_v41 = vpop.f32.mrf.mxu2  ;;  %v2619_v43 = vpop.f32.mrf.mxu0 }
 0x27f   :  { %v2805_v46 = vpop.f32.mrf.mxu3  ;;  %v2743_v51 = vadd.f32 %v2742_v41, %v2680_v53  ;;  %v2682_v52 = vpop.f32.mrf.mxu1  ;;  %v2620_v62 = vadd.f32 %v2619_v43, %v5817_v30  ;;  %v3617_v30 = vld [vmem:[%s6321_s0 + $0x330] sm:$0xf]  ;;  %v4462_v43 = vld [vmem:[%s6321_s0 + $0x3f4] sm:$0xf0] }
 0x280   :  { %v3618_v21 = vor.u32 %v4445_v9, %v3617_v30 }
 0x281   :  { %v6147_v42 = vadd.f32 %v2805_v46, %v2743_v51  ;;  %v2683_v2 = vadd.f32 %v2682_v52, %v2620_v62  ;;  %2855 = vmatmul.bf16.gmra.mxu0 %v3554_v34  ;;  %v4461_v34 = vld [vmem:[%s6321_s0 + $0x3ec] sm:$0xf0]  ;;  %v3683_v51 = vld [vmem:[%s6321_s0 + $0x3f0] sm:$0xf0]  ;;  %v4454_v52 = vld [vmem:[%s6321_s0 + $0x3bc] sm:$0xf] }
 0x282   :  { %2918 = vmatmul.bf16.gmra.mxu1 %v3558_v47  ;;  %v4453_v47 = vld [vmem:[%s6321_s0 + $0x3b4] sm:$0xf] }
 0x283   :  { %2981 = vmatmul.bf16.gmra.mxu2 %v3562_v56  ;;  %v3691_v56 = vld [vmem:[%s6321_s0 + $0x3f8] sm:$0xf0] }
 0x284   :  { %3044 = vmatmul.bf16.gmra.mxu3 %v3566_v59 }
 0x286   :  { %v2745_v58 = vpop.f32.mrf.mxu2  ;;  %v2621_v54 = vpop.f32.mrf.mxu0 }
 0x287   :  { %v2808_v3 = vpop.f32.mrf.mxu3  ;;  %v2746_v28 = vadd.f32 %v2745_v58, %v2683_v2  ;;  %v2684_v63 = vpop.f32.mrf.mxu1  ;;  %v2622_v6 = vadd.f32 %v2621_v54, %v5844_v1  ;;  %v3625_v1 = vld [vmem:[%s6321_s0 + $0x338] sm:$0xf]  ;;  %v3686_v58 = vor.u32 %v4453_v47, %v3683_v51 }
 0x288   :  { %v3626_v31 = vor.u32 %v4446_v12, %v3625_v1 }
 0x289   :  { %v6150_v20 = vadd.f32 %v2808_v3, %v2746_v28  ;;  %v2685_v23 = vadd.f32 %v2684_v63, %v2622_v6  ;;  %v3694_v6 = vor.u32 %v4454_v52, %v3691_v56  ;;  %v4493_v52 = vld [vmem:[%s6321_s0 + $0x4ec] sm:$0xf0]  ;;  %v3811_v56 = vld [vmem:[%s6321_s0 + $0x4f0] sm:$0xf0] }
 0x28e   :  { %v2747_v11 = vpop.f32.mrf.mxu2  ;;  %v2624_v15 = vpop.f32.mrf.mxu0 }
 0x28f   :  { %v2810_v16 = vpop.f32.mrf.mxu3  ;;  %v2748_v25 = vadd.f32 %v2747_v11, %v2685_v23  ;;  %v2687_v50 = vpop.f32.mrf.mxu1  ;;  %v2625_v53 = vadd.f32 %v2624_v15, %v5847_v4  ;;  %v3681_v4 = vld [vmem:[%s6321_s0 + $0x3b0] sm:$0xf]  ;;  %v4470_v15 = vld [vmem:[%s6321_s0 + $0x43c] sm:$0xf] }
 0x290   :  { %v3682_v2 = vor.u32 %v4461_v34, %v3681_v4  ;;  %v3745_v11 = vld [vmem:[%s6321_s0 + $0x430] sm:$0xf] }
 0x291   :  { %v6177_v38 = vadd.f32 %v2810_v16, %v2748_v25  ;;  %v2688_v35 = vadd.f32 %v2687_v50, %v2625_v53  ;;  %2860 = vmatmul.bf16.gmra.mxu0 %v3618_v21  ;;  %v4469_v16 = vld [vmem:[%s6321_s0 + $0x434] sm:$0xf]  ;;  %v4478_v25 = vld [vmem:[%s6321_s0 + $0x474] sm:$0xf0]  ;;  %v3755_v50 = vld [vmem:[%s6321_s0 + $0x478] sm:$0xf0] }
 0x292   :  { %2923 = vmatmul.bf16.gmra.mxu1 %v3622_v22  ;;  %v3747_v21 = vld [vmem:[%s6321_s0 + $0x470] sm:$0xf0]  ;;  %v3753_v22 = vld [vmem:[%s6321_s0 + $0x438] sm:$0xf] }
 0x293   :  { %2986 = vmatmul.bf16.gmra.mxu2 %v3626_v31 }
 0x294   :  { %3049 = vmatmul.bf16.gmra.mxu3 %v3630_v37 }
 0x296   :  { %v2750_v36 = vpop.f32.mrf.mxu2  ;;  %v2626_v61 = vpop.f32.mrf.mxu0 }
 0x297   :  { %v2813_v39 = vpop.f32.mrf.mxu3  ;;  %v2751_v29 = vadd.f32 %v2750_v36, %v2688_v35  ;;  %v2689_v57 = vpop.f32.mrf.mxu1  ;;  %v2627_v40 = vadd.f32 %v2626_v61, %v5886_v44  ;;  %v3689_v44 = vld [vmem:[%s6321_s0 + $0x3b8] sm:$0xf]  ;;  %v3750_v35 = vor.u32 %v4469_v16, %v3747_v21  ;;  %v3758_v61 = vor.u32 %v4470_v15, %v3755_v50 }
 0x298   :  { %v3690_v63 = vor.u32 %v4462_v43, %v3689_v44  ;;  %v3809_v43 = vld [vmem:[%s6321_s0 + $0x4b0] sm:$0xf] }
 0x299   :  { %v6180_v41 = vadd.f32 %v2813_v39, %v2751_v29  ;;  %v2690_v46 = vadd.f32 %v2689_v57, %v2627_v40  ;;  %v3754_v29 = vor.u32 %v4478_v25, %v3753_v22 }
 0x29e   :  { %v2752_v59 = vpop.f32.mrf.mxu2  ;;  %v2629_v28 = vpop.f32.mrf.mxu0 }
 0x29f   :  { %v2815_v62 = vpop.f32.mrf.mxu3  ;;  %v2753_v3 = vadd.f32 %v2752_v59, %v2690_v46  ;;  %v2692_v54 = vpop.f32.mrf.mxu1  ;;  %v2630_v23 = vadd.f32 %v2629_v28, %v5888_v24  ;;  %v4477_v24 = vld [vmem:[%s6321_s0 + $0x46c] sm:$0xf0]  ;;  %v4494_v59 = vld [vmem:[%s6321_s0 + $0x4f4] sm:$0xf0] }
 0x2a0   :  { %v3746_v53 = vor.u32 %v4477_v24, %v3745_v11 }
 0x2a1   :  { %v6207_v30 = vadd.f32 %v2815_v62, %v2753_v3  ;;  %v2693_v9 = vadd.f32 %v2692_v54, %v2630_v23  ;;  %2865 = vmatmul.bf16.gmra.mxu0 %v3682_v2  ;;  %v4486_v62 = vld [vmem:[%s6321_s0 + $0x4bc] sm:$0xf] }
 0x2a2   :  { %2928 = vmatmul.bf16.gmra.mxu1 %v3686_v58  ;;  %v3819_v2 = vld [vmem:[%s6321_s0 + $0x4f8] sm:$0xf0] }
 0x2a3   :  { %2991 = vmatmul.bf16.gmra.mxu2 %v3690_v63  ;;  %v3810_v63 = vor.u32 %v4493_v52, %v3809_v43 }
 0x2a4   :  { %3054 = vmatmul.bf16.gmra.mxu3 %v3694_v6 }
 0x2a6   :  { %v2755_v10 = vpop.f32.mrf.mxu2  ;;  %v2631_v12 = vpop.f32.mrf.mxu0 }
 0x2a7   :  { %v2818_v8 = vpop.f32.mrf.mxu3  ;;  %v2756_v1 = vadd.f32 %v2755_v10, %v2693_v9  ;;  %v2694_v13 = vpop.f32.mrf.mxu1 }
 0x2a9   :  { %v6209_v17 = vadd.f32 %v2818_v8, %v2756_v1  ;;  %v3822_v1 = vor.u32 %v4486_v62, %v3819_v2 }
 0x2ae   :  { %v2757_v31 = vpop.f32.mrf.mxu2  ;;  %v2831_v36 = vpop.f32.mrf.mxu0 }
 0x2af   :  { %v2820_v37 = vpop.f32.mrf.mxu3  ;;  %v2894_v39 = vpop.f32.mrf.mxu1  ;;  %v2832_v57 = vadd.f32 %v2831_v36, %v5928_v19  ;;  %v4485_v19 = vld [vmem:[%s6321_s0 + $0x4b4] sm:$0xf] }
 0x2b0   :  { %v3814_v6 = vor.u32 %v4485_v19, %v3811_v56 }
 0x2b1   :  { %2870 = vmatmul.bf16.gmra.mxu0 %v3746_v53  ;;  %v2895_v4 = vadd.f32 %v2894_v39, %v2832_v57  ;;  %v180_v53 = vld [vmem:[%s6321_s0 + $0x530] sm:$0xff] }
 0x2b2   :  { %2933 = vmatmul.bf16.gmra.mxu1 %v3750_v35  ;;  %v942_v39 = vunpack.c.l.b16 %v180_v53 }
 0x2b3   :  { %2996 = vmatmul.bf16.gmra.mxu2 %v3754_v29  ;;  %v943_v29 = vunpack.c.h.b16 %v180_v53 }
 0x2b4   :  { %3059 = vmatmul.bf16.gmra.mxu3 %v3758_v61 }
 0x2b6   :  { %v2957_v40 = vpop.f32.mrf.mxu2  ;;  %v2833_v34 = vpop.f32.mrf.mxu0 }
 0x2b7   :  { %v3020_v46 = vpop.f32.mrf.mxu3  ;;  %v2896_v47 = vpop.f32.mrf.mxu1  ;;  %v2958_v51 = vadd.f32 %v2957_v40, %v2895_v4  ;;  %v2834_v44 = vadd.f32 %v2833_v34, %v5955_v49  ;;  %v3817_v49 = vld [vmem:[%s6321_s0 + $0x4b8] sm:$0xf] }
 0x2b8   :  { %v3818_v8 = vor.u32 %v4494_v59, %v3817_v49 }
 0x2b9   :  { %v3021_v58 = vadd.f32 %v3020_v46, %v2958_v51  ;;  %v2897_v3 = vadd.f32 %v2896_v47, %v2834_v44  ;;  %v1118_v47 = vpack.c.b16 %v942_v39, %v942_v39  ;;  %v1119_v51 = vpack.c.b16 %v943_v29, %v943_v29 }
 0x2bb   :  { %v3095_v12 = vmul.f32 0.01, %v3021_v58  ;;  %vm3074_vm0 = vcmp.gt.f32.partialorder %v3021_v58, 0.0 }
 0x2bd   :  { %v3116_v16 = vsel %vm3074_vm0, %v3021_v58, %v3095_v12 }
 0x2be   :  { %v2959_v28 = vpop.f32.mrf.mxu2  ;;  %v2836_v9 = vpop.f32.mrf.mxu0 }
 0x2bf   :  { %v3022_v54 = vpop.f32.mrf.mxu3  ;;  %v2960_v23 = vadd.f32 %v2959_v28, %v2897_v3  ;;  %v2899_v10 = vpop.f32.mrf.mxu1  ;;  %v2837_v24 = vadd.f32 %v2836_v9, %v5964_v55  ;;  %v181_v55 = vld [vmem:[%s6321_s0 + $0x538] sm:$0xff] }
 0x2c0   :  { %v944_v61 = vunpack.c.l.b16 %v181_v55  ;;  %v945_v57 = vunpack.c.h.b16 %v181_v55 }
 0x2c1   :  { %v3023_v13 = vadd.f32 %v3022_v54, %v2960_v23  ;;  %2875 = vmatmul.bf16.gmra.mxu0 %v3810_v63  ;;  %v2900_v50 = vadd.f32 %v2899_v10, %v2837_v24 }
 0x2c2   :  { %2938 = vmatmul.bf16.gmra.mxu1 %v3814_v6  ;;  %v1120_v19 = vpack.c.b16 %v944_v61, %v944_v61  ;;  %v1121_v56 = vpack.c.b16 %v945_v57, %v945_v57 }
 0x2c3   :  { %vm3075_vm1 = vcmp.gt.f32.partialorder %v3023_v13, 0.0  ;;  %v3096_v11 = vmul.f32 0.01, %v3023_v13  ;;  %3001 = vmatmul.bf16.gmra.mxu2 %v3818_v8 }
 0x2c4   :  { %3064 = vmatmul.bf16.gmra.mxu3 %v3822_v1 }
 0x2c5   :  { %v3117_v21 = vsel %vm3075_vm1, %v3023_v13, %v3096_v11 }
 0x2c6   :  { %v4626_v22 = vpack.c.bf16 %v3117_v21, %v3116_v16  ;;  %v2962_v25 = vpop.f32.mrf.mxu2  ;;  %v2838_v31 = vpop.f32.mrf.mxu0 }
 0x2c7   :  { %v3025_v15 = vpop.f32.mrf.mxu3  ;;  %v2901_v37 = vpop.f32.mrf.mxu1  ;;  %v2963_v35 = vadd.f32 %v2962_v25, %v2900_v50  ;;  %v2839_v36 = vadd.f32 %v2838_v31, %v5967_v18 }
 0x2c8   :  { %4627 = vst [vmem:[%s6322_s3] sm:$0xff] %v4626_v22  }
 0x2c9   :  { %v3026_v40 = vadd.f32 %v3025_v15, %v2963_v35  ;;  %v2902_v46 = vadd.f32 %v2901_v37, %v2839_v36 }
 0x2cb   :  { %v3097_v49 = vmul.f32 0.01, %v3026_v40  ;;  %vm3076_vm2 = vcmp.gt.f32.partialorder %v3026_v40, 0.0 }
 0x2cd   :  { %v3118_v2 = vsel %vm3076_vm2, %v3026_v40, %v3097_v49 }
 0x2ce   :  { %v2964_v4 = vpop.f32.mrf.mxu2  ;;  %v2841_v43 = vpop.f32.mrf.mxu0 }
 0x2cf   :  { %v3027_v34 = vpop.f32.mrf.mxu3  ;;  %v2965_v44 = vadd.f32 %v2964_v4, %v2902_v46  ;;  %v2904_v52 = vpop.f32.mrf.mxu1  ;;  %v2842_v62 = vadd.f32 %v2841_v43, %v5970_v33 }
 0x2d1   :  { %v3028_v59 = vadd.f32 %v3027_v34, %v2965_v44  ;;  %2880 = vmatmul.bf16.gmra.mxu0 %v1118_v47  ;;  %v2905_v63 = vadd.f32 %v2904_v52, %v2842_v62 }
 0x2d2   :  { %2943 = vmatmul.bf16.gmra.mxu1 %v1119_v51 }
 0x2d3   :  { %vm3077_vm3 = vcmp.gt.f32.partialorder %v3028_v59, 0.0  ;;  %v3098_v18 = vmul.f32 0.01, %v3028_v59  ;;  %3006 = vmatmul.bf16.gmra.mxu2 %v1120_v19 }
 0x2d4   :  { %3069 = vmatmul.bf16.gmra.mxu3 %v1121_v56 }
 0x2d5   :  { %v3119_v58 = vsel %vm3077_vm3, %v3028_v59, %v3098_v18 }
 0x2d6   :  { %v4631_v3 = vpack.c.bf16 %v3119_v58, %v3118_v2  ;;  %v2967_v28 = vpop.f32.mrf.mxu2  ;;  %v2843_v6 = vpop.f32.mrf.mxu0 }
 0x2d7   :  { %v3030_v54 = vpop.f32.mrf.mxu3  ;;  %v2906_v23 = vpop.f32.mrf.mxu1  ;;  %v2968_v9 = vadd.f32 %v2967_v28, %v2905_v63  ;;  %v2844_v10 = vadd.f32 %v2843_v6, %v5997_v0 }
 0x2d8   :  { %4673 = vst [vmem:[%s6322_s3 + $0x8] sm:$0xff] %v4631_v3  }
 0x2d9   :  { %v3031_v8 = vadd.f32 %v3030_v54, %v2968_v9  ;;  %v2907_v1 = vadd.f32 %v2906_v23, %v2844_v10 }
 0x2db   :  { %v3099_v16 = vmul.f32 0.01, %v3031_v8  ;;  %vm3078_vm4 = vcmp.gt.f32.partialorder %v3031_v8, 0.0 }
 0x2dd   :  { %v3120_v15 = vsel %vm3078_vm4, %v3031_v8, %v3099_v16 }
 0x2de   :  { %v2969_v33 = vpop.f32.mrf.mxu2  ;;  %v2846_v11 = vpop.f32.mrf.mxu0 }
 0x2df   :  { %v3032_v12 = vpop.f32.mrf.mxu3  ;;  %v2970_v13 = vadd.f32 %v2969_v33, %v2907_v1  ;;  %v2909_v24 = vpop.f32.mrf.mxu1  ;;  %v2847_v25 = vadd.f32 %v2846_v11, %v6000_v7 }
 0x2e1   :  { %v3033_v21 = vadd.f32 %v3032_v12, %v2970_v13  ;;  %v2910_v0 = vadd.f32 %v2909_v24, %v2847_v25 }
 0x2e3   :  { %vm3079_vm5 = vcmp.gt.f32.partialorder %v3033_v21, 0.0  ;;  %v3100_v22 = vmul.f32 0.01, %v3033_v21 }
 0x2e5   :  { %v3121_v50 = vsel %vm3079_vm5, %v3033_v21, %v3100_v22 }
 0x2e6   :  { %v4636_v31 = vpack.c.bf16 %v3121_v50, %v3120_v15  ;;  %v2972_v37 = vpop.f32.mrf.mxu2  ;;  %v2848_v55 = vpop.f32.mrf.mxu0 }
 0x2e7   :  { %v3035_v53 = vpop.f32.mrf.mxu3  ;;  %v2911_v35 = vpop.f32.mrf.mxu1  ;;  %v2973_v36 = vadd.f32 %v2972_v37, %v2910_v0  ;;  %v2849_v39 = vadd.f32 %v2848_v55, %v6027_v27 }
 0x2e8   :  { %4674 = vst [vmem:[%s6322_s3 + $0x10] sm:$0xff] %v4636_v31  }
 0x2e9   :  { %v3036_v29 = vadd.f32 %v3035_v53, %v2973_v36  ;;  %v2912_v61 = vadd.f32 %v2911_v35, %v2849_v39 }
 0x2eb   :  { %v3101_v34 = vmul.f32 0.01, %v3036_v29  ;;  %vm3080_vm6 = vcmp.gt.f32.partialorder %v3036_v29, 0.0 }
 0x2ed   :  { %v3122_v43 = vsel %vm3080_vm6, %v3036_v29, %v3101_v34 }
 0x2ee   :  { %v2974_v57 = vpop.f32.mrf.mxu2  ;;  %v2851_v46 = vpop.f32.mrf.mxu0 }
 0x2ef   :  { %v3037_v40 = vpop.f32.mrf.mxu3  ;;  %v2975_v7 = vadd.f32 %v2974_v57, %v2912_v61  ;;  %v2914_v4 = vpop.f32.mrf.mxu1  ;;  %v2852_v44 = vadd.f32 %v2851_v46, %v6030_v45 }
 0x2f1   :  { %v3038_v47 = vadd.f32 %v3037_v40, %v2975_v7  ;;  %v2915_v27 = vadd.f32 %v2914_v4, %v2852_v44 }
 0x2f3   :  { %vm3081_vm7 = vcmp.gt.f32.partialorder %v3038_v47, 0.0  ;;  %v3102_v51 = vmul.f32 0.01, %v3038_v47 }
 0x2f5   :  { %v3123_v52 = vsel %vm3081_vm7, %v3038_v47, %v3102_v51 }
 0x2f6   :  { %v4641_v19 = vpack.c.bf16 %v3123_v52, %v3122_v43  ;;  %v2977_v56 = vpop.f32.mrf.mxu2  ;;  %v2853_v59 = vpop.f32.mrf.mxu0 }
 0x2f7   :  { %v3040_v49 = vpop.f32.mrf.mxu3  ;;  %v2916_v18 = vpop.f32.mrf.mxu1  ;;  %v2978_v62 = vadd.f32 %v2977_v56, %v2915_v27  ;;  %v2854_v2 = vadd.f32 %v2853_v59, %v6057_v5 }
 0x2f8   :  { %4675 = vst [vmem:[%s6322_s3 + $0x18] sm:$0xff] %v4641_v19  }
 0x2f9   :  { %v3041_v58 = vadd.f32 %v3040_v49, %v2978_v62  ;;  %v2917_v3 = vadd.f32 %v2916_v18, %v2854_v2 }
 0x2fb   :  { %v3103_v23 = vmul.f32 0.01, %v3041_v58  ;;  %vm3082_vm8 = vcmp.gt.f32.partialorder %v3041_v58, 0.0 }
 0x2fd   :  { %v3124_v1 = vsel %vm3082_vm8, %v3041_v58, %v3103_v23 }
 0x2fe   :  { %v2979_v28 = vpop.f32.mrf.mxu2  ;;  %v2856_v63 = vpop.f32.mrf.mxu0 }
 0x2ff   :  { %v3042_v54 = vpop.f32.mrf.mxu3  ;;  %v2980_v45 = vadd.f32 %v2979_v28, %v2917_v3  ;;  %v2919_v6 = vpop.f32.mrf.mxu1  ;;  %v2857_v8 = vadd.f32 %v2856_v63, %v6060_v14 }
 0x301   :  { %v3043_v9 = vadd.f32 %v3042_v54, %v2980_v45  ;;  %v2920_v5 = vadd.f32 %v2919_v6, %v2857_v8 }
 0x303   :  { %vm3083_vm9 = vcmp.gt.f32.partialorder %v3043_v9, 0.0  ;;  %v3104_v10 = vmul.f32 0.01, %v3043_v9 }
 0x305   :  { %v3125_v33 = vsel %vm3083_vm9, %v3043_v9, %v3104_v10 }
 0x306   :  { %v4646_v12 = vpack.c.bf16 %v3125_v33, %v3124_v1  ;;  %v2982_v13 = vpop.f32.mrf.mxu2  ;;  %v2858_v24 = vpop.f32.mrf.mxu0 }
 0x307   :  { %v3045_v11 = vpop.f32.mrf.mxu3  ;;  %v2921_v16 = vpop.f32.mrf.mxu1  ;;  %v2983_v21 = vadd.f32 %v2982_v13, %v2920_v5  ;;  %v2859_v22 = vadd.f32 %v2858_v24, %v6087_v48 }
 0x308   :  { %4676 = vst [vmem:[%s6322_s3 + $0x20] sm:$0xff] %v4646_v12  }
 0x309   :  { %v3046_v25 = vadd.f32 %v3045_v11, %v2983_v21  ;;  %v2922_v15 = vadd.f32 %v2921_v16, %v2859_v22 }
 0x30b   :  { %v3105_v0 = vmul.f32 0.01, %v3046_v25  ;;  %vm3084_vm10 = vcmp.gt.f32.partialorder %v3046_v25, 0.0 }
 0x30d   :  { %v3126_v39 = vsel %vm3084_vm10, %v3046_v25, %v3105_v0 }
 0x30e   :  { %v2984_v50 = vpop.f32.mrf.mxu2  ;;  %v2861_v37 = vpop.f32.mrf.mxu0 }
 0x30f   :  { %v3047_v31 = vpop.f32.mrf.mxu3  ;;  %v2985_v14 = vadd.f32 %v2984_v50, %v2922_v15  ;;  %v2924_v53 = vpop.f32.mrf.mxu1  ;;  %v2862_v36 = vadd.f32 %v2861_v37, %v6090_v60 }
 0x311   :  { %v3048_v55 = vadd.f32 %v3047_v31, %v2985_v14  ;;  %v2925_v48 = vadd.f32 %v2924_v53, %v2862_v36 }
 0x313   :  { %vm3085_vm11 = vcmp.gt.f32.partialorder %v3048_v55, 0.0  ;;  %v3106_v35 = vmul.f32 0.01, %v3048_v55 }
 0x315   :  { %v3127_v29 = vsel %vm3085_vm11, %v3048_v55, %v3106_v35 }
 0x316   :  { %v4651_v61 = vpack.c.bf16 %v3127_v29, %v3126_v39  ;;  %v2987_v57 = vpop.f32.mrf.mxu2  ;;  %v2863_v7 = vpop.f32.mrf.mxu0 }
 0x317   :  { %v3050_v40 = vpop.f32.mrf.mxu3  ;;  %v2926_v46 = vpop.f32.mrf.mxu1  ;;  %v2988_v4 = vadd.f32 %v2987_v57, %v2925_v48  ;;  %v2864_v34 = vadd.f32 %v2863_v7, %v6117_v26 }
 0x318   :  { %4677 = vst [vmem:[%s6322_s3 + $0x28] sm:$0xff] %v4651_v61  }
 0x319   :  { %v3051_v47 = vadd.f32 %v3050_v40, %v2988_v4  ;;  %v2927_v51 = vadd.f32 %v2926_v46, %v2864_v34 }
 0x31b   :  { %v3107_v56 = vmul.f32 0.01, %v3051_v47  ;;  %vm3086_vm12 = vcmp.gt.f32.partialorder %v3051_v47, 0.0 }
 0x31d   :  { %v3128_v18 = vsel %vm3086_vm12, %v3051_v47, %v3107_v56 }
 0x31e   :  { %v2989_v44 = vpop.f32.mrf.mxu2  ;;  %v2866_v52 = vpop.f32.mrf.mxu0 }
 0x31f   :  { %v3052_v43 = vpop.f32.mrf.mxu3  ;;  %v2990_v60 = vadd.f32 %v2989_v44, %v2927_v51  ;;  %v2929_v19 = vpop.f32.mrf.mxu1  ;;  %v2867_v59 = vadd.f32 %v2866_v52, %v6120_v32 }
 0x321   :  { %v3053_v49 = vadd.f32 %v3052_v43, %v2990_v60  ;;  %v2930_v26 = vadd.f32 %v2929_v19, %v2867_v59 }
 0x323   :  { %vm3087_vm13 = vcmp.gt.f32.partialorder %v3053_v49, 0.0  ;;  %v3108_v27 = vmul.f32 0.01, %v3053_v49 }
 0x325   :  { %v3129_v62 = vsel %vm3087_vm13, %v3053_v49, %v3108_v27 }
 0x326   :  { %v4656_v2 = vpack.c.bf16 %v3129_v62, %v3128_v18  ;;  %v2992_v58 = vpop.f32.mrf.mxu2  ;;  %v2868_v28 = vpop.f32.mrf.mxu0 }
 0x327   :  { %v3055_v3 = vpop.f32.mrf.mxu3  ;;  %v2931_v54 = vpop.f32.mrf.mxu1  ;;  %v2993_v45 = vadd.f32 %v2992_v58, %v2930_v26  ;;  %v2869_v63 = vadd.f32 %v2868_v28, %v6147_v42 }
 0x328   :  { %4678 = vst [vmem:[%s6322_s3 + $0x30] sm:$0xff] %v4656_v2  }
 0x329   :  { %v3056_v6 = vadd.f32 %v3055_v3, %v2993_v45  ;;  %v2932_v23 = vadd.f32 %v2931_v54, %v2869_v63 }
 0x32b   :  { %v3109_v33 = vmul.f32 0.01, %v3056_v6  ;;  %vm3088_vm14 = vcmp.gt.f32.partialorder %v3056_v6, 0.0 }
 0x32d   :  { %v3130_v5 = vsel %vm3088_vm14, %v3056_v6, %v3109_v33 }
 0x32e   :  { %v2994_v9 = vpop.f32.mrf.mxu2  ;;  %v2871_v8 = vpop.f32.mrf.mxu0 }
 0x32f   :  { %v3057_v10 = vpop.f32.mrf.mxu3  ;;  %v2995_v32 = vadd.f32 %v2994_v9, %v2932_v23  ;;  %v2934_v1 = vpop.f32.mrf.mxu1  ;;  %v2872_v11 = vadd.f32 %v2871_v8, %v6150_v20 }
 0x331   :  { %v3058_v12 = vadd.f32 %v3057_v10, %v2995_v32  ;;  %v2935_v42 = vadd.f32 %v2934_v1, %v2872_v11 }
 0x333   :  { %vm3089_vm15 = vcmp.gt.f32.partialorder %v3058_v12, 0.0  ;;  %v3110_v13 = vmul.f32 0.01, %v3058_v12 }
 0x335   :  { %v3131_v24 = vsel %vm3089_vm15, %v3058_v12, %v3110_v13 }
 0x336   :  { %v4661_v16 = vpack.c.bf16 %v3131_v24, %v3130_v5  ;;  %v2997_v21 = vpop.f32.mrf.mxu2  ;;  %v2873_v25 = vpop.f32.mrf.mxu0 }
 0x337   :  { %v3060_v22 = vpop.f32.mrf.mxu3  ;;  %v2936_v15 = vpop.f32.mrf.mxu1  ;;  %v2998_v50 = vadd.f32 %v2997_v21, %v2935_v42  ;;  %v2874_v31 = vadd.f32 %v2873_v25, %v6177_v38 }
 0x338   :  { %4679 = vst [vmem:[%s6322_s3 + $0x38] sm:$0xff] %v4661_v16  }
 0x339   :  { %v3061_v14 = vadd.f32 %v3060_v22, %v2998_v50  ;;  %v2937_v37 = vadd.f32 %v2936_v15, %v2874_v31 }
 0x33b   :  { %v3111_v36 = vmul.f32 0.01, %v3061_v14  ;;  %vm3090_vm0 = vcmp.gt.f32.partialorder %v3061_v14, 0.0 }
 0x33d   :  { %v3132_v57 = vsel %vm3090_vm0, %v3061_v14, %v3111_v36 }
 0x33e   :  { %v2999_v53 = vpop.f32.mrf.mxu2  ;;  %v2876_v55 = vpop.f32.mrf.mxu0 }
 0x33f   :  { %v3062_v0 = vpop.f32.mrf.mxu3  ;;  %v3000_v20 = vadd.f32 %v2999_v53, %v2937_v37  ;;  %v2939_v35 = vpop.f32.mrf.mxu1  ;;  %v2877_v61 = vadd.f32 %v2876_v55, %v6180_v41 }
 0x341   :  { %v3063_v39 = vadd.f32 %v3062_v0, %v3000_v20  ;;  %v2940_v38 = vadd.f32 %v2939_v35, %v2877_v61 }
 0x343   :  { %vm3091_vm1 = vcmp.gt.f32.partialorder %v3063_v39, 0.0  ;;  %v3112_v29 = vmul.f32 0.01, %v3063_v39 }
 0x345   :  { %v3133_v40 = vsel %vm3091_vm1, %v3063_v39, %v3112_v29 }
 0x346   :  { %v4666_v48 = vpack.c.bf16 %v3133_v40, %v3132_v57  ;;  %v3002_v7 = vpop.f32.mrf.mxu2  ;;  %v2878_v4 = vpop.f32.mrf.mxu0 }
 0x347   :  { %v3065_v46 = vpop.f32.mrf.mxu3  ;;  %v2941_v34 = vpop.f32.mrf.mxu1  ;;  %v3003_v47 = vadd.f32 %v3002_v7, %v2940_v38  ;;  %v2879_v51 = vadd.f32 %v2878_v4, %v6207_v30 }
 0x348   :  { %4680 = vst [vmem:[%s6322_s3 + $0x40] sm:$0xff] %v4666_v48  }
 0x349   :  { %v3066_v44 = vadd.f32 %v3065_v46, %v3003_v47  ;;  %v2942_v43 = vadd.f32 %v2941_v34, %v2879_v51 }
 0x34b   :  { %v3113_v49 = vmul.f32 0.01, %v3066_v44  ;;  %vm3092_vm2 = vcmp.gt.f32.partialorder %v3066_v44, 0.0 }
 0x34d   :  { %v3134_v62 = vsel %vm3092_vm2, %v3066_v44, %v3113_v49 }
 0x34e   :  { %v3004_v60 = vpop.f32.mrf.mxu2  ;;  %v2881_v19 = vpop.f32.mrf.mxu0 }
 0x34f   :  { %v3067_v52 = vpop.f32.mrf.mxu3  ;;  %v3005_v41 = vadd.f32 %v3004_v60, %v2942_v43  ;;  %v2944_v56 = vpop.f32.mrf.mxu1  ;;  %v2882_v59 = vadd.f32 %v2881_v19, %v6209_v17 }
 0x351   :  { %v3068_v27 = vadd.f32 %v3067_v52, %v3005_v41  ;;  %v2945_v58 = vadd.f32 %v2944_v56, %v2882_v59 }
 0x353   :  { %vm3093_vm3 = vcmp.gt.f32.partialorder %v3068_v27, 0.0  ;;  %v3114_v18 = vmul.f32 0.01, %v3068_v27 }
 0x355   :  { %v3135_v2 = vsel %vm3093_vm3, %v3068_v27, %v3114_v18 }
 0x356   :  { %v4671_v3 = vpack.c.bf16 %v3135_v2, %v3134_v62  ;;  %v3007_v26 = vpop.f32.mrf.mxu2  ;;  %v2883_v54 = vpop.f32.mrf.mxu0 }
 0x357   :  { %v3070_v30 = vpop.f32.mrf.mxu3  ;;  %v3008_v28 = vadd.f32 %v3007_v26, %v2945_v58  ;;  %v2946_v45 = vpop.f32.mrf.mxu1 }
 0x358   :  { %4681 = vst [vmem:[%s6322_s3 + $0x48] sm:$0xff] %v4671_v3  }
 0x359   :  { %v3071_v63 = vadd.f32 %v3070_v30, %v3008_v28 }
 0x35b   :  { %vm3094_vm4 = vcmp.gt.f32.partialorder %v3071_v63, 0.0  ;;  %v3115_v6 = vmul.f32 0.01, %v3071_v63 }
 0x35d   :  { %v3136_v17 = vsel %vm3094_vm4, %v3071_v63, %v3115_v6 }
 0x35e   :  { %v3157_v23 = vpack.c.bf16 %v3136_v17, %v3136_v17  ;;  %v3009_v9 = vpop.f32.mrf.mxu2 }
 0x35f   :  { %v3072_v10 = vpop.f32.mrf.mxu3 }
 0x360   :  { %3178 = vst [vmem:[%s6322_s3 + $0x50] sm:$0xf] %v3157_v23 }

// kernel: cnn_actor_critic_forward.6
= control target key start
LH: loop header
LB: loop body
LE: loop exit
PB: predicated region body
PF: predicated region fallthrough
CT: control target
= control target key end

     0   :  { %s2801_s1 = inlined_call_operand.vmem [shape: bf16[1152,128], index: 1, kind: input, shape index: {}]   ;;  %s2802_s2 = inlined_call_operand.vmem [shape: f32[1,128], index: 2, kind: input, shape index: {}]   ;;  %s2803_s0 = inlined_call_operand.vmem [shape: bf16[104,1152], index: 0, kind: input, shape index: {}]   ;;  %s2804_s3 = inlined_call_operand.vmem [shape: bf16[104,128], index: 3, kind: output, shape index: {}]  }
   0x1   :  { %v1988_v0 = vld [vmem:[%s2801_s1 + $0x38] sm:$0xff]  ;;  %v1987_v1 = vld [vmem:[%s2801_s1 + $0x30] sm:$0xff]  ;;  %v1986_v2 = vld [vmem:[%s2801_s1 + $0x28] sm:$0xff] }
   0x2   :  { %2088 = vmatpush.bf16.msra.mxu1 %v1988_v0  ;;  %2089 = vmatpush.bf16.msra.mxu2 %v1988_v0  ;;  %v1985_v3 = vld [vmem:[%s2801_s1 + $0x20] sm:$0xff]  ;;  %v1984_v4 = vld [vmem:[%s2801_s1 + $0x18] sm:$0xff]  ;;  %v1983_v5 = vld [vmem:[%s2801_s1 + $0x10] sm:$0xff] }
   0x3   :  { %2090 = vmatpush.bf16.msra.mxu3 %v1988_v0  ;;  %967 = vmatpush.bf16.msra.mxu0 %v1988_v0  ;;  %v1982_v6 = vld [vmem:[%s2801_s1 + $0x8] sm:$0xff]  ;;  %v2157_v7 = vld [vmem:[%s2803_s0 + $0x1b0] sm:$0xff]  ;;  %v1981_v8 = vld [vmem:[%s2801_s1] sm:$0xff] }
   0x4   :  { %v1497_v9 = vld [vmem:[%s2803_s0 + $0x90] sm:$0xf]  ;;  %v1949_v10 = vld [vmem:[%s2803_s0 + $0xb0] sm:$0xf0]  ;;  %v1569_v11 = vld [vmem:[%s2803_s0 + $0x120] sm:$0xf]  ;;  %v400_v15 = vunpack.c.l.b16 %v2157_v7 }
   0x5   :  { %v1967_v12 = vld [vmem:[%s2803_s0 + $0x140] sm:$0xf0]  ;;  %v1425_v13 = vld [vmem:[%s2803_s0] sm:$0xf]  ;;  %v2012_v16 = vld [vmem:[%s2801_s1 + $0xf8] sm:$0xff]  ;;  %v1498_v18 = vor.u32 %v1949_v10, %v1497_v9 }
   0x6   :  { %2091 = vmatpush.bf16.msra.mxu1 %v1987_v1  ;;  %2092 = vmatpush.bf16.msra.mxu2 %v1987_v1  ;;  %v1931_v14 = vld [vmem:[%s2803_s0 + $0x20] sm:$0xf0]  ;;  %v2004_v17 = vld [vmem:[%s2801_s1 + $0xb8] sm:$0xff]  ;;  %v1570_v19 = vor.u32 %v1967_v12, %v1569_v11  ;;  %v463_v23 = vpack.c.b16 %v400_v15, %v400_v15  ;;  %v2011_v24 = vld [vmem:[%s2801_s1 + $0xf0] sm:$0xff] }
   0x7   :  { %2093 = vmatpush.bf16.msra.mxu3 %v1987_v1  ;;  %968 = vmatpush.bf16.msra.mxu0 %v1987_v1  ;;  %v1996_v20 = vld [vmem:[%s2801_s1 + $0x78] sm:$0xff]  ;;  %v1426_v21 = vor.u32 %v1931_v14, %v1425_v13  ;;  %v2003_v25 = vld [vmem:[%s2801_s1 + $0xb0] sm:$0xff]  ;;  %v2010_v28 = vld [vmem:[%s2801_s1 + $0xe8] sm:$0xff] }
   0x8   :  { %v2020_v22 = vld [vmem:[%s2801_s1 + $0x138] sm:$0xff]  ;;  %v1995_v26 = vld [vmem:[%s2801_s1 + $0x70] sm:$0xff]  ;;  %v2002_v29 = vld [vmem:[%s2801_s1 + $0xa8] sm:$0xff] }
   0x9   :  { %v2019_v27 = vld [vmem:[%s2801_s1 + $0x130] sm:$0xff]  ;;  %v1994_v30 = vld [vmem:[%s2801_s1 + $0x68] sm:$0xff]  ;;  %v2009_v32 = vld [vmem:[%s2801_s1 + $0xe0] sm:$0xff] }
   0xa   :  { %2094 = vmatpush.bf16.msra.mxu1 %v1986_v2  ;;  %2095 = vmatpush.bf16.msra.mxu2 %v1986_v2  ;;  %v2018_v31 = vld [vmem:[%s2801_s1 + $0x128] sm:$0xff]  ;;  %v2001_v33 = vld [vmem:[%s2801_s1 + $0xa0] sm:$0xff]  ;;  %v1533_v35 = vld [vmem:[%s2803_s0 + $0xd8] sm:$0xf] }
   0xb   :  { %2096 = vmatpush.bf16.msra.mxu3 %v1986_v2  ;;  %969 = vmatpush.bf16.msra.mxu0 %v1986_v2  ;;  %v1993_v34 = vld [vmem:[%s2801_s1 + $0x60] sm:$0xff]  ;;  %v1958_v36 = vld [vmem:[%s2803_s0 + $0xf8] sm:$0xf0]  ;;  %v1605_v37 = vld [vmem:[%s2803_s0 + $0x168] sm:$0xf] }
   0xc   :  { %v1976_v38 = vld [vmem:[%s2803_s0 + $0x188] sm:$0xf0]  ;;  %v2017_v39 = vld [vmem:[%s2801_s1 + $0x120] sm:$0xff]  ;;  %v1461_v40 = vld [vmem:[%s2803_s0 + $0x48] sm:$0xf]  ;;  %v1534_v44 = vor.u32 %v1958_v36, %v1533_v35 }
   0xd   :  { %v1940_v41 = vld [vmem:[%s2803_s0 + $0x68] sm:$0xf0]  ;;  %v2008_v42 = vld [vmem:[%s2801_s1 + $0xd8] sm:$0xff]  ;;  %v1606_v45 = vor.u32 %v1976_v38, %v1605_v37  ;;  %v2007_v49 = vld [vmem:[%s2801_s1 + $0xd0] sm:$0xff] }
   0xe   :  { %2097 = vmatpush.bf16.msra.mxu1 %v1985_v3  ;;  %2098 = vmatpush.bf16.msra.mxu2 %v1985_v3  ;;  %v2000_v43 = vld [vmem:[%s2801_s1 + $0x98] sm:$0xff]  ;;  %v1462_v47 = vor.u32 %v1940_v41, %v1461_v40  ;;  %v1999_v50 = vld [vmem:[%s2801_s1 + $0x90] sm:$0xff]  ;;  %v2006_v53 = vld [vmem:[%s2801_s1 + $0xc8] sm:$0xff] }
   0xf   :  { %2099 = vmatpush.bf16.msra.mxu3 %v1985_v3  ;;  %970 = vmatpush.bf16.msra.mxu0 %v1985_v3  ;;  %v1992_v46 = vld [vmem:[%s2801_s1 + $0x58] sm:$0xff]  ;;  %v1991_v51 = vld [vmem:[%s2801_s1 + $0x50] sm:$0xff]  ;;  %v1998_v54 = vld [vmem:[%s2801_s1 + $0x88] sm:$0xff] }
  0x10   :  { %v2016_v48 = vld [vmem:[%s2801_s1 + $0x118] sm:$0xff]  ;;  %v2015_v52 = vld [vmem:[%s2801_s1 + $0x110] sm:$0xff]  ;;  %v1990_v55 = vld [vmem:[%s2801_s1 + $0x48] sm:$0xff] }
  0x11   :  { %v2005_v56 = vld [vmem:[%s2801_s1 + $0xc0] sm:$0xff]  ;;  %v2014_v57 = vld [vmem:[%s2801_s1 + $0x108] sm:$0xff]  ;;  %v1435_v61 = vld [vmem:[%s2803_s0 + $0x2c] sm:$0xf0] }
  0x12   :  { %2100 = vmatpush.bf16.msra.mxu1 %v1984_v4  ;;  %2101 = vmatpush.bf16.msra.mxu2 %v1984_v4  ;;  %v1997_v58 = vld [vmem:[%s2801_s1 + $0x80] sm:$0xff]  ;;  %v1928_v60 = vld [vmem:[%s2803_s0 + $0xc] sm:$0xf]  ;;  %v2036_v63 = vld [vmem:[%s2801_s1 + $0x1b8] sm:$0xff] }
  0x13   :  { %2102 = vmatpush.bf16.msra.mxu3 %v1984_v4  ;;  %971 = vmatpush.bf16.msra.mxu0 %v1984_v4  ;;  %v1989_v59 = vld [vmem:[%s2801_s1 + $0x40] sm:$0xff]  ;;  %v2044_v0 = vld [vmem:[%s2801_s1 + $0x1f8] sm:$0xff]  ;;  %v1427_v1 = vld [vmem:[%s2803_s0 + $0x24] sm:$0xf0]  ;;  %v1438_v4 = vor.u32 %v1928_v60, %v1435_v61 }
  0x14   :  { %v1927_v62 = vld [vmem:[%s2803_s0 + $0x4] sm:$0xf]  ;;  %v1433_v2 = vld [vmem:[%s2803_s0 + $0x8] sm:$0xf]  ;;  %v1932_v3 = vld [vmem:[%s2803_s0 + $0x28] sm:$0xf0] }
  0x15   :  { %v2028_v9 = vld [vmem:[%s2801_s1 + $0x178] sm:$0xff]  ;;  %v1430_v11 = vor.u32 %v1927_v62, %v1427_v1  ;;  %v1434_v12 = vor.u32 %v1932_v3, %v1433_v2  ;;  %v2035_v14 = vld [vmem:[%s2801_s1 + $0x1b0] sm:$0xff]  ;;  %v2025_v36 = vld [vmem:[%s2801_s1 + $0x160] sm:$0xff] }
  0x16   :  { %2103 = vmatpush.bf16.msra.mxu1 %v1983_v5  ;;  %2104 = vmatpush.bf16.msra.mxu2 %v1983_v5  ;;  %v2052_v10 = vld [vmem:[%s2801_s1 + $0x238] sm:$0xff]  ;;  %v2043_v15 = vld [vmem:[%s2801_s1 + $0x1f0] sm:$0xff]  ;;  %v2049_v37 = vld [vmem:[%s2801_s1 + $0x220] sm:$0xff] }
  0x17   :  { %2105 = vmatpush.bf16.msra.mxu3 %v1983_v5  ;;  %972 = vmatpush.bf16.msra.mxu0 %v1983_v5  ;;  %v2013_v5 = vld [vmem:[%s2801_s1 + $0x100] sm:$0xff]  ;;  %v2032_v38 = vld [vmem:[%s2801_s1 + $0x198] sm:$0xff]  ;;  %v1960_v1 = vld [vmem:[%s2803_s0 + $0x108] sm:$0xf0] }
  0x18   :  { %v2024_v40 = vld [vmem:[%s2801_s1 + $0x158] sm:$0xff]  ;;  %v1535_v60 = vld [vmem:[%s2803_s0 + $0xfc] sm:$0xf0]  ;;  %v1959_v62 = vld [vmem:[%s2803_s0 + $0x100] sm:$0xf0] }
  0x19   :  { %v1946_v41 = vld [vmem:[%s2803_s0 + $0x9c] sm:$0xf]  ;;  %v1541_v61 = vld [vmem:[%s2803_s0 + $0xe0] sm:$0xf] }
  0x1a   :  { %2106 = vmatpush.bf16.msra.mxu1 %v1982_v6  ;;  %2107 = vmatpush.bf16.msra.mxu2 %v1982_v6  ;;  %v1542_v3 = vor.u32 %v1959_v62, %v1541_v61  ;;  %v1449_v61 = vld [vmem:[%s2803_s0 + $0x18] sm:$0xf]  ;;  %v1934_v62 = vld [vmem:[%s2803_s0 + $0x38] sm:$0xf0] }
  0x1b   :  { %2108 = vmatpush.bf16.msra.mxu3 %v1982_v6  ;;  %973 = vmatpush.bf16.msra.mxu0 %v1982_v6  ;;  %v1441_v6 = vld [vmem:[%s2803_s0 + $0x10] sm:$0xf] }
  0x1e   :  { %2109 = vmatpush.bf16.msra.mxu1 %v1981_v8  ;;  %2110 = vmatpush.bf16.msra.mxu2 %v1981_v8 }
  0x1f   :  { %2111 = vmatpush.bf16.msra.mxu3 %v1981_v8  ;;  %974 = vmatpush.bf16.msra.mxu0 %v1981_v8  ;;  %v1933_v8 = vld [vmem:[%s2803_s0 + $0x30] sm:$0xf0] }
  0x20   :  { %v1442_v13 = vor.u32 %v1933_v8, %v1441_v6  ;;  %v2030_v6 = vld [vmem:[%s2801_s1 + $0x188] sm:$0xff] }
  0x21   :  { %985 = vmatmul.bf16.vlgmr.msra.gmra.mxu1 %v1498_v18  ;;  %995 = vmatmul.bf16.vlgmr.msra.gmra.mxu2 %v1570_v19  ;;  %v2034_v18 = vld [vmem:[%s2801_s1 + $0x1a8] sm:$0xff] }
  0x22   :  { %1053 = vmatpush.bf16.msrb.mxu2 %v2004_v17  ;;  %1010 = vmatpush.bf16.msrb.mxu1 %v1996_v20  ;;  %v2051_v17 = vld [vmem:[%s2801_s1 + $0x230] sm:$0xff]  ;;  %v2042_v19 = vld [vmem:[%s2801_s1 + $0x1e8] sm:$0xff] }
  0x23   :  { %1096 = vmatpush.bf16.msrb.mxu3 %v2012_v16  ;;  %975 = vmatmul.bf16.vlgmr.msra.gmra.mxu0 %v1426_v21  ;;  %v2027_v16 = vld [vmem:[%s2801_s1 + $0x170] sm:$0xff]  ;;  %v2026_v20 = vld [vmem:[%s2801_s1 + $0x168] sm:$0xff] }
  0x24   :  { %1139 = vmatpush.bf16.msrb.mxu0 %v2020_v22  ;;  %1005 = vmatmul.bf16.vlgmr.msra.gmra.mxu3 %v463_v23  ;;  %v2050_v21 = vld [vmem:[%s2801_s1 + $0x228] sm:$0xff]  ;;  %v2033_v22 = vld [vmem:[%s2801_s1 + $0x1a0] sm:$0xff] }
  0x25   :  { %v2041_v23 = vld [vmem:[%s2801_s1 + $0x1e0] sm:$0xff]  ;;  %v2038_v8 = vld [vmem:[%s2801_s1 + $0x1c8] sm:$0xff] }
  0x26   :  { %1054 = vmatpush.bf16.msrb.mxu2 %v2003_v25  ;;  %1011 = vmatpush.bf16.msrb.mxu1 %v1995_v26  ;;  %v1471_v25 = vld [vmem:[%s2803_s0 + $0x74] sm:$0xf0]  ;;  %v1936_v26 = vld [vmem:[%s2803_s0 + $0x4c] sm:$0xf] }
  0x27   :  { %1097 = vmatpush.bf16.msrb.mxu3 %v2011_v24  ;;  %v1937_v24 = vld [vmem:[%s2803_s0 + $0x54] sm:$0xf] }
  0x28   :  { %1140 = vmatpush.bf16.msrb.mxu0 %v2019_v27  ;;  %v1463_v27 = vld [vmem:[%s2803_s0 + $0x6c] sm:$0xf0] }
  0x2a   :  { %1055 = vmatpush.bf16.msrb.mxu2 %v2002_v29  ;;  %1012 = vmatpush.bf16.msrb.mxu1 %v1994_v30  ;;  %v1941_v29 = vld [vmem:[%s2803_s0 + $0x70] sm:$0xf0]  ;;  %v1474_v30 = vor.u32 %v1937_v24, %v1471_v25  ;;  %v2037_v24 = vld [vmem:[%s2801_s1 + $0x1c0] sm:$0xff] }
  0x2b   :  { %1098 = vmatpush.bf16.msrb.mxu3 %v2010_v28  ;;  %v1469_v28 = vld [vmem:[%s2803_s0 + $0x50] sm:$0xf]  ;;  %v2021_v25 = vld [vmem:[%s2801_s1 + $0x140] sm:$0xff] }
  0x2c   :  { %1141 = vmatpush.bf16.msrb.mxu0 %v2018_v31  ;;  %v1477_v31 = vld [vmem:[%s2803_s0 + $0x58] sm:$0xf] }
  0x2e   :  { %1056 = vmatpush.bf16.msrb.mxu2 %v2001_v33  ;;  %1013 = vmatpush.bf16.msrb.mxu1 %v1993_v34  ;;  %v1466_v33 = vor.u32 %v1936_v26, %v1463_v27  ;;  %v1470_v34 = vor.u32 %v1941_v29, %v1469_v28  ;;  %v1973_v26 = vld [vmem:[%s2803_s0 + $0x174] sm:$0xf]  ;;  %v1615_v27 = vld [vmem:[%s2803_s0 + $0x194] sm:$0xf0]  ;;  %v1972_v28 = vld [vmem:[%s2803_s0 + $0x16c] sm:$0xf] }
  0x2f   :  { %1099 = vmatpush.bf16.msrb.mxu3 %v2009_v32  ;;  %v1942_v32 = vld [vmem:[%s2803_s0 + $0x78] sm:$0xf0]  ;;  %v1607_v29 = vld [vmem:[%s2803_s0 + $0x18c] sm:$0xf0] }
  0x30   :  { %1142 = vmatpush.bf16.msrb.mxu0 %v2017_v39  ;;  %v1478_v35 = vor.u32 %v1942_v32, %v1477_v31  ;;  %v2040_v39 = vld [vmem:[%s2801_s1 + $0x1d8] sm:$0xff]  ;;  %v1977_v31 = vld [vmem:[%s2803_s0 + $0x190] sm:$0xf0]  ;;  %v1618_v32 = vor.u32 %v1973_v26, %v1615_v27 }
  0x31   :  { %990 = vmatmul.bf16.gmra.mxu1 %v1534_v44  ;;  %1000 = vmatmul.bf16.gmra.mxu2 %v1606_v45  ;;  %v1499_v44 = vld [vmem:[%s2803_s0 + $0xb4] sm:$0xf0] }
  0x32   :  { %1057 = vmatpush.bf16.msrb.mxu2 %v2000_v43  ;;  %1014 = vmatpush.bf16.msrb.mxu1 %v1992_v46  ;;  %v1945_v43 = vld [vmem:[%s2803_s0 + $0x94] sm:$0xf]  ;;  %v1505_v45 = vld [vmem:[%s2803_s0 + $0x98] sm:$0xf]  ;;  %v1950_v46 = vld [vmem:[%s2803_s0 + $0xb8] sm:$0xf0] }
  0x33   :  { %1100 = vmatpush.bf16.msrb.mxu3 %v2008_v42  ;;  %980 = vmatmul.bf16.gmra.mxu0 %v1462_v47  ;;  %v1507_v42 = vld [vmem:[%s2803_s0 + $0xbc] sm:$0xf0] }
  0x34   :  { %1143 = vmatpush.bf16.msrb.mxu0 %v2016_v48  ;;  %v1510_v47 = vor.u32 %v1946_v41, %v1507_v42  ;;  %v1513_v48 = vld [vmem:[%s2803_s0 + $0xa0] sm:$0xf]  ;;  %v401_v42 = vunpack.c.h.b16 %v2157_v7 }
  0x35   :  { %v2541_v41 = vld [vmem:[%s2803_s0 + $0x1c0] sm:$0xff] }
  0x36   :  { %1058 = vmatpush.bf16.msrb.mxu2 %v1999_v50  ;;  %1015 = vmatpush.bf16.msrb.mxu1 %v1991_v51  ;;  %v1502_v50 = vor.u32 %v1945_v43, %v1499_v44  ;;  %v1506_v51 = vor.u32 %v1950_v46, %v1505_v45  ;;  %v404_v44 = vunpack.c.l.b16 %v2541_v41  ;;  %v464_v46 = vpack.c.b16 %v401_v42, %v401_v42  ;;  %v1948_v42 = vld [vmem:[%s2803_s0 + $0xac] sm:$0xf] }
  0x37   :  { %1101 = vmatpush.bf16.msrb.mxu3 %v2007_v49  ;;  %v1951_v49 = vld [vmem:[%s2803_s0 + $0xc0] sm:$0xf0] }
  0x38   :  { %1144 = vmatpush.bf16.msrb.mxu0 %v2015_v52  ;;  %v1514_v52 = vor.u32 %v1951_v49, %v1513_v48  ;;  %v467_v49 = vpack.c.b16 %v404_v44, %v404_v44  ;;  %v1947_v44 = vld [vmem:[%s2803_s0 + $0xa4] sm:$0xf] }
  0x3a   :  { %1059 = vmatpush.bf16.msrb.mxu2 %v1998_v54  ;;  %1016 = vmatpush.bf16.msrb.mxu1 %v1990_v55  ;;  %v2031_v54 = vld [vmem:[%s2801_s1 + $0x190] sm:$0xff] }
  0x3b   :  { %1102 = vmatpush.bf16.msrb.mxu3 %v2006_v53  ;;  %v2048_v53 = vld [vmem:[%s2801_s1 + $0x218] sm:$0xff]  ;;  %v2039_v55 = vld [vmem:[%s2801_s1 + $0x1d0] sm:$0xff] }
  0x3c   :  { %1145 = vmatpush.bf16.msrb.mxu0 %v2014_v57  ;;  %v1955_v57 = vld [vmem:[%s2803_s0 + $0xe4] sm:$0xf] }
  0x3e   :  { %1060 = vmatpush.bf16.msrb.mxu2 %v1997_v58  ;;  %1017 = vmatpush.bf16.msrb.mxu1 %v1989_v59  ;;  %v1543_v58 = vld [vmem:[%s2803_s0 + $0x104] sm:$0xf0]  ;;  %v1954_v59 = vld [vmem:[%s2803_s0 + $0xdc] sm:$0xf] }
  0x3f   :  { %1103 = vmatpush.bf16.msrb.mxu3 %v2005_v56  ;;  %v2023_v56 = vld [vmem:[%s2801_s1 + $0x150] sm:$0xff]  ;;  %v1538_v2 = vor.u32 %v1954_v59, %v1535_v60  ;;  %v1443_v60 = vld [vmem:[%s2803_s0 + $0x34] sm:$0xf0] }
  0x40   :  { %1146 = vmatpush.bf16.msrb.mxu0 %v2013_v5  ;;  %v2047_v5 = vld [vmem:[%s2801_s1 + $0x210] sm:$0xff] }
  0x41   :  { %1018 = vmatmul.bf16.vlgmr.msrb.gmra.mxu1 %v1430_v11  ;;  %1061 = vmatmul.bf16.vlgmr.msrb.gmra.mxu2 %v1434_v12  ;;  %v1579_v11 = vld [vmem:[%s2803_s0 + $0x14c] sm:$0xf0]  ;;  %v1963_v12 = vld [vmem:[%s2803_s0 + $0x124] sm:$0xf]  ;;  %v1929_v59 = vld [vmem:[%s2803_s0 + $0x14] sm:$0xf] }
  0x42   :  { %1225 = vmatpush.bf16.msra.mxu2 %v2036_v63  ;;  %1104 = vmatmul.bf16.vlgmr.msrb.gmra.mxu3 %v1438_v4  ;;  %v1546_v63 = vor.u32 %v1955_v57, %v1543_v58  ;;  %v1930_v57 = vld [vmem:[%s2803_s0 + $0x1c] sm:$0xf]  ;;  %v1451_v58 = vld [vmem:[%s2803_s0 + $0x3c] sm:$0xf0] }
  0x43   :  { %1268 = vmatpush.bf16.msra.mxu3 %v2044_v0  ;;  %1182 = vmatpush.bf16.msra.mxu1 %v2028_v9  ;;  %v1549_v0 = vld [vmem:[%s2803_s0 + $0xe8] sm:$0xf] }
  0x44   :  { %1311 = vmatpush.bf16.msra.mxu0 %v2052_v10  ;;  %v1550_v4 = vor.u32 %v1960_v1, %v1549_v0  ;;  %v2022_v9 = vld [vmem:[%s2801_s1 + $0x148] sm:$0xff]  ;;  %v1457_v0 = vld [vmem:[%s2803_s0 + $0x20] sm:$0xf]  ;;  %v1935_v1 = vld [vmem:[%s2803_s0 + $0x40] sm:$0xf0] }
  0x45   :  { %1147 = vmatmul.bf16.vlgmr.msrb.gmra.mxu0 %v1442_v13  ;;  %v1964_v10 = vld [vmem:[%s2803_s0 + $0x12c] sm:$0xf]  ;;  %v1571_v13 = vld [vmem:[%s2803_s0 + $0x144] sm:$0xf0] }
  0x46   :  { %1226 = vmatpush.bf16.msra.mxu2 %v2035_v14  ;;  %v1577_v14 = vld [vmem:[%s2803_s0 + $0x128] sm:$0xf] }
  0x47   :  { %1269 = vmatpush.bf16.msra.mxu3 %v2043_v15  ;;  %1183 = vmatpush.bf16.msra.mxu1 %v2027_v16  ;;  %v1968_v15 = vld [vmem:[%s2803_s0 + $0x148] sm:$0xf0]  ;;  %v1582_v16 = vor.u32 %v1964_v10, %v1579_v11 }
  0x48   :  { %1312 = vmatpush.bf16.msra.mxu0 %v2051_v17  ;;  %v1585_v17 = vld [vmem:[%s2803_s0 + $0x130] sm:$0xf] }
  0x4a   :  { %1227 = vmatpush.bf16.msra.mxu2 %v2034_v18  ;;  %v1969_v18 = vld [vmem:[%s2803_s0 + $0x150] sm:$0xf0] }
  0x4b   :  { %1270 = vmatpush.bf16.msra.mxu3 %v2042_v19  ;;  %1184 = vmatpush.bf16.msra.mxu1 %v2026_v20  ;;  %v1574_v19 = vor.u32 %v1963_v12, %v1571_v13  ;;  %v1578_v20 = vor.u32 %v1968_v15, %v1577_v14  ;;  %v1939_v15 = vld [vmem:[%s2803_s0 + $0x64] sm:$0xf] }
  0x4c   :  { %1313 = vmatpush.bf16.msra.mxu0 %v2050_v21  ;;  %v1586_v21 = vor.u32 %v1969_v18, %v1585_v17  ;;  %v1938_v17 = vld [vmem:[%s2803_s0 + $0x5c] sm:$0xf]  ;;  %v1479_v18 = vld [vmem:[%s2803_s0 + $0x7c] sm:$0xf0] }
  0x4d   :  { %v1482_v27 = vor.u32 %v1938_v17, %v1479_v18  ;;  %v1957_v18 = vld [vmem:[%s2803_s0 + $0xf4] sm:$0xf] }
  0x4e   :  { %1228 = vmatpush.bf16.msra.mxu2 %v2033_v22  ;;  %v2046_v22 = vld [vmem:[%s2801_s1 + $0x208] sm:$0xff] }
  0x4f   :  { %1271 = vmatpush.bf16.msra.mxu3 %v2041_v23  ;;  %1185 = vmatpush.bf16.msra.mxu1 %v2025_v36  ;;  %v2029_v23 = vld [vmem:[%s2801_s1 + $0x180] sm:$0xff] }
  0x50   :  { %1314 = vmatpush.bf16.msra.mxu0 %v2049_v37  ;;  %v2045_v37 = vld [vmem:[%s2801_s1 + $0x200] sm:$0xff] }
  0x51   :  { %1023 = vmatmul.bf16.gmra.mxu1 %v1466_v33  ;;  %1066 = vmatmul.bf16.gmra.mxu2 %v1470_v34  ;;  %v1621_v33 = vld [vmem:[%s2803_s0 + $0x178] sm:$0xf]  ;;  %v1978_v34 = vld [vmem:[%s2803_s0 + $0x198] sm:$0xf0] }
  0x52   :  { %1109 = vmatmul.bf16.gmra.mxu3 %v1474_v30  ;;  %1229 = vmatpush.bf16.msra.mxu2 %v2032_v38  ;;  %v1613_v30 = vld [vmem:[%s2803_s0 + $0x170] sm:$0xf]  ;;  %v1622_v38 = vor.u32 %v1978_v34, %v1621_v33 }
  0x53   :  { %1272 = vmatpush.bf16.msra.mxu3 %v2040_v39  ;;  %1186 = vmatpush.bf16.msra.mxu1 %v2024_v40  ;;  %v1614_v36 = vor.u32 %v1977_v31, %v1613_v30  ;;  %v75_v39 = vld [vmem:[%s2803_s0 + $0x1b8] sm:$0xff] }
  0x54   :  { %1315 = vmatpush.bf16.msra.mxu0 %v2048_v53  ;;  %v403_v40 = vunpack.c.h.b16 %v75_v39  ;;  %v402_v43 = vunpack.c.l.b16 %v75_v39 }
  0x55   :  { %1152 = vmatmul.bf16.gmra.mxu0 %v1478_v35  ;;  %v1610_v35 = vor.u32 %v1972_v28, %v1607_v29 }
  0x56   :  { %1230 = vmatpush.bf16.msra.mxu2 %v2031_v54  ;;  %v466_v45 = vpack.c.b16 %v403_v40, %v403_v40 }
  0x57   :  { %1273 = vmatpush.bf16.msra.mxu3 %v2039_v55  ;;  %1187 = vmatpush.bf16.msra.mxu1 %v2023_v56 }
  0x58   :  { %1316 = vmatpush.bf16.msra.mxu0 %v2047_v5  ;;  %v1450_v5 = vor.u32 %v1934_v62, %v1449_v61 }
  0x5a   :  { %1231 = vmatpush.bf16.msra.mxu2 %v2030_v6 }
  0x5b   :  { %1274 = vmatpush.bf16.msra.mxu3 %v2038_v8  ;;  %1188 = vmatpush.bf16.msra.mxu1 %v2022_v9  ;;  %v1458_v8 = vor.u32 %v1935_v1, %v1457_v0 }
  0x5c   :  { %1317 = vmatpush.bf16.msra.mxu0 %v2046_v22  ;;  %v1493_v22 = vld [vmem:[%s2803_s0 + $0x68] sm:$0xf] }
  0x5e   :  { %1232 = vmatpush.bf16.msra.mxu2 %v2029_v23  ;;  %v1944_v23 = vld [vmem:[%s2803_s0 + $0x88] sm:$0xf0] }
  0x5f   :  { %1275 = vmatpush.bf16.msra.mxu3 %v2037_v24  ;;  %1189 = vmatpush.bf16.msra.mxu1 %v2021_v25  ;;  %v1494_v30 = vor.u32 %v1944_v23, %v1493_v22  ;;  %v1551_v22 = vld [vmem:[%s2803_s0 + $0x10c] sm:$0xf0] }
  0x60   :  { %1318 = vmatpush.bf16.msra.mxu0 %v2045_v37  ;;  %v1557_v23 = vld [vmem:[%s2803_s0 + $0xf0] sm:$0xf] }
  0x61   :  { %1028 = vmatmul.bf16.gmra.mxu1 %v1502_v50  ;;  %1071 = vmatmul.bf16.gmra.mxu2 %v1506_v51  ;;  %v2550_v51 = vld [vmem:[%s2802_s2] ss:$0 sm:$0xff] }
  0x62   :  { %1114 = vmatmul.bf16.gmra.mxu3 %v1510_v47  ;;  %v465_v47 = vpack.c.b16 %v402_v43, %v402_v43  ;;  %v1523_v43 = vld [vmem:[%s2803_s0 + $0xcc] sm:$0xf0] }
  0x65   :  { %1157 = vmatmul.bf16.gmra.mxu0 %v1514_v52 }
  0x71   :  { %1033 = vmatmul.bf16.gmra.mxu1 %v1538_v2  ;;  %1076 = vmatmul.bf16.gmra.mxu2 %v1542_v3 }
  0x72   :  { %1119 = vmatmul.bf16.gmra.mxu3 %v1546_v63  ;;  %v1454_v63 = vor.u32 %v1930_v57, %v1451_v58 }
  0x75   :  { %1162 = vmatmul.bf16.gmra.mxu0 %v1550_v4  ;;  %v1446_v4 = vor.u32 %v1929_v59, %v1443_v60 }
  0x81   :  { %1038 = vmatmul.bf16.gmra.mxu1 %v1574_v19  ;;  %1081 = vmatmul.bf16.gmra.mxu2 %v1578_v20  ;;  %v1485_v19 = vld [vmem:[%s2803_s0 + $0x60] sm:$0xf]  ;;  %v1943_v20 = vld [vmem:[%s2803_s0 + $0x80] sm:$0xf0] }
  0x82   :  { %1124 = vmatmul.bf16.gmra.mxu3 %v1582_v16  ;;  %v1487_v16 = vld [vmem:[%s2803_s0 + $0x84] sm:$0xf0]  ;;  %v1486_v28 = vor.u32 %v1943_v20, %v1485_v19  ;;  %v1559_v19 = vld [vmem:[%s2803_s0 + $0x114] sm:$0xf0]  ;;  %v1956_v20 = vld [vmem:[%s2803_s0 + $0xec] sm:$0xf] }
  0x85   :  { %1167 = vmatmul.bf16.gmra.mxu0 %v1586_v21  ;;  %v1490_v21 = vor.u32 %v1939_v15, %v1487_v16 }
  0x91   :  { %1043 = vmatmul.bf16.gmra.mxu1 %v1610_v35  ;;  %1086 = vmatmul.bf16.gmra.mxu2 %v1614_v36 }
  0x92   :  { %1129 = vmatmul.bf16.gmra.mxu3 %v1618_v32 }
  0x95   :  { %1172 = vmatmul.bf16.gmra.mxu0 %v1622_v38 }
  0x9e   :  { %v2545_v48 = vpop.f32.mrf.mxu1 }
  0xa0   :  { %v976_v50 = vpop.f32.mrf.mxu0 }
  0xa1   :  { %1048 = vmatmul.bf16.gmra.mxu1 %v464_v46  ;;  %1091 = vmatmul.bf16.gmra.mxu2 %v465_v47  ;;  %v977_v25 = vadd.f32 %v2550_v51, %v976_v50  ;;  %v1515_v47 = vld [vmem:[%s2803_s0 + $0xc4] sm:$0xf0]  ;;  %v1952_v50 = vld [vmem:[%s2803_s0 + $0xc8] sm:$0xf0] }
  0xa2   :  { %1134 = vmatmul.bf16.gmra.mxu3 %v466_v45  ;;  %v1518_v60 = vor.u32 %v1947_v44, %v1515_v47 }
  0xa4   :  { %v996_v7 = vpop.f32.mrf.mxu2 }
  0xa5   :  { %1177 = vmatmul.bf16.gmra.mxu0 %v467_v49  ;;  %v2553_v52 = vadd.f32 %v2550_v51, %v996_v7  ;;  %v1521_v49 = vld [vmem:[%s2803_s0 + $0xa8] sm:$0xf]  ;;  %v1526_v7 = vor.u32 %v1948_v42, %v1523_v43 }
  0xa6   :  { %v2555_v53 = vpop.f32.mrf.mxu1  ;;  %v1522_v61 = vor.u32 %v1952_v50, %v1521_v49  ;;  %v1966_v50 = vld [vmem:[%s2803_s0 + $0x13c] sm:$0xf] }
  0xa7   :  { %v1006_v54 = vpop.f32.mrf.mxu3  ;;  %v989_v43 = vadd.f32 %v2550_v51, %v2555_v53 }
  0xa8   :  { %v978_v55 = vpop.f32.mrf.mxu0  ;;  %v2558_v56 = vadd.f32 %v2550_v51, %v1006_v54  ;;  %v1529_v54 = vld [vmem:[%s2803_s0 + $0xb0] sm:$0xf] }
  0xa9   :  { %v979_v35 = vadd.f32 %v2550_v51, %v978_v55  ;;  %v1953_v55 = vld [vmem:[%s2803_s0 + $0xd0] sm:$0xf0] }
  0xac   :  { %v998_v2 = vpop.f32.mrf.mxu2 }
  0xad   :  { %v2585_v3 = vadd.f32 %v2550_v51, %v998_v2 }
  0xae   :  { %v2587_v6 = vpop.f32.mrf.mxu1 }
  0xaf   :  { %v1008_v9 = vpop.f32.mrf.mxu3 }
  0xb0   :  { %v981_v10 = vpop.f32.mrf.mxu0 }
  0xb1   :  { %1190 = vmatmul.bf16.vlgmr.msra.gmra.mxu1 %v1446_v4  ;;  %1233 = vmatmul.bf16.vlgmr.msra.gmra.mxu2 %v1450_v5  ;;  %v982_v58 = vadd.f32 %v2550_v51, %v981_v10 }
  0xb2   :  { %1276 = vmatmul.bf16.vlgmr.msra.gmra.mxu3 %v1454_v63  ;;  %v1530_v63 = vor.u32 %v1953_v55, %v1529_v54  ;;  %v1965_v54 = vld [vmem:[%s2803_s0 + $0x134] sm:$0xf] }
  0xb4   :  { %v1001_v11 = vpop.f32.mrf.mxu2 }
  0xb5   :  { %1319 = vmatmul.bf16.vlgmr.msra.gmra.mxu0 %v1458_v8  ;;  %v2590_v12 = vadd.f32 %v2550_v51, %v1001_v11 }
  0xb6   :  { %v2592_v13 = vpop.f32.mrf.mxu1 }
  0xb8   :  { %v983_v14 = vpop.f32.mrf.mxu0 }
  0xb9   :  { %v984_v9 = vadd.f32 %v2550_v51, %v983_v14 }
  0xbc   :  { %v1003_v24 = vpop.f32.mrf.mxu2 }
  0xbd   :  { %v2620_v26 = vadd.f32 %v2550_v51, %v1003_v24  ;;  %v1961_v24 = vld [vmem:[%s2803_s0 + $0x110] sm:$0xf0] }
  0xbe   :  { %v1019_v29 = vpop.f32.mrf.mxu1 }
  0xbf   :  { %v1020_v31 = vadd.f32 %v1019_v29, %v977_v25  ;;  %v1562_v25 = vor.u32 %v1957_v18, %v1559_v19  ;;  %v994_v19 = vadd.f32 %v2550_v51, %v2592_v13  ;;  %v1623_v13 = vld [vmem:[%s2803_s0 + $0x19c] sm:$0xf0] }
  0xc1   :  { %1195 = vmatmul.bf16.gmra.mxu1 %v1482_v27  ;;  %1238 = vmatmul.bf16.gmra.mxu2 %v1486_v28  ;;  %v1565_v27 = vld [vmem:[%s2803_s0 + $0xf8] sm:$0xf]  ;;  %v1962_v28 = vld [vmem:[%s2803_s0 + $0x118] sm:$0xf0] }
  0xc2   :  { %1281 = vmatmul.bf16.gmra.mxu3 %v1490_v21  ;;  %v1148_v32 = vpop.f32.mrf.mxu0 }
  0xc4   :  { %v1062_v34 = vpop.f32.mrf.mxu2 }
  0xc5   :  { %v1105_v33 = vpop.f32.mrf.mxu3  ;;  %1324 = vmatmul.bf16.gmra.mxu0 %v1494_v30  ;;  %v1063_v36 = vadd.f32 %v1062_v34, %v1020_v31  ;;  %v987_v30 = vadd.f32 %v2550_v51, %v2545_v48 }
  0xc6   :  { %v1021_v37 = vpop.f32.mrf.mxu1 }
  0xc7   :  { %v1106_v38 = vadd.f32 %v1105_v33, %v1063_v36  ;;  %v1022_v39 = vadd.f32 %v1021_v37, %v979_v35  ;;  %v1558_v33 = vor.u32 %v1961_v24, %v1557_v23  ;;  %v1566_v35 = vor.u32 %v1962_v28, %v1565_v27  ;;  %v1975_v24 = vld [vmem:[%s2803_s0 + $0x184] sm:$0xf]  ;;  %v1974_v27 = vld [vmem:[%s2803_s0 + $0x17c] sm:$0xf] }
  0xc9   :  { %v2632_v45 = vadd.f32 %v1148_v32, %v1106_v38  ;;  %v1554_v32 = vor.u32 %v1956_v20, %v1551_v22 }
  0xca   :  { %v1150_v40 = vpop.f32.mrf.mxu0 }
  0xcc   :  { %v1064_v57 = vpop.f32.mrf.mxu2 }
  0xcd   :  { %v1107_v46 = vpop.f32.mrf.mxu3  ;;  %v1065_v59 = vadd.f32 %v1064_v57, %v1022_v39  ;;  %v1587_v57 = vld [vmem:[%s2803_s0 + $0x154] sm:$0xf0] }
  0xce   :  { %v1024_v62 = vpop.f32.mrf.mxu1 }
  0xcf   :  { %v1108_v0 = vadd.f32 %v1107_v46, %v1065_v59  ;;  %v1025_v1 = vadd.f32 %v1024_v62, %v982_v58  ;;  %v1593_v58 = vld [vmem:[%s2803_s0 + $0x138] sm:$0xf]  ;;  %v1970_v59 = vld [vmem:[%s2803_s0 + $0x158] sm:$0xf0]  ;;  %v1971_v62 = vld [vmem:[%s2803_s0 + $0x160] sm:$0xf0] }
  0xd1   :  { %1200 = vmatmul.bf16.gmra.mxu1 %v1518_v60  ;;  %1243 = vmatmul.bf16.gmra.mxu2 %v1522_v61  ;;  %v2650_v4 = vadd.f32 %v1150_v40, %v1108_v0  ;;  %v1601_v61 = vld [vmem:[%s2803_s0 + $0x140] sm:$0xf]  ;;  %v992_v0 = vadd.f32 %v2550_v51, %v2587_v6 }
  0xd2   :  { %1286 = vmatmul.bf16.gmra.mxu3 %v1526_v7  ;;  %v1153_v2 = vpop.f32.mrf.mxu0  ;;  %v1595_v7 = vld [vmem:[%s2803_s0 + $0x15c] sm:$0xf0] }
  0xd3   :  { %v1598_v60 = vor.u32 %v1966_v50, %v1595_v7 }
  0xd4   :  { %v1067_v8 = vpop.f32.mrf.mxu2 }
  0xd5   :  { %v1110_v5 = vpop.f32.mrf.mxu3  ;;  %1329 = vmatmul.bf16.gmra.mxu0 %v1530_v63  ;;  %v1068_v11 = vadd.f32 %v1067_v8, %v1025_v1 }
  0xd6   :  { %v1026_v10 = vpop.f32.mrf.mxu1 }
  0xd7   :  { %v1111_v15 = vadd.f32 %v1110_v5, %v1068_v11  ;;  %v1027_v16 = vadd.f32 %v1026_v10, %v984_v9  ;;  %v1594_v5 = vor.u32 %v1970_v59, %v1593_v58  ;;  %v1602_v9 = vor.u32 %v1971_v62, %v1601_v61  ;;  %v78_v58 = vld [vmem:[%s2803_s0 + $0x1d0] sm:$0xf] }
  0xd8   :  { %v405_v59 = vunpack.c.h.b16 %v2541_v41 }
  0xd9   :  { %v2662_v21 = vadd.f32 %v1153_v2, %v1111_v15  ;;  %v1590_v2 = vor.u32 %v1965_v54, %v1587_v57 }
  0xda   :  { %v1155_v17 = vpop.f32.mrf.mxu0 }
  0xdc   :  { %v1069_v29 = vpop.f32.mrf.mxu2 }
  0xdd   :  { %v1112_v14 = vpop.f32.mrf.mxu3  ;;  %v1070_v31 = vadd.f32 %v1069_v29, %v1027_v16  ;;  %v1629_v29 = vld [vmem:[%s2803_s0 + $0x180] sm:$0xf] }
  0xde   :  { %v1029_v34 = vpop.f32.mrf.mxu1 }
  0xdf   :  { %v1113_v36 = vadd.f32 %v1112_v14, %v1070_v31  ;;  %v1030_v37 = vadd.f32 %v1029_v34, %v987_v30  ;;  %v1979_v30 = vld [vmem:[%s2803_s0 + $0x1a0] sm:$0xf0] }
  0xe1   :  { %1205 = vmatmul.bf16.gmra.mxu1 %v1554_v32  ;;  %1248 = vmatmul.bf16.gmra.mxu2 %v1558_v33  ;;  %v2681_v39 = vadd.f32 %v1155_v17, %v1113_v36  ;;  %v1637_v32 = vld [vmem:[%s2803_s0 + $0x188] sm:$0xf]  ;;  %v1980_v33 = vld [vmem:[%s2803_s0 + $0x1a8] sm:$0xf0]  ;;  %v1626_v36 = vor.u32 %v1974_v27, %v1623_v13 }
  0xe2   :  { %1291 = vmatmul.bf16.gmra.mxu3 %v1562_v25  ;;  %v1158_v38 = vpop.f32.mrf.mxu0  ;;  %v1631_v25 = vld [vmem:[%s2803_s0 + $0x1a4] sm:$0xf0] }
  0xe3   :  { %v1634_v31 = vor.u32 %v1975_v24, %v1631_v25 }
  0xe4   :  { %v1072_v42 = vpop.f32.mrf.mxu2 }
  0xe5   :  { %v1115_v40 = vpop.f32.mrf.mxu3  ;;  %1334 = vmatmul.bf16.gmra.mxu0 %v1566_v35  ;;  %v1073_v48 = vadd.f32 %v1072_v42, %v1030_v37  ;;  %v1630_v37 = vor.u32 %v1979_v30, %v1629_v29 }
  0xe6   :  { %v1031_v44 = vpop.f32.mrf.mxu1 }
  0xe7   :  { %v1116_v46 = vadd.f32 %v1115_v40, %v1073_v48  ;;  %v1032_v47 = vadd.f32 %v1031_v44, %v989_v43  ;;  %v1638_v40 = vor.u32 %v1980_v33, %v1637_v32 }
  0xe9   :  { %v2694_v55 = vadd.f32 %v1158_v38, %v1116_v46 }
  0xea   :  { %v1160_v49 = vpop.f32.mrf.mxu0 }
  0xec   :  { %v1074_v63 = vpop.f32.mrf.mxu2 }
  0xed   :  { %v1117_v53 = vpop.f32.mrf.mxu3  ;;  %v1075_v1 = vadd.f32 %v1074_v63, %v1032_v47  ;;  %v408_v63 = vunpack.c.l.b16 %v78_v58 }
  0xee   :  { %v1034_v8 = vpop.f32.mrf.mxu1 }
  0xef   :  { %v1118_v11 = vadd.f32 %v1117_v53, %v1075_v1  ;;  %v1035_v10 = vadd.f32 %v1034_v8, %v992_v0 }
  0xf1   :  { %1210 = vmatmul.bf16.gmra.mxu1 %v1590_v2  ;;  %1253 = vmatmul.bf16.gmra.mxu2 %v1594_v5  ;;  %v2713_v16 = vadd.f32 %v1160_v49, %v1118_v11  ;;  %v77_v49 = vld [vmem:[%s2803_s0 + $0x1c8] sm:$0xff]  ;;  %v468_v5 = vpack.c.b16 %v405_v59, %v405_v59 }
  0xf2   :  { %1296 = vmatmul.bf16.gmra.mxu3 %v1598_v60  ;;  %v1163_v15 = vpop.f32.mrf.mxu0  ;;  %v406_v60 = vunpack.c.l.b16 %v77_v49 }
  0xf4   :  { %v1077_v18 = vpop.f32.mrf.mxu2  ;;  %v469_v8 = vpack.c.b16 %v406_v60, %v406_v60 }
  0xf5   :  { %v1120_v17 = vpop.f32.mrf.mxu3  ;;  %1339 = vmatmul.bf16.gmra.mxu0 %v1602_v9  ;;  %v1078_v6 = vadd.f32 %v1077_v18, %v1035_v10 }
  0xf6   :  { %v1036_v20 = vpop.f32.mrf.mxu1 }
  0xf7   :  { %v1121_v14 = vadd.f32 %v1120_v17, %v1078_v6  ;;  %v1037_v22 = vadd.f32 %v1036_v20, %v994_v19 }
  0xf9   :  { %v2726_v28 = vadd.f32 %v1163_v15, %v1121_v14 }
  0xfa   :  { %v1165_v23 = vpop.f32.mrf.mxu0 }
  0xfc   :  { %v1079_v34 = vpop.f32.mrf.mxu2 }
  0xfd   :  { %v1122_v51 = vpop.f32.mrf.mxu3  ;;  %v1080_v35 = vadd.f32 %v1079_v34, %v1037_v22 }
  0xfe   :  { %v1039_v38 = vpop.f32.mrf.mxu1 }
  0xff   :  { %v1123_v42 = vadd.f32 %v1122_v51, %v1080_v35  ;;  %v1040_v43 = vadd.f32 %v1039_v38, %v2553_v52  ;;  %v407_v52 = vunpack.c.h.b16 %v77_v49 }
 0x101   :  { %1215 = vmatmul.bf16.gmra.mxu1 %v1626_v36  ;;  %1258 = vmatmul.bf16.gmra.mxu2 %v1630_v37  ;;  %v2744_v44 = vadd.f32 %v1165_v23, %v1123_v42  ;;  %v470_v0 = vpack.c.b16 %v407_v52, %v407_v52 }
 0x102   :  { %1301 = vmatmul.bf16.gmra.mxu3 %v1634_v31  ;;  %v1168_v48 = vpop.f32.mrf.mxu0 }
 0x104   :  { %v1082_v47 = vpop.f32.mrf.mxu2 }
 0x105   :  { %v1125_v46 = vpop.f32.mrf.mxu3  ;;  %1344 = vmatmul.bf16.gmra.mxu0 %v1638_v40  ;;  %v1083_v50 = vadd.f32 %v1082_v47, %v1040_v43 }
 0x106   :  { %v1041_v7 = vpop.f32.mrf.mxu1 }
 0x107   :  { %v1126_v54 = vadd.f32 %v1125_v46, %v1083_v50  ;;  %v1042_v53 = vadd.f32 %v1041_v7, %v2585_v3  ;;  %v471_v3 = vpack.c.b16 %v408_v63, %v408_v63 }
 0x109   :  { %v2754_v61 = vadd.f32 %v1168_v48, %v1126_v54 }
 0x10a   :  { %v1170_v57 = vpop.f32.mrf.mxu0 }
 0x10c   :  { %v1084_v1 = vpop.f32.mrf.mxu2 }
 0x10d   :  { %v1127_v62 = vpop.f32.mrf.mxu3  ;;  %v1085_v2 = vadd.f32 %v1084_v1, %v1042_v53 }
 0x10e   :  { %v1044_v9 = vpop.f32.mrf.mxu1 }
 0x10f   :  { %v1128_v11 = vadd.f32 %v1127_v62, %v1085_v2  ;;  %v1045_v10 = vadd.f32 %v1044_v9, %v2590_v12 }
 0x111   :  { %1220 = vmatmul.bf16.gmra.mxu1 %v468_v5  ;;  %1263 = vmatmul.bf16.gmra.mxu2 %v469_v8  ;;  %v2757_v41 = vadd.f32 %v1170_v57, %v1128_v11 }
 0x112   :  { %1306 = vmatmul.bf16.gmra.mxu3 %v470_v0  ;;  %v1173_v15 = vpop.f32.mrf.mxu0 }
 0x114   :  { %v1087_v18 = vpop.f32.mrf.mxu2 }
 0x115   :  { %v1130_v17 = vpop.f32.mrf.mxu3  ;;  %1349 = vmatmul.bf16.gmra.mxu0 %v471_v3  ;;  %v1088_v19 = vadd.f32 %v1087_v18, %v1045_v10 }
 0x116   :  { %v1046_v6 = vpop.f32.mrf.mxu1 }
 0x117   :  { %v1131_v20 = vadd.f32 %v1130_v17, %v1088_v19  ;;  %v1047_v14 = vadd.f32 %v1046_v6, %v2620_v26 }
 0x119   :  { %v2760_v23 = vadd.f32 %v1173_v15, %v1131_v20 }
 0x11a   :  { %v1175_v22 = vpop.f32.mrf.mxu0 }
 0x11c   :  { %v1089_v25 = vpop.f32.mrf.mxu2 }
 0x11d   :  { %v1132_v24 = vpop.f32.mrf.mxu3  ;;  %v1090_v12 = vadd.f32 %v1089_v25, %v1047_v14 }
 0x11e   :  { %v1049_v27 = vpop.f32.mrf.mxu1 }
 0x11f   :  { %v1133_v51 = vadd.f32 %v1132_v24, %v1090_v12  ;;  %v1050_v13 = vadd.f32 %v1049_v27, %v2558_v56 }
 0x121   :  { %v2763_v30 = vadd.f32 %v1175_v22, %v1133_v51 }
 0x122   :  { %v1178_v29 = vpop.f32.mrf.mxu0 }
 0x124   :  { %v1092_v32 = vpop.f32.mrf.mxu2 }
 0x125   :  { %v1135_v31 = vpop.f32.mrf.mxu3  ;;  %v1093_v33 = vadd.f32 %v1092_v32, %v1050_v13 }
 0x126   :  { %v1051_v34 = vpop.f32.mrf.mxu1 }
 0x127   :  { %v1136_v35 = vadd.f32 %v1135_v31, %v1093_v33 }
 0x129   :  { %v2765_v26 = vadd.f32 %v1178_v29, %v1136_v35 }
 0x12a   :  { %v1180_v36 = vpop.f32.mrf.mxu0 }
 0x12c   :  { %v1094_v38 = vpop.f32.mrf.mxu2 }
 0x12d   :  { %v1137_v37 = vpop.f32.mrf.mxu3 }
 0x12e   :  { %v1191_v40 = vpop.f32.mrf.mxu1 }
 0x12f   :  { %v1192_v48 = vadd.f32 %v1191_v40, %v2632_v45 }
 0x132   :  { %v1320_v42 = vpop.f32.mrf.mxu0 }
 0x134   :  { %v1234_v46 = vpop.f32.mrf.mxu2 }
 0x135   :  { %v1277_v43 = vpop.f32.mrf.mxu3  ;;  %v1235_v56 = vadd.f32 %v1234_v46, %v1192_v48 }
 0x136   :  { %v1193_v47 = vpop.f32.mrf.mxu1 }
 0x137   :  { %v1278_v50 = vadd.f32 %v1277_v43, %v1235_v56  ;;  %v1194_v54 = vadd.f32 %v1193_v47, %v2650_v4 }
 0x139   :  { %v1321_v57 = vadd.f32 %v1320_v42, %v1278_v50 }
 0x13a   :  { %v1322_v49 = vpop.f32.mrf.mxu0 }
 0x13b   :  { %v1367_v62 = vmul.f32 0.01, %v1321_v57  ;;  %vm1354_vm0 = vcmp.gt.f32.partialorder %v1321_v57, 0.0 }
 0x13c   :  { %v1236_v53 = vpop.f32.mrf.mxu2 }
 0x13d   :  { %v1279_v7 = vpop.f32.mrf.mxu3  ;;  %v1237_v52 = vadd.f32 %v1236_v53, %v1194_v54  ;;  %v1380_v5 = vsel %vm1354_vm0, %v1321_v57, %v1367_v62 }
 0x13e   :  { %v1196_v58 = vpop.f32.mrf.mxu1 }
 0x13f   :  { %v1280_v59 = vadd.f32 %v1279_v7, %v1237_v52  ;;  %v1197_v1 = vadd.f32 %v1196_v58, %v2662_v21 }
 0x141   :  { %v1323_v63 = vadd.f32 %v1322_v49, %v1280_v59 }
 0x142   :  { %v1325_v60 = vpop.f32.mrf.mxu0 }
 0x143   :  { %vm1355_vm1 = vcmp.gt.f32.partialorder %v1323_v63, 0.0  ;;  %v1368_v45 = vmul.f32 0.01, %v1323_v63 }
 0x144   :  { %v1239_v2 = vpop.f32.mrf.mxu2 }
 0x145   :  { %v1282_v0 = vpop.f32.mrf.mxu3  ;;  %v1381_v8 = vsel %vm1355_vm1, %v1323_v63, %v1368_v45  ;;  %v1240_v9 = vadd.f32 %v1239_v2, %v1197_v1 }
 0x146   :  { %v2056_v3 = vpack.c.bf16 %v1381_v8, %v1380_v5  ;;  %v1198_v4 = vpop.f32.mrf.mxu1 }
 0x147   :  { %v1283_v10 = vadd.f32 %v1282_v0, %v1240_v9  ;;  %v1199_v17 = vadd.f32 %v1198_v4, %v2681_v39 }
 0x148   :  { %2057 = vst [vmem:[%s2804_s3] sm:$0xff] %v2056_v3  }
 0x149   :  { %v1326_v19 = vadd.f32 %v1325_v60, %v1283_v10 }
 0x14a   :  { %v1327_v11 = vpop.f32.mrf.mxu0 }
 0x14b   :  { %v1369_v22 = vmul.f32 0.01, %v1326_v19  ;;  %vm1356_vm2 = vcmp.gt.f32.partialorder %v1326_v19, 0.0 }
 0x14c   :  { %v1241_v18 = vpop.f32.mrf.mxu2 }
 0x14d   :  { %v1284_v15 = vpop.f32.mrf.mxu3  ;;  %v1242_v6 = vadd.f32 %v1241_v18, %v1199_v17  ;;  %v1382_v13 = vsel %vm1356_vm2, %v1326_v19, %v1369_v22 }
 0x14e   :  { %v1201_v20 = vpop.f32.mrf.mxu1 }
 0x14f   :  { %v1285_v21 = vadd.f32 %v1284_v15, %v1242_v6  ;;  %v1202_v27 = vadd.f32 %v1201_v20, %v2694_v55 }
 0x151   :  { %v1328_v24 = vadd.f32 %v1327_v11, %v1285_v21 }
 0x152   :  { %v1330_v14 = vpop.f32.mrf.mxu0 }
 0x153   :  { %vm1357_vm3 = vcmp.gt.f32.partialorder %v1328_v24, 0.0  ;;  %v1370_v12 = vmul.f32 0.01, %v1328_v24 }
 0x154   :  { %v1244_v51 = vpop.f32.mrf.mxu2 }
 0x155   :  { %v1287_v25 = vpop.f32.mrf.mxu3  ;;  %v1383_v29 = vsel %vm1357_vm3, %v1328_v24, %v1370_v12  ;;  %v1245_v31 = vadd.f32 %v1244_v51, %v1202_v27 }
 0x156   :  { %v2061_v32 = vpack.c.bf16 %v1383_v29, %v1382_v13  ;;  %v1203_v39 = vpop.f32.mrf.mxu1 }
 0x157   :  { %v1288_v34 = vadd.f32 %v1287_v25, %v1245_v31  ;;  %v1204_v36 = vadd.f32 %v1203_v39, %v2713_v16 }
 0x158   :  { %2083 = vst [vmem:[%s2804_s3 + $0x8] sm:$0xff] %v2061_v32  }
 0x159   :  { %v1331_v38 = vadd.f32 %v1330_v14, %v1288_v34 }
 0x15a   :  { %v1332_v33 = vpop.f32.mrf.mxu0 }
 0x15b   :  { %v1371_v48 = vmul.f32 0.01, %v1331_v38  ;;  %vm1358_vm4 = vcmp.gt.f32.partialorder %v1331_v38, 0.0 }
 0x15c   :  { %v1246_v37 = vpop.f32.mrf.mxu2 }
 0x15d   :  { %v1289_v35 = vpop.f32.mrf.mxu3  ;;  %v1247_v40 = vadd.f32 %v1246_v37, %v1204_v36  ;;  %v1384_v7 = vsel %vm1358_vm4, %v1331_v38, %v1371_v48 }
 0x15e   :  { %v1206_v42 = vpop.f32.mrf.mxu1 }
 0x15f   :  { %v1290_v55 = vadd.f32 %v1289_v35, %v1247_v40  ;;  %v1207_v49 = vadd.f32 %v1206_v42, %v2726_v28 }
 0x161   :  { %v1333_v46 = vadd.f32 %v1332_v33, %v1290_v55 }
 0x162   :  { %v1335_v43 = vpop.f32.mrf.mxu0 }
 0x163   :  { %vm1359_vm5 = vcmp.gt.f32.partialorder %v1333_v46, 0.0  ;;  %v1372_v47 = vmul.f32 0.01, %v1333_v46 }
 0x164   :  { %v1249_v50 = vpop.f32.mrf.mxu2 }
 0x165   :  { %v1292_v56 = vpop.f32.mrf.mxu3  ;;  %v1385_v54 = vsel %vm1359_vm5, %v1333_v46, %v1372_v47  ;;  %v1250_v53 = vadd.f32 %v1249_v50, %v1207_v49 }
 0x166   :  { %v2066_v57 = vpack.c.bf16 %v1385_v54, %v1384_v7  ;;  %v1208_v16 = vpop.f32.mrf.mxu1 }
 0x167   :  { %v1293_v58 = vadd.f32 %v1292_v56, %v1250_v53  ;;  %v1209_v60 = vadd.f32 %v1208_v16, %v2744_v44 }
 0x168   :  { %2084 = vst [vmem:[%s2804_s3 + $0x10] sm:$0xff] %v2066_v57  }
 0x169   :  { %v1336_v63 = vadd.f32 %v1335_v43, %v1293_v58 }
 0x16a   :  { %v1337_v52 = vpop.f32.mrf.mxu0 }
 0x16b   :  { %v1373_v2 = vmul.f32 0.01, %v1336_v63  ;;  %vm1360_vm6 = vcmp.gt.f32.partialorder %v1336_v63, 0.0 }
 0x16c   :  { %v1251_v62 = vpop.f32.mrf.mxu2 }
 0x16d   :  { %v1294_v59 = vpop.f32.mrf.mxu3  ;;  %v1252_v0 = vadd.f32 %v1251_v62, %v1209_v60  ;;  %v1386_v11 = vsel %vm1360_vm6, %v1336_v63, %v1373_v2 }
 0x16e   :  { %v1211_v45 = vpop.f32.mrf.mxu1 }
 0x16f   :  { %v1295_v28 = vadd.f32 %v1294_v59, %v1252_v0  ;;  %v1212_v3 = vadd.f32 %v1211_v45, %v2754_v61 }
 0x171   :  { %v1338_v5 = vadd.f32 %v1337_v52, %v1295_v28 }
 0x172   :  { %v1340_v1 = vpop.f32.mrf.mxu0 }
 0x173   :  { %vm1361_vm7 = vcmp.gt.f32.partialorder %v1338_v5, 0.0  ;;  %v1374_v9 = vmul.f32 0.01, %v1338_v5 }
 0x174   :  { %v1254_v4 = vpop.f32.mrf.mxu2 }
 0x175   :  { %v1297_v8 = vpop.f32.mrf.mxu3  ;;  %v1387_v10 = vsel %vm1361_vm7, %v1338_v5, %v1374_v9  ;;  %v1255_v15 = vadd.f32 %v1254_v4, %v1212_v3 }
 0x176   :  { %v2071_v17 = vpack.c.bf16 %v1387_v10, %v1386_v11  ;;  %v1213_v44 = vpop.f32.mrf.mxu1 }
 0x177   :  { %v1298_v19 = vadd.f32 %v1297_v8, %v1255_v15  ;;  %v1214_v20 = vadd.f32 %v1213_v44, %v2757_v41 }
 0x178   :  { %2085 = vst [vmem:[%s2804_s3 + $0x18] sm:$0xff] %v2071_v17  }
 0x179   :  { %v1341_v14 = vadd.f32 %v1340_v1, %v1298_v19 }
 0x17a   :  { %v1342_v18 = vpop.f32.mrf.mxu0 }
 0x17b   :  { %v1375_v12 = vmul.f32 0.01, %v1341_v14  ;;  %vm1362_vm8 = vcmp.gt.f32.partialorder %v1341_v14, 0.0 }
 0x17c   :  { %v1256_v21 = vpop.f32.mrf.mxu2 }
 0x17d   :  { %v1299_v6 = vpop.f32.mrf.mxu3  ;;  %v1257_v22 = vadd.f32 %v1256_v21, %v1214_v20  ;;  %v1388_v32 = vsel %vm1362_vm8, %v1341_v14, %v1375_v12 }
 0x17e   :  { %v1216_v24 = vpop.f32.mrf.mxu1 }
 0x17f   :  { %v1300_v61 = vadd.f32 %v1299_v6, %v1257_v22  ;;  %v1217_v29 = vadd.f32 %v1216_v24, %v2760_v23 }
 0x181   :  { %v1343_v27 = vadd.f32 %v1342_v18, %v1300_v61 }
 0x182   :  { %v1345_v25 = vpop.f32.mrf.mxu0 }
 0x183   :  { %vm1363_vm9 = vcmp.gt.f32.partialorder %v1343_v27, 0.0  ;;  %v1376_v13 = vmul.f32 0.01, %v1343_v27 }
 0x184   :  { %v1259_v31 = vpop.f32.mrf.mxu2 }
 0x185   :  { %v1302_v51 = vpop.f32.mrf.mxu3  ;;  %v1389_v39 = vsel %vm1363_vm9, %v1343_v27, %v1376_v13  ;;  %v1260_v33 = vadd.f32 %v1259_v31, %v1217_v29 }
 0x186   :  { %v2076_v34 = vpack.c.bf16 %v1389_v39, %v1388_v32  ;;  %v1218_v41 = vpop.f32.mrf.mxu1 }
 0x187   :  { %v1303_v36 = vadd.f32 %v1302_v51, %v1260_v33  ;;  %v1219_v38 = vadd.f32 %v1218_v41, %v2763_v30 }
 0x188   :  { %2086 = vst [vmem:[%s2804_s3 + $0x20] sm:$0xff] %v2076_v34  }
 0x189   :  { %v1346_v42 = vadd.f32 %v1345_v25, %v1303_v36 }
 0x18a   :  { %v1347_v35 = vpop.f32.mrf.mxu0 }
 0x18b   :  { %v1377_v46 = vmul.f32 0.01, %v1346_v42  ;;  %vm1364_vm10 = vcmp.gt.f32.partialorder %v1346_v42, 0.0 }
 0x18c   :  { %v1261_v40 = vpop.f32.mrf.mxu2 }
 0x18d   :  { %v1304_v37 = vpop.f32.mrf.mxu3  ;;  %v1262_v55 = vadd.f32 %v1261_v40, %v1219_v38  ;;  %v1390_v54 = vsel %vm1364_vm10, %v1346_v42, %v1377_v46 }
 0x18e   :  { %v1221_v43 = vpop.f32.mrf.mxu1 }
 0x18f   :  { %v1305_v23 = vadd.f32 %v1304_v37, %v1262_v55  ;;  %v1222_v50 = vadd.f32 %v1221_v43, %v2765_v26 }
 0x191   :  { %v1348_v56 = vadd.f32 %v1347_v35, %v1305_v23 }
 0x192   :  { %v1350_v48 = vpop.f32.mrf.mxu0 }
 0x193   :  { %vm1365_vm11 = vcmp.gt.f32.partialorder %v1348_v56, 0.0  ;;  %v1378_v49 = vmul.f32 0.01, %v1348_v56 }
 0x194   :  { %v1264_v7 = vpop.f32.mrf.mxu2 }
 0x195   :  { %v1307_v47 = vpop.f32.mrf.mxu3  ;;  %v1391_v53 = vsel %vm1365_vm11, %v1348_v56, %v1378_v49  ;;  %v1265_v57 = vadd.f32 %v1264_v7, %v1222_v50 }
 0x196   :  { %v2081_v16 = vpack.c.bf16 %v1391_v53, %v1390_v54  ;;  %v1223_v30 = vpop.f32.mrf.mxu1 }
 0x197   :  { %v1308_v52 = vadd.f32 %v1307_v47, %v1265_v57 }
 0x198   :  { %2087 = vst [vmem:[%s2804_s3 + $0x28] sm:$0xff] %v2081_v16  }
 0x199   :  { %v1351_v59 = vadd.f32 %v1350_v48, %v1308_v52 }
 0x19a   :  { %v1352_v58 = vpop.f32.mrf.mxu0 }
 0x19b   :  { %vm1366_vm12 = vcmp.gt.f32.partialorder %v1351_v59, 0.0  ;;  %v1379_v62 = vmul.f32 0.01, %v1351_v59 }
 0x19c   :  { %v1266_v63 = vpop.f32.mrf.mxu2 }
 0x19d   :  { %v1309_v60 = vpop.f32.mrf.mxu3  ;;  %v1392_v0 = vsel %vm1366_vm12, %v1351_v59, %v1379_v62 }
 0x19e   :  { %v1405_v45 = vpack.c.bf16 %v1392_v0, %v1392_v0 }
 0x1a0   :  { %1418 = vst [vmem:[%s2804_s3 + $0x30] sm:$0xf] %v1405_v45 }

// kernel: cnn_actor_critic_forward.7
= control target key start
LH: loop header
LB: loop body
LE: loop exit
PB: predicated region body
PF: predicated region fallthrough
CT: control target
= control target key end

     0   :  { %vm4835_vm0 = vcmask 523264   ;;  %s15664_s1 = inlined_call_operand.vmem [shape: bf16[3136,512], index: 1, kind: input, shape index: {}]   ;;  %s15665_s0 = inlined_call_operand.vmem [shape: bf16[8,3136], index: 0, kind: input, shape index: {}]   ;;  %s15666_s2 = inlined_call_operand.vmem [shape: f32[1,512], index: 2, kind: input, shape index: {}]   ;;  %s15667_s3 = inlined_call_operand.vmem [shape: bf16[512,128], index: 3, kind: input, shape index: {}]   ;;  %s15668_s4 = inlined_call_operand.vmem [shape: f32[1,128], index: 4, kind: input, shape index: {}]   ;;  %s15669_s5 = inlined_call_operand.vmem [shape: f32[8,128], index: 5, kind: output, shape index: {}]  }
   0x1   :  { %v6586_v0 = vld [vmem:[%s15664_s1 + $0xe0] sm:$0xf]  ;;  %v9770_v1 = vld [vmem:[%s15664_s1 + $0xec] sm:$0xf0] }
   0x2   :  { %v6714_v2 = vld [vmem:[%s15664_s1 + $0x1e0] sm:$0xf]  ;;  %v6587_v3 = vor.u32 %v9770_v1, %v6586_v0  ;;  %v9802_v4 = vld [vmem:[%s15664_s1 + $0x1ec] sm:$0xf0] }
   0x3   :  { %v6842_v5 = vld [vmem:[%s15664_s1 + $0x2e0] sm:$0xf]  ;;  %v9834_v6 = vld [vmem:[%s15664_s1 + $0x2ec] sm:$0xf0]  ;;  %v6715_v7 = vor.u32 %v9802_v4, %v6714_v2 }
   0x4   :  { %v6843_v8 = vor.u32 %v9834_v6, %v6842_v5  ;;  %v6970_v9 = vld [vmem:[%s15664_s1 + $0x3e0] sm:$0xf]  ;;  %v9866_v10 = vld [vmem:[%s15664_s1 + $0x3ec] sm:$0xf0]  ;;  %4839 = vmatpush.bf16.msra.mxu0 %v6587_v3 }
   0x5   :  { %v6570_v11 = vld [vmem:[%s15664_s1 + $0xc0] sm:$0xf]  ;;  %v6971_v12 = vor.u32 %v9866_v10, %v6970_v9  ;;  %v9766_v13 = vld [vmem:[%s15664_s1 + $0xcc] sm:$0xf0]  ;;  %4852 = vmatpush.bf16.msra.mxu1 %v6715_v7 }
   0x6   :  { %v6698_v14 = vld [vmem:[%s15664_s1 + $0x1c0] sm:$0xf]  ;;  %v9798_v15 = vld [vmem:[%s15664_s1 + $0x1cc] sm:$0xf0]  ;;  %4865 = vmatpush.bf16.msra.mxu2 %v6843_v8  ;;  %v6571_v16 = vor.u32 %v9766_v13, %v6570_v11 }
   0x7   :  { %v6699_v17 = vor.u32 %v9798_v15, %v6698_v14  ;;  %v6826_v18 = vld [vmem:[%s15664_s1 + $0x2c0] sm:$0xf]  ;;  %v9830_v19 = vld [vmem:[%s15664_s1 + $0x2cc] sm:$0xf0]  ;;  %4878 = vmatpush.bf16.msra.mxu3 %v6971_v12 }
   0x8   :  { %v6954_v20 = vld [vmem:[%s15664_s1 + $0x3c0] sm:$0xf]  ;;  %v6827_v21 = vor.u32 %v9830_v19, %v6826_v18  ;;  %v9862_v22 = vld [vmem:[%s15664_s1 + $0x3cc] sm:$0xf0]  ;;  %4840 = vmatpush.bf16.msra.mxu0 %v6571_v16 }
   0x9   :  { %v6554_v23 = vld [vmem:[%s15664_s1 + $0xa0] sm:$0xf]  ;;  %v9762_v24 = vld [vmem:[%s15664_s1 + $0xac] sm:$0xf0]  ;;  %v6955_v25 = vor.u32 %v9862_v22, %v6954_v20  ;;  %4853 = vmatpush.bf16.msra.mxu1 %v6699_v17 }
   0xa   :  { %v6682_v26 = vld [vmem:[%s15664_s1 + $0x1a0] sm:$0xf]  ;;  %v9794_v27 = vld [vmem:[%s15664_s1 + $0x1ac] sm:$0xf0]  ;;  %v6555_v29 = vor.u32 %v9762_v24, %v6554_v23  ;;  %4866 = vmatpush.bf16.msra.mxu2 %v6827_v21 }
   0xb   :  { %v6810_v28 = vld [vmem:[%s15664_s1 + $0x2a0] sm:$0xf]  ;;  %v9826_v30 = vld [vmem:[%s15664_s1 + $0x2ac] sm:$0xf0]  ;;  %v6683_v33 = vor.u32 %v9794_v27, %v6682_v26  ;;  %4879 = vmatpush.bf16.msra.mxu3 %v6955_v25 }
   0xc   :  { %v6938_v31 = vld [vmem:[%s15664_s1 + $0x3a0] sm:$0xf]  ;;  %v9858_v32 = vld [vmem:[%s15664_s1 + $0x3ac] sm:$0xf0]  ;;  %v6811_v34 = vor.u32 %v9826_v30, %v6810_v28  ;;  %4841 = vmatpush.bf16.msra.mxu0 %v6555_v29 }
   0xd   :  { %v6538_v35 = vld [vmem:[%s15664_s1 + $0x80] sm:$0xf]  ;;  %v9758_v36 = vld [vmem:[%s15664_s1 + $0x8c] sm:$0xf0]  ;;  %v6939_v38 = vor.u32 %v9858_v32, %v6938_v31  ;;  %4854 = vmatpush.bf16.msra.mxu1 %v6683_v33 }
   0xe   :  { %v6666_v37 = vld [vmem:[%s15664_s1 + $0x180] sm:$0xf]  ;;  %v9790_v39 = vld [vmem:[%s15664_s1 + $0x18c] sm:$0xf0]  ;;  %v6539_v44 = vor.u32 %v9758_v36, %v6538_v35  ;;  %4867 = vmatpush.bf16.msra.mxu2 %v6811_v34 }
   0xf   :  { %v6794_v40 = vld [vmem:[%s15664_s1 + $0x280] sm:$0xf]  ;;  %v9822_v41 = vld [vmem:[%s15664_s1 + $0x28c] sm:$0xf0]  ;;  %v6667_v45 = vor.u32 %v9790_v39, %v6666_v37  ;;  %4880 = vmatpush.bf16.msra.mxu3 %v6939_v38 }
  0x10   :  { %v6922_v42 = vld [vmem:[%s15664_s1 + $0x380] sm:$0xf]  ;;  %v9854_v43 = vld [vmem:[%s15664_s1 + $0x38c] sm:$0xf0]  ;;  %v6795_v46 = vor.u32 %v9822_v41, %v6794_v40  ;;  %4842 = vmatpush.bf16.msra.mxu0 %v6539_v44 }
  0x11   :  { %v6522_v47 = vld [vmem:[%s15664_s1 + $0x60] sm:$0xf]  ;;  %v9754_v48 = vld [vmem:[%s15664_s1 + $0x6c] sm:$0xf0]  ;;  %v6923_v50 = vor.u32 %v9854_v43, %v6922_v42  ;;  %4855 = vmatpush.bf16.msra.mxu1 %v6667_v45 }
  0x12   :  { %v6650_v49 = vld [vmem:[%s15664_s1 + $0x160] sm:$0xf]  ;;  %v9786_v51 = vld [vmem:[%s15664_s1 + $0x16c] sm:$0xf0]  ;;  %v6523_v56 = vor.u32 %v9754_v48, %v6522_v47  ;;  %4868 = vmatpush.bf16.msra.mxu2 %v6795_v46 }
  0x13   :  { %v6778_v52 = vld [vmem:[%s15664_s1 + $0x260] sm:$0xf]  ;;  %v9818_v53 = vld [vmem:[%s15664_s1 + $0x26c] sm:$0xf0]  ;;  %v6651_v57 = vor.u32 %v9786_v51, %v6650_v49  ;;  %4881 = vmatpush.bf16.msra.mxu3 %v6923_v50 }
  0x14   :  { %v6906_v54 = vld [vmem:[%s15664_s1 + $0x360] sm:$0xf]  ;;  %v9850_v55 = vld [vmem:[%s15664_s1 + $0x36c] sm:$0xf0]  ;;  %v6779_v58 = vor.u32 %v9818_v53, %v6778_v52  ;;  %4843 = vmatpush.bf16.msra.mxu0 %v6523_v56 }
  0x15   :  { %v6506_v59 = vld [vmem:[%s15664_s1 + $0x40] sm:$0xf]  ;;  %v9750_v60 = vld [vmem:[%s15664_s1 + $0x4c] sm:$0xf0]  ;;  %v6907_v62 = vor.u32 %v9850_v55, %v6906_v54  ;;  %4856 = vmatpush.bf16.msra.mxu1 %v6651_v57 }
  0x16   :  { %v6634_v61 = vld [vmem:[%s15664_s1 + $0x140] sm:$0xf]  ;;  %v9782_v63 = vld [vmem:[%s15664_s1 + $0x14c] sm:$0xf0]  ;;  %v6507_v4 = vor.u32 %v9750_v60, %v6506_v59  ;;  %4869 = vmatpush.bf16.msra.mxu2 %v6779_v58  ;;  %v22_v58 = vld [vmem:[%s15665_s0 + $0x8] sm:$0xff] }
  0x17   :  { %v6762_v0 = vld [vmem:[%s15664_s1 + $0x240] sm:$0xf]  ;;  %v9814_v1 = vld [vmem:[%s15664_s1 + $0x24c] sm:$0xf0]  ;;  %v6635_v5 = vor.u32 %v9782_v63, %v6634_v61  ;;  %4882 = vmatpush.bf16.msra.mxu3 %v6907_v62  ;;  %v843_v63 = vunpack.c.l.b16 %v22_v58 }
  0x18   :  { %v6890_v2 = vld [vmem:[%s15664_s1 + $0x340] sm:$0xf]  ;;  %v9846_v3 = vld [vmem:[%s15664_s1 + $0x34c] sm:$0xf0]  ;;  %v6763_v6 = vor.u32 %v9814_v1, %v6762_v0  ;;  %4844 = vmatpush.bf16.msra.mxu0 %v6507_v4  ;;  %v844_v0 = vunpack.c.h.b16 %v22_v58 }
  0x19   :  { %v6490_v7 = vld [vmem:[%s15664_s1 + $0x20] sm:$0xf]  ;;  %v9746_v8 = vld [vmem:[%s15664_s1 + $0x2c] sm:$0xf0]  ;;  %v6891_v10 = vor.u32 %v9846_v3, %v6890_v2  ;;  %4857 = vmatpush.bf16.msra.mxu1 %v6635_v5  ;;  %v10857_v4 = vpack.c.b16 %v843_v63, %v843_v63 }
  0x1a   :  { %v6618_v9 = vld [vmem:[%s15664_s1 + $0x120] sm:$0xf]  ;;  %v9778_v11 = vld [vmem:[%s15664_s1 + $0x12c] sm:$0xf0]  ;;  %v6491_v16 = vor.u32 %v9746_v8, %v6490_v7  ;;  %4870 = vmatpush.bf16.msra.mxu2 %v6763_v6  ;;  %v10862_v6 = vpack.c.b16 %v844_v0, %v844_v0 }
  0x1b   :  { %v6746_v12 = vld [vmem:[%s15664_s1 + $0x220] sm:$0xf]  ;;  %v9810_v13 = vld [vmem:[%s15664_s1 + $0x22c] sm:$0xf0]  ;;  %v6619_v19 = vor.u32 %v9778_v11, %v6618_v9  ;;  %4883 = vmatpush.bf16.msra.mxu3 %v6891_v10 }
  0x1c   :  { %v6874_v14 = vld [vmem:[%s15664_s1 + $0x320] sm:$0xf]  ;;  %v9842_v15 = vld [vmem:[%s15664_s1 + $0x32c] sm:$0xf0]  ;;  %v6747_v20 = vor.u32 %v9810_v13, %v6746_v12  ;;  %4845 = vmatpush.bf16.msra.mxu0 %v6491_v16 }
  0x1d   :  { %v6474_v17 = vld [vmem:[%s15664_s1] sm:$0xf]  ;;  %v9742_v18 = vld [vmem:[%s15664_s1 + $0xc] sm:$0xf0]  ;;  %v6875_v24 = vor.u32 %v9842_v15, %v6874_v14  ;;  %4858 = vmatpush.bf16.msra.mxu1 %v6619_v19 }
  0x1e   :  { %v6602_v21 = vld [vmem:[%s15664_s1 + $0x100] sm:$0xf]  ;;  %v9774_v22 = vld [vmem:[%s15664_s1 + $0x10c] sm:$0xf0]  ;;  %v6475_v31 = vor.u32 %v9742_v18, %v6474_v17  ;;  %4871 = vmatpush.bf16.msra.mxu2 %v6747_v20 }
  0x1f   :  { %v6730_v23 = vld [vmem:[%s15664_s1 + $0x200] sm:$0xf]  ;;  %v9806_v25 = vld [vmem:[%s15664_s1 + $0x20c] sm:$0xf0]  ;;  %v6603_v35 = vor.u32 %v9774_v22, %v6602_v21  ;;  %4884 = vmatpush.bf16.msra.mxu3 %v6875_v24 }
  0x20   :  { %v6858_v26 = vld [vmem:[%s15664_s1 + $0x300] sm:$0xf]  ;;  %v9838_v27 = vld [vmem:[%s15664_s1 + $0x30c] sm:$0xf0]  ;;  %v6731_v36 = vor.u32 %v9806_v25, %v6730_v23  ;;  %4846 = vmatpush.bf16.msra.mxu0 %v6475_v31 }
  0x21   :  { %v7098_v28 = vld [vmem:[%s15664_s1 + $0x4e0] sm:$0xf]  ;;  %v9898_v29 = vld [vmem:[%s15664_s1 + $0x4ec] sm:$0xf0]  ;;  %v6859_v39 = vor.u32 %v9838_v27, %v6858_v26  ;;  %4859 = vmatpush.bf16.msra.mxu1 %v6603_v35 }
  0x22   :  { %v7226_v30 = vld [vmem:[%s15664_s1 + $0x5e0] sm:$0xf]  ;;  %v9930_v32 = vld [vmem:[%s15664_s1 + $0x5ec] sm:$0xf0]  ;;  %v7099_v40 = vor.u32 %v9898_v29, %v7098_v28  ;;  %4872 = vmatpush.bf16.msra.mxu2 %v6731_v36 }
  0x23   :  { %v7354_v33 = vld [vmem:[%s15664_s1 + $0x6e0] sm:$0xf]  ;;  %v9962_v34 = vld [vmem:[%s15664_s1 + $0x6ec] sm:$0xf0]  ;;  %v7227_v41 = vor.u32 %v9930_v32, %v7226_v30  ;;  %4885 = vmatpush.bf16.msra.mxu3 %v6859_v39 }
  0x24   :  { %v7482_v37 = vld [vmem:[%s15664_s1 + $0x7e0] sm:$0xf]  ;;  %v9994_v38 = vld [vmem:[%s15664_s1 + $0x7ec] sm:$0xf0]  ;;  %v7355_v42 = vor.u32 %v9962_v34, %v7354_v33  ;;  %4891 = vmatpush.bf16.msrb.mxu0 %v7099_v40 }
  0x25   :  { %v7082_v43 = vld [vmem:[%s15664_s1 + $0x4c0] sm:$0xf]  ;;  %v9894_v44 = vld [vmem:[%s15664_s1 + $0x4cc] sm:$0xf0]  ;;  %v7483_v46 = vor.u32 %v9994_v38, %v7482_v37  ;;  %4904 = vmatpush.bf16.msrb.mxu1 %v7227_v41  ;;  %4873 = vmatmul.bf16.vlgmr.msra.gmra.mxu2 %v10857_v4 }
  0x26   :  { %v7210_v45 = vld [vmem:[%s15664_s1 + $0x5c0] sm:$0xf]  ;;  %v9926_v47 = vld [vmem:[%s15664_s1 + $0x5cc] sm:$0xf0]  ;;  %v7083_v52 = vor.u32 %v9894_v44, %v7082_v43  ;;  %4917 = vmatpush.bf16.msrb.mxu2 %v7355_v42  ;;  %4886 = vmatmul.bf16.vlgmr.msra.gmra.mxu3 %v10862_v6 }
  0x27   :  { %v7338_v48 = vld [vmem:[%s15664_s1 + $0x6c0] sm:$0xf]  ;;  %v9958_v49 = vld [vmem:[%s15664_s1 + $0x6cc] sm:$0xf0]  ;;  %v7211_v54 = vor.u32 %v9926_v47, %v7210_v45  ;;  %4930 = vmatpush.bf16.msrb.mxu3 %v7483_v46 }
  0x28   :  { %v7466_v50 = vld [vmem:[%s15664_s1 + $0x7c0] sm:$0xf]  ;;  %v9990_v51 = vld [vmem:[%s15664_s1 + $0x7cc] sm:$0xf0]  ;;  %v7339_v55 = vor.u32 %v9958_v49, %v7338_v48  ;;  %4892 = vmatpush.bf16.msrb.mxu0 %v7083_v52 }
  0x29   :  { %v7066_v53 = vld [vmem:[%s15664_s1 + $0x4a0] sm:$0xf]  ;;  %v9890_v56 = vld [vmem:[%s15664_s1 + $0x4ac] sm:$0xf0]  ;;  %v7467_v59 = vor.u32 %v9990_v51, %v7466_v50  ;;  %4905 = vmatpush.bf16.msrb.mxu1 %v7211_v54 }
  0x2a   :  { %v7194_v57 = vld [vmem:[%s15664_s1 + $0x5a0] sm:$0xf]  ;;  %v9922_v60 = vld [vmem:[%s15664_s1 + $0x5ac] sm:$0xf0]  ;;  %v7067_v3 = vor.u32 %v9890_v56, %v7066_v53  ;;  %4918 = vmatpush.bf16.msrb.mxu2 %v7339_v55 }
  0x2b   :  { %v7322_v61 = vld [vmem:[%s15664_s1 + $0x6a0] sm:$0xf]  ;;  %v9954_v62 = vld [vmem:[%s15664_s1 + $0x6ac] sm:$0xf0]  ;;  %v7195_v7 = vor.u32 %v9922_v60, %v7194_v57  ;;  %4931 = vmatpush.bf16.msrb.mxu3 %v7467_v59 }
  0x2c   :  { %v7450_v1 = vld [vmem:[%s15664_s1 + $0x7a0] sm:$0xf]  ;;  %v9986_v2 = vld [vmem:[%s15664_s1 + $0x7ac] sm:$0xf0]  ;;  %v7323_v8 = vor.u32 %v9954_v62, %v7322_v61  ;;  %4893 = vmatpush.bf16.msrb.mxu0 %v7067_v3  ;;  %v24_v3 = vld [vmem:[%s15665_s0 + $0x18] sm:$0xff] }
  0x2d   :  { %v21_v5 = vld [vmem:[%s15665_s0] sm:$0xff]  ;;  %v9886_v10 = vld [vmem:[%s15664_s1 + $0x48c] sm:$0xf0]  ;;  %v7451_v14 = vor.u32 %v9986_v2, %v7450_v1  ;;  %4906 = vmatpush.bf16.msrb.mxu1 %v7195_v7 }
  0x2e   :  { %v7050_v9 = vld [vmem:[%s15664_s1 + $0x480] sm:$0xf]  ;;  %v841_v12 = vunpack.c.l.b16 %v21_v5  ;;  %v842_v13 = vunpack.c.h.b16 %v21_v5  ;;  %v9918_v15 = vld [vmem:[%s15664_s1 + $0x58c] sm:$0xf0]  ;;  %4919 = vmatpush.bf16.msrb.mxu2 %v7323_v8 }
  0x2f   :  { %v7178_v11 = vld [vmem:[%s15664_s1 + $0x580] sm:$0xf]  ;;  %v9950_v17 = vld [vmem:[%s15664_s1 + $0x68c] sm:$0xf0]  ;;  %v7051_v22 = vor.u32 %v9886_v10, %v7050_v9  ;;  %4932 = vmatpush.bf16.msrb.mxu3 %v7451_v14 }
  0x30   :  { %v7306_v16 = vld [vmem:[%s15664_s1 + $0x680] sm:$0xf]  ;;  %v9982_v19 = vld [vmem:[%s15664_s1 + $0x78c] sm:$0xf0]  ;;  %v10889_v20 = vpack.c.b16 %v841_v12, %v841_v12  ;;  %v10892_v21 = vpack.c.b16 %v842_v13, %v842_v13  ;;  %v7179_v23 = vor.u32 %v9918_v15, %v7178_v11 }
  0x31   :  { %v7434_v18 = vld [vmem:[%s15664_s1 + $0x780] sm:$0xf]  ;;  %v7307_v24 = vor.u32 %v9950_v17, %v7306_v16  ;;  %v9882_v26 = vld [vmem:[%s15664_s1 + $0x46c] sm:$0xf0]  ;;  %4894 = vmatpush.bf16.msrb.mxu0 %v7051_v22  ;;  %v847_v17 = vunpack.c.l.b16 %v24_v3 }
  0x32   :  { %v7034_v25 = vld [vmem:[%s15664_s1 + $0x460] sm:$0xf]  ;;  %v7435_v28 = vor.u32 %v9982_v19, %v7434_v18  ;;  %v9914_v29 = vld [vmem:[%s15664_s1 + $0x56c] sm:$0xf0]  ;;  %4847 = vmatmul.bf16.vlgmr.msra.gmra.mxu0 %v10889_v20  ;;  %4860 = vmatmul.bf16.vlgmr.msra.gmra.mxu1 %v10892_v21 }
  0x33   :  { %v7162_v27 = vld [vmem:[%s15664_s1 + $0x560] sm:$0xf]  ;;  %v9946_v31 = vld [vmem:[%s15664_s1 + $0x66c] sm:$0xf0]  ;;  %v7035_v34 = vor.u32 %v9882_v26, %v7034_v25  ;;  %4907 = vmatpush.bf16.msrb.mxu1 %v7179_v23  ;;  %4920 = vmatpush.bf16.msrb.mxu2 %v7307_v24  ;;  %v848_v25 = vunpack.c.h.b16 %v24_v3 }
  0x34   :  { %v7290_v30 = vld [vmem:[%s15664_s1 + $0x660] sm:$0xf]  ;;  %v9978_v33 = vld [vmem:[%s15664_s1 + $0x76c] sm:$0xf0]  ;;  %v7163_v35 = vor.u32 %v9914_v29, %v7162_v27  ;;  %4933 = vmatpush.bf16.msrb.mxu3 %v7435_v28 }
  0x35   :  { %v7418_v32 = vld [vmem:[%s15664_s1 + $0x760] sm:$0xf]  ;;  %v7291_v36 = vor.u32 %v9946_v31, %v7290_v30  ;;  %v9878_v38 = vld [vmem:[%s15664_s1 + $0x44c] sm:$0xf0]  ;;  %4895 = vmatpush.bf16.msrb.mxu0 %v7035_v34 }
  0x36   :  { %v7018_v37 = vld [vmem:[%s15664_s1 + $0x440] sm:$0xf]  ;;  %v7419_v40 = vor.u32 %v9978_v33, %v7418_v32  ;;  %v9910_v41 = vld [vmem:[%s15664_s1 + $0x54c] sm:$0xf0] }
  0x37   :  { %v7146_v39 = vld [vmem:[%s15664_s1 + $0x540] sm:$0xf]  ;;  %v9942_v43 = vld [vmem:[%s15664_s1 + $0x64c] sm:$0xf0]  ;;  %v7019_v46 = vor.u32 %v9878_v38, %v7018_v37  ;;  %4908 = vmatpush.bf16.msrb.mxu1 %v7163_v35  ;;  %4921 = vmatpush.bf16.msrb.mxu2 %v7291_v36  ;;  %v11040_v38 = vpack.c.b16 %v847_v17, %v847_v17 }
  0x38   :  { %v7274_v42 = vld [vmem:[%s15664_s1 + $0x640] sm:$0xf]  ;;  %v9974_v45 = vld [vmem:[%s15664_s1 + $0x74c] sm:$0xf0]  ;;  %v7147_v47 = vor.u32 %v9910_v41, %v7146_v39  ;;  %4934 = vmatpush.bf16.msrb.mxu3 %v7419_v40 }
  0x39   :  { %v7402_v44 = vld [vmem:[%s15664_s1 + $0x740] sm:$0xf]  ;;  %v7275_v48 = vor.u32 %v9942_v43, %v7274_v42  ;;  %v9874_v50 = vld [vmem:[%s15664_s1 + $0x42c] sm:$0xf0]  ;;  %4896 = vmatpush.bf16.msrb.mxu0 %v7019_v46  ;;  %v11050_v42 = vpack.c.b16 %v848_v25, %v848_v25 }
  0x3a   :  { %v7002_v49 = vld [vmem:[%s15664_s1 + $0x420] sm:$0xf]  ;;  %v7403_v52 = vor.u32 %v9974_v45, %v7402_v44  ;;  %v9906_v53 = vld [vmem:[%s15664_s1 + $0x52c] sm:$0xf0] }
  0x3b   :  { %v7130_v51 = vld [vmem:[%s15664_s1 + $0x520] sm:$0xf]  ;;  %v9938_v55 = vld [vmem:[%s15664_s1 + $0x62c] sm:$0xf0]  ;;  %v7003_v59 = vor.u32 %v9874_v50, %v7002_v49  ;;  %4909 = vmatpush.bf16.msrb.mxu1 %v7147_v47  ;;  %4922 = vmatpush.bf16.msrb.mxu2 %v7275_v48 }
  0x3c   :  { %v7258_v54 = vld [vmem:[%s15664_s1 + $0x620] sm:$0xf]  ;;  %v9970_v57 = vld [vmem:[%s15664_s1 + $0x72c] sm:$0xf0]  ;;  %v7131_v63 = vor.u32 %v9906_v53, %v7130_v51  ;;  %4935 = vmatpush.bf16.msrb.mxu3 %v7403_v52 }
  0x3d   :  { %v7386_v56 = vld [vmem:[%s15664_s1 + $0x720] sm:$0xf]  ;;  %v9870_v60 = vld [vmem:[%s15664_s1 + $0x40c] sm:$0xf0]  ;;  %v7259_v0 = vor.u32 %v9938_v55, %v7258_v54  ;;  %4897 = vmatpush.bf16.msrb.mxu0 %v7003_v59 }
  0x3e   :  { %v6986_v58 = vld [vmem:[%s15664_s1 + $0x400] sm:$0xf]  ;;  %v9902_v62 = vld [vmem:[%s15664_s1 + $0x50c] sm:$0xf0]  ;;  %v7387_v5 = vor.u32 %v9970_v57, %v7386_v56 }
  0x3f   :  { %v7114_v61 = vld [vmem:[%s15664_s1 + $0x500] sm:$0xf]  ;;  %v9934_v2 = vld [vmem:[%s15664_s1 + $0x60c] sm:$0xf0]  ;;  %v6987_v13 = vor.u32 %v9870_v60, %v6986_v58  ;;  %4910 = vmatpush.bf16.msrb.mxu1 %v7131_v63  ;;  %4923 = vmatpush.bf16.msrb.mxu2 %v7259_v0 }
  0x40   :  { %v7242_v1 = vld [vmem:[%s15664_s1 + $0x600] sm:$0xf]  ;;  %v9966_v8 = vld [vmem:[%s15664_s1 + $0x70c] sm:$0xf0]  ;;  %v7115_v18 = vor.u32 %v9902_v62, %v7114_v61  ;;  %4936 = vmatpush.bf16.msrb.mxu3 %v7387_v5 }
  0x41   :  { %v7370_v7 = vld [vmem:[%s15664_s1 + $0x700] sm:$0xf]  ;;  %v23_v9 = vld [vmem:[%s15665_s0 + $0x10] sm:$0xff]  ;;  %v7243_v19 = vor.u32 %v9934_v2, %v7242_v1  ;;  %4898 = vmatpush.bf16.msrb.mxu0 %v6987_v13 }
  0x42   :  { %v7610_v10 = vld [vmem:[%s15664_s1 + $0x8e0] sm:$0xf]  ;;  %v10026_v11 = vld [vmem:[%s15664_s1 + $0x8ec] sm:$0xf0]  ;;  %v845_v24 = vunpack.c.l.b16 %v23_v9  ;;  %v7371_v26 = vor.u32 %v9966_v8, %v7370_v7  ;;  %v846_v28 = vunpack.c.h.b16 %v23_v9 }
  0x43   :  { %v7738_v12 = vld [vmem:[%s15664_s1 + $0x9e0] sm:$0xf]  ;;  %v10058_v14 = vld [vmem:[%s15664_s1 + $0x9ec] sm:$0xf0]  ;;  %v7611_v27 = vor.u32 %v10026_v11, %v7610_v10  ;;  %4911 = vmatpush.bf16.msrb.mxu1 %v7115_v18  ;;  %4924 = vmatpush.bf16.msrb.mxu2 %v7243_v19 }
  0x44   :  { %v7866_v15 = vld [vmem:[%s15664_s1 + $0xae0] sm:$0xf]  ;;  %v10090_v16 = vld [vmem:[%s15664_s1 + $0xaec] sm:$0xf0]  ;;  %v7739_v29 = vor.u32 %v10058_v14, %v7738_v12  ;;  %v11048_v41 = vpack.c.b16 %v845_v24, %v845_v24  ;;  %4937 = vmatpush.bf16.msrb.mxu3 %v7371_v26  ;;  %v11052_v44 = vpack.c.b16 %v846_v28, %v846_v28 }
  0x45   :  { %v7994_v22 = vld [vmem:[%s15664_s1 + $0xbe0] sm:$0xf]  ;;  %v10122_v23 = vld [vmem:[%s15664_s1 + $0xbec] sm:$0xf0]  ;;  %v7867_v30 = vor.u32 %v10090_v16, %v7866_v15  ;;  %4943 = vmatpush.bf16.msra.mxu0 %v7611_v27 }
  0x46   :  { %v7594_v31 = vld [vmem:[%s15664_s1 + $0x8c0] sm:$0xf]  ;;  %v10022_v32 = vld [vmem:[%s15664_s1 + $0x8cc] sm:$0xf0]  ;;  %v7995_v34 = vor.u32 %v10122_v23, %v7994_v22  ;;  %4925 = vmatmul.bf16.vlgmr.msrb.gmra.mxu2 %v11040_v38  ;;  %4899 = vmatmul.bf16.vlgmr.msrb.gmra.mxu0 %v11048_v41 }
  0x47   :  { %v7722_v33 = vld [vmem:[%s15664_s1 + $0x9c0] sm:$0xf]  ;;  %v10054_v35 = vld [vmem:[%s15664_s1 + $0x9cc] sm:$0xf0]  ;;  %v7595_v43 = vor.u32 %v10022_v32, %v7594_v31  ;;  %4956 = vmatpush.bf16.msra.mxu1 %v7739_v29  ;;  %4969 = vmatpush.bf16.msra.mxu2 %v7867_v30 }
  0x48   :  { %v7850_v36 = vld [vmem:[%s15664_s1 + $0xac0] sm:$0xf]  ;;  %v10086_v37 = vld [vmem:[%s15664_s1 + $0xacc] sm:$0xf0]  ;;  %v7723_v45 = vor.u32 %v10054_v35, %v7722_v33  ;;  %4982 = vmatpush.bf16.msra.mxu3 %v7995_v34  ;;  %4912 = vmatmul.bf16.vlgmr.msrb.gmra.mxu1 %v11052_v44 }
  0x49   :  { %v7978_v39 = vld [vmem:[%s15664_s1 + $0xbc0] sm:$0xf]  ;;  %v10118_v40 = vld [vmem:[%s15664_s1 + $0xbcc] sm:$0xf0]  ;;  %v7851_v46 = vor.u32 %v10086_v37, %v7850_v36  ;;  %4938 = vmatmul.bf16.vlgmr.msrb.gmra.mxu3 %v11050_v42  ;;  %4944 = vmatpush.bf16.msra.mxu0 %v7595_v43 }
  0x4a   :  { %v7578_v47 = vld [vmem:[%s15664_s1 + $0x8a0] sm:$0xf]  ;;  %v10018_v48 = vld [vmem:[%s15664_s1 + $0x8ac] sm:$0xf0]  ;;  %v7979_v50 = vor.u32 %v10118_v40, %v7978_v39 }
  0x4b   :  { %v7706_v49 = vld [vmem:[%s15664_s1 + $0x9a0] sm:$0xf]  ;;  %v10050_v51 = vld [vmem:[%s15664_s1 + $0x9ac] sm:$0xf0]  ;;  %v7579_v56 = vor.u32 %v10018_v48, %v7578_v47  ;;  %4957 = vmatpush.bf16.msra.mxu1 %v7723_v45  ;;  %4970 = vmatpush.bf16.msra.mxu2 %v7851_v46 }
  0x4c   :  { %v7834_v52 = vld [vmem:[%s15664_s1 + $0xaa0] sm:$0xf]  ;;  %v10082_v53 = vld [vmem:[%s15664_s1 + $0xaac] sm:$0xf0]  ;;  %v7707_v57 = vor.u32 %v10050_v51, %v7706_v49  ;;  %4983 = vmatpush.bf16.msra.mxu3 %v7979_v50 }
  0x4d   :  { %v7962_v54 = vld [vmem:[%s15664_s1 + $0xba0] sm:$0xf]  ;;  %v10114_v55 = vld [vmem:[%s15664_s1 + $0xbac] sm:$0xf0]  ;;  %v7835_v58 = vor.u32 %v10082_v53, %v7834_v52  ;;  %4945 = vmatpush.bf16.msra.mxu0 %v7579_v56 }
  0x4e   :  { %v7562_v59 = vld [vmem:[%s15664_s1 + $0x880] sm:$0xf]  ;;  %v10014_v60 = vld [vmem:[%s15664_s1 + $0x88c] sm:$0xf0]  ;;  %v7963_v62 = vor.u32 %v10114_v55, %v7962_v54 }
  0x4f   :  { %v7690_v61 = vld [vmem:[%s15664_s1 + $0x980] sm:$0xf]  ;;  %v10046_v63 = vld [vmem:[%s15664_s1 + $0x98c] sm:$0xf0]  ;;  %v7563_v5 = vor.u32 %v10014_v60, %v7562_v59  ;;  %4958 = vmatpush.bf16.msra.mxu1 %v7707_v57  ;;  %4971 = vmatpush.bf16.msra.mxu2 %v7835_v58 }
  0x50   :  { %v7818_v0 = vld [vmem:[%s15664_s1 + $0xa80] sm:$0xf]  ;;  %v10078_v1 = vld [vmem:[%s15664_s1 + $0xa8c] sm:$0xf0]  ;;  %v7691_v7 = vor.u32 %v10046_v63, %v7690_v61  ;;  %4984 = vmatpush.bf16.msra.mxu3 %v7963_v62  ;;  %v26_v61 = vld [vmem:[%s15665_s0 + $0x28] sm:$0xff] }
  0x51   :  { %v7946_v2 = vld [vmem:[%s15664_s1 + $0xb80] sm:$0xf]  ;;  %v10110_v3 = vld [vmem:[%s15664_s1 + $0xb8c] sm:$0xf0]  ;;  %v7819_v8 = vor.u32 %v10078_v1, %v7818_v0  ;;  %4946 = vmatpush.bf16.msra.mxu0 %v7563_v5 }
  0x52   :  { %v7546_v9 = vld [vmem:[%s15664_s1 + $0x860] sm:$0xf]  ;;  %v10010_v10 = vld [vmem:[%s15664_s1 + $0x86c] sm:$0xf0]  ;;  %v7947_v12 = vor.u32 %v10110_v3, %v7946_v2 }
  0x53   :  { %v7674_v11 = vld [vmem:[%s15664_s1 + $0x960] sm:$0xf]  ;;  %v10042_v13 = vld [vmem:[%s15664_s1 + $0x96c] sm:$0xf0]  ;;  %v7547_v18 = vor.u32 %v10010_v10, %v7546_v9  ;;  %4959 = vmatpush.bf16.msra.mxu1 %v7691_v7  ;;  %4972 = vmatpush.bf16.msra.mxu2 %v7819_v8 }
  0x54   :  { %v7802_v14 = vld [vmem:[%s15664_s1 + $0xa60] sm:$0xf]  ;;  %v10074_v15 = vld [vmem:[%s15664_s1 + $0xa6c] sm:$0xf0]  ;;  %v7675_v19 = vor.u32 %v10042_v13, %v7674_v11  ;;  %4985 = vmatpush.bf16.msra.mxu3 %v7947_v12  ;;  %v851_v12 = vunpack.c.l.b16 %v26_v61 }
  0x55   :  { %v7930_v16 = vld [vmem:[%s15664_s1 + $0xb60] sm:$0xf]  ;;  %v10106_v17 = vld [vmem:[%s15664_s1 + $0xb6c] sm:$0xf0]  ;;  %v7803_v22 = vor.u32 %v10074_v15, %v7802_v14  ;;  %4947 = vmatpush.bf16.msra.mxu0 %v7547_v18 }
  0x56   :  { %v7530_v23 = vld [vmem:[%s15664_s1 + $0x840] sm:$0xf]  ;;  %v10006_v24 = vld [vmem:[%s15664_s1 + $0x84c] sm:$0xf0]  ;;  %v7931_v26 = vor.u32 %v10106_v17, %v7930_v16  ;;  %v852_v16 = vunpack.c.h.b16 %v26_v61 }
  0x57   :  { %v7658_v25 = vld [vmem:[%s15664_s1 + $0x940] sm:$0xf]  ;;  %v10038_v27 = vld [vmem:[%s15664_s1 + $0x94c] sm:$0xf0]  ;;  %v7531_v32 = vor.u32 %v10006_v24, %v7530_v23  ;;  %4960 = vmatpush.bf16.msra.mxu1 %v7675_v19  ;;  %4973 = vmatpush.bf16.msra.mxu2 %v7803_v22 }
  0x58   :  { %v7786_v28 = vld [vmem:[%s15664_s1 + $0xa40] sm:$0xf]  ;;  %v10070_v29 = vld [vmem:[%s15664_s1 + $0xa4c] sm:$0xf0]  ;;  %v7659_v33 = vor.u32 %v10038_v27, %v7658_v25  ;;  %4986 = vmatpush.bf16.msra.mxu3 %v7931_v26 }
  0x59   :  { %v7914_v30 = vld [vmem:[%s15664_s1 + $0xb40] sm:$0xf]  ;;  %v10102_v31 = vld [vmem:[%s15664_s1 + $0xb4c] sm:$0xf0]  ;;  %v7787_v34 = vor.u32 %v10070_v29, %v7786_v28  ;;  %4948 = vmatpush.bf16.msra.mxu0 %v7531_v32  ;;  %v11252_v29 = vpack.c.b16 %v851_v12, %v851_v12 }
  0x5a   :  { %v7514_v35 = vld [vmem:[%s15664_s1 + $0x820] sm:$0xf]  ;;  %v10002_v36 = vld [vmem:[%s15664_s1 + $0x82c] sm:$0xf0]  ;;  %v7915_v39 = vor.u32 %v10102_v31, %v7914_v30 }
  0x5b   :  { %v7642_v37 = vld [vmem:[%s15664_s1 + $0x920] sm:$0xf]  ;;  %v10034_v40 = vld [vmem:[%s15664_s1 + $0x92c] sm:$0xf0]  ;;  %v7515_v49 = vor.u32 %v10002_v36, %v7514_v35  ;;  %4961 = vmatpush.bf16.msra.mxu1 %v7659_v33  ;;  %4974 = vmatpush.bf16.msra.mxu2 %v7787_v34  ;;  %v11262_v33 = vpack.c.b16 %v852_v16, %v852_v16 }
  0x5c   :  { %v7770_v43 = vld [vmem:[%s15664_s1 + $0xa20] sm:$0xf]  ;;  %v10066_v45 = vld [vmem:[%s15664_s1 + $0xa2c] sm:$0xf0]  ;;  %v7643_v53 = vor.u32 %v10034_v40, %v7642_v37  ;;  %4987 = vmatpush.bf16.msra.mxu3 %v7915_v39 }
  0x5d   :  { %v7898_v46 = vld [vmem:[%s15664_s1 + $0xb20] sm:$0xf]  ;;  %v10098_v47 = vld [vmem:[%s15664_s1 + $0xb2c] sm:$0xf0]  ;;  %v7771_v54 = vor.u32 %v10066_v45, %v7770_v43  ;;  %4949 = vmatpush.bf16.msra.mxu0 %v7515_v49 }
  0x5e   :  { %v7498_v48 = vld [vmem:[%s15664_s1 + $0x800] sm:$0xf]  ;;  %v9998_v50 = vld [vmem:[%s15664_s1 + $0x80c] sm:$0xf0]  ;;  %v7899_v58 = vor.u32 %v10098_v47, %v7898_v46 }
  0x5f   :  { %v7626_v51 = vld [vmem:[%s15664_s1 + $0x900] sm:$0xf]  ;;  %v10030_v52 = vld [vmem:[%s15664_s1 + $0x90c] sm:$0xf0]  ;;  %v7499_v1 = vor.u32 %v9998_v50, %v7498_v48  ;;  %4962 = vmatpush.bf16.msra.mxu1 %v7643_v53  ;;  %4975 = vmatpush.bf16.msra.mxu2 %v7771_v54 }
  0x60   :  { %v7754_v55 = vld [vmem:[%s15664_s1 + $0xa00] sm:$0xf]  ;;  %v10062_v56 = vld [vmem:[%s15664_s1 + $0xa0c] sm:$0xf0]  ;;  %v7627_v8 = vor.u32 %v10030_v52, %v7626_v51  ;;  %4988 = vmatpush.bf16.msra.mxu3 %v7899_v58 }
  0x61   :  { %v25_v57 = vld [vmem:[%s15665_s0 + $0x20] sm:$0xff]  ;;  %v10094_v60 = vld [vmem:[%s15664_s1 + $0xb0c] sm:$0xf0]  ;;  %v7755_v9 = vor.u32 %v10062_v56, %v7754_v55  ;;  %4950 = vmatpush.bf16.msra.mxu0 %v7499_v1 }
  0x62   :  { %v7882_v59 = vld [vmem:[%s15664_s1 + $0xb00] sm:$0xf]  ;;  %v10154_v63 = vld [vmem:[%s15664_s1 + $0xcec] sm:$0xf0]  ;;  %v849_v7 = vunpack.c.l.b16 %v25_v57  ;;  %v850_v13 = vunpack.c.h.b16 %v25_v57 }
  0x63   :  { %v8122_v62 = vld [vmem:[%s15664_s1 + $0xce0] sm:$0xf]  ;;  %v10186_v2 = vld [vmem:[%s15664_s1 + $0xdec] sm:$0xf0]  ;;  %v7883_v14 = vor.u32 %v10094_v60, %v7882_v59  ;;  %4963 = vmatpush.bf16.msra.mxu1 %v7627_v8  ;;  %4976 = vmatpush.bf16.msra.mxu2 %v7755_v9 }
  0x64   :  { %v8250_v0 = vld [vmem:[%s15664_s1 + $0xde0] sm:$0xf]  ;;  %v10218_v5 = vld [vmem:[%s15664_s1 + $0xeec] sm:$0xf0]  ;;  %v8123_v15 = vor.u32 %v10154_v63, %v8122_v62  ;;  %v11241_v25 = vpack.c.b16 %v849_v7, %v849_v7  ;;  %v11254_v30 = vpack.c.b16 %v850_v13, %v850_v13 }
  0x65   :  { %v8378_v3 = vld [vmem:[%s15664_s1 + $0xee0] sm:$0xf]  ;;  %v10250_v11 = vld [vmem:[%s15664_s1 + $0xfec] sm:$0xf0]  ;;  %v8251_v17 = vor.u32 %v10186_v2, %v8250_v0  ;;  %4989 = vmatpush.bf16.msra.mxu3 %v7883_v14 }
  0x66   :  { %v8506_v10 = vld [vmem:[%s15664_s1 + $0xfe0] sm:$0xf]  ;;  %v8379_v18 = vor.u32 %v10218_v5, %v8378_v3  ;;  %v10150_v22 = vld [vmem:[%s15664_s1 + $0xccc] sm:$0xf0]  ;;  %4995 = vmatpush.bf16.msrb.mxu0 %v8123_v15  ;;  %4977 = vmatmul.bf16.vlgmr.msra.gmra.mxu2 %v11252_v29 }
  0x67   :  { %v8106_v19 = vld [vmem:[%s15664_s1 + $0xcc0] sm:$0xf]  ;;  %v8507_v24 = vor.u32 %v10250_v11, %v8506_v10  ;;  %v10182_v26 = vld [vmem:[%s15664_s1 + $0xdcc] sm:$0xf0]  ;;  %5008 = vmatpush.bf16.msrb.mxu1 %v8251_v17  ;;  %4951 = vmatmul.bf16.vlgmr.msra.gmra.mxu0 %v11241_v25 }
  0x68   :  { %v8234_v23 = vld [vmem:[%s15664_s1 + $0xdc0] sm:$0xf]  ;;  %v10214_v28 = vld [vmem:[%s15664_s1 + $0xecc] sm:$0xf0]  ;;  %v8107_v34 = vor.u32 %v10150_v22, %v8106_v19  ;;  %5021 = vmatpush.bf16.msrb.mxu2 %v8379_v18  ;;  %4964 = vmatmul.bf16.vlgmr.msra.gmra.mxu1 %v11254_v30 }
  0x69   :  { %v8362_v27 = vld [vmem:[%s15664_s1 + $0xec0] sm:$0xf]  ;;  %v10246_v32 = vld [vmem:[%s15664_s1 + $0xfcc] sm:$0xf0]  ;;  %v8235_v35 = vor.u32 %v10182_v26, %v8234_v23  ;;  %5034 = vmatpush.bf16.msrb.mxu3 %v8507_v24 }
  0x6a   :  { %v8490_v31 = vld [vmem:[%s15664_s1 + $0xfc0] sm:$0xf]  ;;  %v8363_v36 = vor.u32 %v10214_v28, %v8362_v27  ;;  %v10146_v39 = vld [vmem:[%s15664_s1 + $0xcac] sm:$0xf0]  ;;  %4990 = vmatmul.bf16.vlgmr.msra.gmra.mxu3 %v11262_v33  ;;  %4996 = vmatpush.bf16.msrb.mxu0 %v8107_v34 }
  0x6b   :  { %v8090_v37 = vld [vmem:[%s15664_s1 + $0xca0] sm:$0xf]  ;;  %v8491_v43 = vor.u32 %v10246_v32, %v8490_v31  ;;  %v10178_v45 = vld [vmem:[%s15664_s1 + $0xdac] sm:$0xf0]  ;;  %5009 = vmatpush.bf16.msrb.mxu1 %v8235_v35 }
  0x6c   :  { %v8218_v40 = vld [vmem:[%s15664_s1 + $0xda0] sm:$0xf]  ;;  %v10210_v47 = vld [vmem:[%s15664_s1 + $0xeac] sm:$0xf0]  ;;  %v8091_v50 = vor.u32 %v10146_v39, %v8090_v37  ;;  %5022 = vmatpush.bf16.msrb.mxu2 %v8363_v36 }
  0x6d   :  { %v8346_v46 = vld [vmem:[%s15664_s1 + $0xea0] sm:$0xf]  ;;  %v10242_v49 = vld [vmem:[%s15664_s1 + $0xfac] sm:$0xf0]  ;;  %v8219_v51 = vor.u32 %v10178_v45, %v8218_v40  ;;  %5035 = vmatpush.bf16.msrb.mxu3 %v8491_v43 }
  0x6e   :  { %v8474_v48 = vld [vmem:[%s15664_s1 + $0xfa0] sm:$0xf]  ;;  %v8347_v52 = vor.u32 %v10210_v47, %v8346_v46  ;;  %v10142_v54 = vld [vmem:[%s15664_s1 + $0xc8c] sm:$0xf0]  ;;  %4997 = vmatpush.bf16.msrb.mxu0 %v8091_v50 }
  0x6f   :  { %v8074_v53 = vld [vmem:[%s15664_s1 + $0xc80] sm:$0xf]  ;;  %v8475_v56 = vor.u32 %v10242_v49, %v8474_v48  ;;  %v10174_v57 = vld [vmem:[%s15664_s1 + $0xd8c] sm:$0xf0]  ;;  %5010 = vmatpush.bf16.msrb.mxu1 %v8219_v51 }
  0x70   :  { %v8202_v55 = vld [vmem:[%s15664_s1 + $0xd80] sm:$0xf]  ;;  %v10206_v59 = vld [vmem:[%s15664_s1 + $0xe8c] sm:$0xf0]  ;;  %v8075_v62 = vor.u32 %v10142_v54, %v8074_v53  ;;  %5023 = vmatpush.bf16.msrb.mxu2 %v8347_v52 }
  0x71   :  { %v8330_v58 = vld [vmem:[%s15664_s1 + $0xe80] sm:$0xf]  ;;  %v10238_v61 = vld [vmem:[%s15664_s1 + $0xf8c] sm:$0xf0]  ;;  %v8203_v63 = vor.u32 %v10174_v57, %v8202_v55  ;;  %5036 = vmatpush.bf16.msrb.mxu3 %v8475_v56 }
  0x72   :  { %v8458_v60 = vld [vmem:[%s15664_s1 + $0xf80] sm:$0xf]  ;;  %v8331_v0 = vor.u32 %v10206_v59, %v8330_v58  ;;  %v10138_v2 = vld [vmem:[%s15664_s1 + $0xc6c] sm:$0xf0]  ;;  %4998 = vmatpush.bf16.msrb.mxu0 %v8075_v62  ;;  %v28_v59 = vld [vmem:[%s15665_s0 + $0x38] sm:$0xff] }
  0x73   :  { %v8058_v1 = vld [vmem:[%s15664_s1 + $0xc60] sm:$0xf]  ;;  %v8459_v5 = vor.u32 %v10238_v61, %v8458_v60  ;;  %v10170_v7 = vld [vmem:[%s15664_s1 + $0xd6c] sm:$0xf0]  ;;  %5011 = vmatpush.bf16.msrb.mxu1 %v8203_v63 }
  0x74   :  { %v8186_v3 = vld [vmem:[%s15664_s1 + $0xd60] sm:$0xf]  ;;  %v10202_v9 = vld [vmem:[%s15664_s1 + $0xe6c] sm:$0xf0]  ;;  %v8059_v12 = vor.u32 %v10138_v2, %v8058_v1  ;;  %5024 = vmatpush.bf16.msrb.mxu2 %v8331_v0 }
  0x75   :  { %v8314_v8 = vld [vmem:[%s15664_s1 + $0xe60] sm:$0xf]  ;;  %v10234_v11 = vld [vmem:[%s15664_s1 + $0xf6c] sm:$0xf0]  ;;  %v8187_v13 = vor.u32 %v10170_v7, %v8186_v3  ;;  %5037 = vmatpush.bf16.msrb.mxu3 %v8459_v5 }
  0x76   :  { %v8442_v10 = vld [vmem:[%s15664_s1 + $0xf60] sm:$0xf]  ;;  %v8315_v14 = vor.u32 %v10202_v9, %v8314_v8  ;;  %v10134_v16 = vld [vmem:[%s15664_s1 + $0xc4c] sm:$0xf0]  ;;  %4999 = vmatpush.bf16.msrb.mxu0 %v8059_v12 }
  0x77   :  { %v8042_v15 = vld [vmem:[%s15664_s1 + $0xc40] sm:$0xf]  ;;  %v8443_v18 = vor.u32 %v10234_v11, %v8442_v10  ;;  %v10166_v19 = vld [vmem:[%s15664_s1 + $0xd4c] sm:$0xf0]  ;;  %5012 = vmatpush.bf16.msrb.mxu1 %v8187_v13  ;;  %v855_v10 = vunpack.c.l.b16 %v28_v59 }
  0x78   :  { %v8170_v17 = vld [vmem:[%s15664_s1 + $0xd40] sm:$0xf]  ;;  %v10198_v23 = vld [vmem:[%s15664_s1 + $0xe4c] sm:$0xf0]  ;;  %v8043_v27 = vor.u32 %v10134_v16, %v8042_v15  ;;  %5025 = vmatpush.bf16.msrb.mxu2 %v8315_v14  ;;  %v856_v14 = vunpack.c.h.b16 %v28_v59 }
  0x79   :  { %v8298_v22 = vld [vmem:[%s15664_s1 + $0xe40] sm:$0xf]  ;;  %v10230_v26 = vld [vmem:[%s15664_s1 + $0xf4c] sm:$0xf0]  ;;  %v8171_v28 = vor.u32 %v10166_v19, %v8170_v17  ;;  %5038 = vmatpush.bf16.msrb.mxu3 %v8443_v18 }
  0x7a   :  { %v8426_v24 = vld [vmem:[%s15664_s1 + $0xf40] sm:$0xf]  ;;  %v8299_v31 = vor.u32 %v10198_v23, %v8298_v22  ;;  %v10130_v34 = vld [vmem:[%s15664_s1 + $0xc2c] sm:$0xf0]  ;;  %5000 = vmatpush.bf16.msrb.mxu0 %v8043_v27 }
  0x7b   :  { %v8026_v32 = vld [vmem:[%s15664_s1 + $0xc20] sm:$0xf]  ;;  %v8427_v36 = vor.u32 %v10230_v26, %v8426_v24  ;;  %v10162_v37 = vld [vmem:[%s15664_s1 + $0xd2c] sm:$0xf0]  ;;  %5013 = vmatpush.bf16.msrb.mxu1 %v8171_v28  ;;  %v11462_v28 = vpack.c.b16 %v855_v10, %v855_v10 }
  0x7c   :  { %v8154_v35 = vld [vmem:[%s15664_s1 + $0xd20] sm:$0xf]  ;;  %v10194_v40 = vld [vmem:[%s15664_s1 + $0xe2c] sm:$0xf0]  ;;  %v8027_v47 = vor.u32 %v10130_v34, %v8026_v32  ;;  %5026 = vmatpush.bf16.msrb.mxu2 %v8299_v31 }
  0x7d   :  { %v8282_v39 = vld [vmem:[%s15664_s1 + $0xe20] sm:$0xf]  ;;  %v10226_v45 = vld [vmem:[%s15664_s1 + $0xf2c] sm:$0xf0]  ;;  %v8155_v51 = vor.u32 %v10162_v37, %v8154_v35  ;;  %5039 = vmatpush.bf16.msrb.mxu3 %v8427_v36  ;;  %v11472_v35 = vpack.c.b16 %v856_v14, %v856_v14 }
  0x7e   :  { %v8410_v43 = vld [vmem:[%s15664_s1 + $0xf20] sm:$0xf]  ;;  %v10126_v48 = vld [vmem:[%s15664_s1 + $0xc0c] sm:$0xf0]  ;;  %v8283_v52 = vor.u32 %v10194_v40, %v8282_v39  ;;  %5001 = vmatpush.bf16.msrb.mxu0 %v8027_v47 }
  0x7f   :  { %v8010_v46 = vld [vmem:[%s15664_s1 + $0xc00] sm:$0xf]  ;;  %v10158_v50 = vld [vmem:[%s15664_s1 + $0xd0c] sm:$0xf0]  ;;  %v8411_v56 = vor.u32 %v10226_v45, %v8410_v43  ;;  %5014 = vmatpush.bf16.msrb.mxu1 %v8155_v51 }
  0x80   :  { %v8138_v49 = vld [vmem:[%s15664_s1 + $0xd00] sm:$0xf]  ;;  %v10190_v54 = vld [vmem:[%s15664_s1 + $0xe0c] sm:$0xf0]  ;;  %v8011_v63 = vor.u32 %v10126_v48, %v8010_v46  ;;  %5027 = vmatpush.bf16.msrb.mxu2 %v8283_v52 }
  0x81   :  { %v8266_v53 = vld [vmem:[%s15664_s1 + $0xe00] sm:$0xf]  ;;  %v27_v55 = vld [vmem:[%s15665_s0 + $0x30] sm:$0xff]  ;;  %v8139_v5 = vor.u32 %v10158_v50, %v8138_v49  ;;  %5040 = vmatpush.bf16.msrb.mxu3 %v8411_v56 }
  0x82   :  { %v8394_v57 = vld [vmem:[%s15664_s1 + $0xf00] sm:$0xf]  ;;  %v10222_v58 = vld [vmem:[%s15664_s1 + $0xf0c] sm:$0xf0]  ;;  %v853_v3 = vunpack.c.l.b16 %v27_v55  ;;  %v8267_v7 = vor.u32 %v10190_v54, %v8266_v53  ;;  %v854_v11 = vunpack.c.h.b16 %v27_v55  ;;  %5002 = vmatpush.bf16.msrb.mxu0 %v8011_v63 }
  0x83   :  { %v8634_v60 = vld [vmem:[%s15664_s1 + $0x10e0] sm:$0xf]  ;;  %v10282_v61 = vld [vmem:[%s15664_s1 + $0x10ec] sm:$0xf0]  ;;  %v8395_v12 = vor.u32 %v10222_v58, %v8394_v57  ;;  %5015 = vmatpush.bf16.msrb.mxu1 %v8139_v5 }
  0x84   :  { %v8762_v62 = vld [vmem:[%s15664_s1 + $0x11e0] sm:$0xf]  ;;  %v10314_v0 = vld [vmem:[%s15664_s1 + $0x11ec] sm:$0xf0]  ;;  %v8635_v13 = vor.u32 %v10282_v61, %v8634_v60  ;;  %v11451_v23 = vpack.c.b16 %v853_v3, %v853_v3  ;;  %5028 = vmatpush.bf16.msrb.mxu2 %v8267_v7  ;;  %v11464_v31 = vpack.c.b16 %v854_v11, %v854_v11 }
  0x85   :  { %v8890_v1 = vld [vmem:[%s15664_s1 + $0x12e0] sm:$0xf]  ;;  %v10346_v2 = vld [vmem:[%s15664_s1 + $0x12ec] sm:$0xf0]  ;;  %v8763_v15 = vor.u32 %v10314_v0, %v8762_v62  ;;  %5041 = vmatpush.bf16.msrb.mxu3 %v8395_v12 }
  0x86   :  { %v9018_v8 = vld [vmem:[%s15664_s1 + $0x13e0] sm:$0xf]  ;;  %v10378_v9 = vld [vmem:[%s15664_s1 + $0x13ec] sm:$0xf0]  ;;  %v8891_v16 = vor.u32 %v10346_v2, %v8890_v1  ;;  %5047 = vmatpush.bf16.msra.mxu0 %v8635_v13  ;;  %5016 = vmatmul.bf16.vlgmr.msrb.gmra.mxu1 %v11464_v31 }
  0x87   :  { %v8618_v17 = vld [vmem:[%s15664_s1 + $0x10c0] sm:$0xf]  ;;  %v10278_v18 = vld [vmem:[%s15664_s1 + $0x10cc] sm:$0xf0]  ;;  %v9019_v22 = vor.u32 %v10378_v9, %v9018_v8  ;;  %5060 = vmatpush.bf16.msra.mxu1 %v8763_v15  ;;  %5003 = vmatmul.bf16.vlgmr.msrb.gmra.mxu0 %v11451_v23 }
  0x88   :  { %v8746_v19 = vld [vmem:[%s15664_s1 + $0x11c0] sm:$0xf]  ;;  %v10310_v24 = vld [vmem:[%s15664_s1 + $0x11cc] sm:$0xf0]  ;;  %v8619_v36 = vor.u32 %v10278_v18, %v8618_v17  ;;  %5073 = vmatpush.bf16.msra.mxu2 %v8891_v16  ;;  %5042 = vmatmul.bf16.vlgmr.msrb.gmra.mxu3 %v11472_v35 }
  0x89   :  { %v8874_v26 = vld [vmem:[%s15664_s1 + $0x12c0] sm:$0xf]  ;;  %v10342_v27 = vld [vmem:[%s15664_s1 + $0x12cc] sm:$0xf0]  ;;  %v8747_v37 = vor.u32 %v10310_v24, %v8746_v19  ;;  %5086 = vmatpush.bf16.msra.mxu3 %v9019_v22  ;;  %5029 = vmatmul.bf16.vlgmr.msrb.gmra.mxu2 %v11462_v28 }
  0x8a   :  { %v9002_v32 = vld [vmem:[%s15664_s1 + $0x13c0] sm:$0xf]  ;;  %v10374_v34 = vld [vmem:[%s15664_s1 + $0x13cc] sm:$0xf0]  ;;  %v8875_v39 = vor.u32 %v10342_v27, %v8874_v26  ;;  %5048 = vmatpush.bf16.msra.mxu0 %v8619_v36 }
  0x8b   :  { %v8602_v40 = vld [vmem:[%s15664_s1 + $0x10a0] sm:$0xf]  ;;  %v10274_v43 = vld [vmem:[%s15664_s1 + $0x10ac] sm:$0xf0]  ;;  %v9003_v46 = vor.u32 %v10374_v34, %v9002_v32  ;;  %5061 = vmatpush.bf16.msra.mxu1 %v8747_v37 }
  0x8c   :  { %v8730_v45 = vld [vmem:[%s15664_s1 + $0x11a0] sm:$0xf]  ;;  %v10306_v47 = vld [vmem:[%s15664_s1 + $0x11ac] sm:$0xf0]  ;;  %v8603_v52 = vor.u32 %v10274_v43, %v8602_v40  ;;  %5074 = vmatpush.bf16.msra.mxu2 %v8875_v39 }
  0x8d   :  { %v8858_v48 = vld [vmem:[%s15664_s1 + $0x12a0] sm:$0xf]  ;;  %v10338_v49 = vld [vmem:[%s15664_s1 + $0x12ac] sm:$0xf0]  ;;  %v8731_v53 = vor.u32 %v10306_v47, %v8730_v45  ;;  %5087 = vmatpush.bf16.msra.mxu3 %v9003_v46 }
  0x8e   :  { %v8986_v50 = vld [vmem:[%s15664_s1 + $0x13a0] sm:$0xf]  ;;  %v10370_v51 = vld [vmem:[%s15664_s1 + $0x13ac] sm:$0xf0]  ;;  %v8859_v54 = vor.u32 %v10338_v49, %v8858_v48  ;;  %5049 = vmatpush.bf16.msra.mxu0 %v8603_v52 }
  0x8f   :  { %v8586_v55 = vld [vmem:[%s15664_s1 + $0x1080] sm:$0xf]  ;;  %v10270_v56 = vld [vmem:[%s15664_s1 + $0x108c] sm:$0xf0]  ;;  %v8987_v58 = vor.u32 %v10370_v51, %v8986_v50  ;;  %5062 = vmatpush.bf16.msra.mxu1 %v8731_v53 }
  0x90   :  { %v8714_v57 = vld [vmem:[%s15664_s1 + $0x1180] sm:$0xf]  ;;  %v10302_v59 = vld [vmem:[%s15664_s1 + $0x118c] sm:$0xf0]  ;;  %v8587_v0 = vor.u32 %v10270_v56, %v8586_v55  ;;  %5075 = vmatpush.bf16.msra.mxu2 %v8859_v54 }
  0x91   :  { %v8842_v60 = vld [vmem:[%s15664_s1 + $0x1280] sm:$0xf]  ;;  %v10334_v61 = vld [vmem:[%s15664_s1 + $0x128c] sm:$0xf0]  ;;  %v8715_v1 = vor.u32 %v10302_v59, %v8714_v57  ;;  %5088 = vmatpush.bf16.msra.mxu3 %v8987_v58 }
  0x92   :  { %v8970_v62 = vld [vmem:[%s15664_s1 + $0x1380] sm:$0xf]  ;;  %v10366_v63 = vld [vmem:[%s15664_s1 + $0x138c] sm:$0xf0]  ;;  %v8843_v2 = vor.u32 %v10334_v61, %v8842_v60  ;;  %5050 = vmatpush.bf16.msra.mxu0 %v8587_v0 }
  0x93   :  { %v8570_v3 = vld [vmem:[%s15664_s1 + $0x1060] sm:$0xf]  ;;  %v10266_v5 = vld [vmem:[%s15664_s1 + $0x106c] sm:$0xf0]  ;;  %v8971_v8 = vor.u32 %v10366_v63, %v8970_v62  ;;  %5063 = vmatpush.bf16.msra.mxu1 %v8715_v1  ;;  %v30_v1 = vld [vmem:[%s15665_s0 + $0x48] sm:$0xff] }
  0x94   :  { %v8698_v7 = vld [vmem:[%s15664_s1 + $0x1160] sm:$0xf]  ;;  %v10298_v9 = vld [vmem:[%s15664_s1 + $0x116c] sm:$0xf0]  ;;  %v8571_v14 = vor.u32 %v10266_v5, %v8570_v3  ;;  %5076 = vmatpush.bf16.msra.mxu2 %v8843_v2 }
  0x95   :  { %v8826_v10 = vld [vmem:[%s15664_s1 + $0x1260] sm:$0xf]  ;;  %v10330_v11 = vld [vmem:[%s15664_s1 + $0x126c] sm:$0xf0]  ;;  %v8699_v15 = vor.u32 %v10298_v9, %v8698_v7  ;;  %5089 = vmatpush.bf16.msra.mxu3 %v8971_v8 }
  0x96   :  { %v8954_v12 = vld [vmem:[%s15664_s1 + $0x1360] sm:$0xf]  ;;  %v10362_v13 = vld [vmem:[%s15664_s1 + $0x136c] sm:$0xf0]  ;;  %v8827_v16 = vor.u32 %v10330_v11, %v8826_v10  ;;  %5051 = vmatpush.bf16.msra.mxu0 %v8571_v14 }
  0x97   :  { %v8554_v17 = vld [vmem:[%s15664_s1 + $0x1040] sm:$0xf]  ;;  %v10262_v18 = vld [vmem:[%s15664_s1 + $0x104c] sm:$0xf0]  ;;  %v8955_v22 = vor.u32 %v10362_v13, %v8954_v12  ;;  %5064 = vmatpush.bf16.msra.mxu1 %v8699_v15 }
  0x98   :  { %v8682_v19 = vld [vmem:[%s15664_s1 + $0x1140] sm:$0xf]  ;;  %v10294_v24 = vld [vmem:[%s15664_s1 + $0x114c] sm:$0xf0]  ;;  %v8555_v36 = vor.u32 %v10262_v18, %v8554_v17  ;;  %5077 = vmatpush.bf16.msra.mxu2 %v8827_v16  ;;  %v859_v16 = vunpack.c.l.b16 %v30_v1 }
  0x99   :  { %v8810_v26 = vld [vmem:[%s15664_s1 + $0x1240] sm:$0xf]  ;;  %v10326_v27 = vld [vmem:[%s15664_s1 + $0x124c] sm:$0xf0]  ;;  %v8683_v37 = vor.u32 %v10294_v24, %v8682_v19  ;;  %5090 = vmatpush.bf16.msra.mxu3 %v8955_v22  ;;  %v860_v22 = vunpack.c.h.b16 %v30_v1 }
  0x9a   :  { %v8938_v32 = vld [vmem:[%s15664_s1 + $0x1340] sm:$0xf]  ;;  %v10358_v34 = vld [vmem:[%s15664_s1 + $0x134c] sm:$0xf0]  ;;  %v8811_v39 = vor.u32 %v10326_v27, %v8810_v26  ;;  %5052 = vmatpush.bf16.msra.mxu0 %v8555_v36 }
  0x9b   :  { %v8538_v40 = vld [vmem:[%s15664_s1 + $0x1020] sm:$0xf]  ;;  %v10258_v43 = vld [vmem:[%s15664_s1 + $0x102c] sm:$0xf0]  ;;  %v8939_v46 = vor.u32 %v10358_v34, %v8938_v32  ;;  %5065 = vmatpush.bf16.msra.mxu1 %v8683_v37 }
  0x9c   :  { %v8666_v45 = vld [vmem:[%s15664_s1 + $0x1120] sm:$0xf]  ;;  %v10290_v47 = vld [vmem:[%s15664_s1 + $0x112c] sm:$0xf0]  ;;  %v8539_v53 = vor.u32 %v10258_v43, %v8538_v40  ;;  %5078 = vmatpush.bf16.msra.mxu2 %v8811_v39 }
  0x9d   :  { %v8794_v48 = vld [vmem:[%s15664_s1 + $0x1220] sm:$0xf]  ;;  %v10322_v49 = vld [vmem:[%s15664_s1 + $0x122c] sm:$0xf0]  ;;  %v8667_v57 = vor.u32 %v10290_v47, %v8666_v45  ;;  %5091 = vmatpush.bf16.msra.mxu3 %v8939_v46  ;;  %v11672_v45 = vpack.c.b16 %v859_v16, %v859_v16 }
  0x9e   :  { %v8922_v50 = vld [vmem:[%s15664_s1 + $0x1320] sm:$0xf]  ;;  %v10354_v51 = vld [vmem:[%s15664_s1 + $0x132c] sm:$0xf0]  ;;  %v8795_v58 = vor.u32 %v10322_v49, %v8794_v48  ;;  %5053 = vmatpush.bf16.msra.mxu0 %v8539_v53  ;;  %v11682_v49 = vpack.c.b16 %v860_v22, %v860_v22 }
  0x9f   :  { %v8522_v52 = vld [vmem:[%s15664_s1 + $0x1000] sm:$0xf]  ;;  %v10254_v54 = vld [vmem:[%s15664_s1 + $0x100c] sm:$0xf0]  ;;  %v8923_v62 = vor.u32 %v10354_v51, %v8922_v50  ;;  %5066 = vmatpush.bf16.msra.mxu1 %v8667_v57 }
  0xa0   :  { %v8650_v55 = vld [vmem:[%s15664_s1 + $0x1100] sm:$0xf]  ;;  %v10286_v56 = vld [vmem:[%s15664_s1 + $0x110c] sm:$0xf0]  ;;  %v8523_v7 = vor.u32 %v10254_v54, %v8522_v52  ;;  %5079 = vmatpush.bf16.msra.mxu2 %v8795_v58 }
  0xa1   :  { %v8778_v59 = vld [vmem:[%s15664_s1 + $0x1200] sm:$0xf]  ;;  %v10318_v60 = vld [vmem:[%s15664_s1 + $0x120c] sm:$0xf0]  ;;  %v8651_v12 = vor.u32 %v10286_v56, %v8650_v55  ;;  %5092 = vmatpush.bf16.msra.mxu3 %v8923_v62 }
  0xa2   :  { %v29_v61 = vld [vmem:[%s15665_s0 + $0x40] sm:$0xff]  ;;  %v10350_v0 = vld [vmem:[%s15664_s1 + $0x130c] sm:$0xf0]  ;;  %v8779_v13 = vor.u32 %v10318_v60, %v8778_v59  ;;  %5054 = vmatpush.bf16.msra.mxu0 %v8523_v7 }
  0xa3   :  { %v8906_v63 = vld [vmem:[%s15664_s1 + $0x1300] sm:$0xf]  ;;  %v10410_v3 = vld [vmem:[%s15664_s1 + $0x14ec] sm:$0xf0]  ;;  %v857_v11 = vunpack.c.l.b16 %v29_v61  ;;  %v858_v17 = vunpack.c.h.b16 %v29_v61  ;;  %5067 = vmatpush.bf16.msra.mxu1 %v8651_v12 }
  0xa4   :  { %v9146_v2 = vld [vmem:[%s15664_s1 + $0x14e0] sm:$0xf]  ;;  %v10442_v8 = vld [vmem:[%s15664_s1 + $0x15ec] sm:$0xf0]  ;;  %v8907_v18 = vor.u32 %v10350_v0, %v8906_v63  ;;  %5080 = vmatpush.bf16.msra.mxu2 %v8779_v13 }
  0xa5   :  { %v9274_v5 = vld [vmem:[%s15664_s1 + $0x15e0] sm:$0xf]  ;;  %v10474_v10 = vld [vmem:[%s15664_s1 + $0x16ec] sm:$0xf0]  ;;  %v9147_v19 = vor.u32 %v10410_v3, %v9146_v2  ;;  %v11661_v37 = vpack.c.b16 %v857_v11, %v857_v11  ;;  %v11674_v46 = vpack.c.b16 %v858_v17, %v858_v17 }
  0xa6   :  { %v9402_v9 = vld [vmem:[%s15664_s1 + $0x16e0] sm:$0xf]  ;;  %v10506_v15 = vld [vmem:[%s15664_s1 + $0x17ec] sm:$0xf0]  ;;  %v9275_v24 = vor.u32 %v10442_v8, %v9274_v5  ;;  %5093 = vmatpush.bf16.msra.mxu3 %v8907_v18 }
  0xa7   :  { %v9530_v14 = vld [vmem:[%s15664_s1 + $0x17e0] sm:$0xf]  ;;  %v9403_v26 = vor.u32 %v10474_v10, %v9402_v9  ;;  %v10406_v32 = vld [vmem:[%s15664_s1 + $0x14cc] sm:$0xf0]  ;;  %5099 = vmatpush.bf16.msrb.mxu0 %v9147_v19  ;;  %5081 = vmatmul.bf16.vlgmr.msra.gmra.mxu2 %v11672_v45 }
  0xa8   :  { %v9130_v27 = vld [vmem:[%s15664_s1 + $0x14c0] sm:$0xf]  ;;  %v9531_v36 = vor.u32 %v10506_v15, %v9530_v14  ;;  %v10438_v39 = vld [vmem:[%s15664_s1 + $0x15cc] sm:$0xf0]  ;;  %5112 = vmatpush.bf16.msrb.mxu1 %v9275_v24  ;;  %5055 = vmatmul.bf16.vlgmr.msra.gmra.mxu0 %v11661_v37 }
  0xa9   :  { %v9258_v34 = vld [vmem:[%s15664_s1 + $0x15c0] sm:$0xf]  ;;  %v10470_v43 = vld [vmem:[%s15664_s1 + $0x16cc] sm:$0xf0]  ;;  %v9131_v50 = vor.u32 %v10406_v32, %v9130_v27  ;;  %5125 = vmatpush.bf16.msrb.mxu2 %v9403_v26  ;;  %5068 = vmatmul.bf16.vlgmr.msra.gmra.mxu1 %v11674_v46 }
  0xaa   :  { %v9386_v40 = vld [vmem:[%s15664_s1 + $0x16c0] sm:$0xf]  ;;  %v10502_v48 = vld [vmem:[%s15664_s1 + $0x17cc] sm:$0xf0]  ;;  %v9259_v51 = vor.u32 %v10438_v39, %v9258_v34  ;;  %5138 = vmatpush.bf16.msrb.mxu3 %v9531_v36 }
  0xab   :  { %v9514_v47 = vld [vmem:[%s15664_s1 + $0x17c0] sm:$0xf]  ;;  %v9387_v52 = vor.u32 %v10470_v43, %v9386_v40  ;;  %v10402_v54 = vld [vmem:[%s15664_s1 + $0x14ac] sm:$0xf0]  ;;  %5094 = vmatmul.bf16.vlgmr.msra.gmra.mxu3 %v11682_v49  ;;  %5100 = vmatpush.bf16.msrb.mxu0 %v9131_v50 }
  0xac   :  { %v9114_v53 = vld [vmem:[%s15664_s1 + $0x14a0] sm:$0xf]  ;;  %v9515_v56 = vor.u32 %v10502_v48, %v9514_v47  ;;  %v10434_v57 = vld [vmem:[%s15664_s1 + $0x15ac] sm:$0xf0]  ;;  %5113 = vmatpush.bf16.msrb.mxu1 %v9259_v51 }
  0xad   :  { %v9242_v55 = vld [vmem:[%s15664_s1 + $0x15a0] sm:$0xf]  ;;  %v10466_v59 = vld [vmem:[%s15664_s1 + $0x16ac] sm:$0xf0]  ;;  %v9115_v62 = vor.u32 %v10402_v54, %v9114_v53  ;;  %5126 = vmatpush.bf16.msrb.mxu2 %v9387_v52 }
  0xae   :  { %v9370_v58 = vld [vmem:[%s15664_s1 + $0x16a0] sm:$0xf]  ;;  %v10498_v61 = vld [vmem:[%s15664_s1 + $0x17ac] sm:$0xf0]  ;;  %v9243_v63 = vor.u32 %v10434_v57, %v9242_v55  ;;  %5139 = vmatpush.bf16.msrb.mxu3 %v9515_v56 }
  0xaf   :  { %v9498_v60 = vld [vmem:[%s15664_s1 + $0x17a0] sm:$0xf]  ;;  %v9371_v0 = vor.u32 %v10466_v59, %v9370_v58  ;;  %v10398_v2 = vld [vmem:[%s15664_s1 + $0x148c] sm:$0xf0]  ;;  %5101 = vmatpush.bf16.msrb.mxu0 %v9115_v62  ;;  %v4848_v56 = vpop.f32.mrf.mxu0  ;;  %v4861_v59 = vpop.f32.mrf.mxu1 }
  0xb0   :  { %v9098_v1 = vld [vmem:[%s15664_s1 + $0x1480] sm:$0xf]  ;;  %v9499_v5 = vor.u32 %v10498_v61, %v9498_v60  ;;  %v10430_v7 = vld [vmem:[%s15664_s1 + $0x158c] sm:$0xf0]  ;;  %5114 = vmatpush.bf16.msrb.mxu1 %v9243_v63 }
  0xb1   :  { %v9226_v3 = vld [vmem:[%s15664_s1 + $0x1580] sm:$0xf]  ;;  %v10462_v9 = vld [vmem:[%s15664_s1 + $0x168c] sm:$0xf0]  ;;  %v9099_v12 = vor.u32 %v10398_v2, %v9098_v1  ;;  %5127 = vmatpush.bf16.msrb.mxu2 %v9371_v0  ;;  %v4874_v1 = vpop.f32.mrf.mxu2 }
  0xb2   :  { %v9354_v8 = vld [vmem:[%s15664_s1 + $0x1680] sm:$0xf]  ;;  %v10494_v11 = vld [vmem:[%s15664_s1 + $0x178c] sm:$0xf0]  ;;  %v9227_v14 = vor.u32 %v10430_v7, %v9226_v3  ;;  %5140 = vmatpush.bf16.msrb.mxu3 %v9499_v5 }
  0xb3   :  { %v9482_v10 = vld [vmem:[%s15664_s1 + $0x1780] sm:$0xf]  ;;  %v9355_v15 = vor.u32 %v10462_v9, %v9354_v8  ;;  %v10394_v16 = vld [vmem:[%s15664_s1 + $0x146c] sm:$0xf0]  ;;  %5102 = vmatpush.bf16.msrb.mxu0 %v9099_v12  ;;  %v4887_v9 = vpop.f32.mrf.mxu3 }
  0xb4   :  { %v9082_v13 = vld [vmem:[%s15664_s1 + $0x1460] sm:$0xf]  ;;  %v9483_v19 = vor.u32 %v10494_v11, %v9482_v10  ;;  %v10426_v22 = vld [vmem:[%s15664_s1 + $0x156c] sm:$0xf0]  ;;  %5115 = vmatpush.bf16.msrb.mxu1 %v9227_v14 }
  0xb5   :  { %v9210_v17 = vld [vmem:[%s15664_s1 + $0x1560] sm:$0xf]  ;;  %v10458_v26 = vld [vmem:[%s15664_s1 + $0x166c] sm:$0xf0]  ;;  %v9083_v34 = vor.u32 %v10394_v16, %v9082_v13  ;;  %5128 = vmatpush.bf16.msrb.mxu2 %v9355_v15 }
  0xb6   :  { %v818_v18 = vld [vmem:[%s15666_s2] sm:$0xf]  ;;  %v10490_v32 = vld [vmem:[%s15664_s1 + $0x176c] sm:$0xf0]  ;;  %v9211_v39 = vor.u32 %v10426_v22, %v9210_v17  ;;  %5141 = vmatpush.bf16.msrb.mxu3 %v9483_v19 }
  0xb7   :  { %v9338_v24 = vld [vmem:[%s15664_s1 + $0x1660] sm:$0xf]  ;;  %v820_v36 = vperm.slane %v818_v18, 0  ;;  %v10390_v47 = vld [vmem:[%s15664_s1 + $0x144c] sm:$0xf0]  ;;  %5103 = vmatpush.bf16.msrb.mxu0 %v9083_v34 }
  0xb8   :  { %v9466_v27 = vld [vmem:[%s15664_s1 + $0x1760] sm:$0xf]  ;;  %v9339_v40 = vor.u32 %v10458_v26, %v9338_v24  ;;  %v10422_v51 = vld [vmem:[%s15664_s1 + $0x154c] sm:$0xf0]  ;;  %5116 = vmatpush.bf16.msrb.mxu1 %v9211_v39 }
  0xb9   :  { %v9066_v43 = vld [vmem:[%s15664_s1 + $0x1440] sm:$0xf]  ;;  %v9467_v50 = vor.u32 %v10490_v32, %v9466_v27  ;;  %v10454_v53 = vld [vmem:[%s15664_s1 + $0x164c] sm:$0xf0]  ;;  %v4849_v58 = vadd.f32 %v4848_v56, %v820_v36  ;;  %v32_v36 = vld [vmem:[%s15665_s0 + $0x58] sm:$0xff] }
  0xba   :  { %v9194_v48 = vld [vmem:[%s15664_s1 + $0x1540] sm:$0xf]  ;;  %v10486_v55 = vld [vmem:[%s15664_s1 + $0x174c] sm:$0xf0]  ;;  %v9067_v57 = vor.u32 %v10390_v47, %v9066_v43  ;;  %5129 = vmatpush.bf16.msrb.mxu2 %v9339_v40  ;;  %v9768_v47 = vld [vmem:[%s15664_s1 + $0xe4] sm:$0xf] }
  0xbb   :  { %v9322_v52 = vld [vmem:[%s15664_s1 + $0x1640] sm:$0xf]  ;;  %v9195_v60 = vor.u32 %v10422_v51, %v9194_v48  ;;  %v10386_v63 = vld [vmem:[%s15664_s1 + $0x142c] sm:$0xf0]  ;;  %5142 = vmatpush.bf16.msrb.mxu3 %v9467_v50  ;;  %v4862_v8 = vadd.f32 %v4861_v59, %v4849_v58  ;;  %v4850_v48 = vpop.f32.mrf.mxu0  ;;  %v6588_v51 = vld [vmem:[%s15664_s1 + $0xf0] sm:$0xf0] }
  0xbc   :  { %v9450_v54 = vld [vmem:[%s15664_s1 + $0x1740] sm:$0xf]  ;;  %v9323_v61 = vor.u32 %v10454_v53, %v9322_v52  ;;  %v10418_v3 = vld [vmem:[%s15664_s1 + $0x152c] sm:$0xf0]  ;;  %5104 = vmatpush.bf16.msrb.mxu0 %v9067_v57  ;;  %v9800_v52 = vld [vmem:[%s15664_s1 + $0x1e4] sm:$0xf] }
  0xbd   :  { %v9050_v62 = vld [vmem:[%s15664_s1 + $0x1420] sm:$0xf]  ;;  %v9451_v2 = vor.u32 %v10486_v55, %v9450_v54  ;;  %v10450_v7 = vld [vmem:[%s15664_s1 + $0x162c] sm:$0xf0]  ;;  %v4875_v17 = vadd.f32 %v4874_v1, %v4862_v8  ;;  %5117 = vmatpush.bf16.msrb.mxu1 %v9195_v60  ;;  %v6716_v53 = vld [vmem:[%s15664_s1 + $0x1f0] sm:$0xf0]  ;;  %v4863_v55 = vpop.f32.mrf.mxu1  ;;  %v863_v60 = vunpack.c.l.b16 %v32_v36  ;;  %v864_v1 = vunpack.c.h.b16 %v32_v36 }
  0xbe   :  { %v9178_v0 = vld [vmem:[%s15664_s1 + $0x1520] sm:$0xf]  ;;  %v10482_v11 = vld [vmem:[%s15664_s1 + $0x172c] sm:$0xf0]  ;;  %v9051_v13 = vor.u32 %v10386_v63, %v9050_v62  ;;  %5130 = vmatpush.bf16.msrb.mxu2 %v9323_v61  ;;  %v9832_v58 = vld [vmem:[%s15664_s1 + $0x2e4] sm:$0xf]  ;;  %v4876_v62 = vpop.f32.mrf.mxu2 }
  0xbf   :  { %v9306_v5 = vld [vmem:[%s15664_s1 + $0x1620] sm:$0xf]  ;;  %v10382_v14 = vld [vmem:[%s15664_s1 + $0x140c] sm:$0xf0]  ;;  %v9179_v18 = vor.u32 %v10418_v3, %v9178_v0  ;;  %5143 = vmatpush.bf16.msrb.mxu3 %v9451_v2  ;;  %v11841_v39 = vadd.f32 %v4887_v9, %v4875_v17  ;;  %v6844_v59 = vld [vmem:[%s15664_s1 + $0x2f0] sm:$0xf0]  ;;  %v4889_v2 = vpop.f32.mrf.mxu3  ;;  %v6591_v3 = vor.u32 %v9768_v47, %v6588_v51 }
  0xc0   :  { %v9434_v10 = vld [vmem:[%s15664_s1 + $0x1720] sm:$0xf]  ;;  %v10414_v16 = vld [vmem:[%s15664_s1 + $0x150c] sm:$0xf0]  ;;  %v9307_v19 = vor.u32 %v10450_v7, %v9306_v5  ;;  %5105 = vmatpush.bf16.msrb.mxu0 %v9051_v13  ;;  %v6719_v5 = vor.u32 %v9800_v52, %v6716_v53  ;;  %v9764_v9 = vld [vmem:[%s15664_s1 + $0xc4] sm:$0xf] }
  0xc1   :  { %v9034_v12 = vld [vmem:[%s15664_s1 + $0x1400] sm:$0xf]  ;;  %v10446_v24 = vld [vmem:[%s15664_s1 + $0x160c] sm:$0xf0]  ;;  %v9435_v27 = vor.u32 %v10482_v11, %v9434_v10  ;;  %5118 = vmatpush.bf16.msrb.mxu1 %v9179_v18  ;;  %v6847_v10 = vor.u32 %v9832_v58, %v6844_v59  ;;  %v9796_v13 = vld [vmem:[%s15664_s1 + $0x1c4] sm:$0xf] }
  0xc2   :  { %v9162_v15 = vld [vmem:[%s15664_s1 + $0x1500] sm:$0xf]  ;;  %v31_v26 = vld [vmem:[%s15665_s0 + $0x50] sm:$0xff]  ;;  %v9035_v50 = vor.u32 %v10382_v14, %v9034_v12  ;;  %5131 = vmatpush.bf16.msrb.mxu2 %v9307_v19  ;;  %v9828_v17 = vld [vmem:[%s15664_s1 + $0x2c4] sm:$0xf]  ;;  %v11897_v19 = vpack.c.b16 %v864_v1, %v864_v1 }
  0xc3   :  { %v9290_v22 = vld [vmem:[%s15664_s1 + $0x1600] sm:$0xf]  ;;  %v10478_v34 = vld [vmem:[%s15664_s1 + $0x170c] sm:$0xf0]  ;;  %v861_v54 = vunpack.c.l.b16 %v31_v26  ;;  %v9163_v56 = vor.u32 %v10414_v16, %v9162_v15  ;;  %v862_v61 = vunpack.c.h.b16 %v31_v26  ;;  %5144 = vmatpush.bf16.msrb.mxu3 %v9435_v27  ;;  %v6572_v12 = vld [vmem:[%s15664_s1 + $0xd0] sm:$0xf0]  ;;  %v11887_v15 = vpack.c.b16 %v863_v60, %v863_v60  ;;  %v4900_v2 = vpop.f32.mrf.mxu0 }
  0xc4   :  { %v9418_v32 = vld [vmem:[%s15664_s1 + $0x1700] sm:$0xf]  ;;  %v10522_v43 = vld [vmem:[%s15664_s1 + $0x186c] sm:$0xf0]  ;;  %v9291_v57 = vor.u32 %v10446_v24, %v9290_v22  ;;  %5106 = vmatpush.bf16.msrb.mxu0 %v9035_v50  ;;  %v6700_v14 = vld [vmem:[%s15664_s1 + $0x1d0] sm:$0xf0]  ;;  %v6575_v24 = vor.u32 %v9764_v9, %v6572_v12 }
  0xc5   :  { %v9594_v40 = vld [vmem:[%s15664_s1 + $0x1860] sm:$0xf]  ;;  %v9419_v63 = vor.u32 %v10478_v34, %v9418_v32  ;;  %v10518_v8 = vld [vmem:[%s15664_s1 + $0x184c] sm:$0xf0]  ;;  %v11876_v11 = vpack.c.b16 %v861_v54, %v861_v54  ;;  %5119 = vmatpush.bf16.msrb.mxu1 %v9163_v56  ;;  %v11889_v16 = vpack.c.b16 %v862_v61, %v862_v61  ;;  %v6828_v18 = vld [vmem:[%s15664_s1 + $0x2d0] sm:$0xf0]  ;;  %v6703_v26 = vor.u32 %v9796_v13, %v6700_v14  ;;  %v4913_v12 = vpop.f32.mrf.mxu1 }
  0xc6   :  { %v9595_v0 = vor.u32 %v10522_v43, %v9594_v40  ;;  %v9578_v7 = vld [vmem:[%s15664_s1 + $0x1840] sm:$0xf]  ;;  %5132 = vmatpush.bf16.msrb.mxu2 %v9291_v57  ;;  %v10514_v32 = vld [vmem:[%s15664_s1 + $0x182c] sm:$0xf0]  ;;  %v9760_v34 = vld [vmem:[%s15664_s1 + $0xa4] sm:$0xf]  ;;  %v6831_v36 = vor.u32 %v9828_v17, %v6828_v18 }
  0xc7   :  { %5145 = vmatpush.bf16.msrb.mxu3 %v9419_v63  ;;  %v9579_v22 = vor.u32 %v10518_v8, %v9578_v7  ;;  %v9562_v27 = vld [vmem:[%s15664_s1 + $0x1820] sm:$0xf]  ;;  %5107 = vmatmul.bf16.vlgmr.msrb.gmra.mxu0 %v11876_v11  ;;  %v6556_v40 = vld [vmem:[%s15664_s1 + $0xb0] sm:$0xf0]  ;;  %v9792_v43 = vld [vmem:[%s15664_s1 + $0x1a4] sm:$0xf] }
  0xc8   :  { %5155 = vmatpush.bf16.msra.mxu0 %v9595_v0  ;;  %v6684_v47 = vld [vmem:[%s15664_s1 + $0x1b0] sm:$0xf0]  ;;  %5120 = vmatmul.bf16.vlgmr.msrb.gmra.mxu1 %v11889_v16  ;;  %v9824_v48 = vld [vmem:[%s15664_s1 + $0x2a4] sm:$0xf]  ;;  %v9563_v51 = vor.u32 %v10514_v32, %v9562_v27  ;;  %v9546_v52 = vld [vmem:[%s15664_s1 + $0x1800] sm:$0xf]  ;;  %v6559_v53 = vor.u32 %v9760_v34, %v6556_v40 }
  0xc9   :  { %5164 = vmatpush.bf16.msra.mxu1 %v6591_v3  ;;  %5133 = vmatmul.bf16.vlgmr.msrb.gmra.mxu2 %v11887_v15  ;;  %v6812_v50 = vld [vmem:[%s15664_s1 + $0x2b0] sm:$0xf0]  ;;  %v6687_v54 = vor.u32 %v9792_v43, %v6684_v47  ;;  %v10510_v55 = vld [vmem:[%s15664_s1 + $0x180c] sm:$0xf0]  ;;  %v9756_v56 = vld [vmem:[%s15664_s1 + $0x84] sm:$0xf]  ;;  %v4926_v47 = vpop.f32.mrf.mxu2 }
  0xca   :  { %5177 = vmatpush.bf16.msra.mxu2 %v6719_v5  ;;  %5146 = vmatmul.bf16.vlgmr.msrb.gmra.mxu3 %v11897_v19  ;;  %v6540_v57 = vld [vmem:[%s15664_s1 + $0x90] sm:$0xf0]  ;;  %v6815_v58 = vor.u32 %v9824_v48, %v6812_v50  ;;  %v9788_v59 = vld [vmem:[%s15664_s1 + $0x184] sm:$0xf]  ;;  %v9547_v1 = vor.u32 %v10510_v55, %v9546_v52  ;;  %v33_v3 = vld [vmem:[%s15665_s0 + $0x60] sm:$0xf] }
  0xcb   :  { %5190 = vmatpush.bf16.msra.mxu3 %v6847_v10  ;;  %v6668_v60 = vld [vmem:[%s15664_s1 + $0x190] sm:$0xf0]  ;;  %v9820_v61 = vld [vmem:[%s15664_s1 + $0x284] sm:$0xf]  ;;  %v6543_v5 = vor.u32 %v9756_v56, %v6540_v57  ;;  %v4901_v10 = vadd.f32 %v4900_v2, %v11841_v39  ;;  %v865_v27 = vunpack.c.l.b16 %v33_v3 }
  0xcc   :  { %5156 = vmatpush.bf16.msra.mxu0 %v9579_v22  ;;  %v6796_v62 = vld [vmem:[%s15664_s1 + $0x290] sm:$0xf0]  ;;  %v9864_v63 = vld [vmem:[%s15664_s1 + $0x3e4] sm:$0xf]  ;;  %v6671_v7 = vor.u32 %v9788_v59, %v6668_v60  ;;  %v4939_v55 = vpop.f32.mrf.mxu3 }
  0xcd   :  { %5165 = vmatpush.bf16.msra.mxu1 %v6575_v24  ;;  %v6972_v0 = vld [vmem:[%s15664_s1 + $0x3f0] sm:$0xf0]  ;;  %v9752_v8 = vld [vmem:[%s15664_s1 + $0x64] sm:$0xf]  ;;  %v6799_v13 = vor.u32 %v9820_v61, %v6796_v62  ;;  %v4914_v32 = vadd.f32 %v4913_v12, %v4901_v10  ;;  %v12000_v56 = vpack.c.b16 %v865_v27, %v865_v27  ;;  %v4902_v61 = vpop.f32.mrf.mxu0  ;;  %v4915_v2 = vpop.f32.mrf.mxu1 }
  0xce   :  { %5178 = vmatpush.bf16.msra.mxu2 %v6703_v26  ;;  %v6524_v9 = vld [vmem:[%s15664_s1 + $0x70] sm:$0xf0]  ;;  %v6975_v14 = vor.u32 %v9864_v63, %v6972_v0  ;;  %v9784_v17 = vld [vmem:[%s15664_s1 + $0x164] sm:$0xf] }
  0xcf   :  { %5191 = vmatpush.bf16.msra.mxu3 %v6831_v36  ;;  %v6652_v18 = vld [vmem:[%s15664_s1 + $0x170] sm:$0xf0]  ;;  %v9816_v22 = vld [vmem:[%s15664_s1 + $0x264] sm:$0xf]  ;;  %v6527_v34 = vor.u32 %v9752_v8, %v6524_v9 }
  0xd0   :  { %5157 = vmatpush.bf16.msra.mxu0 %v9563_v51  ;;  %v6780_v39 = vld [vmem:[%s15664_s1 + $0x270] sm:$0xf0]  ;;  %v9860_v24 = vld [vmem:[%s15664_s1 + $0x3c4] sm:$0xf]  ;;  %v6655_v36 = vor.u32 %v9784_v17, %v6652_v18 }
  0xd1   :  { %5166 = vmatpush.bf16.msra.mxu1 %v6559_v53  ;;  %v6956_v26 = vld [vmem:[%s15664_s1 + $0x3d0] sm:$0xf0]  ;;  %v9748_v40 = vld [vmem:[%s15664_s1 + $0x44] sm:$0xf]  ;;  %v6783_v48 = vor.u32 %v9816_v22, %v6780_v39 }
  0xd2   :  { %5179 = vmatpush.bf16.msra.mxu2 %v6687_v54  ;;  %v6508_v43 = vld [vmem:[%s15664_s1 + $0x50] sm:$0xf0]  ;;  %v6959_v50 = vor.u32 %v9860_v24, %v6956_v26  ;;  %v9780_v51 = vld [vmem:[%s15664_s1 + $0x144] sm:$0xf]  ;;  %v4927_v54 = vadd.f32 %v4926_v47, %v4914_v32  ;;  %v4928_v24 = vpop.f32.mrf.mxu2 }
  0xd3   :  { %5192 = vmatpush.bf16.msra.mxu3 %v6815_v58  ;;  %v6636_v52 = vld [vmem:[%s15664_s1 + $0x150] sm:$0xf0]  ;;  %v9812_v53 = vld [vmem:[%s15664_s1 + $0x244] sm:$0xf]  ;;  %v6511_v62 = vor.u32 %v9748_v40, %v6508_v43 }
  0xd4   :  { %5158 = vmatpush.bf16.msra.mxu0 %v9547_v1  ;;  %v6764_v57 = vld [vmem:[%s15664_s1 + $0x250] sm:$0xf0]  ;;  %v9856_v58 = vld [vmem:[%s15664_s1 + $0x3a4] sm:$0xf]  ;;  %v12011_v60 = vadd.f32 %v4939_v55, %v4927_v54  ;;  %v6639_v63 = vor.u32 %v9780_v51, %v6636_v52  ;;  %v4941_v40 = vpop.f32.mrf.mxu3 }
  0xd5   :  { %5167 = vmatpush.bf16.msra.mxu1 %v6543_v5  ;;  %v6940_v59 = vld [vmem:[%s15664_s1 + $0x3b0] sm:$0xf0]  ;;  %v9744_v0 = vld [vmem:[%s15664_s1 + $0x24] sm:$0xf]  ;;  %v6767_v3 = vor.u32 %v9812_v53, %v6764_v57 }
  0xd6   :  { %5180 = vmatpush.bf16.msra.mxu2 %v6671_v7  ;;  %v6492_v1 = vld [vmem:[%s15664_s1 + $0x30] sm:$0xf0]  ;;  %v6943_v5 = vor.u32 %v9856_v58, %v6940_v59  ;;  %v9776_v7 = vld [vmem:[%s15664_s1 + $0x124] sm:$0xf] }
  0xd7   :  { %5193 = vmatpush.bf16.msra.mxu3 %v6799_v13  ;;  %v6620_v8 = vld [vmem:[%s15664_s1 + $0x130] sm:$0xf0]  ;;  %v9808_v9 = vld [vmem:[%s15664_s1 + $0x224] sm:$0xf]  ;;  %9608 = vmatmul.msk.bf16.vlgmr.msra.gmra.mxu0 %vm4835_vm0, %v12000_v56 }
  0xd8   :  { %5203 = vmatpush.bf16.msrb.mxu0 %v6975_v14  ;;  %v6748_v10 = vld [vmem:[%s15664_s1 + $0x230] sm:$0xf0]  ;;  %v9852_v12 = vld [vmem:[%s15664_s1 + $0x384] sm:$0xf]  ;;  %v6495_v14 = vor.u32 %v9744_v0, %v6492_v1  ;;  %v6623_v17 = vor.u32 %v9776_v7, %v6620_v8 }
  0xd9   :  { %5168 = vmatpush.bf16.msra.mxu1 %v6527_v34  ;;  %v6924_v13 = vld [vmem:[%s15664_s1 + $0x390] sm:$0xf0]  ;;  %v9740_v18 = vld [vmem:[%s15664_s1 + $0x4] sm:$0xf]  ;;  %v6751_v26 = vor.u32 %v9808_v9, %v6748_v10 }
  0xda   :  { %5181 = vmatpush.bf16.msra.mxu2 %v6655_v36  ;;  %v6476_v22 = vld [vmem:[%s15664_s1 + $0x10] sm:$0xf0]  ;;  %v9772_v39 = vld [vmem:[%s15664_s1 + $0x104] sm:$0xf]  ;;  %v6927_v27 = vor.u32 %v9852_v12, %v6924_v13 }
  0xdb   :  { %5194 = vmatpush.bf16.msra.mxu3 %v6783_v48  ;;  %v6604_v32 = vld [vmem:[%s15664_s1 + $0x110] sm:$0xf0]  ;;  %v9804_v34 = vld [vmem:[%s15664_s1 + $0x204] sm:$0xf]  ;;  %v6479_v53 = vor.u32 %v9740_v18, %v6476_v22 }
  0xdc   :  { %5204 = vmatpush.bf16.msrb.mxu0 %v6959_v50  ;;  %v6732_v36 = vld [vmem:[%s15664_s1 + $0x210] sm:$0xf0]  ;;  %v9848_v43 = vld [vmem:[%s15664_s1 + $0x364] sm:$0xf]  ;;  %v6607_v54 = vor.u32 %v9772_v39, %v6604_v32 }
  0xdd   :  { %5169 = vmatpush.bf16.msra.mxu1 %v6511_v62  ;;  %v6908_v47 = vld [vmem:[%s15664_s1 + $0x370] sm:$0xf0]  ;;  %v9896_v48 = vld [vmem:[%s15664_s1 + $0x4e4] sm:$0xf]  ;;  %v6735_v58 = vor.u32 %v9804_v34, %v6732_v36 }
  0xde   :  { %5182 = vmatpush.bf16.msra.mxu2 %v6639_v63  ;;  %v7100_v50 = vld [vmem:[%s15664_s1 + $0x4f0] sm:$0xf0]  ;;  %v9928_v51 = vld [vmem:[%s15664_s1 + $0x5e4] sm:$0xf]  ;;  %v6911_v59 = vor.u32 %v9848_v43, %v6908_v47 }
  0xdf   :  { %5195 = vmatpush.bf16.msra.mxu3 %v6767_v3  ;;  %v7228_v52 = vld [vmem:[%s15664_s1 + $0x5f0] sm:$0xf0]  ;;  %v9960_v55 = vld [vmem:[%s15664_s1 + $0x6e4] sm:$0xf]  ;;  %v7103_v61 = vor.u32 %v9896_v48, %v7100_v50 }
  0xe0   :  { %5205 = vmatpush.bf16.msrb.mxu0 %v6943_v5  ;;  %v7356_v57 = vld [vmem:[%s15664_s1 + $0x6f0] sm:$0xf0]  ;;  %v7231_v62 = vor.u32 %v9928_v51, %v7228_v52  ;;  %v9844_v63 = vld [vmem:[%s15664_s1 + $0x344] sm:$0xf] }
  0xe1   :  { %5170 = vmatpush.bf16.msra.mxu1 %v6495_v14  ;;  %v6892_v0 = vld [vmem:[%s15664_s1 + $0x350] sm:$0xf0]  ;;  %v9892_v1 = vld [vmem:[%s15664_s1 + $0x4c4] sm:$0xf]  ;;  %v7359_v2 = vor.u32 %v9960_v55, %v7356_v57 }
  0xe2   :  { %5183 = vmatpush.bf16.msra.mxu2 %v6623_v17  ;;  %v7084_v3 = vld [vmem:[%s15664_s1 + $0x4d0] sm:$0xf0]  ;;  %v9924_v5 = vld [vmem:[%s15664_s1 + $0x5c4] sm:$0xf]  ;;  %v6895_v10 = vor.u32 %v9844_v63, %v6892_v0 }
  0xe3   :  { %5196 = vmatpush.bf16.msra.mxu3 %v6751_v26  ;;  %v7212_v7 = vld [vmem:[%s15664_s1 + $0x5d0] sm:$0xf0]  ;;  %v9956_v8 = vld [vmem:[%s15664_s1 + $0x6c4] sm:$0xf]  ;;  %v7087_v12 = vor.u32 %v9892_v1, %v7084_v3 }
  0xe4   :  { %5206 = vmatpush.bf16.msrb.mxu0 %v6927_v27  ;;  %v7340_v9 = vld [vmem:[%s15664_s1 + $0x6d0] sm:$0xf0]  ;;  %v7215_v13 = vor.u32 %v9924_v5, %v7212_v7  ;;  %v9840_v14 = vld [vmem:[%s15664_s1 + $0x324] sm:$0xf]  ;;  %v4952_v55 = vpop.f32.mrf.mxu0 }
  0xe5   :  { %5171 = vmatpush.bf16.msra.mxu1 %v6479_v53  ;;  %v6876_v17 = vld [vmem:[%s15664_s1 + $0x330] sm:$0xf0]  ;;  %v9888_v18 = vld [vmem:[%s15664_s1 + $0x4a4] sm:$0xf]  ;;  %v7343_v22 = vor.u32 %v9956_v8, %v7340_v9  ;;  %v4965_v63 = vpop.f32.mrf.mxu1 }
  0xe6   :  { %5184 = vmatpush.bf16.msra.mxu2 %v6607_v54  ;;  %v7068_v39 = vld [vmem:[%s15664_s1 + $0x4b0] sm:$0xf0]  ;;  %v9920_v24 = vld [vmem:[%s15664_s1 + $0x5a4] sm:$0xf]  ;;  %v6879_v34 = vor.u32 %v9840_v14, %v6876_v17 }
  0xe7   :  { %5197 = vmatpush.bf16.msra.mxu3 %v6735_v58  ;;  %v7196_v26 = vld [vmem:[%s15664_s1 + $0x5b0] sm:$0xf0]  ;;  %v9952_v27 = vld [vmem:[%s15664_s1 + $0x6a4] sm:$0xf]  ;;  %v7071_v40 = vor.u32 %v9888_v18, %v7068_v39 }
  0xe8   :  { %5207 = vmatpush.bf16.msrb.mxu0 %v6911_v59  ;;  %v7324_v32 = vld [vmem:[%s15664_s1 + $0x6b0] sm:$0xf0]  ;;  %5172 = vmatmul.bf16.vlgmr.msra.gmra.mxu1 %v10889_v20  ;;  %v9836_v36 = vld [vmem:[%s15664_s1 + $0x304] sm:$0xf]  ;;  %v7199_v43 = vor.u32 %v9920_v24, %v7196_v26 }
  0xe9   :  { %5216 = vmatpush.bf16.msrb.mxu1 %v7103_v61  ;;  %5185 = vmatmul.bf16.vlgmr.msra.gmra.mxu2 %v10892_v21  ;;  %v6860_v47 = vld [vmem:[%s15664_s1 + $0x310] sm:$0xf0]  ;;  %v9884_v48 = vld [vmem:[%s15664_s1 + $0x484] sm:$0xf]  ;;  %v7327_v51 = vor.u32 %v9952_v27, %v7324_v32  ;;  %v4953_v61 = vadd.f32 %v4952_v55, %v12011_v60  ;;  %v4978_v26 = vpop.f32.mrf.mxu2 }
  0xea   :  { %5229 = vmatpush.bf16.msrb.mxu2 %v7231_v62  ;;  %5198 = vmatmul.bf16.vlgmr.msra.gmra.mxu3 %v10857_v4  ;;  %v7052_v50 = vld [vmem:[%s15664_s1 + $0x490] sm:$0xf0]  ;;  %v9916_v52 = vld [vmem:[%s15664_s1 + $0x584] sm:$0xf]  ;;  %v6863_v62 = vor.u32 %v9836_v36, %v6860_v47 }
  0xeb   :  { %5242 = vmatpush.bf16.msrb.mxu3 %v7359_v2  ;;  %v7180_v53 = vld [vmem:[%s15664_s1 + $0x590] sm:$0xf0]  ;;  %v9948_v54 = vld [vmem:[%s15664_s1 + $0x684] sm:$0xf]  ;;  %v7055_v0 = vor.u32 %v9884_v48, %v7052_v50  ;;  %v4966_v7 = vadd.f32 %v4965_v63, %v4953_v61 }
  0xec   :  { %5208 = vmatpush.bf16.msrb.mxu0 %v6895_v10  ;;  %v7308_v57 = vld [vmem:[%s15664_s1 + $0x690] sm:$0xf0]  ;;  %v9992_v58 = vld [vmem:[%s15664_s1 + $0x7e4] sm:$0xf]  ;;  %v7183_v1 = vor.u32 %v9916_v52, %v7180_v53 }
  0xed   :  { %5217 = vmatpush.bf16.msrb.mxu1 %v7087_v12  ;;  %v7484_v59 = vld [vmem:[%s15664_s1 + $0x7f0] sm:$0xf0]  ;;  %v9880_v2 = vld [vmem:[%s15664_s1 + $0x464] sm:$0xf]  ;;  %v7311_v5 = vor.u32 %v9948_v54, %v7308_v57  ;;  %v4967_v52 = vpop.f32.mrf.mxu1 }
  0xee   :  { %5230 = vmatpush.bf16.msrb.mxu2 %v7215_v13  ;;  %v7036_v3 = vld [vmem:[%s15664_s1 + $0x470] sm:$0xf0]  ;;  %v7487_v8 = vor.u32 %v9992_v58, %v7484_v59  ;;  %v9912_v60 = vld [vmem:[%s15664_s1 + $0x564] sm:$0xf] }
  0xef   :  { %5243 = vmatpush.bf16.msrb.mxu3 %v7343_v22  ;;  %v7164_v9 = vld [vmem:[%s15664_s1 + $0x570] sm:$0xf0]  ;;  %v9944_v10 = vld [vmem:[%s15664_s1 + $0x664] sm:$0xf]  ;;  %v7039_v17 = vor.u32 %v9880_v2, %v7036_v3 }
  0xf0   :  { %5209 = vmatpush.bf16.msrb.mxu0 %v6879_v34  ;;  %v7292_v12 = vld [vmem:[%s15664_s1 + $0x670] sm:$0xf0]  ;;  %v9988_v13 = vld [vmem:[%s15664_s1 + $0x7c4] sm:$0xf]  ;;  %v7167_v18 = vor.u32 %v9912_v60, %v7164_v9 }
  0xf1   :  { %5218 = vmatpush.bf16.msrb.mxu1 %v7071_v40  ;;  %v7468_v14 = vld [vmem:[%s15664_s1 + $0x7d0] sm:$0xf0]  ;;  %v9876_v22 = vld [vmem:[%s15664_s1 + $0x444] sm:$0xf]  ;;  %v7295_v24 = vor.u32 %v9944_v10, %v7292_v12  ;;  %v4979_v40 = vadd.f32 %v4978_v26, %v4966_v7 }
  0xf2   :  { %5231 = vmatpush.bf16.msrb.mxu2 %v7199_v43  ;;  %v7020_v39 = vld [vmem:[%s15664_s1 + $0x450] sm:$0xf0]  ;;  %v7471_v27 = vor.u32 %v9988_v13, %v7468_v14  ;;  %v9908_v32 = vld [vmem:[%s15664_s1 + $0x544] sm:$0xf]  ;;  %v4991_v43 = vpop.f32.mrf.mxu3 }
  0xf3   :  { %5244 = vmatpush.bf16.msrb.mxu3 %v7327_v51  ;;  %v7148_v34 = vld [vmem:[%s15664_s1 + $0x550] sm:$0xf0]  ;;  %v9940_v36 = vld [vmem:[%s15664_s1 + $0x644] sm:$0xf]  ;;  %v4954_v51 = vpop.f32.mrf.mxu0  ;;  %v12212_v53 = vadd.f32 %v4991_v43, %v4979_v40  ;;  %v7023_v54 = vor.u32 %v9876_v22, %v7020_v39 }
  0xf4   :  { %5210 = vmatpush.bf16.msrb.mxu0 %v6863_v62  ;;  %v7276_v47 = vld [vmem:[%s15664_s1 + $0x650] sm:$0xf0]  ;;  %v9984_v48 = vld [vmem:[%s15664_s1 + $0x7a4] sm:$0xf]  ;;  %v7151_v55 = vor.u32 %v9908_v32, %v7148_v34 }
  0xf5   :  { %5219 = vmatpush.bf16.msrb.mxu1 %v7055_v0  ;;  %v7452_v50 = vld [vmem:[%s15664_s1 + $0x7b0] sm:$0xf0]  ;;  %v9872_v57 = vld [vmem:[%s15664_s1 + $0x424] sm:$0xf]  ;;  %v7279_v59 = vor.u32 %v9940_v36, %v7276_v47 }
  0xf6   :  { %5232 = vmatpush.bf16.msrb.mxu2 %v7183_v1  ;;  %v7004_v58 = vld [vmem:[%s15664_s1 + $0x430] sm:$0xf0]  ;;  %v7455_v61 = vor.u32 %v9984_v48, %v7452_v50  ;;  %v9904_v62 = vld [vmem:[%s15664_s1 + $0x524] sm:$0xf] }
  0xf7   :  { %5245 = vmatpush.bf16.msrb.mxu3 %v7311_v5  ;;  %5211 = vmatmul.bf16.vlgmr.msrb.gmra.mxu0 %v10862_v6  ;;  %v7132_v63 = vld [vmem:[%s15664_s1 + $0x530] sm:$0xf0]  ;;  %v9936_v0 = vld [vmem:[%s15664_s1 + $0x624] sm:$0xf]  ;;  %v7007_v5 = vor.u32 %v9872_v57, %v7004_v58 }
  0xf8   :  { %5255 = vmatpush.bf16.msra.mxu0 %v7487_v8  ;;  %v7260_v1 = vld [vmem:[%s15664_s1 + $0x630] sm:$0xf0]  ;;  %v9980_v2 = vld [vmem:[%s15664_s1 + $0x784] sm:$0xf]  ;;  %v7135_v7 = vor.u32 %v9904_v62, %v7132_v63 }
  0xf9   :  { %5220 = vmatpush.bf16.msrb.mxu1 %v7039_v17  ;;  %v7436_v3 = vld [vmem:[%s15664_s1 + $0x790] sm:$0xf0]  ;;  %v9868_v8 = vld [vmem:[%s15664_s1 + $0x404] sm:$0xf]  ;;  %v7263_v10 = vor.u32 %v9936_v0, %v7260_v1 }
  0xfa   :  { %5233 = vmatpush.bf16.msrb.mxu2 %v7167_v18  ;;  %v6988_v60 = vld [vmem:[%s15664_s1 + $0x410] sm:$0xf0]  ;;  %v9900_v9 = vld [vmem:[%s15664_s1 + $0x504] sm:$0xf]  ;;  %v7439_v12 = vor.u32 %v9980_v2, %v7436_v3  ;;  %v4980_v18 = vpop.f32.mrf.mxu2  ;;  %v4993_v26 = vpop.f32.mrf.mxu3 }
  0xfb   :  { %5246 = vmatpush.bf16.msrb.mxu3 %v7295_v24  ;;  %v7116_v13 = vld [vmem:[%s15664_s1 + $0x510] sm:$0xf0]  ;;  %v9932_v14 = vld [vmem:[%s15664_s1 + $0x604] sm:$0xf]  ;;  %v6991_v36 = vor.u32 %v9868_v8, %v6988_v60 }
  0xfc   :  { %5256 = vmatpush.bf16.msra.mxu0 %v7471_v27  ;;  %v7244_v17 = vld [vmem:[%s15664_s1 + $0x610] sm:$0xf0]  ;;  %v9976_v22 = vld [vmem:[%s15664_s1 + $0x764] sm:$0xf]  ;;  %v7119_v40 = vor.u32 %v9900_v9, %v7116_v13 }
  0xfd   :  { %5221 = vmatpush.bf16.msrb.mxu1 %v7023_v54  ;;  %v7420_v39 = vld [vmem:[%s15664_s1 + $0x770] sm:$0xf0]  ;;  %v10024_v24 = vld [vmem:[%s15664_s1 + $0x8e4] sm:$0xf]  ;;  %v7247_v48 = vor.u32 %v9932_v14, %v7244_v17 }
  0xfe   :  { %5234 = vmatpush.bf16.msrb.mxu2 %v7151_v55  ;;  %v7612_v27 = vld [vmem:[%s15664_s1 + $0x8f0] sm:$0xf0]  ;;  %v10056_v32 = vld [vmem:[%s15664_s1 + $0x9e4] sm:$0xf]  ;;  %v7423_v50 = vor.u32 %v9976_v22, %v7420_v39 }
  0xff   :  { %5247 = vmatpush.bf16.msrb.mxu3 %v7279_v59  ;;  %v7740_v34 = vld [vmem:[%s15664_s1 + $0x9f0] sm:$0xf0]  ;;  %v10088_v43 = vld [vmem:[%s15664_s1 + $0xae4] sm:$0xf]  ;;  %v7615_v51 = vor.u32 %v10024_v24, %v7612_v27 }
 0x100   :  { %5257 = vmatpush.bf16.msra.mxu0 %v7455_v61  ;;  %v7868_v47 = vld [vmem:[%s15664_s1 + $0xaf0] sm:$0xf0]  ;;  %v7743_v52 = vor.u32 %v10056_v32, %v7740_v34  ;;  %v9972_v54 = vld [vmem:[%s15664_s1 + $0x744] sm:$0xf] }
 0x101   :  { %5222 = vmatpush.bf16.msrb.mxu1 %v7007_v5  ;;  %v7404_v55 = vld [vmem:[%s15664_s1 + $0x750] sm:$0xf0]  ;;  %v10020_v57 = vld [vmem:[%s15664_s1 + $0x8c4] sm:$0xf]  ;;  %v7871_v58 = vor.u32 %v10088_v43, %v7868_v47 }
 0x102   :  { %5235 = vmatpush.bf16.msrb.mxu2 %v7135_v7  ;;  %v7596_v59 = vld [vmem:[%s15664_s1 + $0x8d0] sm:$0xf0]  ;;  %v10052_v61 = vld [vmem:[%s15664_s1 + $0x9c4] sm:$0xf]  ;;  %v7407_v1 = vor.u32 %v9972_v54, %v7404_v55 }
 0x103   :  { %5248 = vmatpush.bf16.msrb.mxu3 %v7263_v10  ;;  %v7724_v62 = vld [vmem:[%s15664_s1 + $0x9d0] sm:$0xf0]  ;;  %v10084_v63 = vld [vmem:[%s15664_s1 + $0xac4] sm:$0xf]  ;;  %v7599_v2 = vor.u32 %v10020_v57, %v7596_v59  ;;  %v5017_v54 = vpop.f32.mrf.mxu1 }
 0x104   :  { %5258 = vmatpush.bf16.msra.mxu0 %v7439_v12  ;;  %v7852_v0 = vld [vmem:[%s15664_s1 + $0xad0] sm:$0xf0]  ;;  %v7727_v3 = vor.u32 %v10052_v61, %v7724_v62  ;;  %v9968_v5 = vld [vmem:[%s15664_s1 + $0x724] sm:$0xf]  ;;  %v5004_v43 = vpop.f32.mrf.mxu0 }
 0x105   :  { %5223 = vmatpush.bf16.msrb.mxu1 %v6991_v36  ;;  %v7388_v7 = vld [vmem:[%s15664_s1 + $0x730] sm:$0xf0]  ;;  %v10016_v8 = vld [vmem:[%s15664_s1 + $0x8a4] sm:$0xf]  ;;  %v7855_v60 = vor.u32 %v10084_v63, %v7852_v0 }
 0x106   :  { %5236 = vmatpush.bf16.msrb.mxu2 %v7119_v40  ;;  %v7580_v9 = vld [vmem:[%s15664_s1 + $0x8b0] sm:$0xf0]  ;;  %v10048_v10 = vld [vmem:[%s15664_s1 + $0x9a4] sm:$0xf]  ;;  %v7391_v17 = vor.u32 %v9968_v5, %v7388_v7 }
 0x107   :  { %5249 = vmatpush.bf16.msrb.mxu3 %v7247_v48  ;;  %v7708_v12 = vld [vmem:[%s15664_s1 + $0x9b0] sm:$0xf0]  ;;  %v10080_v13 = vld [vmem:[%s15664_s1 + $0xaa4] sm:$0xf]  ;;  %v7583_v22 = vor.u32 %v10016_v8, %v7580_v9 }
 0x108   :  { %5259 = vmatpush.bf16.msra.mxu0 %v7423_v50  ;;  %v7836_v14 = vld [vmem:[%s15664_s1 + $0xab0] sm:$0xf0]  ;;  %5224 = vmatmul.bf16.vlgmr.msrb.gmra.mxu1 %v11048_v41  ;;  %v9964_v18 = vld [vmem:[%s15664_s1 + $0x704] sm:$0xf]  ;;  %v7711_v39 = vor.u32 %v10048_v10, %v7708_v12 }
 0x109   :  { %5268 = vmatpush.bf16.msra.mxu1 %v7615_v51  ;;  %5237 = vmatmul.bf16.vlgmr.msrb.gmra.mxu2 %v11052_v44  ;;  %v7372_v24 = vld [vmem:[%s15664_s1 + $0x710] sm:$0xf0]  ;;  %v10012_v26 = vld [vmem:[%s15664_s1 + $0x884] sm:$0xf]  ;;  %v7839_v32 = vor.u32 %v10080_v13, %v7836_v14  ;;  %v5005_v51 = vadd.f32 %v5004_v43, %v12212_v53 }
 0x10a   :  { %5281 = vmatpush.bf16.msra.mxu2 %v7743_v52  ;;  %5250 = vmatmul.bf16.vlgmr.msrb.gmra.mxu3 %v11040_v38  ;;  %v7564_v27 = vld [vmem:[%s15664_s1 + $0x890] sm:$0xf0]  ;;  %v10044_v34 = vld [vmem:[%s15664_s1 + $0x984] sm:$0xf]  ;;  %v7375_v52 = vor.u32 %v9964_v18, %v7372_v24 }
 0x10b   :  { %5294 = vmatpush.bf16.msra.mxu3 %v7871_v58  ;;  %v7692_v36 = vld [vmem:[%s15664_s1 + $0x990] sm:$0xf0]  ;;  %v10076_v40 = vld [vmem:[%s15664_s1 + $0xa84] sm:$0xf]  ;;  %v7567_v55 = vor.u32 %v10012_v26, %v7564_v27  ;;  %v5018_v62 = vadd.f32 %v5017_v54, %v5005_v51 }
 0x10c   :  { %5260 = vmatpush.bf16.msra.mxu0 %v7407_v1  ;;  %v7820_v47 = vld [vmem:[%s15664_s1 + $0xa90] sm:$0xf0]  ;;  %v10120_v48 = vld [vmem:[%s15664_s1 + $0xbe4] sm:$0xf]  ;;  %v7695_v57 = vor.u32 %v10044_v34, %v7692_v36  ;;  %v5030_v12 = vpop.f32.mrf.mxu2  ;;  %v5019_v34 = vpop.f32.mrf.mxu1 }
 0x10d   :  { %5269 = vmatpush.bf16.msra.mxu1 %v7599_v2  ;;  %v7996_v50 = vld [vmem:[%s15664_s1 + $0xbf0] sm:$0xf0]  ;;  %v10008_v58 = vld [vmem:[%s15664_s1 + $0x864] sm:$0xf]  ;;  %v7823_v61 = vor.u32 %v10076_v40, %v7820_v47 }
 0x10e   :  { %5282 = vmatpush.bf16.msra.mxu2 %v7727_v3  ;;  %v7548_v59 = vld [vmem:[%s15664_s1 + $0x870] sm:$0xf0]  ;;  %v7999_v63 = vor.u32 %v10120_v48, %v7996_v50  ;;  %v10040_v53 = vld [vmem:[%s15664_s1 + $0x964] sm:$0xf] }
 0x10f   :  { %5295 = vmatpush.bf16.msra.mxu3 %v7855_v60  ;;  %v7676_v0 = vld [vmem:[%s15664_s1 + $0x970] sm:$0xf0]  ;;  %v10072_v1 = vld [vmem:[%s15664_s1 + $0xa64] sm:$0xf]  ;;  %v7551_v7 = vor.u32 %v10008_v58, %v7548_v59 }
 0x110   :  { %5261 = vmatpush.bf16.msra.mxu0 %v7391_v17  ;;  %v7804_v2 = vld [vmem:[%s15664_s1 + $0xa70] sm:$0xf0]  ;;  %v10116_v3 = vld [vmem:[%s15664_s1 + $0xbc4] sm:$0xf]  ;;  %v7679_v8 = vor.u32 %v10040_v53, %v7676_v0 }
 0x111   :  { %5270 = vmatpush.bf16.msra.mxu1 %v7583_v22  ;;  %v7980_v5 = vld [vmem:[%s15664_s1 + $0xbd0] sm:$0xf0]  ;;  %v10004_v60 = vld [vmem:[%s15664_s1 + $0x844] sm:$0xf]  ;;  %v7807_v10 = vor.u32 %v10072_v1, %v7804_v2  ;;  %v5031_v22 = vadd.f32 %v5030_v12, %v5018_v62 }
 0x112   :  { %5283 = vmatpush.bf16.msra.mxu2 %v7711_v39  ;;  %v7532_v9 = vld [vmem:[%s15664_s1 + $0x850] sm:$0xf0]  ;;  %v7983_v13 = vor.u32 %v10116_v3, %v7980_v5  ;;  %v10036_v14 = vld [vmem:[%s15664_s1 + $0x944] sm:$0xf]  ;;  %v5043_v39 = vpop.f32.mrf.mxu3 }
 0x113   :  { %5296 = vmatpush.bf16.msra.mxu3 %v7839_v32  ;;  %v7660_v17 = vld [vmem:[%s15664_s1 + $0x950] sm:$0xf0]  ;;  %v10068_v18 = vld [vmem:[%s15664_s1 + $0xa44] sm:$0xf]  ;;  %v5006_v32 = vpop.f32.mrf.mxu0  ;;  %v12411_v36 = vadd.f32 %v5043_v39, %v5031_v22  ;;  %v7535_v40 = vor.u32 %v10004_v60, %v7532_v9 }
 0x114   :  { %5262 = vmatpush.bf16.msra.mxu0 %v7375_v52  ;;  %v7788_v24 = vld [vmem:[%s15664_s1 + $0xa50] sm:$0xf0]  ;;  %v10112_v26 = vld [vmem:[%s15664_s1 + $0xba4] sm:$0xf]  ;;  %v7663_v43 = vor.u32 %v10036_v14, %v7660_v17 }
 0x115   :  { %5271 = vmatpush.bf16.msra.mxu1 %v7567_v55  ;;  %v7964_v27 = vld [vmem:[%s15664_s1 + $0xbb0] sm:$0xf0]  ;;  %v10000_v47 = vld [vmem:[%s15664_s1 + $0x824] sm:$0xf]  ;;  %v7791_v50 = vor.u32 %v10068_v18, %v7788_v24 }
 0x116   :  { %5284 = vmatpush.bf16.msra.mxu2 %v7695_v57  ;;  %v7516_v48 = vld [vmem:[%s15664_s1 + $0x830] sm:$0xf0]  ;;  %v7967_v51 = vor.u32 %v10112_v26, %v7964_v27  ;;  %v10032_v52 = vld [vmem:[%s15664_s1 + $0x924] sm:$0xf] }
 0x117   :  { %5297 = vmatpush.bf16.msra.mxu3 %v7823_v61  ;;  %5263 = vmatmul.bf16.vlgmr.msra.gmra.mxu0 %v11050_v42  ;;  %v7644_v54 = vld [vmem:[%s15664_s1 + $0x930] sm:$0xf0]  ;;  %v10064_v55 = vld [vmem:[%s15664_s1 + $0xa24] sm:$0xf]  ;;  %v7519_v61 = vor.u32 %v10000_v47, %v7516_v48 }
 0x118   :  { %5307 = vmatpush.bf16.msrb.mxu0 %v7999_v63  ;;  %v7772_v57 = vld [vmem:[%s15664_s1 + $0xa30] sm:$0xf0]  ;;  %v10108_v58 = vld [vmem:[%s15664_s1 + $0xb84] sm:$0xf]  ;;  %v7647_v62 = vor.u32 %v10032_v52, %v7644_v54 }
 0x119   :  { %5272 = vmatpush.bf16.msra.mxu1 %v7551_v7  ;;  %v7948_v59 = vld [vmem:[%s15664_s1 + $0xb90] sm:$0xf0]  ;;  %v9996_v63 = vld [vmem:[%s15664_s1 + $0x804] sm:$0xf]  ;;  %v7775_v1 = vor.u32 %v10064_v55, %v7772_v57 }
 0x11a   :  { %5285 = vmatpush.bf16.msra.mxu2 %v7679_v8  ;;  %v7500_v53 = vld [vmem:[%s15664_s1 + $0x810] sm:$0xf0]  ;;  %v10028_v0 = vld [vmem:[%s15664_s1 + $0x904] sm:$0xf]  ;;  %v7951_v2 = vor.u32 %v10108_v58, %v7948_v59  ;;  %v5032_v8 = vpop.f32.mrf.mxu2  ;;  %v5045_v12 = vpop.f32.mrf.mxu3 }
 0x11b   :  { %5298 = vmatpush.bf16.msra.mxu3 %v7807_v10  ;;  %v7628_v3 = vld [vmem:[%s15664_s1 + $0x910] sm:$0xf0]  ;;  %v10060_v5 = vld [vmem:[%s15664_s1 + $0xa04] sm:$0xf]  ;;  %v7503_v18 = vor.u32 %v9996_v63, %v7500_v53 }
 0x11c   :  { %5308 = vmatpush.bf16.msrb.mxu0 %v7983_v13  ;;  %v7756_v7 = vld [vmem:[%s15664_s1 + $0xa10] sm:$0xf0]  ;;  %v10104_v60 = vld [vmem:[%s15664_s1 + $0xb64] sm:$0xf]  ;;  %v7631_v22 = vor.u32 %v10028_v0, %v7628_v3 }
 0x11d   :  { %5273 = vmatpush.bf16.msra.mxu1 %v7535_v40  ;;  %v7932_v9 = vld [vmem:[%s15664_s1 + $0xb70] sm:$0xf0]  ;;  %v10152_v10 = vld [vmem:[%s15664_s1 + $0xce4] sm:$0xf]  ;;  %v7759_v26 = vor.u32 %v10060_v5, %v7756_v7 }
 0x11e   :  { %5286 = vmatpush.bf16.msra.mxu2 %v7663_v43  ;;  %v8124_v13 = vld [vmem:[%s15664_s1 + $0xcf0] sm:$0xf0]  ;;  %v10184_v14 = vld [vmem:[%s15664_s1 + $0xde4] sm:$0xf]  ;;  %v7935_v27 = vor.u32 %v10104_v60, %v7932_v9 }
 0x11f   :  { %5299 = vmatpush.bf16.msra.mxu3 %v7791_v50  ;;  %v8252_v17 = vld [vmem:[%s15664_s1 + $0xdf0] sm:$0xf0]  ;;  %v10216_v39 = vld [vmem:[%s15664_s1 + $0xee4] sm:$0xf]  ;;  %v8127_v32 = vor.u32 %v10152_v10, %v8124_v13 }
 0x120   :  { %5309 = vmatpush.bf16.msrb.mxu0 %v7967_v51  ;;  %v8380_v24 = vld [vmem:[%s15664_s1 + $0xef0] sm:$0xf0]  ;;  %v8255_v34 = vor.u32 %v10184_v14, %v8252_v17  ;;  %v10100_v40 = vld [vmem:[%s15664_s1 + $0xb44] sm:$0xf] }
 0x121   :  { %5274 = vmatpush.bf16.msra.mxu1 %v7519_v61  ;;  %v7916_v43 = vld [vmem:[%s15664_s1 + $0xb50] sm:$0xf0]  ;;  %v10148_v47 = vld [vmem:[%s15664_s1 + $0xcc4] sm:$0xf]  ;;  %v8383_v48 = vor.u32 %v10216_v39, %v8380_v24 }
 0x122   :  { %5287 = vmatpush.bf16.msra.mxu2 %v7647_v62  ;;  %v8108_v50 = vld [vmem:[%s15664_s1 + $0xcd0] sm:$0xf0]  ;;  %v10180_v51 = vld [vmem:[%s15664_s1 + $0xdc4] sm:$0xf]  ;;  %v7919_v57 = vor.u32 %v10100_v40, %v7916_v43 }
 0x123   :  { %5300 = vmatpush.bf16.msra.mxu3 %v7775_v1  ;;  %v8236_v52 = vld [vmem:[%s15664_s1 + $0xdd0] sm:$0xf0]  ;;  %v10212_v54 = vld [vmem:[%s15664_s1 + $0xec4] sm:$0xf]  ;;  %v8111_v58 = vor.u32 %v10148_v47, %v8108_v50 }
 0x124   :  { %5310 = vmatpush.bf16.msrb.mxu0 %v7951_v2  ;;  %v8364_v55 = vld [vmem:[%s15664_s1 + $0xed0] sm:$0xf0]  ;;  %v8239_v59 = vor.u32 %v10180_v51, %v8236_v52  ;;  %v10096_v61 = vld [vmem:[%s15664_s1 + $0xb24] sm:$0xf] }
 0x125   :  { %5275 = vmatpush.bf16.msra.mxu1 %v7503_v18  ;;  %v7900_v62 = vld [vmem:[%s15664_s1 + $0xb30] sm:$0xf0]  ;;  %v10144_v63 = vld [vmem:[%s15664_s1 + $0xca4] sm:$0xf]  ;;  %v8367_v53 = vor.u32 %v10212_v54, %v8364_v55  ;;  %v5056_v39 = vpop.f32.mrf.mxu0 }
 0x126   :  { %5288 = vmatpush.bf16.msra.mxu2 %v7631_v22  ;;  %v8092_v0 = vld [vmem:[%s15664_s1 + $0xcb0] sm:$0xf0]  ;;  %v10176_v1 = vld [vmem:[%s15664_s1 + $0xda4] sm:$0xf]  ;;  %v7903_v7 = vor.u32 %v10096_v61, %v7900_v62  ;;  %v5069_v40 = vpop.f32.mrf.mxu1 }
 0x127   :  { %5301 = vmatpush.bf16.msra.mxu3 %v7759_v26  ;;  %v8220_v2 = vld [vmem:[%s15664_s1 + $0xdb0] sm:$0xf0]  ;;  %v10208_v3 = vld [vmem:[%s15664_s1 + $0xea4] sm:$0xf]  ;;  %v8095_v60 = vor.u32 %v10144_v63, %v8092_v0 }
 0x128   :  { %5311 = vmatpush.bf16.msrb.mxu0 %v7935_v27  ;;  %5276 = vmatmul.bf16.vlgmr.msra.gmra.mxu1 %v11241_v25  ;;  %v8348_v5 = vld [vmem:[%s15664_s1 + $0xeb0] sm:$0xf0]  ;;  %v10092_v8 = vld [vmem:[%s15664_s1 + $0xb04] sm:$0xf]  ;;  %v8223_v9 = vor.u32 %v10176_v1, %v8220_v2 }
 0x129   :  { %5320 = vmatpush.bf16.msrb.mxu1 %v8127_v32  ;;  %5289 = vmatmul.bf16.vlgmr.msra.gmra.mxu2 %v11254_v30  ;;  %v7884_v10 = vld [vmem:[%s15664_s1 + $0xb10] sm:$0xf0]  ;;  %v10140_v12 = vld [vmem:[%s15664_s1 + $0xc84] sm:$0xf]  ;;  %v8351_v14 = vor.u32 %v10208_v3, %v8348_v5  ;;  %v5057_v32 = vadd.f32 %v5056_v39, %v12411_v36 }
 0x12a   :  { %5333 = vmatpush.bf16.msrb.mxu2 %v8255_v34  ;;  %5302 = vmatmul.bf16.vlgmr.msra.gmra.mxu3 %v11252_v29  ;;  %v8076_v13 = vld [vmem:[%s15664_s1 + $0xc90] sm:$0xf0]  ;;  %v10172_v17 = vld [vmem:[%s15664_s1 + $0xd84] sm:$0xf]  ;;  %v7887_v34 = vor.u32 %v10092_v8, %v7884_v10  ;;  %v5082_v2 = vpop.f32.mrf.mxu2 }
 0x12b   :  { %5346 = vmatpush.bf16.msrb.mxu3 %v8383_v48  ;;  %v8204_v18 = vld [vmem:[%s15664_s1 + $0xd90] sm:$0xf0]  ;;  %v10204_v22 = vld [vmem:[%s15664_s1 + $0xe84] sm:$0xf]  ;;  %v8079_v43 = vor.u32 %v10140_v12, %v8076_v13  ;;  %v5070_v52 = vadd.f32 %v5069_v40, %v5057_v32 }
 0x12c   :  { %5312 = vmatpush.bf16.msrb.mxu0 %v7919_v57  ;;  %v8332_v24 = vld [vmem:[%s15664_s1 + $0xe90] sm:$0xf0]  ;;  %v10248_v26 = vld [vmem:[%s15664_s1 + $0xfe4] sm:$0xf]  ;;  %v8207_v47 = vor.u32 %v10172_v17, %v8204_v18 }
 0x12d   :  { %5321 = vmatpush.bf16.msrb.mxu1 %v8111_v58  ;;  %v8508_v27 = vld [vmem:[%s15664_s1 + $0xff0] sm:$0xf0]  ;;  %v10136_v48 = vld [vmem:[%s15664_s1 + $0xc64] sm:$0xf]  ;;  %v8335_v51 = vor.u32 %v10204_v22, %v8332_v24 }
 0x12e   :  { %5334 = vmatpush.bf16.msrb.mxu2 %v8239_v59  ;;  %v8060_v50 = vld [vmem:[%s15664_s1 + $0xc70] sm:$0xf0]  ;;  %v8511_v54 = vor.u32 %v10248_v26, %v8508_v27  ;;  %v10168_v36 = vld [vmem:[%s15664_s1 + $0xd64] sm:$0xf]  ;;  %v5071_v17 = vpop.f32.mrf.mxu1 }
 0x12f   :  { %5347 = vmatpush.bf16.msrb.mxu3 %v8367_v53  ;;  %v8188_v55 = vld [vmem:[%s15664_s1 + $0xd70] sm:$0xf0]  ;;  %v10200_v57 = vld [vmem:[%s15664_s1 + $0xe64] sm:$0xf]  ;;  %v8063_v62 = vor.u32 %v10136_v48, %v8060_v50 }
 0x130   :  { %5313 = vmatpush.bf16.msrb.mxu0 %v7903_v7  ;;  %v8316_v58 = vld [vmem:[%s15664_s1 + $0xe70] sm:$0xf0]  ;;  %v10244_v59 = vld [vmem:[%s15664_s1 + $0xfc4] sm:$0xf]  ;;  %v8191_v63 = vor.u32 %v10168_v36, %v8188_v55 }
 0x131   :  { %5322 = vmatpush.bf16.msrb.mxu1 %v8095_v60  ;;  %v8492_v61 = vld [vmem:[%s15664_s1 + $0xfd0] sm:$0xf0]  ;;  %v10132_v53 = vld [vmem:[%s15664_s1 + $0xc44] sm:$0xf]  ;;  %v8319_v1 = vor.u32 %v10200_v57, %v8316_v58  ;;  %v5083_v60 = vadd.f32 %v5082_v2, %v5070_v52 }
 0x132   :  { %5335 = vmatpush.bf16.msrb.mxu2 %v8223_v9  ;;  %v8044_v0 = vld [vmem:[%s15664_s1 + $0xc50] sm:$0xf0]  ;;  %v8495_v3 = vor.u32 %v10244_v59, %v8492_v61  ;;  %v10164_v5 = vld [vmem:[%s15664_s1 + $0xd44] sm:$0xf]  ;;  %v5095_v9 = vpop.f32.mrf.mxu3 }
 0x133   :  { %5348 = vmatpush.bf16.msrb.mxu3 %v8351_v14  ;;  %v8172_v7 = vld [vmem:[%s15664_s1 + $0xd50] sm:$0xf0]  ;;  %v10196_v8 = vld [vmem:[%s15664_s1 + $0xe44] sm:$0xf]  ;;  %v5058_v14 = vpop.f32.mrf.mxu0  ;;  %v12610_v18 = vadd.f32 %v5095_v9, %v5083_v60  ;;  %v8047_v22 = vor.u32 %v10132_v53, %v8044_v0 }
 0x134   :  { %5314 = vmatpush.bf16.msrb.mxu0 %v7887_v34  ;;  %v8300_v10 = vld [vmem:[%s15664_s1 + $0xe50] sm:$0xf0]  ;;  %v10240_v12 = vld [vmem:[%s15664_s1 + $0xfa4] sm:$0xf]  ;;  %v8175_v39 = vor.u32 %v10164_v5, %v8172_v7 }
 0x135   :  { %5323 = vmatpush.bf16.msrb.mxu1 %v8079_v43  ;;  %v8476_v13 = vld [vmem:[%s15664_s1 + $0xfb0] sm:$0xf0]  ;;  %v10128_v24 = vld [vmem:[%s15664_s1 + $0xc24] sm:$0xf]  ;;  %v8303_v27 = vor.u32 %v10196_v8, %v8300_v10 }
 0x136   :  { %5336 = vmatpush.bf16.msrb.mxu2 %v8207_v47  ;;  %v8028_v26 = vld [vmem:[%s15664_s1 + $0xc30] sm:$0xf0]  ;;  %v8479_v32 = vor.u32 %v10240_v12, %v8476_v13  ;;  %v10160_v34 = vld [vmem:[%s15664_s1 + $0xd24] sm:$0xf] }
 0x137   :  { %5349 = vmatpush.bf16.msrb.mxu3 %v8335_v51  ;;  %5315 = vmatmul.bf16.vlgmr.msrb.gmra.mxu0 %v11262_v33  ;;  %v8156_v40 = vld [vmem:[%s15664_s1 + $0xd30] sm:$0xf0]  ;;  %v10192_v43 = vld [vmem:[%s15664_s1 + $0xe24] sm:$0xf]  ;;  %v8031_v51 = vor.u32 %v10128_v24, %v8028_v26 }
 0x138   :  { %5359 = vmatpush.bf16.msra.mxu0 %v8511_v54  ;;  %v8284_v47 = vld [vmem:[%s15664_s1 + $0xe30] sm:$0xf0]  ;;  %v10236_v48 = vld [vmem:[%s15664_s1 + $0xf84] sm:$0xf]  ;;  %v8159_v52 = vor.u32 %v10160_v34, %v8156_v40 }
 0x139   :  { %5324 = vmatpush.bf16.msrb.mxu1 %v8063_v62  ;;  %v8460_v50 = vld [vmem:[%s15664_s1 + $0xf90] sm:$0xf0]  ;;  %v10124_v54 = vld [vmem:[%s15664_s1 + $0xc04] sm:$0xf]  ;;  %v8287_v57 = vor.u32 %v10192_v43, %v8284_v47 }
 0x13a   :  { %5337 = vmatpush.bf16.msrb.mxu2 %v8191_v63  ;;  %v8012_v36 = vld [vmem:[%s15664_s1 + $0xc10] sm:$0xf0]  ;;  %v10156_v55 = vld [vmem:[%s15664_s1 + $0xd04] sm:$0xf]  ;;  %v8463_v58 = vor.u32 %v10236_v48, %v8460_v50  ;;  %v5084_v63 = vpop.f32.mrf.mxu2  ;;  %v5097_v2 = vpop.f32.mrf.mxu3 }
 0x13b   :  { %5350 = vmatpush.bf16.msrb.mxu3 %v8319_v1  ;;  %v8140_v59 = vld [vmem:[%s15664_s1 + $0xd10] sm:$0xf0]  ;;  %v10188_v61 = vld [vmem:[%s15664_s1 + $0xe04] sm:$0xf]  ;;  %v8015_v8 = vor.u32 %v10124_v54, %v8012_v36 }
 0x13c   :  { %5360 = vmatpush.bf16.msra.mxu0 %v8495_v3  ;;  %v8268_v62 = vld [vmem:[%s15664_s1 + $0xe10] sm:$0xf0]  ;;  %v10232_v53 = vld [vmem:[%s15664_s1 + $0xf64] sm:$0xf]  ;;  %v8143_v60 = vor.u32 %v10156_v55, %v8140_v59 }
 0x13d   :  { %5325 = vmatpush.bf16.msrb.mxu1 %v8047_v22  ;;  %v8444_v0 = vld [vmem:[%s15664_s1 + $0xf70] sm:$0xf0]  ;;  %v10280_v1 = vld [vmem:[%s15664_s1 + $0x10e4] sm:$0xf]  ;;  %v8271_v12 = vor.u32 %v10188_v61, %v8268_v62 }
 0x13e   :  { %5338 = vmatpush.bf16.msrb.mxu2 %v8175_v39  ;;  %v8636_v3 = vld [vmem:[%s15664_s1 + $0x10f0] sm:$0xf0]  ;;  %v10312_v5 = vld [vmem:[%s15664_s1 + $0x11e4] sm:$0xf]  ;;  %v8447_v13 = vor.u32 %v10232_v53, %v8444_v0 }
 0x13f   :  { %5351 = vmatpush.bf16.msrb.mxu3 %v8303_v27  ;;  %v8764_v7 = vld [vmem:[%s15664_s1 + $0x11f0] sm:$0xf0]  ;;  %v10344_v9 = vld [vmem:[%s15664_s1 + $0x12e4] sm:$0xf]  ;;  %v8639_v14 = vor.u32 %v10280_v1, %v8636_v3 }
 0x140   :  { %5361 = vmatpush.bf16.msra.mxu0 %v8479_v32  ;;  %v8892_v10 = vld [vmem:[%s15664_s1 + $0x12f0] sm:$0xf0]  ;;  %v8767_v17 = vor.u32 %v10312_v5, %v8764_v7  ;;  %v10228_v22 = vld [vmem:[%s15664_s1 + $0xf44] sm:$0xf] }
 0x141   :  { %5326 = vmatpush.bf16.msrb.mxu1 %v8031_v51  ;;  %v8428_v39 = vld [vmem:[%s15664_s1 + $0xf50] sm:$0xf0]  ;;  %v10276_v24 = vld [vmem:[%s15664_s1 + $0x10c4] sm:$0xf]  ;;  %v8895_v26 = vor.u32 %v10344_v9, %v8892_v10 }
 0x142   :  { %5339 = vmatpush.bf16.msrb.mxu2 %v8159_v52  ;;  %v8620_v27 = vld [vmem:[%s15664_s1 + $0x10d0] sm:$0xf0]  ;;  %v10308_v32 = vld [vmem:[%s15664_s1 + $0x11c4] sm:$0xf]  ;;  %v8431_v47 = vor.u32 %v10228_v22, %v8428_v39 }
 0x143   :  { %5352 = vmatpush.bf16.msrb.mxu3 %v8287_v57  ;;  %v8748_v34 = vld [vmem:[%s15664_s1 + $0x11d0] sm:$0xf0]  ;;  %v10340_v40 = vld [vmem:[%s15664_s1 + $0x12c4] sm:$0xf]  ;;  %v8623_v48 = vor.u32 %v10276_v24, %v8620_v27 }
 0x144   :  { %5362 = vmatpush.bf16.msra.mxu0 %v8463_v58  ;;  %v8876_v43 = vld [vmem:[%s15664_s1 + $0x12d0] sm:$0xf0]  ;;  %v8751_v50 = vor.u32 %v10308_v32, %v8748_v34  ;;  %v10224_v51 = vld [vmem:[%s15664_s1 + $0xf24] sm:$0xf]  ;;  %v5108_v9 = vpop.f32.mrf.mxu0 }
 0x145   :  { %5327 = vmatpush.bf16.msrb.mxu1 %v8015_v8  ;;  %v8412_v52 = vld [vmem:[%s15664_s1 + $0xf30] sm:$0xf0]  ;;  %v10272_v54 = vld [vmem:[%s15664_s1 + $0x10a4] sm:$0xf]  ;;  %v8879_v36 = vor.u32 %v10340_v40, %v8876_v43  ;;  %v5121_v22 = vpop.f32.mrf.mxu1 }
 0x146   :  { %5340 = vmatpush.bf16.msrb.mxu2 %v8143_v60  ;;  %v8604_v55 = vld [vmem:[%s15664_s1 + $0x10b0] sm:$0xf0]  ;;  %v10304_v57 = vld [vmem:[%s15664_s1 + $0x11a4] sm:$0xf]  ;;  %v8415_v62 = vor.u32 %v10224_v51, %v8412_v52 }
 0x147   :  { %5353 = vmatpush.bf16.msrb.mxu3 %v8271_v12  ;;  %v8732_v58 = vld [vmem:[%s15664_s1 + $0x11b0] sm:$0xf0]  ;;  %v10336_v59 = vld [vmem:[%s15664_s1 + $0x12a4] sm:$0xf]  ;;  %v8607_v53 = vor.u32 %v10272_v54, %v8604_v55 }
 0x148   :  { %5363 = vmatpush.bf16.msra.mxu0 %v8447_v13  ;;  %5328 = vmatmul.bf16.vlgmr.msrb.gmra.mxu1 %v11451_v23  ;;  %v8860_v61 = vld [vmem:[%s15664_s1 + $0x12b0] sm:$0xf0]  ;;  %v10220_v63 = vld [vmem:[%s15664_s1 + $0xf04] sm:$0xf]  ;;  %v8735_v0 = vor.u32 %v10304_v57, %v8732_v58 }
 0x149   :  { %5372 = vmatpush.bf16.msra.mxu1 %v8639_v14  ;;  %5341 = vmatmul.bf16.vlgmr.msrb.gmra.mxu2 %v11464_v31  ;;  %v8396_v1 = vld [vmem:[%s15664_s1 + $0xf10] sm:$0xf0]  ;;  %v10268_v2 = vld [vmem:[%s15664_s1 + $0x1084] sm:$0xf]  ;;  %v8863_v5 = vor.u32 %v10336_v59, %v8860_v61  ;;  %v5109_v14 = vadd.f32 %v5108_v9, %v12610_v18 }
 0x14a   :  { %5385 = vmatpush.bf16.msra.mxu2 %v8767_v17  ;;  %5354 = vmatmul.bf16.vlgmr.msrb.gmra.mxu3 %v11462_v28  ;;  %v8588_v3 = vld [vmem:[%s15664_s1 + $0x1090] sm:$0xf0]  ;;  %v10300_v7 = vld [vmem:[%s15664_s1 + $0x1184] sm:$0xf]  ;;  %v8399_v17 = vor.u32 %v10220_v63, %v8396_v1 }
 0x14b   :  { %5398 = vmatpush.bf16.msra.mxu3 %v8895_v26  ;;  %v8716_v8 = vld [vmem:[%s15664_s1 + $0x1190] sm:$0xf0]  ;;  %v10332_v60 = vld [vmem:[%s15664_s1 + $0x1284] sm:$0xf]  ;;  %v8591_v39 = vor.u32 %v10268_v2, %v8588_v3  ;;  %v5122_v34 = vadd.f32 %v5121_v22, %v5109_v14 }
 0x14c   :  { %5364 = vmatpush.bf16.msra.mxu0 %v8431_v47  ;;  %v8844_v10 = vld [vmem:[%s15664_s1 + $0x1290] sm:$0xf0]  ;;  %v10376_v12 = vld [vmem:[%s15664_s1 + $0x13e4] sm:$0xf]  ;;  %v8719_v24 = vor.u32 %v10300_v7, %v8716_v8  ;;  %v5134_v58 = vpop.f32.mrf.mxu2 }
 0x14d   :  { %5373 = vmatpush.bf16.msra.mxu1 %v8623_v48  ;;  %v9020_v13 = vld [vmem:[%s15664_s1 + $0x13f0] sm:$0xf0]  ;;  %v10264_v26 = vld [vmem:[%s15664_s1 + $0x1064] sm:$0xf]  ;;  %v8847_v32 = vor.u32 %v10332_v60, %v8844_v10  ;;  %v5147_v1 = vpop.f32.mrf.mxu3  ;;  %v5123_v7 = vpop.f32.mrf.mxu1 }
 0x14e   :  { %5386 = vmatpush.bf16.msra.mxu2 %v8751_v50  ;;  %v8572_v27 = vld [vmem:[%s15664_s1 + $0x1070] sm:$0xf0]  ;;  %v9023_v40 = vor.u32 %v10376_v12, %v9020_v13  ;;  %v10296_v18 = vld [vmem:[%s15664_s1 + $0x1164] sm:$0xf] }
 0x14f   :  { %5399 = vmatpush.bf16.msra.mxu3 %v8879_v36  ;;  %v8700_v43 = vld [vmem:[%s15664_s1 + $0x1170] sm:$0xf0]  ;;  %v10328_v47 = vld [vmem:[%s15664_s1 + $0x1264] sm:$0xf]  ;;  %v8575_v52 = vor.u32 %v10264_v26, %v8572_v27 }
 0x150   :  { %5365 = vmatpush.bf16.msra.mxu0 %v8415_v62  ;;  %v8828_v48 = vld [vmem:[%s15664_s1 + $0x1270] sm:$0xf0]  ;;  %v10372_v50 = vld [vmem:[%s15664_s1 + $0x13c4] sm:$0xf]  ;;  %v8703_v54 = vor.u32 %v10296_v18, %v8700_v43 }
 0x151   :  { %5374 = vmatpush.bf16.msra.mxu1 %v8607_v53  ;;  %v9004_v51 = vld [vmem:[%s15664_s1 + $0x13d0] sm:$0xf0]  ;;  %v10260_v36 = vld [vmem:[%s15664_s1 + $0x1044] sm:$0xf]  ;;  %v8831_v57 = vor.u32 %v10328_v47, %v8828_v48  ;;  %v5135_v53 = vadd.f32 %v5134_v58, %v5122_v34 }
 0x152   :  { %5387 = vmatpush.bf16.msra.mxu2 %v8735_v0  ;;  %v8556_v55 = vld [vmem:[%s15664_s1 + $0x1050] sm:$0xf0]  ;;  %v9007_v59 = vor.u32 %v10372_v50, %v9004_v51  ;;  %v10292_v61 = vld [vmem:[%s15664_s1 + $0x1144] sm:$0xf]  ;;  %v5110_v0 = vpop.f32.mrf.mxu0 }
 0x153   :  { %5400 = vmatpush.bf16.msra.mxu3 %v8863_v5  ;;  %v8684_v62 = vld [vmem:[%s15664_s1 + $0x1150] sm:$0xf0]  ;;  %v10324_v63 = vld [vmem:[%s15664_s1 + $0x1244] sm:$0xf]  ;;  %v5148_v8 = vadd.f32 %v5147_v1, %v5135_v53  ;;  %v8559_v60 = vor.u32 %v10260_v36, %v8556_v55 }
 0x154   :  { %5366 = vmatpush.bf16.msra.mxu0 %v8399_v17  ;;  %v8812_v2 = vld [vmem:[%s15664_s1 + $0x1250] sm:$0xf0]  ;;  %v10368_v3 = vld [vmem:[%s15664_s1 + $0x13a4] sm:$0xf]  ;;  %v8687_v9 = vor.u32 %v10292_v61, %v8684_v62 }
 0x155   :  { %5375 = vmatpush.bf16.msra.mxu1 %v8591_v39  ;;  %v8988_v5 = vld [vmem:[%s15664_s1 + $0x13b0] sm:$0xf0]  ;;  %v10256_v10 = vld [vmem:[%s15664_s1 + $0x1024] sm:$0xf]  ;;  %v8815_v13 = vor.u32 %v10324_v63, %v8812_v2  ;;  %v5149_v58 = vpop.f32.mrf.mxu3 }
 0x156   :  { %5388 = vmatpush.bf16.msra.mxu2 %v8719_v24  ;;  %v8540_v12 = vld [vmem:[%s15664_s1 + $0x1030] sm:$0xf0]  ;;  %v8991_v14 = vor.u32 %v10368_v3, %v8988_v5  ;;  %v10288_v17 = vld [vmem:[%s15664_s1 + $0x1124] sm:$0xf] }
 0x157   :  { %5401 = vmatpush.bf16.msra.mxu3 %v8847_v32  ;;  %5367 = vmatmul.bf16.vlgmr.msra.gmra.mxu0 %v11472_v35  ;;  %v8668_v22 = vld [vmem:[%s15664_s1 + $0x1130] sm:$0xf0]  ;;  %v10320_v39 = vld [vmem:[%s15664_s1 + $0x1224] sm:$0xf]  ;;  %v8543_v32 = vor.u32 %v10256_v10, %v8540_v12 }
 0x158   :  { %5411 = vmatpush.bf16.msrb.mxu0 %v9023_v40  ;;  %v8796_v24 = vld [vmem:[%s15664_s1 + $0x1230] sm:$0xf0]  ;;  %v10364_v26 = vld [vmem:[%s15664_s1 + $0x1384] sm:$0xf]  ;;  %v8671_v34 = vor.u32 %v10288_v17, %v8668_v22 }
 0x159   :  { %5376 = vmatpush.bf16.msra.mxu1 %v8575_v52  ;;  %v8972_v27 = vld [vmem:[%s15664_s1 + $0x1390] sm:$0xf0]  ;;  %v10252_v40 = vld [vmem:[%s15664_s1 + $0x1004] sm:$0xf]  ;;  %v8799_v47 = vor.u32 %v10320_v39, %v8796_v24 }
 0x15a   :  { %5389 = vmatpush.bf16.msra.mxu2 %v8703_v54  ;;  %v8524_v18 = vld [vmem:[%s15664_s1 + $0x1010] sm:$0xf0]  ;;  %v10284_v43 = vld [vmem:[%s15664_s1 + $0x1104] sm:$0xf]  ;;  %v8975_v48 = vor.u32 %v10364_v26, %v8972_v27  ;;  %v5136_v54 = vpop.f32.mrf.mxu2 }
 0x15b   :  { %5402 = vmatpush.bf16.msra.mxu3 %v8831_v57  ;;  %v8652_v50 = vld [vmem:[%s15664_s1 + $0x1110] sm:$0xf0]  ;;  %v10316_v51 = vld [vmem:[%s15664_s1 + $0x1204] sm:$0xf]  ;;  %v8527_v0 = vor.u32 %v10252_v40, %v8524_v18 }
 0x15c   :  { %5412 = vmatpush.bf16.msrb.mxu0 %v9007_v59  ;;  %v8780_v52 = vld [vmem:[%s15664_s1 + $0x1210] sm:$0xf0]  ;;  %v10360_v36 = vld [vmem:[%s15664_s1 + $0x1364] sm:$0xf]  ;;  %v5160_v59 = vpop.f32.mrf.mxu0  ;;  %v8655_v1 = vor.u32 %v10284_v43, %v8652_v50 }
 0x15d   :  { %5377 = vmatpush.bf16.msra.mxu1 %v8559_v60  ;;  %v8956_v55 = vld [vmem:[%s15664_s1 + $0x1370] sm:$0xf0]  ;;  %v10408_v57 = vld [vmem:[%s15664_s1 + $0x14e4] sm:$0xf]  ;;  %v12869_v53 = vadd.f32 %v5160_v59, %v5148_v8  ;;  %v8783_v5 = vor.u32 %v10316_v51, %v8780_v52 }
 0x15e   :  { %5390 = vmatpush.bf16.msra.mxu2 %v8687_v9  ;;  %v9148_v61 = vld [vmem:[%s15664_s1 + $0x14f0] sm:$0xf0]  ;;  %v10440_v62 = vld [vmem:[%s15664_s1 + $0x15e4] sm:$0xf]  ;;  %v8959_v7 = vor.u32 %v10360_v36, %v8956_v55 }
 0x15f   :  { %5403 = vmatpush.bf16.msra.mxu3 %v8815_v13  ;;  %v9276_v63 = vld [vmem:[%s15664_s1 + $0x15f0] sm:$0xf0]  ;;  %v10472_v2 = vld [vmem:[%s15664_s1 + $0x16e4] sm:$0xf]  ;;  %v9151_v60 = vor.u32 %v10408_v57, %v9148_v61  ;;  %vm6139_vm1 = vcmp.gt.f32.partialorder %v12869_v53, 0.0 }
 0x160   :  { %5413 = vmatpush.bf16.msrb.mxu0 %v8991_v14  ;;  %v9404_v3 = vld [vmem:[%s15664_s1 + $0x16f0] sm:$0xf0]  ;;  %v9279_v9 = vor.u32 %v10440_v62, %v9276_v63  ;;  %v10356_v8 = vld [vmem:[%s15664_s1 + $0x1344] sm:$0xf] }
 0x161   :  { %5378 = vmatpush.bf16.msra.mxu1 %v8543_v32  ;;  %v8940_v10 = vld [vmem:[%s15664_s1 + $0x1350] sm:$0xf0]  ;;  %v10404_v12 = vld [vmem:[%s15664_s1 + $0x14c4] sm:$0xf]  ;;  %v9407_v13 = vor.u32 %v10472_v2, %v9404_v3  ;;  %v10557_v3 = vld [vmem:[%s15666_s2] sm:$0xf] }
 0x162   :  { %5391 = vmatpush.bf16.msra.mxu2 %v8671_v34  ;;  %v9132_v14 = vld [vmem:[%s15664_s1 + $0x14d0] sm:$0xf0]  ;;  %v10436_v17 = vld [vmem:[%s15664_s1 + $0x15c4] sm:$0xf]  ;;  %v8943_v26 = vor.u32 %v10356_v8, %v8940_v10 }
 0x163   :  { %5404 = vmatpush.bf16.msra.mxu3 %v8799_v47  ;;  %v9260_v22 = vld [vmem:[%s15664_s1 + $0x15d0] sm:$0xf0]  ;;  %v10468_v39 = vld [vmem:[%s15664_s1 + $0x16c4] sm:$0xf]  ;;  %v9135_v27 = vor.u32 %v10404_v12, %v9132_v14 }
 0x164   :  { %5414 = vmatpush.bf16.msrb.mxu0 %v8975_v48  ;;  %v9388_v24 = vld [vmem:[%s15664_s1 + $0x16d0] sm:$0xf0]  ;;  %v9263_v32 = vor.u32 %v10436_v17, %v9260_v22  ;;  %v10352_v34 = vld [vmem:[%s15664_s1 + $0x1324] sm:$0xf]  ;;  %v5162_v51 = vpop.f32.mrf.mxu0 }
 0x165   :  { %5379 = vmatpush.bf16.msra.mxu1 %v8527_v0  ;;  %v8924_v40 = vld [vmem:[%s15664_s1 + $0x1330] sm:$0xf0]  ;;  %v10400_v18 = vld [vmem:[%s15664_s1 + $0x14a4] sm:$0xf]  ;;  %v9391_v43 = vor.u32 %v10468_v39, %v9388_v24  ;;  %v5173_v10 = vpop.f32.mrf.mxu1 }
 0x166   :  { %5392 = vmatpush.bf16.msra.mxu2 %v8655_v1  ;;  %v9116_v47 = vld [vmem:[%s15664_s1 + $0x14b0] sm:$0xf0]  ;;  %v10432_v48 = vld [vmem:[%s15664_s1 + $0x15a4] sm:$0xf]  ;;  %v8927_v36 = vor.u32 %v10352_v34, %v8924_v40 }
 0x167   :  { %5405 = vmatpush.bf16.msra.mxu3 %v8783_v5  ;;  %v9244_v50 = vld [vmem:[%s15664_s1 + $0x15b0] sm:$0xf0]  ;;  %v10464_v52 = vld [vmem:[%s15664_s1 + $0x16a4] sm:$0xf]  ;;  %v9119_v58 = vor.u32 %v10400_v18, %v9116_v47  ;;  %v821_v5 = vperm.slane %v10557_v3, 1 }
 0x168   :  { %5415 = vmatpush.bf16.msrb.mxu0 %v8959_v7  ;;  %5380 = vmatmul.bf16.vlgmr.msra.gmra.mxu1 %v11661_v37  ;;  %v9372_v54 = vld [vmem:[%s15664_s1 + $0x16b0] sm:$0xf0]  ;;  %v10348_v55 = vld [vmem:[%s15664_s1 + $0x1304] sm:$0xf]  ;;  %v9247_v59 = vor.u32 %v10432_v48, %v9244_v50 }
 0x169   :  { %5424 = vmatpush.bf16.msrb.mxu1 %v9151_v60  ;;  %5393 = vmatmul.bf16.vlgmr.msra.gmra.mxu2 %v11674_v46  ;;  %v8908_v57 = vld [vmem:[%s15664_s1 + $0x1310] sm:$0xf0]  ;;  %v10396_v61 = vld [vmem:[%s15664_s1 + $0x1484] sm:$0xf]  ;;  %v9375_v0 = vor.u32 %v10464_v52, %v9372_v54 }
 0x16a   :  { %5437 = vmatpush.bf16.msrb.mxu2 %v9279_v9  ;;  %5406 = vmatmul.bf16.vlgmr.msra.gmra.mxu3 %v11672_v45  ;;  %v9100_v62 = vld [vmem:[%s15664_s1 + $0x1490] sm:$0xf0]  ;;  %v10428_v63 = vld [vmem:[%s15664_s1 + $0x1584] sm:$0xf]  ;;  %v8911_v8 = vor.u32 %v10348_v55, %v8908_v57 }
 0x16b   :  { %5450 = vmatpush.bf16.msrb.mxu3 %v9407_v13  ;;  %v9228_v1 = vld [vmem:[%s15664_s1 + $0x1590] sm:$0xf0]  ;;  %v10460_v2 = vld [vmem:[%s15664_s1 + $0x1684] sm:$0xf]  ;;  %v9103_v12 = vor.u32 %v10396_v61, %v9100_v62 }
 0x16c   :  { %5416 = vmatpush.bf16.msrb.mxu0 %v8943_v26  ;;  %v9356_v7 = vld [vmem:[%s15664_s1 + $0x1690] sm:$0xf0]  ;;  %v10504_v60 = vld [vmem:[%s15664_s1 + $0x17e4] sm:$0xf]  ;;  %v9231_v13 = vor.u32 %v10428_v63, %v9228_v1  ;;  %v5186_v51 = vpop.f32.mrf.mxu2 }
 0x16d   :  { %5425 = vmatpush.bf16.msrb.mxu1 %v9135_v27  ;;  %v9532_v9 = vld [vmem:[%s15664_s1 + $0x17f0] sm:$0xf0]  ;;  %v10392_v14 = vld [vmem:[%s15664_s1 + $0x1464] sm:$0xf]  ;;  %v9359_v22 = vor.u32 %v10460_v2, %v9356_v7  ;;  %v5175_v1 = vpop.f32.mrf.mxu1 }
 0x16e   :  { %5438 = vmatpush.bf16.msrb.mxu2 %v9263_v32  ;;  %v9084_v17 = vld [vmem:[%s15664_s1 + $0x1470] sm:$0xf0]  ;;  %v9535_v39 = vor.u32 %v10504_v60, %v9532_v9  ;;  %v10424_v24 = vld [vmem:[%s15664_s1 + $0x1564] sm:$0xf]  ;;  %v5174_v32 = vadd.f32 %v5173_v10, %v821_v5 }
 0x16f   :  { %5451 = vmatpush.bf16.msrb.mxu3 %v9391_v43  ;;  %v9212_v26 = vld [vmem:[%s15664_s1 + $0x1570] sm:$0xf0]  ;;  %v10456_v27 = vld [vmem:[%s15664_s1 + $0x1664] sm:$0xf]  ;;  %v9087_v43 = vor.u32 %v10392_v14, %v9084_v17 }
 0x170   :  { %5417 = vmatpush.bf16.msrb.mxu0 %v8927_v36  ;;  %v9340_v34 = vld [vmem:[%s15664_s1 + $0x1670] sm:$0xf0]  ;;  %v10500_v40 = vld [vmem:[%s15664_s1 + $0x17c4] sm:$0xf]  ;;  %v9215_v47 = vor.u32 %v10424_v24, %v9212_v26 }
 0x171   :  { %5426 = vmatpush.bf16.msrb.mxu1 %v9119_v58  ;;  %v9516_v18 = vld [vmem:[%s15664_s1 + $0x17d0] sm:$0xf0]  ;;  %v10388_v48 = vld [vmem:[%s15664_s1 + $0x1444] sm:$0xf]  ;;  %v9343_v52 = vor.u32 %v10456_v27, %v9340_v34  ;;  %v5187_v58 = vadd.f32 %v5186_v51, %v5174_v32 }
 0x172   :  { %5439 = vmatpush.bf16.msrb.mxu2 %v9247_v59  ;;  %v9068_v50 = vld [vmem:[%s15664_s1 + $0x1450] sm:$0xf0]  ;;  %v9519_v54 = vor.u32 %v10500_v40, %v9516_v18  ;;  %v10420_v36 = vld [vmem:[%s15664_s1 + $0x1544] sm:$0xf]  ;;  %v5199_v59 = vpop.f32.mrf.mxu3 }
 0x173   :  { %5452 = vmatpush.bf16.msrb.mxu3 %v9375_v0  ;;  %v9196_v55 = vld [vmem:[%s15664_s1 + $0x1550] sm:$0xf0]  ;;  %v10452_v57 = vld [vmem:[%s15664_s1 + $0x1644] sm:$0xf]  ;;  %v5200_v0 = vadd.f32 %v5199_v59, %v5187_v58  ;;  %v9071_v2 = vor.u32 %v10388_v48, %v9068_v50  ;;  %v9771_v58 = vld [vmem:[%s15664_s1 + $0xf4] sm:$0xf0] }
 0x174   :  { %5418 = vmatpush.bf16.msrb.mxu0 %v8911_v8  ;;  %v9324_v61 = vld [vmem:[%s15664_s1 + $0x1650] sm:$0xf0]  ;;  %v10496_v62 = vld [vmem:[%s15664_s1 + $0x17a4] sm:$0xf]  ;;  %v9199_v3 = vor.u32 %v10420_v36, %v9196_v55  ;;  %v5188_v40 = vpop.f32.mrf.mxu2 }
 0x175   :  { %5427 = vmatpush.bf16.msrb.mxu1 %v9103_v12  ;;  %v9500_v63 = vld [vmem:[%s15664_s1 + $0x17b0] sm:$0xf0]  ;;  %v10384_v5 = vld [vmem:[%s15664_s1 + $0x1424] sm:$0xf]  ;;  %v9327_v60 = vor.u32 %v10452_v57, %v9324_v61  ;;  %v6594_v57 = vld [vmem:[%s15664_s1 + $0xe8] sm:$0xf] }
 0x176   :  { %5440 = vmatpush.bf16.msrb.mxu2 %v9231_v13  ;;  %v9052_v7 = vld [vmem:[%s15664_s1 + $0x1430] sm:$0xf0]  ;;  %v9503_v9 = vor.u32 %v10496_v62, %v9500_v63  ;;  %v10416_v8 = vld [vmem:[%s15664_s1 + $0x1524] sm:$0xf]  ;;  %v6722_v62 = vld [vmem:[%s15664_s1 + $0x1e8] sm:$0xf] }
 0x177   :  { %5453 = vmatpush.bf16.msrb.mxu3 %v9359_v22  ;;  %5419 = vmatmul.bf16.vlgmr.msrb.gmra.mxu0 %v11682_v49  ;;  %v9180_v10 = vld [vmem:[%s15664_s1 + $0x1530] sm:$0xf0]  ;;  %v10448_v12 = vld [vmem:[%s15664_s1 + $0x1624] sm:$0xf]  ;;  %v5212_v22 = vpop.f32.mrf.mxu0  ;;  %v9803_v63 = vld [vmem:[%s15664_s1 + $0x1f4] sm:$0xf0] }
 0x178   :  { %5463 = vmatpush.bf16.msra.mxu0 %v9535_v39  ;;  %v9308_v13 = vld [vmem:[%s15664_s1 + $0x1630] sm:$0xf0]  ;;  %v10492_v14 = vld [vmem:[%s15664_s1 + $0x1784] sm:$0xf]  ;;  %v9055_v39 = vor.u32 %v10384_v5, %v9052_v7  ;;  %v9183_v24 = vor.u32 %v10416_v8, %v9180_v10  ;;  %v13043_v34 = vadd.f32 %v5212_v22, %v5200_v0  ;;  %v6578_v10 = vld [vmem:[%s15664_s1 + $0xc8] sm:$0xf] }
 0x179   :  { %5428 = vmatpush.bf16.msrb.mxu1 %v9087_v43  ;;  %v9484_v17 = vld [vmem:[%s15664_s1 + $0x1790] sm:$0xf0]  ;;  %v10380_v26 = vld [vmem:[%s15664_s1 + $0x1404] sm:$0xf]  ;;  %v9311_v18 = vor.u32 %v10448_v12, %v9308_v13  ;;  %v9767_v12 = vld [vmem:[%s15664_s1 + $0xd4] sm:$0xf0] }
 0x17a   :  { %5441 = vmatpush.bf16.msrb.mxu2 %v9215_v47  ;;  %v9036_v27 = vld [vmem:[%s15664_s1 + $0x1410] sm:$0xf0]  ;;  %v10412_v32 = vld [vmem:[%s15664_s1 + $0x1504] sm:$0xf]  ;;  %v9487_v43 = vor.u32 %v10492_v14, %v9484_v17  ;;  %v5201_v51 = vpop.f32.mrf.mxu3  ;;  %v6706_v14 = vld [vmem:[%s15664_s1 + $0x1c8] sm:$0xf] }
 0x17b   :  { %5454 = vmatpush.bf16.msrb.mxu3 %v9343_v52  ;;  %v9164_v47 = vld [vmem:[%s15664_s1 + $0x1510] sm:$0xf0]  ;;  %v10444_v48 = vld [vmem:[%s15664_s1 + $0x1604] sm:$0xf]  ;;  %v9039_v59 = vor.u32 %v10380_v26, %v9036_v27  ;;  %v9799_v17 = vld [vmem:[%s15664_s1 + $0x1d4] sm:$0xf0] }
 0x17c   :  { %5464 = vmatpush.bf16.msra.mxu0 %v9519_v54  ;;  %v9292_v50 = vld [vmem:[%s15664_s1 + $0x1610] sm:$0xf0]  ;;  %v10488_v52 = vld [vmem:[%s15664_s1 + $0x1764] sm:$0xf]  ;;  %v9167_v61 = vor.u32 %v10412_v32, %v9164_v47  ;;  %v6707_v40 = vor.u32 %v9799_v17, %v6706_v14  ;;  %v9763_v47 = vld [vmem:[%s15664_s1 + $0xb4] sm:$0xf0] }
 0x17d   :  { %5429 = vmatpush.bf16.msrb.mxu1 %v9071_v2  ;;  %v9468_v54 = vld [vmem:[%s15664_s1 + $0x1770] sm:$0xf0]  ;;  %v10520_v36 = vld [vmem:[%s15664_s1 + $0x1864] sm:$0xf]  ;;  %v9295_v0 = vor.u32 %v10444_v48, %v9292_v50  ;;  %v6690_v48 = vld [vmem:[%s15664_s1 + $0x1a8] sm:$0xf] }
 0x17e   :  { %5442 = vmatpush.bf16.msrb.mxu2 %v9199_v3  ;;  %v9596_v55 = vld [vmem:[%s15664_s1 + $0x1870] sm:$0xf0]  ;;  %v9471_v1 = vor.u32 %v10488_v52, %v9468_v54  ;;  %v6595_v3 = vor.u32 %v9771_v58, %v6594_v57  ;;  %v10484_v5 = vld [vmem:[%s15664_s1 + $0x1744] sm:$0xf]  ;;  %v9795_v50 = vld [vmem:[%s15664_s1 + $0x1b4] sm:$0xf0] }
 0x17f   :  { %5455 = vmatpush.bf16.msrb.mxu3 %v9327_v60  ;;  %v9599_v2 = vor.u32 %v10520_v36, %v9596_v55  ;;  %v9452_v7 = vld [vmem:[%s15664_s1 + $0x1750] sm:$0xf0]  ;;  %v10516_v60 = vld [vmem:[%s15664_s1 + $0x1844] sm:$0xf]  ;;  %v5214_v13 = vpop.f32.mrf.mxu0  ;;  %v6530_v14 = vld [vmem:[%s15664_s1 + $0x68] sm:$0xf] }
 0x180   :  { %5465 = vmatpush.bf16.msra.mxu0 %v9503_v9  ;;  %v6723_v9 = vor.u32 %v9803_v63, %v6722_v62  ;;  %v9580_v8 = vld [vmem:[%s15664_s1 + $0x1850] sm:$0xf0]  ;;  %v9455_v22 = vor.u32 %v10484_v5, %v9452_v7  ;;  %v10480_v26 = vld [vmem:[%s15664_s1 + $0x1724] sm:$0xf]  ;;  %v9759_v62 = vld [vmem:[%s15664_s1 + $0x94] sm:$0xf0] }
 0x181   :  { %5430 = vmatpush.bf16.msrb.mxu1 %v9055_v39  ;;  %v9583_v39 = vor.u32 %v10516_v60, %v9580_v8  ;;  %v9436_v27 = vld [vmem:[%s15664_s1 + $0x1730] sm:$0xf0]  ;;  %v10512_v32 = vld [vmem:[%s15664_s1 + $0x1824] sm:$0xf]  ;;  %v6674_v63 = vld [vmem:[%s15664_s1 + $0x188] sm:$0xf] }
 0x182   :  { %5443 = vmatpush.bf16.msrb.mxu2 %v9183_v24  ;;  %v6579_v24 = vor.u32 %v9767_v12, %v6578_v10  ;;  %v9439_v51 = vor.u32 %v10480_v26, %v9436_v27  ;;  %v10476_v52 = vld [vmem:[%s15664_s1 + $0x1704] sm:$0xf]  ;;  %v9420_v55 = vld [vmem:[%s15664_s1 + $0x1710] sm:$0xf0]  ;;  %v6978_v5 = vld [vmem:[%s15664_s1 + $0x3e8] sm:$0xf] }
 0x183   :  { %5456 = vmatpush.bf16.msrb.mxu3 %v9311_v18  ;;  %v9564_v18 = vld [vmem:[%s15664_s1 + $0x1830] sm:$0xf0]  ;;  %v10508_v57 = vld [vmem:[%s15664_s1 + $0x1804] sm:$0xf]  ;;  %v9867_v7 = vld [vmem:[%s15664_s1 + $0x3f4] sm:$0xf0] }
 0x184   :  { %5466 = vmatpush.bf16.msra.mxu0 %v9487_v43  ;;  %v6562_v43 = vld [vmem:[%s15664_s1 + $0xa8] sm:$0xf]  ;;  %v9567_v54 = vor.u32 %v10512_v32, %v9564_v18  ;;  %v9548_v58 = vld [vmem:[%s15664_s1 + $0x1810] sm:$0xf0]  ;;  %v9755_v17 = vld [vmem:[%s15664_s1 + $0x74] sm:$0xf0] }
 0x185   :  { %5431 = vmatpush.bf16.msrb.mxu1 %v9039_v59  ;;  %v6563_v36 = vor.u32 %v9763_v47, %v6562_v43  ;;  %v6691_v59 = vor.u32 %v9795_v50, %v6690_v48  ;;  %v5225_v60 = vpop.f32.mrf.mxu1  ;;  %v9831_v26 = vld [vmem:[%s15664_s1 + $0x2d4] sm:$0xf0]  ;;  %v6962_v27 = vld [vmem:[%s15664_s1 + $0x3c8] sm:$0xf] }
 0x186   :  { %5444 = vmatpush.bf16.msrb.mxu2 %v9167_v61  ;;  %v6546_v61 = vld [vmem:[%s15664_s1 + $0x88] sm:$0xf]  ;;  %v5226_v10 = vadd.f32 %v5225_v60, %v13043_v34  ;;  %v9787_v34 = vld [vmem:[%s15664_s1 + $0x174] sm:$0xf0] }
 0x187   :  { %5457 = vmatpush.bf16.msrb.mxu3 %v9295_v0  ;;  %v9791_v0 = vld [vmem:[%s15664_s1 + $0x194] sm:$0xf0]  ;;  %v6547_v8 = vor.u32 %v9759_v62, %v6546_v61  ;;  %v6514_v48 = vld [vmem:[%s15664_s1 + $0x48] sm:$0xf] }
 0x188   :  { %5467 = vmatpush.bf16.msra.mxu0 %v9471_v1  ;;  %5432 = vmatmul.bf16.vlgmr.msrb.gmra.mxu1 %v11876_v11  ;;  %v6850_v1 = vld [vmem:[%s15664_s1 + $0x2e8] sm:$0xf]  ;;  %v6675_v12 = vor.u32 %v9791_v0, %v6674_v63  ;;  %v9863_v32 = vld [vmem:[%s15664_s1 + $0x3d4] sm:$0xf0] }
 0x189   :  { %5480 = vmatpush.bf16.msra.mxu1 %v9599_v2  ;;  %5445 = vmatmul.bf16.vlgmr.msrb.gmra.mxu2 %v11889_v16  ;;  %v9835_v2 = vld [vmem:[%s15664_s1 + $0x2f4] sm:$0xf0] }
 0x18a   :  { %5489 = vmatpush.bf16.msra.mxu2 %v6595_v3  ;;  %5458 = vmatmul.bf16.vlgmr.msrb.gmra.mxu3 %v11887_v15  ;;  %v9423_v3 = vor.u32 %v10476_v52, %v9420_v55  ;;  %v6851_v13 = vor.u32 %v9835_v2, %v6850_v1  ;;  %v9751_v50 = vld [vmem:[%s15664_s1 + $0x54] sm:$0xf0] }
 0x18b   :  { %5502 = vmatpush.bf16.msra.mxu3 %v6723_v9  ;;  %v9551_v9 = vor.u32 %v10508_v57, %v9548_v58  ;;  %v9783_v55 = vld [vmem:[%s15664_s1 + $0x154] sm:$0xf0]  ;;  %v6818_v57 = vld [vmem:[%s15664_s1 + $0x2a8] sm:$0xf]  ;;  %v6515_v0 = vor.u32 %v9751_v50, %v6514_v48 }
 0x18c   :  { %5468 = vmatpush.bf16.msra.mxu0 %v9455_v22  ;;  %v6658_v22 = vld [vmem:[%s15664_s1 + $0x168] sm:$0xf]  ;;  %v5238_v18 = vpop.f32.mrf.mxu2  ;;  %v9827_v58 = vld [vmem:[%s15664_s1 + $0x2b4] sm:$0xf0] }
 0x18d   :  { %5481 = vmatpush.bf16.msra.mxu1 %v9583_v39  ;;  %v6979_v39 = vor.u32 %v9867_v7, %v6978_v5  ;;  %v6659_v43 = vor.u32 %v9787_v34, %v6658_v22  ;;  %v5239_v52 = vadd.f32 %v5238_v18, %v5226_v10  ;;  %v9859_v61 = vld [vmem:[%s15664_s1 + $0x3b4] sm:$0xf0]  ;;  %v5227_v63 = vpop.f32.mrf.mxu1  ;;  %v6819_v2 = vor.u32 %v9827_v58, %v6818_v57  ;;  %v6626_v7 = vld [vmem:[%s15664_s1 + $0x128] sm:$0xf] }
 0x18e   :  { %5490 = vmatpush.bf16.msra.mxu2 %v6579_v24  ;;  %v6834_v24 = vld [vmem:[%s15664_s1 + $0x2c8] sm:$0xf]  ;;  %v9747_v5 = vld [vmem:[%s15664_s1 + $0x34] sm:$0xf0] }
 0x18f   :  { %5503 = vmatpush.bf16.msra.mxu3 %v6707_v40  ;;  %v6531_v40 = vor.u32 %v9755_v17, %v6530_v14  ;;  %v6835_v47 = vor.u32 %v9831_v26, %v6834_v24  ;;  %v9823_v10 = vld [vmem:[%s15664_s1 + $0x294] sm:$0xf0]  ;;  %v6914_v50 = vld [vmem:[%s15664_s1 + $0x368] sm:$0xf] }
 0x190   :  { %5469 = vmatpush.bf16.msra.mxu0 %v9439_v51  ;;  %v6642_v51 = vld [vmem:[%s15664_s1 + $0x148] sm:$0xf]  ;;  %v9855_v14 = vld [vmem:[%s15664_s1 + $0x394] sm:$0xf0] }
 0x191   :  { %5482 = vmatpush.bf16.msra.mxu1 %v9567_v54  ;;  %v5251_v54 = vpop.f32.mrf.mxu3  ;;  %v6643_v1 = vor.u32 %v9783_v55, %v6642_v51  ;;  %v9819_v48 = vld [vmem:[%s15664_s1 + $0x274] sm:$0xf0]  ;;  %v7234_v55 = vld [vmem:[%s15664_s1 + $0x5e8] sm:$0xf] }
 0x192   :  { %5491 = vmatpush.bf16.msra.mxu2 %v6563_v36  ;;  %v6963_v36 = vor.u32 %v9863_v32, %v6962_v27  ;;  %v5252_v62 = vadd.f32 %v5251_v54, %v5239_v52  ;;  %v9743_v27 = vld [vmem:[%s15664_s1 + $0x14] sm:$0xf0]  ;;  %v6610_v32 = vld [vmem:[%s15664_s1 + $0x108] sm:$0xf] }
 0x193   :  { %5504 = vmatpush.bf16.msra.mxu3 %v6691_v59  ;;  %v6946_v59 = vld [vmem:[%s15664_s1 + $0x3a8] sm:$0xf]  ;;  %v9851_v51 = vld [vmem:[%s15664_s1 + $0x374] sm:$0xf0] }
 0x194   :  { %5470 = vmatpush.bf16.msra.mxu0 %v9423_v3  ;;  %v6498_v3 = vld [vmem:[%s15664_s1 + $0x28] sm:$0xf]  ;;  %v6947_v60 = vor.u32 %v9859_v61, %v6946_v59  ;;  %v5240_v34 = vpop.f32.mrf.mxu2  ;;  %v9899_v54 = vld [vmem:[%s15664_s1 + $0x4f4] sm:$0xf0]  ;;  %v6915_v61 = vor.u32 %v9851_v51, %v6914_v50 }
 0x195   :  { %5483 = vmatpush.bf16.msra.mxu1 %v9551_v9  ;;  %v9779_v9 = vld [vmem:[%s15664_s1 + $0x134] sm:$0xf0]  ;;  %v6499_v17 = vor.u32 %v9747_v5, %v6498_v3  ;;  %v7106_v52 = vld [vmem:[%s15664_s1 + $0x4e8] sm:$0xf] }
 0x196   :  { %5492 = vmatpush.bf16.msra.mxu2 %v6547_v8  ;;  %v6802_v8 = vld [vmem:[%s15664_s1 + $0x288] sm:$0xf]  ;;  %v6627_v24 = vor.u32 %v9779_v9, %v6626_v7  ;;  %v9931_v57 = vld [vmem:[%s15664_s1 + $0x5f4] sm:$0xf0] }
 0x197   :  { %5505 = vmatpush.bf16.msra.mxu3 %v6675_v12  ;;  %5471 = vmatmul.bf16.vlgmr.msra.gmra.mxu0 %v11897_v19  ;;  %v5264_v12 = vpop.f32.mrf.mxu0  ;;  %v6803_v26 = vor.u32 %v9823_v10, %v6802_v8  ;;  %v6770_v63 = vld [vmem:[%s15664_s1 + $0x248] sm:$0xf]  ;;  %v9847_v3 = vld [vmem:[%s15664_s1 + $0x354] sm:$0xf0] }
 0x198   :  { %5515 = vmatpush.bf16.msrb.mxu0 %v6851_v13  ;;  %9609 = vmatmul.msk.bf16.vlgmr.msra.gmra.mxu1 %vm4835_vm0, %v12000_v56  ;;  %v6930_v13 = vld [vmem:[%s15664_s1 + $0x388] sm:$0xf]  ;;  %v13241_v22 = vadd.f32 %v5264_v12, %v5252_v62  ;;  %v7107_v62 = vor.u32 %v9899_v54, %v7106_v52  ;;  %v9895_v7 = vld [vmem:[%s15664_s1 + $0x4d4] sm:$0xf0] }
 0x199   :  { %5528 = vmatpush.bf16.msrb.mxu1 %v6979_v39  ;;  %v6482_v39 = vld [vmem:[%s15664_s1 + $0x8] sm:$0xf]  ;;  %v5253_v18 = vpop.f32.mrf.mxu3  ;;  %v9927_v8 = vld [vmem:[%s15664_s1 + $0x5d4] sm:$0xf0] }
 0x19a   :  { %5493 = vmatpush.bf16.msra.mxu2 %v6531_v40  ;;  %v9775_v40 = vld [vmem:[%s15664_s1 + $0x114] sm:$0xf0]  ;;  %v7090_v5 = vld [vmem:[%s15664_s1 + $0x4c8] sm:$0xf] }
 0x19b   :  { %5506 = vmatpush.bf16.msra.mxu3 %v6659_v43  ;;  %v6931_v43 = vor.u32 %v9855_v14, %v6930_v13  ;;  %v6611_v58 = vor.u32 %v9775_v40, %v6610_v32  ;;  %v7218_v9 = vld [vmem:[%s15664_s1 + $0x5c8] sm:$0xf]  ;;  %v7091_v13 = vor.u32 %v9895_v7, %v7090_v5  ;;  %v9923_v40 = vld [vmem:[%s15664_s1 + $0x5b4] sm:$0xf0] }
 0x19c   :  { %5516 = vmatpush.bf16.msrb.mxu0 %v6835_v47  ;;  %v6786_v47 = vld [vmem:[%s15664_s1 + $0x268] sm:$0xf]  ;;  %v7219_v34 = vor.u32 %v9927_v8, %v7218_v9  ;;  %v9807_v50 = vld [vmem:[%s15664_s1 + $0x214] sm:$0xf0] }
 0x19d   :  { %5529 = vmatpush.bf16.msrb.mxu1 %v6963_v36  ;;  %v6483_v36 = vor.u32 %v9743_v27, %v6482_v39  ;;  %v6787_v59 = vor.u32 %v9819_v48, %v6786_v47  ;;  %v6754_v14 = vld [vmem:[%s15664_s1 + $0x228] sm:$0xf]  ;;  %v9891_v27 = vld [vmem:[%s15664_s1 + $0x4b4] sm:$0xf0] }
 0x19e   :  { %5494 = vmatpush.bf16.msra.mxu2 %v6515_v0  ;;  %v9815_v0 = vld [vmem:[%s15664_s1 + $0x254] sm:$0xf0]  ;;  %v6882_v39 = vld [vmem:[%s15664_s1 + $0x328] sm:$0xf] }
 0x19f   :  { %5507 = vmatpush.bf16.msra.mxu3 %v6643_v1  ;;  %v6898_v1 = vld [vmem:[%s15664_s1 + $0x348] sm:$0xf]  ;;  %v6771_v10 = vor.u32 %v9815_v0, %v6770_v63  ;;  %v9839_v52 = vld [vmem:[%s15664_s1 + $0x314] sm:$0xf0] }
 0x1a0   :  { %5517 = vmatpush.bf16.msrb.mxu0 %v6819_v2  ;;  %v7235_v2 = vor.u32 %v9931_v57, %v7234_v55  ;;  %v6899_v12 = vor.u32 %v9847_v3, %v6898_v1  ;;  %v7202_v32 = vld [vmem:[%s15664_s1 + $0x5a8] sm:$0xf]  ;;  %v9887_v55 = vld [vmem:[%s15664_s1 + $0x494] sm:$0xf0] }
 0x1a1   :  { %5530 = vmatpush.bf16.msrb.mxu1 %v6947_v60  ;;  %v5266_v60 = vpop.f32.mrf.mxu0  ;;  %v6866_v51 = vld [vmem:[%s15664_s1 + $0x308] sm:$0xf]  ;;  %v7203_v54 = vor.u32 %v9923_v40, %v7202_v32  ;;  %v9883_v9 = vld [vmem:[%s15664_s1 + $0x474] sm:$0xf0] }
 0x1a2   :  { %5495 = vmatpush.bf16.msra.mxu2 %v6499_v17  ;;  %v9811_v17 = vld [vmem:[%s15664_s1 + $0x234] sm:$0xf0]  ;;  %v7186_v57 = vld [vmem:[%s15664_s1 + $0x588] sm:$0xf]  ;;  %v6867_v3 = vor.u32 %v9839_v52, %v6866_v51 }
 0x1a3   :  { %5508 = vmatpush.bf16.msra.mxu3 %v6627_v24  ;;  %v9843_v24 = vld [vmem:[%s15664_s1 + $0x334] sm:$0xf0]  ;;  %v6755_v18 = vor.u32 %v9811_v17, %v6754_v14  ;;  %v7490_v1 = vld [vmem:[%s15664_s1 + $0x7e8] sm:$0xf] }
 0x1a4   :  { %5518 = vmatpush.bf16.msrb.mxu0 %v6803_v26  ;;  %v7074_v26 = vld [vmem:[%s15664_s1 + $0x4a8] sm:$0xf]  ;;  %v6883_v47 = vor.u32 %v9843_v24, %v6882_v39  ;;  %v9959_v14 = vld [vmem:[%s15664_s1 + $0x6d4] sm:$0xf0] }
 0x1a5   :  { %5531 = vmatpush.bf16.msrb.mxu1 %v6931_v43  ;;  %v6738_v43 = vld [vmem:[%s15664_s1 + $0x208] sm:$0xf]  ;;  %v7075_v48 = vor.u32 %v9891_v27, %v7074_v26  ;;  %v9991_v39 = vld [vmem:[%s15664_s1 + $0x7d4] sm:$0xf0] }
 0x1a6   :  { %5496 = vmatpush.bf16.msra.mxu2 %v6483_v36  ;;  %v7058_v36 = vld [vmem:[%s15664_s1 + $0x488] sm:$0xf]  ;;  %v6739_v0 = vor.u32 %v9807_v50, %v6738_v43  ;;  %v9911_v50 = vld [vmem:[%s15664_s1 + $0x554] sm:$0xf0] }
 0x1a7   :  { %5509 = vmatpush.bf16.msra.mxu3 %v6611_v58  ;;  %v5277_v58 = vpop.f32.mrf.mxu1  ;;  %v7059_v5 = vor.u32 %v9887_v55, %v7058_v36  ;;  %v7170_v8 = vld [vmem:[%s15664_s1 + $0x568] sm:$0xf]  ;;  %v9955_v52 = vld [vmem:[%s15664_s1 + $0x6b4] sm:$0xf0] }
 0x1a8   :  { %5519 = vmatpush.bf16.msrb.mxu0 %v6787_v59  ;;  %v9919_v59 = vld [vmem:[%s15664_s1 + $0x594] sm:$0xf0]  ;;  %v5278_v63 = vadd.f32 %v5277_v58, %v13241_v22  ;;  %v7042_v22 = vld [vmem:[%s15664_s1 + $0x468] sm:$0xf] }
 0x1a9   :  { %5532 = vmatpush.bf16.msrb.mxu1 %v6915_v61  ;;  %5497 = vmatmul.bf16.vlgmr.msra.gmra.mxu2 %v10889_v20  ;;  %v7362_v61 = vld [vmem:[%s15664_s1 + $0x6e8] sm:$0xf]  ;;  %v7187_v7 = vor.u32 %v9919_v59, %v7186_v57  ;;  %v9987_v55 = vld [vmem:[%s15664_s1 + $0x7b4] sm:$0xf0] }
 0x1aa   :  { %5541 = vmatpush.bf16.msrb.mxu2 %v7107_v62  ;;  %5510 = vmatmul.bf16.vlgmr.msra.gmra.mxu3 %v10892_v21  ;;  %v9963_v62 = vld [vmem:[%s15664_s1 + $0x6f4] sm:$0xf0]  ;;  %v7474_v17 = vld [vmem:[%s15664_s1 + $0x7c8] sm:$0xf] }
 0x1ab   :  { %5554 = vmatpush.bf16.msrb.mxu3 %v7235_v2  ;;  %v9995_v2 = vld [vmem:[%s15664_s1 + $0x7f4] sm:$0xf0]  ;;  %v7363_v60 = vor.u32 %v9963_v62, %v7362_v61  ;;  %v7026_v40 = vld [vmem:[%s15664_s1 + $0x448] sm:$0xf] }
 0x1ac   :  { %5520 = vmatpush.bf16.msrb.mxu0 %v6771_v10  ;;  %v7491_v10 = vor.u32 %v9995_v2, %v7490_v1  ;;  %v5290_v26 = vpop.f32.mrf.mxu2  ;;  %v7154_v43 = vld [vmem:[%s15664_s1 + $0x548] sm:$0xf]  ;;  %v9907_v2 = vld [vmem:[%s15664_s1 + $0x534] sm:$0xf0] }
 0x1ad   :  { %5533 = vmatpush.bf16.msrb.mxu1 %v6899_v12  ;;  %v9915_v12 = vld [vmem:[%s15664_s1 + $0x574] sm:$0xf0]  ;;  %v5303_v32 = vpop.f32.mrf.mxu3  ;;  %v7330_v51 = vld [vmem:[%s15664_s1 + $0x6a8] sm:$0xf]  ;;  %v7155_v59 = vor.u32 %v9911_v50, %v7154_v43 }
 0x1ae   :  { %5542 = vmatpush.bf16.msrb.mxu2 %v7091_v13  ;;  %v7346_v13 = vld [vmem:[%s15664_s1 + $0x6c8] sm:$0xf]  ;;  %v7171_v24 = vor.u32 %v9915_v12, %v7170_v8  ;;  %v7331_v61 = vor.u32 %v9955_v52, %v7330_v51  ;;  %v10059_v51 = vld [vmem:[%s15664_s1 + $0x9f4] sm:$0xf0] }
 0x1af   :  { %5555 = vmatpush.bf16.msrb.mxu3 %v7219_v34  ;;  %v7043_v34 = vor.u32 %v9883_v9, %v7042_v22  ;;  %v7347_v27 = vor.u32 %v9959_v14, %v7346_v13  ;;  %v7458_v36 = vld [vmem:[%s15664_s1 + $0x7a8] sm:$0xf]  ;;  %v9983_v22 = vld [vmem:[%s15664_s1 + $0x794] sm:$0xf0] }
 0x1b0   :  { %5521 = vmatpush.bf16.msrb.mxu0 %v6755_v18  ;;  %v9879_v18 = vld [vmem:[%s15664_s1 + $0x454] sm:$0xf0]  ;;  %v7010_v62 = vld [vmem:[%s15664_s1 + $0x428] sm:$0xf]  ;;  %v7459_v1 = vor.u32 %v9987_v55, %v7458_v36 }
 0x1b1   :  { %5534 = vmatpush.bf16.msrb.mxu1 %v6883_v47  ;;  %v5291_v47 = vadd.f32 %v5290_v26, %v5278_v63  ;;  %v7027_v58 = vor.u32 %v9879_v18, %v7026_v40  ;;  %v9875_v63 = vld [vmem:[%s15664_s1 + $0x434] sm:$0xf0]  ;;  %v7426_v40 = vld [vmem:[%s15664_s1 + $0x768] sm:$0xf] }
 0x1b2   :  { %5543 = vmatpush.bf16.msrb.mxu2 %v7075_v48  ;;  %v7475_v48 = vor.u32 %v9991_v39, %v7474_v17  ;;  %v7011_v8 = vor.u32 %v9875_v63, %v7010_v62  ;;  %v9871_v14 = vld [vmem:[%s15664_s1 + $0x414] sm:$0xf0]  ;;  %v7122_v17 = vld [vmem:[%s15664_s1 + $0x508] sm:$0xf] }
 0x1b3   :  { %5556 = vmatpush.bf16.msrb.mxu3 %v7203_v54  ;;  %v5279_v54 = vpop.f32.mrf.mxu1  ;;  %v5304_v57 = vadd.f32 %v5303_v32, %v5291_v47  ;;  %v9903_v39 = vld [vmem:[%s15664_s1 + $0x514] sm:$0xf0]  ;;  %v7618_v43 = vld [vmem:[%s15664_s1 + $0x8e8] sm:$0xf] }
 0x1b4   :  { %5522 = vmatpush.bf16.msrb.mxu0 %v6739_v0  ;;  %v7138_v0 = vld [vmem:[%s15664_s1 + $0x528] sm:$0xf]  ;;  %v9947_v32 = vld [vmem:[%s15664_s1 + $0x674] sm:$0xf0]  ;;  %v7123_v52 = vor.u32 %v9903_v39, %v7122_v17 }
 0x1b5   :  { %5535 = vmatpush.bf16.msrb.mxu1 %v6867_v3  ;;  %v7314_v3 = vld [vmem:[%s15664_s1 + $0x688] sm:$0xf]  ;;  %v7139_v12 = vor.u32 %v9907_v2, %v7138_v0  ;;  %v9979_v18 = vld [vmem:[%s15664_s1 + $0x774] sm:$0xf0] }
 0x1b6   :  { %5544 = vmatpush.bf16.msrb.mxu2 %v7059_v5  ;;  %v9951_v5 = vld [vmem:[%s15664_s1 + $0x694] sm:$0xf0]  ;;  %v7746_v50 = vld [vmem:[%s15664_s1 + $0x9e8] sm:$0xf]  ;;  %v7427_v36 = vor.u32 %v9979_v18, %v7426_v40 }
 0x1b7   :  { %5557 = vmatpush.bf16.msrb.mxu3 %v7187_v7  ;;  %5523 = vmatmul.bf16.vlgmr.msrb.gmra.mxu0 %v10857_v4  ;;  %v5316_v7 = vpop.f32.mrf.mxu0  ;;  %v7315_v13 = vor.u32 %v9951_v5, %v7314_v3  ;;  %v10027_v47 = vld [vmem:[%s15664_s1 + $0x8f4] sm:$0xf0]  ;;  %v7602_v63 = vld [vmem:[%s15664_s1 + $0x8c8] sm:$0xf] }
 0x1b8   :  { %5567 = vmatpush.bf16.msra.mxu0 %v7363_v60  ;;  %5536 = vmatmul.bf16.vlgmr.msrb.gmra.mxu1 %v10862_v6  ;;  %v7442_v60 = vld [vmem:[%s15664_s1 + $0x788] sm:$0xf]  ;;  %v13440_v9 = vadd.f32 %v5316_v7, %v5304_v57  ;;  %v7619_v55 = vor.u32 %v10027_v47, %v7618_v43  ;;  %v9975_v62 = vld [vmem:[%s15664_s1 + $0x754] sm:$0xf0] }
 0x1b9   :  { %5580 = vmatpush.bf16.msra.mxu1 %v7491_v10  ;;  %v6994_v10 = vld [vmem:[%s15664_s1 + $0x408] sm:$0xf]  ;;  %v7443_v26 = vor.u32 %v9983_v22, %v7442_v60  ;;  %v10023_v0 = vld [vmem:[%s15664_s1 + $0x8d4] sm:$0xf0] }
 0x1ba   :  { %5545 = vmatpush.bf16.msrb.mxu2 %v7043_v34  ;;  %v5292_v34 = vpop.f32.mrf.mxu2  ;;  %v7282_v57 = vld [vmem:[%s15664_s1 + $0x648] sm:$0xf]  ;;  %v10055_v3 = vld [vmem:[%s15664_s1 + $0x9d4] sm:$0xf0]  ;;  %v7603_v60 = vor.u32 %v10023_v0, %v7602_v63 }
 0x1bb   :  { %5558 = vmatpush.bf16.msrb.mxu3 %v7171_v24  ;;  %v5305_v24 = vpop.f32.mrf.mxu3  ;;  %v7730_v2 = vld [vmem:[%s15664_s1 + $0x9c8] sm:$0xf]  ;;  %v10019_v17 = vld [vmem:[%s15664_s1 + $0x8b4] sm:$0xf0] }
 0x1bc   :  { %5568 = vmatpush.bf16.msra.mxu0 %v7347_v27  ;;  %v7298_v27 = vld [vmem:[%s15664_s1 + $0x668] sm:$0xf]  ;;  %v10051_v34 = vld [vmem:[%s15664_s1 + $0x9b4] sm:$0xf0] }
 0x1bd   :  { %5581 = vmatpush.bf16.msra.mxu1 %v7475_v48  ;;  %v6995_v48 = vor.u32 %v9871_v14, %v6994_v10  ;;  %v7299_v54 = vor.u32 %v9947_v32, %v7298_v27  ;;  %v7266_v22 = vld [vmem:[%s15664_s1 + $0x628] sm:$0xf]  ;;  %v9935_v40 = vld [vmem:[%s15664_s1 + $0x614] sm:$0xf0] }
 0x1be   :  { %5546 = vmatpush.bf16.msrb.mxu2 %v7027_v58  ;;  %v9943_v58 = vld [vmem:[%s15664_s1 + $0x654] sm:$0xf0]  ;;  %v7394_v10 = vld [vmem:[%s15664_s1 + $0x728] sm:$0xf] }
 0x1bf   :  { %5559 = vmatpush.bf16.msrb.mxu3 %v7155_v59  ;;  %v7410_v59 = vld [vmem:[%s15664_s1 + $0x748] sm:$0xf]  ;;  %v7283_v5 = vor.u32 %v9943_v58, %v7282_v57  ;;  %v9967_v43 = vld [vmem:[%s15664_s1 + $0x714] sm:$0xf0] }
 0x1c0   :  { %5569 = vmatpush.bf16.msra.mxu0 %v7331_v61  ;;  %v7747_v61 = vor.u32 %v10059_v51, %v7746_v50  ;;  %v7411_v7 = vor.u32 %v9975_v62, %v7410_v59  ;;  %v7586_v14 = vld [vmem:[%s15664_s1 + $0x8a8] sm:$0xf]  ;;  %v10015_v50 = vld [vmem:[%s15664_s1 + $0x894] sm:$0xf0] }
 0x1c1   :  { %5582 = vmatpush.bf16.msra.mxu1 %v7459_v1  ;;  %v5318_v1 = vpop.f32.mrf.mxu0  ;;  %v7714_v39 = vld [vmem:[%s15664_s1 + $0x9a8] sm:$0xf]  ;;  %v7587_v32 = vor.u32 %v10019_v17, %v7586_v14 }
 0x1c2   :  { %5547 = vmatpush.bf16.msrb.mxu2 %v7011_v8  ;;  %v9939_v8 = vld [vmem:[%s15664_s1 + $0x634] sm:$0xf0]  ;;  %v7378_v18 = vld [vmem:[%s15664_s1 + $0x708] sm:$0xf]  ;;  %v7715_v47 = vor.u32 %v10051_v34, %v7714_v39 }
 0x1c3   :  { %5560 = vmatpush.bf16.msrb.mxu3 %v7139_v12  ;;  %v7731_v12 = vor.u32 %v10055_v3, %v7730_v2  ;;  %v7267_v24 = vor.u32 %v9939_v8, %v7266_v22  ;;  %v7698_v51 = vld [vmem:[%s15664_s1 + $0x988] sm:$0xf]  ;;  %v7379_v62 = vor.u32 %v9967_v43, %v7378_v18  ;;  %v10011_v2 = vld [vmem:[%s15664_s1 + $0x874] sm:$0xf0] }
 0x1c4   :  { %5570 = vmatpush.bf16.msra.mxu0 %v7315_v13  ;;  %v9971_v13 = vld [vmem:[%s15664_s1 + $0x734] sm:$0xf0]  ;;  %v8002_v59 = vld [vmem:[%s15664_s1 + $0xbe8] sm:$0xf] }
 0x1c5   :  { %5583 = vmatpush.bf16.msra.mxu1 %v7443_v26  ;;  %v7250_v26 = vld [vmem:[%s15664_s1 + $0x608] sm:$0xf]  ;;  %v7395_v27 = vor.u32 %v9971_v13, %v7394_v10  ;;  %v10087_v22 = vld [vmem:[%s15664_s1 + $0xad4] sm:$0xf0] }
 0x1c6   :  { %5548 = vmatpush.bf16.msrb.mxu2 %v6995_v48  ;;  %v7570_v48 = vld [vmem:[%s15664_s1 + $0x888] sm:$0xf]  ;;  %v7251_v58 = vor.u32 %v9935_v40, %v7250_v26  ;;  %v10119_v10 = vld [vmem:[%s15664_s1 + $0xbd4] sm:$0xf0] }
 0x1c7   :  { %5561 = vmatpush.bf16.msrb.mxu3 %v7123_v52  ;;  %v5329_v52 = vpop.f32.mrf.mxu1  ;;  %v7571_v63 = vor.u32 %v10015_v50, %v7570_v48  ;;  %v7682_v3 = vld [vmem:[%s15664_s1 + $0x968] sm:$0xf]  ;;  %v10039_v40 = vld [vmem:[%s15664_s1 + $0x954] sm:$0xf0] }
 0x1c8   :  { %5571 = vmatpush.bf16.msra.mxu0 %v7299_v54  ;;  %v10047_v54 = vld [vmem:[%s15664_s1 + $0x994] sm:$0xf0]  ;;  %v5330_v57 = vadd.f32 %v5329_v52, %v13440_v9  ;;  %v7554_v9 = vld [vmem:[%s15664_s1 + $0x868] sm:$0xf] }
 0x1c9   :  { %5584 = vmatpush.bf16.msra.mxu1 %v7427_v36  ;;  %5549 = vmatmul.bf16.vlgmr.msrb.gmra.mxu2 %v11048_v41  ;;  %v7874_v36 = vld [vmem:[%s15664_s1 + $0xae8] sm:$0xf]  ;;  %v7699_v0 = vor.u32 %v10047_v54, %v7698_v51  ;;  %v10083_v43 = vld [vmem:[%s15664_s1 + $0xab4] sm:$0xf0] }
 0x1ca   :  { %5593 = vmatpush.bf16.msra.mxu2 %v7619_v55  ;;  %5562 = vmatmul.bf16.vlgmr.msrb.gmra.mxu3 %v11052_v44  ;;  %v10091_v55 = vld [vmem:[%s15664_s1 + $0xaf4] sm:$0xf0]  ;;  %v7986_v8 = vld [vmem:[%s15664_s1 + $0xbc8] sm:$0xf] }
 0x1cb   :  { %5606 = vmatpush.bf16.msra.mxu3 %v7747_v61  ;;  %v10123_v61 = vld [vmem:[%s15664_s1 + $0xbf4] sm:$0xf0]  ;;  %v7875_v1 = vor.u32 %v10091_v55, %v7874_v36  ;;  %v7538_v34 = vld [vmem:[%s15664_s1 + $0x848] sm:$0xf] }
 0x1cc   :  { %5572 = vmatpush.bf16.msra.mxu0 %v7283_v5  ;;  %v8003_v5 = vor.u32 %v10123_v61, %v8002_v59  ;;  %v5342_v14 = vpop.f32.mrf.mxu2  ;;  %v7666_v26 = vld [vmem:[%s15664_s1 + $0x948] sm:$0xf]  ;;  %v10115_v50 = vld [vmem:[%s15664_s1 + $0xbb4] sm:$0xf0] }
 0x1cd   :  { %5585 = vmatpush.bf16.msra.mxu1 %v7411_v7  ;;  %v10043_v7 = vld [vmem:[%s15664_s1 + $0x974] sm:$0xf0]  ;;  %v5355_v39 = vpop.f32.mrf.mxu3  ;;  %v7842_v18 = vld [vmem:[%s15664_s1 + $0xaa8] sm:$0xf]  ;;  %v7667_v54 = vor.u32 %v10039_v40, %v7666_v26 }
 0x1ce   :  { %5594 = vmatpush.bf16.msra.mxu2 %v7603_v60  ;;  %v7858_v60 = vld [vmem:[%s15664_s1 + $0xac8] sm:$0xf]  ;;  %v7683_v13 = vor.u32 %v10043_v7, %v7682_v3  ;;  %v7843_v36 = vor.u32 %v10083_v43, %v7842_v18  ;;  %v10035_v61 = vld [vmem:[%s15664_s1 + $0x934] sm:$0xf0] }
 0x1cf   :  { %5607 = vmatpush.bf16.msra.mxu3 %v7731_v12  ;;  %v7555_v12 = vor.u32 %v10011_v2, %v7554_v9  ;;  %v7859_v17 = vor.u32 %v10087_v22, %v7858_v60  ;;  %v7970_v48 = vld [vmem:[%s15664_s1 + $0xba8] sm:$0xf]  ;;  %v10111_v9 = vld [vmem:[%s15664_s1 + $0xb94] sm:$0xf0] }
 0x1d0   :  { %5573 = vmatpush.bf16.msra.mxu0 %v7267_v24  ;;  %v10007_v24 = vld [vmem:[%s15664_s1 + $0x854] sm:$0xf0]  ;;  %v7522_v55 = vld [vmem:[%s15664_s1 + $0x828] sm:$0xf]  ;;  %v7971_v59 = vor.u32 %v10115_v50, %v7970_v48 }
 0x1d1   :  { %5586 = vmatpush.bf16.msra.mxu1 %v7395_v27  ;;  %v5343_v27 = vadd.f32 %v5342_v14, %v5330_v57  ;;  %v7539_v52 = vor.u32 %v10007_v24, %v7538_v34  ;;  %v10003_v57 = vld [vmem:[%s15664_s1 + $0x834] sm:$0xf0]  ;;  %v7938_v34 = vld [vmem:[%s15664_s1 + $0xb68] sm:$0xf] }
 0x1d2   :  { %5595 = vmatpush.bf16.msra.mxu2 %v7587_v32  ;;  %v7987_v32 = vor.u32 %v10119_v10, %v7986_v8  ;;  %v7523_v3 = vor.u32 %v10003_v57, %v7522_v55  ;;  %v9999_v22 = vld [vmem:[%s15664_s1 + $0x814] sm:$0xf0]  ;;  %v7634_v8 = vld [vmem:[%s15664_s1 + $0x908] sm:$0xf] }
 0x1d3   :  { %5608 = vmatpush.bf16.msra.mxu3 %v7715_v47  ;;  %v5331_v47 = vpop.f32.mrf.mxu1  ;;  %v5356_v51 = vadd.f32 %v5355_v39, %v5343_v27  ;;  %v10031_v10 = vld [vmem:[%s15664_s1 + $0x914] sm:$0xf0]  ;;  %v8130_v26 = vld [vmem:[%s15664_s1 + $0xce8] sm:$0xf] }
 0x1d4   :  { %5574 = vmatpush.bf16.msra.mxu0 %v7251_v58  ;;  %v7650_v58 = vld [vmem:[%s15664_s1 + $0x928] sm:$0xf]  ;;  %v10075_v39 = vld [vmem:[%s15664_s1 + $0xa74] sm:$0xf0]  ;;  %v7635_v43 = vor.u32 %v10031_v10, %v7634_v8 }
 0x1d5   :  { %5587 = vmatpush.bf16.msra.mxu1 %v7379_v62  ;;  %v7826_v62 = vld [vmem:[%s15664_s1 + $0xa88] sm:$0xf]  ;;  %v7651_v7 = vor.u32 %v10035_v61, %v7650_v58  ;;  %v10107_v24 = vld [vmem:[%s15664_s1 + $0xb74] sm:$0xf0] }
 0x1d6   :  { %5596 = vmatpush.bf16.msra.mxu2 %v7571_v63  ;;  %v10079_v63 = vld [vmem:[%s15664_s1 + $0xa94] sm:$0xf0]  ;;  %v8258_v40 = vld [vmem:[%s15664_s1 + $0xde8] sm:$0xf]  ;;  %v7939_v48 = vor.u32 %v10107_v24, %v7938_v34 }
 0x1d7   :  { %5609 = vmatpush.bf16.msra.mxu3 %v7699_v0  ;;  %5575 = vmatmul.bf16.vlgmr.msra.gmra.mxu0 %v11040_v38  ;;  %v5368_v0 = vpop.f32.mrf.mxu0  ;;  %v7827_v60 = vor.u32 %v10079_v63, %v7826_v62  ;;  %v10155_v27 = vld [vmem:[%s15664_s1 + $0xcf4] sm:$0xf0]  ;;  %v8114_v57 = vld [vmem:[%s15664_s1 + $0xcc8] sm:$0xf] }
 0x1d8   :  { %5619 = vmatpush.bf16.msrb.mxu0 %v7875_v1  ;;  %5588 = vmatmul.bf16.vlgmr.msra.gmra.mxu1 %v11050_v42  ;;  %v7954_v1 = vld [vmem:[%s15664_s1 + $0xb88] sm:$0xf]  ;;  %v13639_v2 = vadd.f32 %v5368_v0, %v5356_v51  ;;  %v10187_v18 = vld [vmem:[%s15664_s1 + $0xdf4] sm:$0xf0]  ;;  %v8131_v50 = vor.u32 %v10155_v27, %v8130_v26 }
 0x1d9   :  { %5632 = vmatpush.bf16.msrb.mxu1 %v8003_v5  ;;  %v7506_v5 = vld [vmem:[%s15664_s1 + $0x808] sm:$0xf]  ;;  %v7955_v14 = vor.u32 %v10111_v9, %v7954_v1  ;;  %v10103_v55 = vld [vmem:[%s15664_s1 + $0xb54] sm:$0xf0] }
 0x1da   :  { %5597 = vmatpush.bf16.msra.mxu2 %v7555_v12  ;;  %v5344_v12 = vpop.f32.mrf.mxu2  ;;  %v7794_v51 = vld [vmem:[%s15664_s1 + $0xa48] sm:$0xf]  ;;  %v10151_v58 = vld [vmem:[%s15664_s1 + $0xcd4] sm:$0xf0] }
 0x1db   :  { %5610 = vmatpush.bf16.msra.mxu3 %v7683_v13  ;;  %v5357_v13 = vpop.f32.mrf.mxu3  ;;  %v8242_v61 = vld [vmem:[%s15664_s1 + $0xdc8] sm:$0xf]  ;;  %v10183_v62 = vld [vmem:[%s15664_s1 + $0xdd4] sm:$0xf0]  ;;  %v8115_v1 = vor.u32 %v10151_v58, %v8114_v57 }
 0x1dc   :  { %5620 = vmatpush.bf16.msrb.mxu0 %v7859_v17  ;;  %v7810_v17 = vld [vmem:[%s15664_s1 + $0xa68] sm:$0xf]  ;;  %v10147_v8 = vld [vmem:[%s15664_s1 + $0xcb4] sm:$0xf0] }
 0x1dd   :  { %5633 = vmatpush.bf16.msrb.mxu1 %v7987_v32  ;;  %v7507_v32 = vor.u32 %v9999_v22, %v7506_v5  ;;  %v7811_v47 = vor.u32 %v10075_v39, %v7810_v17  ;;  %v7778_v9 = vld [vmem:[%s15664_s1 + $0xa28] sm:$0xf]  ;;  %v10179_v12 = vld [vmem:[%s15664_s1 + $0xdb4] sm:$0xf0] }
 0x1de   :  { %5598 = vmatpush.bf16.msra.mxu2 %v7539_v52  ;;  %v10071_v52 = vld [vmem:[%s15664_s1 + $0xa54] sm:$0xf0]  ;;  %v7906_v5 = vld [vmem:[%s15664_s1 + $0xb28] sm:$0xf] }
 0x1df   :  { %5611 = vmatpush.bf16.msra.mxu3 %v7667_v54  ;;  %v7922_v54 = vld [vmem:[%s15664_s1 + $0xb48] sm:$0xf]  ;;  %v7795_v63 = vor.u32 %v10071_v52, %v7794_v51  ;;  %v10063_v34 = vld [vmem:[%s15664_s1 + $0xa14] sm:$0xf0] }
 0x1e0   :  { %5621 = vmatpush.bf16.msrb.mxu0 %v7843_v36  ;;  %v8259_v36 = vor.u32 %v10187_v18, %v8258_v40  ;;  %v7923_v0 = vor.u32 %v10103_v55, %v7922_v54  ;;  %v8098_v22 = vld [vmem:[%s15664_s1 + $0xca8] sm:$0xf]  ;;  %v10095_v26 = vld [vmem:[%s15664_s1 + $0xb14] sm:$0xf0] }
 0x1e1   :  { %5634 = vmatpush.bf16.msrb.mxu1 %v7971_v59  ;;  %v5370_v59 = vpop.f32.mrf.mxu0  ;;  %v8226_v10 = vld [vmem:[%s15664_s1 + $0xda8] sm:$0xf]  ;;  %v8099_v39 = vor.u32 %v10147_v8, %v8098_v22  ;;  %v10143_v40 = vld [vmem:[%s15664_s1 + $0xc94] sm:$0xf0] }
 0x1e2   :  { %5599 = vmatpush.bf16.msra.mxu2 %v7523_v3  ;;  %v10067_v3 = vld [vmem:[%s15664_s1 + $0xa34] sm:$0xf0]  ;;  %v7890_v24 = vld [vmem:[%s15664_s1 + $0xb08] sm:$0xf]  ;;  %v8227_v27 = vor.u32 %v10179_v12, %v8226_v10 }
 0x1e3   :  { %5612 = vmatpush.bf16.msra.mxu3 %v7651_v7  ;;  %v8243_v7 = vor.u32 %v10183_v62, %v8242_v61  ;;  %v7779_v13 = vor.u32 %v10067_v3, %v7778_v9  ;;  %v8210_v18 = vld [vmem:[%s15664_s1 + $0xd88] sm:$0xf]  ;;  %v7891_v55 = vor.u32 %v10095_v26, %v7890_v24  ;;  %v10139_v61 = vld [vmem:[%s15664_s1 + $0xc74] sm:$0xf0] }
 0x1e4   :  { %5622 = vmatpush.bf16.msrb.mxu0 %v7827_v60  ;;  %v10099_v60 = vld [vmem:[%s15664_s1 + $0xb34] sm:$0xf0]  ;;  %v8514_v54 = vld [vmem:[%s15664_s1 + $0xfe8] sm:$0xf] }
 0x1e5   :  { %5635 = vmatpush.bf16.msrb.mxu1 %v7955_v14  ;;  %v7762_v14 = vld [vmem:[%s15664_s1 + $0xa08] sm:$0xf]  ;;  %v7907_v17 = vor.u32 %v10099_v60, %v7906_v5  ;;  %v10215_v9 = vld [vmem:[%s15664_s1 + $0xed4] sm:$0xf0] }
 0x1e6   :  { %5600 = vmatpush.bf16.msra.mxu2 %v7507_v32  ;;  %v8082_v32 = vld [vmem:[%s15664_s1 + $0xc88] sm:$0xf]  ;;  %v7763_v52 = vor.u32 %v10063_v34, %v7762_v14  ;;  %v10247_v5 = vld [vmem:[%s15664_s1 + $0xfd4] sm:$0xf0] }
 0x1e7   :  { %5613 = vmatpush.bf16.msra.mxu3 %v7635_v43  ;;  %v5381_v43 = vpop.f32.mrf.mxu1  ;;  %v8083_v57 = vor.u32 %v10143_v40, %v8082_v32  ;;  %v8194_v62 = vld [vmem:[%s15664_s1 + $0xd68] sm:$0xf]  ;;  %v10167_v34 = vld [vmem:[%s15664_s1 + $0xd54] sm:$0xf0] }
 0x1e8   :  { %5623 = vmatpush.bf16.msrb.mxu0 %v7811_v47  ;;  %v10175_v47 = vld [vmem:[%s15664_s1 + $0xd94] sm:$0xf0]  ;;  %v5382_v51 = vadd.f32 %v5381_v43, %v13639_v2  ;;  %v8066_v2 = vld [vmem:[%s15664_s1 + $0xc68] sm:$0xf] }
 0x1e9   :  { %5636 = vmatpush.bf16.msrb.mxu1 %v7939_v48  ;;  %5601 = vmatmul.bf16.vlgmr.msra.gmra.mxu2 %v11241_v25  ;;  %v8386_v48 = vld [vmem:[%s15664_s1 + $0xee8] sm:$0xf]  ;;  %v8211_v58 = vor.u32 %v10175_v47, %v8210_v18  ;;  %v10211_v26 = vld [vmem:[%s15664_s1 + $0xeb4] sm:$0xf0] }
 0x1ea   :  { %5645 = vmatpush.bf16.msrb.mxu2 %v8131_v50  ;;  %5614 = vmatmul.bf16.vlgmr.msra.gmra.mxu3 %v11254_v30  ;;  %v10219_v50 = vld [vmem:[%s15664_s1 + $0xef4] sm:$0xf0]  ;;  %v8498_v3 = vld [vmem:[%s15664_s1 + $0xfc8] sm:$0xf] }
 0x1eb   :  { %5658 = vmatpush.bf16.msrb.mxu3 %v8259_v36  ;;  %v10251_v36 = vld [vmem:[%s15664_s1 + $0xff4] sm:$0xf0]  ;;  %v8387_v59 = vor.u32 %v10219_v50, %v8386_v48  ;;  %v8050_v12 = vld [vmem:[%s15664_s1 + $0xc48] sm:$0xf] }
 0x1ec   :  { %5624 = vmatpush.bf16.msrb.mxu0 %v7795_v63  ;;  %v8515_v63 = vor.u32 %v10251_v36, %v8514_v54  ;;  %v5394_v22 = vpop.f32.mrf.mxu2  ;;  %v8178_v14 = vld [vmem:[%s15664_s1 + $0xd48] sm:$0xf]  ;;  %v10243_v40 = vld [vmem:[%s15664_s1 + $0xfb4] sm:$0xf0] }
 0x1ed   :  { %5637 = vmatpush.bf16.msrb.mxu1 %v7923_v0  ;;  %v10171_v0 = vld [vmem:[%s15664_s1 + $0xd74] sm:$0xf0]  ;;  %v5407_v10 = vpop.f32.mrf.mxu3  ;;  %v8354_v24 = vld [vmem:[%s15664_s1 + $0xea8] sm:$0xf]  ;;  %v8179_v47 = vor.u32 %v10167_v34, %v8178_v14 }
 0x1ee   :  { %5646 = vmatpush.bf16.msrb.mxu2 %v8115_v1  ;;  %v8370_v1 = vld [vmem:[%s15664_s1 + $0xec8] sm:$0xf]  ;;  %v8195_v60 = vor.u32 %v10171_v0, %v8194_v62  ;;  %v8355_v48 = vor.u32 %v10211_v26, %v8354_v24  ;;  %v10163_v36 = vld [vmem:[%s15664_s1 + $0xd34] sm:$0xf0] }
 0x1ef   :  { %5659 = vmatpush.bf16.msrb.mxu3 %v8243_v7  ;;  %v8067_v7 = vor.u32 %v10139_v61, %v8066_v2  ;;  %v8371_v8 = vor.u32 %v10215_v9, %v8370_v1  ;;  %v8482_v32 = vld [vmem:[%s15664_s1 + $0xfa8] sm:$0xf]  ;;  %v10239_v2 = vld [vmem:[%s15664_s1 + $0xf94] sm:$0xf0] }
 0x1f0   :  { %5625 = vmatpush.bf16.msrb.mxu0 %v7779_v13  ;;  %v10135_v13 = vld [vmem:[%s15664_s1 + $0xc54] sm:$0xf0]  ;;  %v8034_v50 = vld [vmem:[%s15664_s1 + $0xc28] sm:$0xf]  ;;  %v8483_v54 = vor.u32 %v10243_v40, %v8482_v32 }
 0x1f1   :  { %5638 = vmatpush.bf16.msrb.mxu1 %v7907_v17  ;;  %v5395_v17 = vadd.f32 %v5394_v22, %v5382_v51  ;;  %v8051_v43 = vor.u32 %v10135_v13, %v8050_v12  ;;  %v10131_v51 = vld [vmem:[%s15664_s1 + $0xc34] sm:$0xf0]  ;;  %v8450_v12 = vld [vmem:[%s15664_s1 + $0xf68] sm:$0xf] }
 0x1f2   :  { %5647 = vmatpush.bf16.msrb.mxu2 %v8099_v39  ;;  %v8499_v39 = vor.u32 %v10247_v5, %v8498_v3  ;;  %v8035_v62 = vor.u32 %v10131_v51, %v8034_v50  ;;  %v10127_v9 = vld [vmem:[%s15664_s1 + $0xc14] sm:$0xf0]  ;;  %v8146_v3 = vld [vmem:[%s15664_s1 + $0xd08] sm:$0xf] }
 0x1f3   :  { %5660 = vmatpush.bf16.msrb.mxu3 %v8227_v27  ;;  %v5383_v27 = vpop.f32.mrf.mxu1  ;;  %v5408_v18 = vadd.f32 %v5407_v10, %v5395_v17  ;;  %v10159_v5 = vld [vmem:[%s15664_s1 + $0xd14] sm:$0xf0]  ;;  %v8642_v14 = vld [vmem:[%s15664_s1 + $0x10e8] sm:$0xf] }
 0x1f4   :  { %5626 = vmatpush.bf16.msrb.mxu0 %v7763_v52  ;;  %v8162_v52 = vld [vmem:[%s15664_s1 + $0xd28] sm:$0xf]  ;;  %v10203_v10 = vld [vmem:[%s15664_s1 + $0xe74] sm:$0xf0]  ;;  %v8147_v26 = vor.u32 %v10159_v5, %v8146_v3 }
 0x1f5   :  { %5639 = vmatpush.bf16.msrb.mxu1 %v7891_v55  ;;  %v8338_v55 = vld [vmem:[%s15664_s1 + $0xe88] sm:$0xf]  ;;  %v8163_v0 = vor.u32 %v10163_v36, %v8162_v52  ;;  %v10235_v13 = vld [vmem:[%s15664_s1 + $0xf74] sm:$0xf0] }
 0x1f6   :  { %5648 = vmatpush.bf16.msrb.mxu2 %v8083_v57  ;;  %v10207_v57 = vld [vmem:[%s15664_s1 + $0xe94] sm:$0xf0]  ;;  %v8770_v34 = vld [vmem:[%s15664_s1 + $0x11e8] sm:$0xf]  ;;  %v8451_v32 = vor.u32 %v10235_v13, %v8450_v12 }
 0x1f7   :  { %5661 = vmatpush.bf16.msrb.mxu3 %v8211_v58  ;;  %5627 = vmatmul.bf16.vlgmr.msrb.gmra.mxu0 %v11252_v29  ;;  %v5420_v58 = vpop.f32.mrf.mxu0  ;;  %v8339_v1 = vor.u32 %v10207_v57, %v8338_v55  ;;  %v10283_v17 = vld [vmem:[%s15664_s1 + $0x10f4] sm:$0xf0]  ;;  %v8626_v51 = vld [vmem:[%s15664_s1 + $0x10c8] sm:$0xf] }
 0x1f8   :  { %5671 = vmatpush.bf16.msra.mxu0 %v8387_v59  ;;  %5640 = vmatmul.bf16.vlgmr.msrb.gmra.mxu1 %v11262_v33  ;;  %v8466_v59 = vld [vmem:[%s15664_s1 + $0xf88] sm:$0xf]  ;;  %v13838_v61 = vadd.f32 %v5420_v58, %v5408_v18  ;;  %v10315_v24 = vld [vmem:[%s15664_s1 + $0x11f4] sm:$0xf0]  ;;  %v8643_v40 = vor.u32 %v10283_v17, %v8642_v14 }
 0x1f9   :  { %5684 = vmatpush.bf16.msra.mxu1 %v8515_v63  ;;  %v8018_v63 = vld [vmem:[%s15664_s1 + $0xc08] sm:$0xf]  ;;  %v8467_v22 = vor.u32 %v10239_v2, %v8466_v59  ;;  %v10231_v50 = vld [vmem:[%s15664_s1 + $0xf54] sm:$0xf0] }
 0x1fa   :  { %5649 = vmatpush.bf16.msrb.mxu2 %v8067_v7  ;;  %v5396_v7 = vpop.f32.mrf.mxu2  ;;  %v8306_v18 = vld [vmem:[%s15664_s1 + $0xe48] sm:$0xf]  ;;  %v10279_v52 = vld [vmem:[%s15664_s1 + $0x10d4] sm:$0xf0] }
 0x1fb   :  { %5662 = vmatpush.bf16.msrb.mxu3 %v8195_v60  ;;  %v5409_v60 = vpop.f32.mrf.mxu3  ;;  %v8754_v36 = vld [vmem:[%s15664_s1 + $0x11c8] sm:$0xf]  ;;  %v10311_v55 = vld [vmem:[%s15664_s1 + $0x11d4] sm:$0xf0]  ;;  %v8627_v59 = vor.u32 %v10279_v52, %v8626_v51 }
 0x1fc   :  { %5672 = vmatpush.bf16.msra.mxu0 %v8371_v8  ;;  %v8322_v8 = vld [vmem:[%s15664_s1 + $0xe68] sm:$0xf]  ;;  %v10275_v3 = vld [vmem:[%s15664_s1 + $0x10b4] sm:$0xf0] }
 0x1fd   :  { %5685 = vmatpush.bf16.msra.mxu1 %v8499_v39  ;;  %v8019_v39 = vor.u32 %v10127_v9, %v8018_v63  ;;  %v8323_v27 = vor.u32 %v10203_v10, %v8322_v8  ;;  %v8290_v2 = vld [vmem:[%s15664_s1 + $0xe28] sm:$0xf]  ;;  %v10307_v7 = vld [vmem:[%s15664_s1 + $0x11b4] sm:$0xf0] }
 0x1fe   :  { %5650 = vmatpush.bf16.msrb.mxu2 %v8051_v43  ;;  %v10199_v43 = vld [vmem:[%s15664_s1 + $0xe54] sm:$0xf0]  ;;  %v8418_v63 = vld [vmem:[%s15664_s1 + $0xf28] sm:$0xf] }
 0x1ff   :  { %5663 = vmatpush.bf16.msrb.mxu3 %v8179_v47  ;;  %v8434_v47 = vld [vmem:[%s15664_s1 + $0xf48] sm:$0xf]  ;;  %v8307_v57 = vor.u32 %v10199_v43, %v8306_v18  ;;  %v10191_v12 = vld [vmem:[%s15664_s1 + $0xe14] sm:$0xf0] }
 0x200   :  { %5673 = vmatpush.bf16.msra.mxu0 %v8355_v48  ;;  %v8771_v48 = vor.u32 %v10315_v24, %v8770_v34  ;;  %v8435_v58 = vor.u32 %v10231_v50, %v8434_v47  ;;  %v8610_v9 = vld [vmem:[%s15664_s1 + $0x10a8] sm:$0xf]  ;;  %v10223_v14 = vld [vmem:[%s15664_s1 + $0xf14] sm:$0xf0] }
 0x201   :  { %5686 = vmatpush.bf16.msra.mxu1 %v8483_v54  ;;  %v5422_v54 = vpop.f32.mrf.mxu0  ;;  %v8738_v5 = vld [vmem:[%s15664_s1 + $0x11a8] sm:$0xf]  ;;  %v8611_v10 = vor.u32 %v10275_v3, %v8610_v9  ;;  %v10271_v34 = vld [vmem:[%s15664_s1 + $0x1094] sm:$0xf0] }
 0x202   :  { %5651 = vmatpush.bf16.msrb.mxu2 %v8035_v62  ;;  %v10195_v62 = vld [vmem:[%s15664_s1 + $0xe34] sm:$0xf0]  ;;  %v8402_v13 = vld [vmem:[%s15664_s1 + $0xf08] sm:$0xf]  ;;  %v8739_v17 = vor.u32 %v10307_v7, %v8738_v5 }
 0x203   :  { %5664 = vmatpush.bf16.msrb.mxu3 %v8163_v0  ;;  %v8755_v0 = vor.u32 %v10311_v55, %v8754_v36  ;;  %v8291_v60 = vor.u32 %v10195_v62, %v8290_v2  ;;  %v8722_v24 = vld [vmem:[%s15664_s1 + $0x1188] sm:$0xf]  ;;  %v8403_v50 = vor.u32 %v10223_v14, %v8402_v13  ;;  %v10267_v36 = vld [vmem:[%s15664_s1 + $0x1074] sm:$0xf0] }
 0x204   :  { %5674 = vmatpush.bf16.msra.mxu0 %v8339_v1  ;;  %v10227_v1 = vld [vmem:[%s15664_s1 + $0xf34] sm:$0xf0]  ;;  %v9026_v47 = vld [vmem:[%s15664_s1 + $0x13e8] sm:$0xf] }
 0x205   :  { %5687 = vmatpush.bf16.msra.mxu1 %v8467_v22  ;;  %v8274_v22 = vld [vmem:[%s15664_s1 + $0xe08] sm:$0xf]  ;;  %v8419_v8 = vor.u32 %v10227_v1, %v8418_v63  ;;  %v10343_v2 = vld [vmem:[%s15664_s1 + $0x12d4] sm:$0xf0] }
 0x206   :  { %5652 = vmatpush.bf16.msrb.mxu2 %v8019_v39  ;;  %v8594_v39 = vld [vmem:[%s15664_s1 + $0x1088] sm:$0xf]  ;;  %v8275_v43 = vor.u32 %v10191_v12, %v8274_v22  ;;  %v10375_v63 = vld [vmem:[%s15664_s1 + $0x13d4] sm:$0xf0] }
 0x207   :  { %5665 = vmatpush.bf16.msrb.mxu3 %v8147_v26  ;;  %v5433_v26 = vpop.f32.mrf.mxu1  ;;  %v8595_v51 = vor.u32 %v10271_v34, %v8594_v39  ;;  %v8706_v55 = vld [vmem:[%s15664_s1 + $0x1168] sm:$0xf]  ;;  %v10295_v13 = vld [vmem:[%s15664_s1 + $0x1154] sm:$0xf0] }
 0x208   :  { %5675 = vmatpush.bf16.msra.mxu0 %v8323_v27  ;;  %v10303_v27 = vld [vmem:[%s15664_s1 + $0x1194] sm:$0xf0]  ;;  %v5434_v18 = vadd.f32 %v5433_v26, %v13838_v61  ;;  %v8578_v61 = vld [vmem:[%s15664_s1 + $0x1068] sm:$0xf] }
 0x209   :  { %5688 = vmatpush.bf16.msra.mxu1 %v8451_v32  ;;  %5653 = vmatmul.bf16.vlgmr.msrb.gmra.mxu2 %v11451_v23  ;;  %v8898_v32 = vld [vmem:[%s15664_s1 + $0x12e8] sm:$0xf]  ;;  %v8723_v52 = vor.u32 %v10303_v27, %v8722_v24  ;;  %v10371_v34 = vld [vmem:[%s15664_s1 + $0x13b4] sm:$0xf0] }
 0x20a   :  { %5697 = vmatpush.bf16.msra.mxu2 %v8643_v40  ;;  %5666 = vmatmul.bf16.vlgmr.msrb.gmra.mxu3 %v11464_v31  ;;  %v10347_v40 = vld [vmem:[%s15664_s1 + $0x12f4] sm:$0xf0]  ;;  %v9010_v62 = vld [vmem:[%s15664_s1 + $0x13c8] sm:$0xf] }
 0x20b   :  { %5710 = vmatpush.bf16.msra.mxu3 %v8771_v48  ;;  %v10379_v48 = vld [vmem:[%s15664_s1 + $0x13f4] sm:$0xf0]  ;;  %v8899_v54 = vor.u32 %v10347_v40, %v8898_v32  ;;  %v8562_v7 = vld [vmem:[%s15664_s1 + $0x1048] sm:$0xf] }
 0x20c   :  { %5676 = vmatpush.bf16.msra.mxu0 %v8307_v57  ;;  %v9027_v57 = vor.u32 %v10379_v48, %v9026_v47  ;;  %v5446_v9 = vpop.f32.mrf.mxu2  ;;  %v8690_v22 = vld [vmem:[%s15664_s1 + $0x1148] sm:$0xf]  ;;  %v10291_v48 = vld [vmem:[%s15664_s1 + $0x1134] sm:$0xf0] }
 0x20d   :  { %5689 = vmatpush.bf16.msra.mxu1 %v8435_v58  ;;  %v10299_v58 = vld [vmem:[%s15664_s1 + $0x1174] sm:$0xf0]  ;;  %v5459_v5 = vpop.f32.mrf.mxu3  ;;  %v8866_v14 = vld [vmem:[%s15664_s1 + $0x12a8] sm:$0xf]  ;;  %v8691_v27 = vor.u32 %v10295_v13, %v8690_v22 }
 0x20e   :  { %5698 = vmatpush.bf16.msra.mxu2 %v8627_v59  ;;  %v8882_v59 = vld [vmem:[%s15664_s1 + $0x12c8] sm:$0xf]  ;;  %v8707_v1 = vor.u32 %v10299_v58, %v8706_v55 }
 0x20f   :  { %5711 = vmatpush.bf16.msra.mxu3 %v8755_v0  ;;  %v8579_v0 = vor.u32 %v10267_v36, %v8578_v61  ;;  %v8883_v3 = vor.u32 %v10343_v2, %v8882_v59  ;;  %v5435_v12 = vpop.f32.mrf.mxu1  ;;  %v8994_v39 = vld [vmem:[%s15664_s1 + $0x13a8] sm:$0xf]  ;;  %v10367_v61 = vld [vmem:[%s15664_s1 + $0x1394] sm:$0xf0] }
 0x210   :  { %5677 = vmatpush.bf16.msra.mxu0 %v8291_v60  ;;  %v10263_v60 = vld [vmem:[%s15664_s1 + $0x1054] sm:$0xf0]  ;;  %v8546_v40 = vld [vmem:[%s15664_s1 + $0x1028] sm:$0xf]  ;;  %v8995_v47 = vor.u32 %v10371_v34, %v8994_v39 }
 0x211   :  { %5690 = vmatpush.bf16.msra.mxu1 %v8419_v8  ;;  %v5447_v8 = vadd.f32 %v5446_v9, %v5434_v18  ;;  %v8563_v26 = vor.u32 %v10263_v60, %v8562_v7  ;;  %v10259_v18 = vld [vmem:[%s15664_s1 + $0x1034] sm:$0xf0]  ;;  %v8962_v7 = vld [vmem:[%s15664_s1 + $0x1368] sm:$0xf] }
 0x212   :  { %5699 = vmatpush.bf16.msra.mxu2 %v8611_v10  ;;  %v9011_v10 = vor.u32 %v10375_v63, %v9010_v62  ;;  %v8547_v55 = vor.u32 %v10259_v18, %v8546_v40  ;;  %v10255_v2 = vld [vmem:[%s15664_s1 + $0x1014] sm:$0xf0]  ;;  %v8658_v62 = vld [vmem:[%s15664_s1 + $0x1108] sm:$0xf] }
 0x213   :  { %5712 = vmatpush.bf16.msra.mxu3 %v8739_v17  ;;  %v10339_v17 = vld [vmem:[%s15664_s1 + $0x12b4] sm:$0xf0]  ;;  %v5460_v24 = vadd.f32 %v5459_v5, %v5447_v8  ;;  %v9154_v22 = vld [vmem:[%s15664_s1 + $0x14e8] sm:$0xf] }
 0x214   :  { %5678 = vmatpush.bf16.msra.mxu0 %v8275_v43  ;;  %v8867_v32 = vor.u32 %v10339_v17, %v8866_v14  ;;  %v8674_v43 = vld [vmem:[%s15664_s1 + $0x1128] sm:$0xf]  ;;  %v10287_v63 = vld [vmem:[%s15664_s1 + $0x1114] sm:$0xf0] }
 0x215   :  { %5691 = vmatpush.bf16.msra.mxu1 %v8403_v50  ;;  %v8850_v50 = vld [vmem:[%s15664_s1 + $0x1288] sm:$0xf]  ;;  %v8675_v58 = vor.u32 %v10291_v48, %v8674_v43  ;;  %v10331_v5 = vld [vmem:[%s15664_s1 + $0x1274] sm:$0xf0]  ;;  %v8659_v39 = vor.u32 %v10287_v63, %v8658_v62 }
 0x216   :  { %5700 = vmatpush.bf16.msra.mxu2 %v8595_v51  ;;  %v10335_v51 = vld [vmem:[%s15664_s1 + $0x1294] sm:$0xf0]  ;;  %v9282_v13 = vld [vmem:[%s15664_s1 + $0x15e8] sm:$0xf] }
 0x217   :  { %5713 = vmatpush.bf16.msra.mxu3 %v8723_v52  ;;  %5679 = vmatmul.bf16.vlgmr.msra.gmra.mxu0 %v11462_v28  ;;  %v5472_v52 = vpop.f32.mrf.mxu0  ;;  %v8851_v59 = vor.u32 %v10335_v51, %v8850_v50  ;;  %v10363_v60 = vld [vmem:[%s15664_s1 + $0x1374] sm:$0xf0]  ;;  %v8946_v40 = vld [vmem:[%s15664_s1 + $0x1348] sm:$0xf] }
 0x218   :  { %5723 = vmatpush.bf16.msrb.mxu0 %v8899_v54  ;;  %5692 = vmatmul.bf16.vlgmr.msra.gmra.mxu1 %v11472_v35  ;;  %v8978_v54 = vld [vmem:[%s15664_s1 + $0x1388] sm:$0xf]  ;;  %v5473_v36 = vadd.f32 %v5472_v52, %v5460_v24  ;;  %v10411_v8 = vld [vmem:[%s15664_s1 + $0x14f4] sm:$0xf0]  ;;  %v8963_v24 = vor.u32 %v10363_v60, %v8962_v7 }
 0x219   :  { %5736 = vmatpush.bf16.msrb.mxu1 %v9027_v57  ;;  %v8530_v57 = vld [vmem:[%s15664_s1 + $0x1008] sm:$0xf]  ;;  %v8979_v9 = vor.u32 %v10367_v61, %v8978_v54  ;;  %v10443_v14 = vld [vmem:[%s15664_s1 + $0x15f4] sm:$0xf0] }
 0x21a   :  { %5701 = vmatpush.bf16.msra.mxu2 %v8579_v0  ;;  %v5461_v0 = vpop.f32.mrf.mxu3  ;;  %v8531_v12 = vor.u32 %v10255_v2, %v8530_v57  ;;  %v9283_v18 = vor.u32 %v10443_v14, %v9282_v13  ;;  %v10359_v43 = vld [vmem:[%s15664_s1 + $0x1354] sm:$0xf0]  ;;  %v9266_v51 = vld [vmem:[%s15664_s1 + $0x15c8] sm:$0xf] }
 0x21b   :  { %5714 = vmatpush.bf16.msra.mxu3 %v8707_v1  ;;  %v5448_v1 = vpop.f32.mrf.mxu2  ;;  %v10407_v48 = vld [vmem:[%s15664_s1 + $0x14d4] sm:$0xf0]  ;;  %v8947_v61 = vor.u32 %v10359_v43, %v8946_v40  ;;  %v9122_v62 = vld [vmem:[%s15664_s1 + $0x14a8] sm:$0xf] }
 0x21c   :  { %5724 = vmatpush.bf16.msrb.mxu0 %v8883_v3  ;;  %v8834_v3 = vld [vmem:[%s15664_s1 + $0x1268] sm:$0xf]  ;;  %v10439_v52 = vld [vmem:[%s15664_s1 + $0x15d4] sm:$0xf0] }
 0x21d   :  { %5737 = vmatpush.bf16.msrb.mxu1 %v9011_v10  ;;  %v5485_v10 = vpop.f32.mrf.mxu1  ;;  %v8835_v34 = vor.u32 %v10331_v5, %v8834_v3  ;;  %v10323_v57 = vld [vmem:[%s15664_s1 + $0x1234] sm:$0xf0]  ;;  %v9250_v0 = vld [vmem:[%s15664_s1 + $0x15a8] sm:$0xf] }
 0x21e   :  { %5702 = vmatpush.bf16.msra.mxu2 %v8563_v26  ;;  %v14073_v17 = vadd.f32 %v5485_v10, %v5473_v36  ;;  %v9155_v26 = vor.u32 %v10411_v8, %v9154_v22  ;;  %v10355_v2 = vld [vmem:[%s15664_s1 + $0x1334] sm:$0xf0]  ;;  %v8786_v5 = vld [vmem:[%s15664_s1 + $0x1208] sm:$0xf] }
 0x21f   :  { %5715 = vmatpush.bf16.msra.mxu3 %v8691_v27  ;;  %v8818_v27 = vld [vmem:[%s15664_s1 + $0x1248] sm:$0xf]  ;;  %v5474_v50 = vpop.f32.mrf.mxu0  ;;  %v10403_v63 = vld [vmem:[%s15664_s1 + $0x14b4] sm:$0xf0] }
 0x220   :  { %5725 = vmatpush.bf16.msrb.mxu0 %v8867_v32  ;;  %v10327_v32 = vld [vmem:[%s15664_s1 + $0x1254] sm:$0xf0]  ;;  %v9123_v60 = vor.u32 %v10403_v63, %v9122_v62  ;;  %v8914_v8 = vld [vmem:[%s15664_s1 + $0x1308] sm:$0xf]  ;;  %vm6140_vm2 = vcmp.gt.f32.partialorder %v14073_v17, 0.0 }
 0x221   :  { %5738 = vmatpush.bf16.msrb.mxu1 %v8995_v47  ;;  %v9138_v47 = vld [vmem:[%s15664_s1 + $0x14c8] sm:$0xf]  ;;  %v8819_v54 = vor.u32 %v10327_v32, %v8818_v27  ;;  %v10435_v1 = vld [vmem:[%s15664_s1 + $0x15b4] sm:$0xf0] }
 0x222   :  { %5703 = vmatpush.bf16.msra.mxu2 %v8547_v55  ;;  %v9139_v36 = vor.u32 %v10407_v48, %v9138_v47  ;;  %v8802_v55 = vld [vmem:[%s15664_s1 + $0x1228] sm:$0xf]  ;;  %v10319_v22 = vld [vmem:[%s15664_s1 + $0x1214] sm:$0xf0] }
 0x223   :  { %5716 = vmatpush.bf16.msra.mxu3 %v8675_v58  ;;  %v8930_v58 = vld [vmem:[%s15664_s1 + $0x1328] sm:$0xf]  ;;  %v8803_v3 = vor.u32 %v10323_v57, %v8802_v55  ;;  %v10351_v10 = vld [vmem:[%s15664_s1 + $0x1314] sm:$0xf0]  ;;  %v8787_v27 = vor.u32 %v10319_v22, %v8786_v5 }
 0x224   :  { %5726 = vmatpush.bf16.msrb.mxu0 %v8851_v59  ;;  %v9267_v59 = vor.u32 %v10439_v52, %v9266_v51  ;;  %v8931_v7 = vor.u32 %v10355_v2, %v8930_v58  ;;  %v9106_v13 = vld [vmem:[%s15664_s1 + $0x1488] sm:$0xf]  ;;  %v10399_v14 = vld [vmem:[%s15664_s1 + $0x1494] sm:$0xf0] }
 0x225   :  { %5739 = vmatpush.bf16.msrb.mxu1 %v8979_v9  ;;  %v5487_v9 = vpop.f32.mrf.mxu1  ;;  %v9538_v32 = vld [vmem:[%s15664_s1 + $0x17e8] sm:$0xf]  ;;  %v10507_v40 = vld [vmem:[%s15664_s1 + $0x17f4] sm:$0xf0]  ;;  %v9107_v43 = vor.u32 %v10399_v14, %v9106_v13 }
 0x226   :  { %5704 = vmatpush.bf16.msra.mxu2 %v8531_v12  ;;  %v9251_v12 = vor.u32 %v10435_v1, %v9250_v0  ;;  %v9090_v47 = vld [vmem:[%s15664_s1 + $0x1468] sm:$0xf]  ;;  %v10395_v51 = vld [vmem:[%s15664_s1 + $0x1474] sm:$0xf0] }
 0x227   :  { %5717 = vmatpush.bf16.msra.mxu3 %v8659_v39  ;;  %v9234_v39 = vld [vmem:[%s15664_s1 + $0x1588] sm:$0xf]  ;;  %v10427_v55 = vld [vmem:[%s15664_s1 + $0x1574] sm:$0xf0]  ;;  %v9091_v62 = vor.u32 %v10395_v51, %v9090_v47 }
 0x228   :  { %5727 = vmatpush.bf16.msrb.mxu0 %v8835_v34  ;;  %v10431_v34 = vld [vmem:[%s15664_s1 + $0x1594] sm:$0xf0]  ;;  %v9218_v52 = vld [vmem:[%s15664_s1 + $0x1568] sm:$0xf] }
 0x229   :  { %5740 = vmatpush.bf16.msrb.mxu1 %v8963_v24  ;;  %5705 = vmatmul.bf16.vlgmr.msra.gmra.mxu2 %v11661_v37  ;;  %v9410_v24 = vld [vmem:[%s15664_s1 + $0x16e8] sm:$0xf]  ;;  %v9235_v48 = vor.u32 %v10431_v34, %v9234_v39  ;;  %v10471_v58 = vld [vmem:[%s15664_s1 + $0x16d4] sm:$0xf0]  ;;  %v9219_v0 = vor.u32 %v10427_v55, %v9218_v52 }
 0x22a   :  { %5749 = vmatpush.bf16.msrb.mxu2 %v9155_v26  ;;  %5718 = vmatmul.bf16.vlgmr.msra.gmra.mxu3 %v11674_v46  ;;  %v10475_v26 = vld [vmem:[%s15664_s1 + $0x16f4] sm:$0xf0]  ;;  %v9394_v57 = vld [vmem:[%s15664_s1 + $0x16c8] sm:$0xf] }
 0x22b   :  { %5762 = vmatpush.bf16.msrb.mxu3 %v9283_v18  ;;  %v8915_v18 = vor.u32 %v10351_v10, %v8914_v8  ;;  %v9411_v50 = vor.u32 %v10475_v26, %v9410_v24  ;;  %v10503_v2 = vld [vmem:[%s15664_s1 + $0x17d4] sm:$0xf0]  ;;  %v9395_v1 = vor.u32 %v10471_v58, %v9394_v57  ;;  %v9074_v9 = vld [vmem:[%s15664_s1 + $0x1448] sm:$0xf] }
 0x22c   :  { %5728 = vmatpush.bf16.msrb.mxu0 %v8819_v54  ;;  %v10558_v54 = vld [vmem:[%s15666_s2] sm:$0xf]  ;;  %v5498_v63 = vpop.f32.mrf.mxu2  ;;  %v9202_v5 = vld [vmem:[%s15664_s1 + $0x1548] sm:$0xf]  ;;  %v10423_v8 = vld [vmem:[%s15664_s1 + $0x1554] sm:$0xf0] }
 0x22d   :  { %5741 = vmatpush.bf16.msrb.mxu1 %v8947_v61  ;;  %v822_v61 = vperm.slane %v10558_v54, 2  ;;  %v9378_v10 = vld [vmem:[%s15664_s1 + $0x16a8] sm:$0xf]  ;;  %v10499_v14 = vld [vmem:[%s15664_s1 + $0x17b4] sm:$0xf0]  ;;  %v9203_v24 = vor.u32 %v10423_v8, %v9202_v5 }
 0x22e   :  { %5750 = vmatpush.bf16.msrb.mxu2 %v9139_v36  ;;  %v9539_v36 = vor.u32 %v10507_v40, %v9538_v32  ;;  %v9506_v13 = vld [vmem:[%s15664_s1 + $0x17a8] sm:$0xf]  ;;  %v10387_v32 = vld [vmem:[%s15664_s1 + $0x1434] sm:$0xf0] }
 0x22f   :  { %5763 = vmatpush.bf16.msrb.mxu3 %v9267_v59  ;;  %v9522_v59 = vld [vmem:[%s15664_s1 + $0x17c8] sm:$0xf]  ;;  %v10495_v51 = vld [vmem:[%s15664_s1 + $0x1794] sm:$0xf0] }
 0x230   :  { %5729 = vmatpush.bf16.msrb.mxu0 %v8803_v3  ;;  %v10391_v3 = vld [vmem:[%s15664_s1 + $0x1454] sm:$0xf0]  ;;  %v9523_v22 = vor.u32 %v10503_v2, %v9522_v59  ;;  %v9186_v40 = vld [vmem:[%s15664_s1 + $0x1528] sm:$0xf] }
 0x231   :  { %5742 = vmatpush.bf16.msrb.mxu1 %v8931_v7  ;;  %v5499_v7 = vadd.f32 %v5498_v63, %v822_v61  ;;  %v9075_v34 = vor.u32 %v10391_v3, %v9074_v9  ;;  %v9362_v47 = vld [vmem:[%s15664_s1 + $0x1688] sm:$0xf]  ;;  %v10383_v2 = vld [vmem:[%s15664_s1 + $0x1414] sm:$0xf0] }
 0x232   :  { %5751 = vmatpush.bf16.msrb.mxu2 %v9123_v60  ;;  %v5511_v60 = vpop.f32.mrf.mxu3  ;;  %v9042_v61 = vld [vmem:[%s15664_s1 + $0x1408] sm:$0xf]  ;;  %v10415_v63 = vld [vmem:[%s15664_s1 + $0x1514] sm:$0xf0] }
 0x233   :  { %5764 = vmatpush.bf16.msrb.mxu3 %v9251_v12  ;;  %v10467_v12 = vld [vmem:[%s15664_s1 + $0x16b4] sm:$0xf0]  ;;  %v5512_v39 = vadd.f32 %v5511_v60, %v5499_v7  ;;  %v9346_v9 = vld [vmem:[%s15664_s1 + $0x1668] sm:$0xf] }
 0x234   :  { %5730 = vmatpush.bf16.msrb.mxu0 %v8787_v27  ;;  %v9379_v26 = vor.u32 %v10467_v12, %v9378_v10  ;;  %v9058_v27 = vld [vmem:[%s15664_s1 + $0x1428] sm:$0xf]  ;;  %v5524_v52 = vpop.f32.mrf.mxu0  ;;  %v5500_v57 = vpop.f32.mrf.mxu2  ;;  %v10459_v3 = vld [vmem:[%s15664_s1 + $0x1674] sm:$0xf0]  ;;  %v9043_v10 = vor.u32 %v10383_v2, %v9042_v61  ;;  %v9769_v12 = vld [vmem:[%s15664_s1 + $0xec] sm:$0xf] }
 0x235   :  { %5743 = vmatpush.bf16.msrb.mxu1 %v8915_v18  ;;  %v9507_v18 = vor.u32 %v10499_v14, %v9506_v13  ;;  %v9059_v54 = vor.u32 %v10387_v32, %v9058_v27  ;;  %v5537_v55 = vpop.f32.mrf.mxu1  ;;  %v9474_v5 = vld [vmem:[%s15664_s1 + $0x1768] sm:$0xf]  ;;  %v10491_v60 = vld [vmem:[%s15664_s1 + $0x1774] sm:$0xf0]  ;;  %v6596_v13 = vld [vmem:[%s15664_s1 + $0xf8] sm:$0xf0] }
 0x236   :  { %5752 = vmatpush.bf16.msrb.mxu2 %v9107_v43  ;;  %v10419_v43 = vld [vmem:[%s15664_s1 + $0x1534] sm:$0xf0]  ;;  %v9458_v32 = vld [vmem:[%s15664_s1 + $0x1748] sm:$0xf] }
 0x237   :  { %5765 = vmatpush.bf16.msrb.mxu3 %v9235_v48  ;;  %5731 = vmatmul.bf16.vlgmr.msrb.gmra.mxu0 %v11672_v45  ;;  %v10463_v48 = vld [vmem:[%s15664_s1 + $0x1694] sm:$0xf0]  ;;  %v9187_v58 = vor.u32 %v10419_v43, %v9186_v40  ;;  %v6599_v40 = vor.u32 %v9769_v12, %v6596_v13  ;;  %v9586_v43 = vld [vmem:[%s15664_s1 + $0x1848] sm:$0xf] }
 0x238   :  { %5775 = vmatpush.bf16.msra.mxu0 %v9411_v50  ;;  %5744 = vmatmul.bf16.vlgmr.msrb.gmra.mxu1 %v11682_v49  ;;  %v9490_v50 = vld [vmem:[%s15664_s1 + $0x1788] sm:$0xf]  ;;  %v9363_v59 = vor.u32 %v10463_v48, %v9362_v47  ;;  %v10523_v8 = vld [vmem:[%s15664_s1 + $0x1874] sm:$0xf0] }
 0x239   :  { %5788 = vmatpush.bf16.msra.mxu1 %v9539_v36  ;;  %v5525_v36 = vadd.f32 %v5524_v52, %v5512_v39  ;;  %v9347_v39 = vor.u32 %v10459_v3, %v9346_v9  ;;  %v10455_v27 = vld [vmem:[%s15664_s1 + $0x1654] sm:$0xf0]  ;;  %v9298_v3 = vld [vmem:[%s15664_s1 + $0x1608] sm:$0xf] }
 0x23a   :  { %5753 = vmatpush.bf16.msrb.mxu2 %v9091_v62  ;;  %v9170_v62 = vld [vmem:[%s15664_s1 + $0x1508] sm:$0xf]  ;;  %v10519_v47 = vld [vmem:[%s15664_s1 + $0x1854] sm:$0xf0] }
 0x23b   :  { %5766 = vmatpush.bf16.msrb.mxu3 %v9219_v0  ;;  %v5513_v0 = vpop.f32.mrf.mxu3  ;;  %v14259_v7 = vadd.f32 %v5537_v55, %v5525_v36  ;;  %v9171_v14 = vor.u32 %v10415_v63, %v9170_v62  ;;  %v9587_v36 = vor.u32 %v10519_v47, %v9586_v43  ;;  %v9314_v55 = vld [vmem:[%s15664_s1 + $0x1628] sm:$0xf]  ;;  %v10451_v57 = vld [vmem:[%s15664_s1 + $0x1634] sm:$0xf0]  ;;  %v6980_v43 = vld [vmem:[%s15664_s1 + $0x3f8] sm:$0xf0] }
 0x23c   :  { %5776 = vmatpush.bf16.msra.mxu0 %v9395_v1  ;;  %v9491_v1 = vor.u32 %v10495_v51, %v9490_v50  ;;  %v5526_v48 = vpop.f32.mrf.mxu0  ;;  %v9765_v50 = vld [vmem:[%s15664_s1 + $0xcc] sm:$0xf]  ;;  %v6580_v51 = vld [vmem:[%s15664_s1 + $0xd8] sm:$0xf0]  ;;  %v10483_v2 = vld [vmem:[%s15664_s1 + $0x1734] sm:$0xf0]  ;;  %v9315_v9 = vor.u32 %v10451_v57, %v9314_v55 }
 0x23d   :  { %5789 = vmatpush.bf16.msra.mxu1 %v9523_v22  ;;  %v9602_v22 = vld [vmem:[%s15664_s1 + $0x1868] sm:$0xf]  ;;  %v5539_v52 = vpop.f32.mrf.mxu1  ;;  %v10515_v63 = vld [vmem:[%s15664_s1 + $0x1834] sm:$0xf0]  ;;  %v9761_v0 = vld [vmem:[%s15664_s1 + $0xac] sm:$0xf] }
 0x23e   :  { %5754 = vmatpush.bf16.msrb.mxu2 %v9075_v34  ;;  %v9475_v34 = vor.u32 %v10491_v60, %v9474_v5  ;;  %v9570_v62 = vld [vmem:[%s15664_s1 + $0x1828] sm:$0xf]  ;;  %v10447_v5 = vld [vmem:[%s15664_s1 + $0x1614] sm:$0xf0]  ;;  %v9753_v52 = vld [vmem:[%s15664_s1 + $0x6c] sm:$0xf] }
 0x23f   :  { %5767 = vmatpush.bf16.msrb.mxu3 %v9203_v24  ;;  %v9603_v24 = vor.u32 %v10523_v8, %v9602_v22  ;;  %v9571_v22 = vor.u32 %v10515_v63, %v9570_v62  ;;  %v9426_v8 = vld [vmem:[%s15664_s1 + $0x1708] sm:$0xf]  ;;  %v9797_v55 = vld [vmem:[%s15664_s1 + $0x1cc] sm:$0xf]  ;;  %v6708_v57 = vld [vmem:[%s15664_s1 + $0x1d8] sm:$0xf0] }
 0x240   :  { %5777 = vmatpush.bf16.msra.mxu0 %v9379_v26  ;;  %v9330_v26 = vld [vmem:[%s15664_s1 + $0x1648] sm:$0xf]  ;;  %v6964_v62 = vld [vmem:[%s15664_s1 + $0x3d8] sm:$0xf0] }
 0x241   :  { %5790 = vmatpush.bf16.msra.mxu1 %v9507_v18  ;;  %v10487_v18 = vld [vmem:[%s15664_s1 + $0x1754] sm:$0xf0]  ;;  %v9554_v12 = vld [vmem:[%s15664_s1 + $0x1808] sm:$0xf] }
 0x242   :  { %5755 = vmatpush.bf16.msrb.mxu2 %v9059_v54  ;;  %v9331_v54 = vor.u32 %v10455_v27, %v9330_v26  ;;  %v9459_v61 = vor.u32 %v10487_v18, %v9458_v32  ;;  %v6724_v26 = vld [vmem:[%s15664_s1 + $0x1f8] sm:$0xf0]  ;;  %v9833_v27 = vld [vmem:[%s15664_s1 + $0x2ec] sm:$0xf]  ;;  %v9299_v32 = vor.u32 %v10447_v5, %v9298_v3 }
 0x243   :  { %5768 = vmatpush.bf16.msrb.mxu3 %v9187_v58  ;;  %v9442_v58 = vld [vmem:[%s15664_s1 + $0x1728] sm:$0xf]  ;;  %v9865_v18 = vld [vmem:[%s15664_s1 + $0x3ec] sm:$0xf]  ;;  %v6516_v3 = vld [vmem:[%s15664_s1 + $0x58] sm:$0xf0] }
 0x244   :  { %5778 = vmatpush.bf16.msra.mxu0 %v9363_v59  ;;  %v6583_v59 = vor.u32 %v9765_v50, %v6580_v51  ;;  %v9443_v60 = vor.u32 %v10483_v2, %v9442_v58  ;;  %v9829_v58 = vld [vmem:[%s15664_s1 + $0x2cc] sm:$0xf] }
 0x245   :  { %5791 = vmatpush.bf16.msra.mxu1 %v9491_v1  ;;  %v6564_v1 = vld [vmem:[%s15664_s1 + $0xb8] sm:$0xf0]  ;;  %v9861_v2 = vld [vmem:[%s15664_s1 + $0x3cc] sm:$0xf] }
 0x246   :  { %5756 = vmatpush.bf16.msrb.mxu2 %v9043_v10  ;;  %v10479_v10 = vld [vmem:[%s15664_s1 + $0x1714] sm:$0xf0]  ;;  %v6567_v13 = vor.u32 %v9761_v0, %v6564_v1  ;;  %v6711_v1 = vor.u32 %v9797_v55, %v6708_v57 }
 0x247   :  { %5769 = vmatpush.bf16.msrb.mxu3 %v9171_v14  ;;  %v10511_v14 = vld [vmem:[%s15664_s1 + $0x1814] sm:$0xf0]  ;;  %v9427_v47 = vor.u32 %v10479_v10, %v9426_v8  ;;  %v6967_v8 = vor.u32 %v9861_v2, %v6964_v62  ;;  %v9793_v10 = vld [vmem:[%s15664_s1 + $0x1ac] sm:$0xf]  ;;  %v6484_v2 = vld [vmem:[%s15664_s1 + $0x18] sm:$0xf0] }
 0x248   :  { %5779 = vmatpush.bf16.msra.mxu0 %v9347_v39  ;;  %v9757_v39 = vld [vmem:[%s15664_s1 + $0x8c] sm:$0xf]  ;;  %v9555_v48 = vor.u32 %v10511_v14, %v9554_v12  ;;  %v6692_v12 = vld [vmem:[%s15664_s1 + $0x1b8] sm:$0xf0] }
 0x249   :  { %5792 = vmatpush.bf16.msra.mxu1 %v9475_v34  ;;  %5757 = vmatmul.bf16.vlgmr.msrb.gmra.mxu2 %v11876_v11  ;;  %v6548_v34 = vld [vmem:[%s15664_s1 + $0x98] sm:$0xf0]  ;;  %v9857_v14 = vld [vmem:[%s15664_s1 + $0x3ac] sm:$0xf] }
 0x24a   :  { %5805 = vmatpush.bf16.msra.mxu2 %v9603_v24  ;;  %5770 = vmatmul.bf16.vlgmr.msrb.gmra.mxu3 %v11889_v16  ;;  %v9801_v24 = vld [vmem:[%s15664_s1 + $0x1ec] sm:$0xf]  ;;  %v6551_v50 = vor.u32 %v9757_v39, %v6548_v34  ;;  %v6948_v39 = vld [vmem:[%s15664_s1 + $0x3b8] sm:$0xf0] }
 0x24b   :  { %5814 = vmatpush.bf16.msra.mxu3 %v6599_v40  ;;  %v6852_v40 = vld [vmem:[%s15664_s1 + $0x2f8] sm:$0xf0]  ;;  %v6727_v51 = vor.u32 %v9801_v24, %v6724_v26  ;;  %v6695_v26 = vor.u32 %v9793_v10, %v6692_v12  ;;  %v9897_v10 = vld [vmem:[%s15664_s1 + $0x4ec] sm:$0xf] }
 0x24c   :  { %5780 = vmatpush.bf16.msra.mxu0 %v9331_v54  ;;  %v6532_v54 = vld [vmem:[%s15664_s1 + $0x78] sm:$0xf0]  ;;  %v5550_v63 = vpop.f32.mrf.mxu2 }
 0x24d   :  { %5793 = vmatpush.bf16.msra.mxu1 %v9459_v61  ;;  %v6855_v61 = vor.u32 %v9833_v27, %v6852_v40  ;;  %v6535_v0 = vor.u32 %v9753_v52, %v6532_v54  ;;  %v5551_v5 = vadd.f32 %v5550_v63, %v14259_v7  ;;  %v6820_v7 = vld [vmem:[%s15664_s1 + $0x2b8] sm:$0xf0]  ;;  %v9745_v27 = vld [vmem:[%s15664_s1 + $0x2c] sm:$0xf] }
 0x24e   :  { %5806 = vmatpush.bf16.msra.mxu2 %v9587_v36  ;;  %v6983_v36 = vor.u32 %v9865_v18, %v6980_v43  ;;  %v6951_v18 = vor.u32 %v9857_v14, %v6948_v39  ;;  %v9789_v43 = vld [vmem:[%s15664_s1 + $0x18c] sm:$0xf]  ;;  %v6932_v54 = vld [vmem:[%s15664_s1 + $0x398] sm:$0xf0] }
 0x24f   :  { %5815 = vmatpush.bf16.msra.mxu3 %v6583_v59  ;;  %v6836_v59 = vld [vmem:[%s15664_s1 + $0x2d8] sm:$0xf0]  ;;  %v9853_v52 = vld [vmem:[%s15664_s1 + $0x38c] sm:$0xf] }
 0x250   :  { %5781 = vmatpush.bf16.msra.mxu0 %v9315_v9  ;;  %v9749_v9 = vld [vmem:[%s15664_s1 + $0x4c] sm:$0xf]  ;;  %v7108_v12 = vld [vmem:[%s15664_s1 + $0x4f8] sm:$0xf0] }
 0x251   :  { %5794 = vmatpush.bf16.msra.mxu1 %v9443_v60  ;;  %v5563_v60 = vpop.f32.mrf.mxu3  ;;  %v6519_v24 = vor.u32 %v9749_v9, %v6516_v3  ;;  %v9785_v9 = vld [vmem:[%s15664_s1 + $0x16c] sm:$0xf]  ;;  %v6660_v3 = vld [vmem:[%s15664_s1 + $0x178] sm:$0xf0] }
 0x252   :  { %5807 = vmatpush.bf16.msra.mxu2 %v9571_v22  ;;  %v6839_v22 = vor.u32 %v9829_v58, %v6836_v59  ;;  %v5564_v34 = vadd.f32 %v5563_v60, %v5551_v5  ;;  %v9741_v59 = vld [vmem:[%s15664_s1 + $0xc] sm:$0xf]  ;;  %v6788_v60 = vld [vmem:[%s15664_s1 + $0x278] sm:$0xf0] }
 0x253   :  { %5816 = vmatpush.bf16.msra.mxu3 %v6567_v13  ;;  %v9825_v13 = vld [vmem:[%s15664_s1 + $0x2ac] sm:$0xf] }
 0x254   :  { %5782 = vmatpush.bf16.msra.mxu0 %v9299_v32  ;;  %v6500_v32 = vld [vmem:[%s15664_s1 + $0x38] sm:$0xf0]  ;;  %v6823_v40 = vor.u32 %v9825_v13, %v6820_v7  ;;  %v5552_v55 = vpop.f32.mrf.mxu2  ;;  %v9817_v5 = vld [vmem:[%s15664_s1 + $0x26c] sm:$0xf]  ;;  %v6487_v13 = vor.u32 %v9741_v59, %v6484_v2  ;;  %v6663_v7 = vor.u32 %v9785_v9, %v6660_v3 }
 0x255   :  { %5795 = vmatpush.bf16.msra.mxu1 %v9427_v47  ;;  %v6676_v47 = vld [vmem:[%s15664_s1 + $0x198] sm:$0xf0]  ;;  %v6503_v57 = vor.u32 %v9745_v27, %v6500_v32  ;;  %v6791_v14 = vor.u32 %v9817_v5, %v6788_v60  ;;  %v7111_v27 = vor.u32 %v9897_v10, %v7108_v12  ;;  %v9809_v55 = vld [vmem:[%s15664_s1 + $0x22c] sm:$0xf] }
 0x256   :  { %5808 = vmatpush.bf16.msra.mxu2 %v9555_v48  ;;  %v9821_v48 = vld [vmem:[%s15664_s1 + $0x28c] sm:$0xf]  ;;  %v6679_v58 = vor.u32 %v9789_v43, %v6676_v47  ;;  %v6772_v32 = vld [vmem:[%s15664_s1 + $0x258] sm:$0xf0] }
 0x257   :  { %5817 = vmatpush.bf16.msra.mxu3 %v6551_v50  ;;  %5783 = vmatmul.bf16.vlgmr.msra.gmra.mxu0 %v11887_v15  ;;  %v5576_v50 = vpop.f32.mrf.mxu0  ;;  %v9893_v47 = vld [vmem:[%s15664_s1 + $0x4cc] sm:$0xf]  ;;  %v6884_v2 = vld [vmem:[%s15664_s1 + $0x338] sm:$0xf0] }
 0x258   :  { %5827 = vmatpush.bf16.msrb.mxu0 %v6727_v51  ;;  %5796 = vmatmul.bf16.vlgmr.msra.gmra.mxu1 %v11897_v19  ;;  %v6804_v51 = vld [vmem:[%s15664_s1 + $0x298] sm:$0xf0]  ;;  %v9841_v59 = vld [vmem:[%s15664_s1 + $0x32c] sm:$0xf] }
 0x259   :  { %5840 = vmatpush.bf16.msrb.mxu1 %v6855_v61  ;;  %9610 = vmatmul.msk.bf16.vlgmr.msra.gmra.mxu2 %vm4835_vm0, %v12000_v56  ;;  %v5577_v61 = vadd.f32 %v5576_v50, %v5564_v34  ;;  %v5565_v62 = vpop.f32.mrf.mxu3  ;;  %v6807_v63 = vor.u32 %v9821_v48, %v6804_v51  ;;  %v9781_v34 = vld [vmem:[%s15664_s1 + $0x14c] sm:$0xf]  ;;  %v7092_v48 = vld [vmem:[%s15664_s1 + $0x4d8] sm:$0xf0]  ;;  %v6887_v60 = vor.u32 %v9841_v59, %v6884_v2 }
 0x25a   :  { %5853 = vmatpush.bf16.msrb.mxu2 %v6983_v36  ;;  %v5589_v36 = vpop.f32.mrf.mxu1  ;;  %v9889_v62 = vld [vmem:[%s15664_s1 + $0x4ac] sm:$0xf]  ;;  %v6612_v3 = vld [vmem:[%s15664_s1 + $0x118] sm:$0xf0] }
 0x25b   :  { %5818 = vmatpush.bf16.msra.mxu3 %v6535_v0  ;;  %v6935_v0 = vor.u32 %v9853_v52, %v6932_v54  ;;  %v9773_v9 = vld [vmem:[%s15664_s1 + $0x10c] sm:$0xf]  ;;  %v6868_v12 = vld [vmem:[%s15664_s1 + $0x318] sm:$0xf0] }
 0x25c   :  { %5828 = vmatpush.bf16.msrb.mxu0 %v6711_v1  ;;  %v14451_v1 = vadd.f32 %v5589_v36, %v5577_v61  ;;  %v9777_v61 = vld [vmem:[%s15664_s1 + $0x12c] sm:$0xf]  ;;  %v6628_v36 = vld [vmem:[%s15664_s1 + $0x138] sm:$0xf0] }
 0x25d   :  { %5841 = vmatpush.bf16.msrb.mxu1 %v6839_v22  ;;  %v9849_v22 = vld [vmem:[%s15664_s1 + $0x36c] sm:$0xf] }
 0x25e   :  { %5854 = vmatpush.bf16.msrb.mxu2 %v6967_v8  ;;  %v6916_v8 = vld [vmem:[%s15664_s1 + $0x378] sm:$0xf0] }
 0x25f   :  { %5819 = vmatpush.bf16.msra.mxu3 %v6519_v24  ;;  %v6919_v39 = vor.u32 %v9849_v22, %v6916_v8  ;;  %v6644_v24 = vld [vmem:[%s15664_s1 + $0x158] sm:$0xf0]  ;;  %v5578_v43 = vpop.f32.mrf.mxu0  ;;  %v9805_v22 = vld [vmem:[%s15664_s1 + $0x20c] sm:$0xf] }
 0x260   :  { %5829 = vmatpush.bf16.msrb.mxu0 %v6695_v26  ;;  %v9813_v26 = vld [vmem:[%s15664_s1 + $0x24c] sm:$0xf]  ;;  %v6647_v51 = vor.u32 %v9781_v34, %v6644_v24  ;;  %v6615_v24 = vor.u32 %v9773_v9, %v6612_v3  ;;  %v7028_v3 = vld [vmem:[%s15664_s1 + $0x458] sm:$0xf0] }
 0x261   :  { %5842 = vmatpush.bf16.msrb.mxu1 %v6823_v40  ;;  %v9845_v40 = vld [vmem:[%s15664_s1 + $0x34c] sm:$0xf]  ;;  %v6775_v52 = vor.u32 %v9813_v26, %v6772_v32  ;;  %v7364_v26 = vld [vmem:[%s15664_s1 + $0x6f8] sm:$0xf0] }
 0x262   :  { %5855 = vmatpush.bf16.msrb.mxu2 %v6951_v18  ;;  %v6900_v18 = vld [vmem:[%s15664_s1 + $0x358] sm:$0xf0]  ;;  %v5591_v50 = vpop.f32.mrf.mxu1  ;;  %v9837_v8 = vld [vmem:[%s15664_s1 + $0x30c] sm:$0xf] }
 0x263   :  { %5820 = vmatpush.bf16.msra.mxu3 %v6503_v57  ;;  %v6903_v54 = vor.u32 %v9845_v40, %v6900_v18  ;;  %v7095_v57 = vor.u32 %v9893_v47, %v7092_v48  ;;  %v9961_v34 = vld [vmem:[%s15664_s1 + $0x6ec] sm:$0xf]  ;;  %v7492_v32 = vld [vmem:[%s15664_s1 + $0x7f8] sm:$0xf0]  ;;  %v6871_v18 = vor.u32 %v9837_v8, %v6868_v12 }
 0x264   :  { %5830 = vmatpush.bf16.msrb.mxu0 %v6679_v58  ;;  %v6756_v58 = vld [vmem:[%s15664_s1 + $0x238] sm:$0xf0]  ;;  %v9881_v48 = vld [vmem:[%s15664_s1 + $0x46c] sm:$0xf] }
 0x265   :  { %5843 = vmatpush.bf16.msrb.mxu1 %v6807_v63  ;;  %v7076_v63 = vld [vmem:[%s15664_s1 + $0x4b8] sm:$0xf0]  ;;  %v6759_v5 = vor.u32 %v9809_v55, %v6756_v58  ;;  %v9877_v9 = vld [vmem:[%s15664_s1 + $0x44c] sm:$0xf] }
 0x266   :  { %5856 = vmatpush.bf16.msrb.mxu2 %v6935_v0  ;;  %v6631_v0 = vor.u32 %v9777_v61, %v6628_v36  ;;  %v7079_v10 = vor.u32 %v9889_v62, %v7076_v63  ;;  %v7044_v50 = vld [vmem:[%s15664_s1 + $0x478] sm:$0xf0]  ;;  %v9957_v36 = vld [vmem:[%s15664_s1 + $0x6cc] sm:$0xf] }
 0x267   :  { %5821 = vmatpush.bf16.msra.mxu3 %v6487_v13  ;;  %v9885_v13 = vld [vmem:[%s15664_s1 + $0x48c] sm:$0xf]  ;;  %v7220_v61 = vld [vmem:[%s15664_s1 + $0x5d8] sm:$0xf0]  ;;  %v7047_v2 = vor.u32 %v9881_v48, %v7044_v50 }
 0x268   :  { %5831 = vmatpush.bf16.msrb.mxu0 %v6663_v7  ;;  %v7060_v7 = vld [vmem:[%s15664_s1 + $0x498] sm:$0xf0]  ;;  %v9985_v12 = vld [vmem:[%s15664_s1 + $0x7ac] sm:$0xf] }
 0x269   :  { %5844 = vmatpush.bf16.msrb.mxu1 %v6791_v14  ;;  %v9929_v14 = vld [vmem:[%s15664_s1 + $0x5ec] sm:$0xf]  ;;  %v7063_v43 = vor.u32 %v9885_v13, %v7060_v7  ;;  %v7348_v55 = vld [vmem:[%s15664_s1 + $0x6d8] sm:$0xf0]  ;;  %v7031_v7 = vor.u32 %v9877_v9, %v7028_v3 }
 0x26a   :  { %5857 = vmatpush.bf16.msrb.mxu2 %v6919_v39  ;;  %5822 = vmatmul.bf16.vlgmr.msra.gmra.mxu3 %v10889_v20  ;;  %v6740_v20 = vld [vmem:[%s15664_s1 + $0x218] sm:$0xf0]  ;;  %v10025_v9 = vld [vmem:[%s15664_s1 + $0x8ec] sm:$0xf] }
 0x26b   :  { %5866 = vmatpush.bf16.msrb.mxu3 %v7111_v27  ;;  %v7236_v39 = vld [vmem:[%s15664_s1 + $0x5f8] sm:$0xf0]  ;;  %v9993_v27 = vld [vmem:[%s15664_s1 + $0x7ec] sm:$0xf]  ;;  %v6743_v40 = vor.u32 %v9805_v22, %v6740_v20 }
 0x26c   :  { %5832 = vmatpush.bf16.msrb.mxu0 %v6647_v51  ;;  %v7239_v47 = vor.u32 %v9929_v14, %v7236_v39  ;;  %v7367_v51 = vor.u32 %v9961_v34, %v7364_v26  ;;  %v7476_v58 = vld [vmem:[%s15664_s1 + $0x7d8] sm:$0xf0]  ;;  %v5602_v59 = vpop.f32.mrf.mxu2  ;;  %v9921_v22 = vld [vmem:[%s15664_s1 + $0x5ac] sm:$0xf] }
 0x26d   :  { %5845 = vmatpush.bf16.msrb.mxu1 %v6775_v52  ;;  %v7495_v52 = vor.u32 %v9993_v27, %v7492_v32  ;;  %v5603_v62 = vadd.f32 %v5602_v59, %v14451_v1  ;;  %v7204_v1 = vld [vmem:[%s15664_s1 + $0x5b8] sm:$0xf0]  ;;  %v9953_v20 = vld [vmem:[%s15664_s1 + $0x6ac] sm:$0xf] }
 0x26e   :  { %5858 = vmatpush.bf16.msrb.mxu2 %v6903_v54  ;;  %v9925_v54 = vld [vmem:[%s15664_s1 + $0x5cc] sm:$0xf]  ;;  %v7460_v13 = vld [vmem:[%s15664_s1 + $0x7b8] sm:$0xf0]  ;;  %v7207_v14 = vor.u32 %v9921_v22, %v7204_v1 }
 0x26f   :  { %5867 = vmatpush.bf16.msrb.mxu3 %v7095_v57  ;;  %v9989_v57 = vld [vmem:[%s15664_s1 + $0x7cc] sm:$0xf]  ;;  %v7223_v63 = vor.u32 %v9925_v54, %v7220_v61  ;;  %v7012_v34 = vld [vmem:[%s15664_s1 + $0x438] sm:$0xf0] }
 0x270   :  { %5833 = vmatpush.bf16.msrb.mxu0 %v6631_v0  ;;  %v5615_v0 = vpop.f32.mrf.mxu3  ;;  %v9873_v39 = vld [vmem:[%s15664_s1 + $0x42c] sm:$0xf]  ;;  %v7316_v32 = vld [vmem:[%s15664_s1 + $0x698] sm:$0xf0] }
 0x271   :  { %5846 = vmatpush.bf16.msrb.mxu1 %v6759_v5  ;;  %v7351_v5 = vor.u32 %v9957_v36, %v7348_v55  ;;  %v5616_v8 = vadd.f32 %v5615_v0, %v5603_v62  ;;  %v9949_v26 = vld [vmem:[%s15664_s1 + $0x68c] sm:$0xf]  ;;  %v7015_v50 = vor.u32 %v9873_v39, %v7012_v34  ;;  %v6996_v54 = vld [vmem:[%s15664_s1 + $0x418] sm:$0xf0] }
 0x272   :  { %5859 = vmatpush.bf16.msrb.mxu2 %v6887_v60  ;;  %v7479_v60 = vor.u32 %v9989_v57, %v7476_v58  ;;  %v7319_v36 = vor.u32 %v9949_v26, %v7316_v32  ;;  %v9913_v58 = vld [vmem:[%s15664_s1 + $0x56c] sm:$0xf]  ;;  %v7172_v59 = vld [vmem:[%s15664_s1 + $0x578] sm:$0xf0] }
 0x273   :  { %5868 = vmatpush.bf16.msrb.mxu3 %v7079_v10  ;;  %v7332_v10 = vld [vmem:[%s15664_s1 + $0x6b8] sm:$0xf0]  ;;  %v10021_v34 = vld [vmem:[%s15664_s1 + $0x8cc] sm:$0xf] }
 0x274   :  { %5834 = vmatpush.bf16.msrb.mxu0 %v6615_v24  ;;  %v7335_v24 = vor.u32 %v9953_v20, %v7332_v10  ;;  %v5628_v27 = vpop.f32.mrf.mxu0  ;;  %v5604_v48 = vpop.f32.mrf.mxu2  ;;  %v7300_v62 = vld [vmem:[%s15664_s1 + $0x678] sm:$0xf0]  ;;  %v9909_v20 = vld [vmem:[%s15664_s1 + $0x54c] sm:$0xf] }
 0x275   :  { %5847 = vmatpush.bf16.msrb.mxu1 %v6743_v40  ;;  %v9981_v40 = vld [vmem:[%s15664_s1 + $0x78c] sm:$0xf]  ;;  %v7428_v0 = vld [vmem:[%s15664_s1 + $0x778] sm:$0xf0] }
 0x276   :  { %5860 = vmatpush.bf16.msrb.mxu2 %v6871_v18  ;;  %v7444_v18 = vld [vmem:[%s15664_s1 + $0x798] sm:$0xf0]  ;;  %v9941_v10 = vld [vmem:[%s15664_s1 + $0x64c] sm:$0xf] }
 0x277   :  { %5869 = vmatpush.bf16.msrb.mxu3 %v7063_v43  ;;  %5835 = vmatmul.bf16.vlgmr.msrb.gmra.mxu0 %v10892_v21  ;;  %v7188_v21 = vld [vmem:[%s15664_s1 + $0x598] sm:$0xf0]  ;;  %v5629_v43 = vadd.f32 %v5628_v27, %v5616_v8  ;;  %v7447_v55 = vor.u32 %v9981_v40, %v7444_v18  ;;  %v9905_v27 = vld [vmem:[%s15664_s1 + $0x52c] sm:$0xf] }
 0x278   :  { %5879 = vmatpush.bf16.msra.mxu0 %v7239_v47  ;;  %5848 = vmatmul.bf16.vlgmr.msrb.gmra.mxu1 %v10857_v4  ;;  %v9917_v4 = vld [vmem:[%s15664_s1 + $0x58c] sm:$0xf]  ;;  %v5641_v47 = vpop.f32.mrf.mxu1  ;;  %v5617_v61 = vpop.f32.mrf.mxu3  ;;  %v7620_v3 = vld [vmem:[%s15664_s1 + $0x8f8] sm:$0xf0] }
 0x279   :  { %5892 = vmatpush.bf16.msra.mxu1 %v7367_v51  ;;  %5861 = vmatmul.bf16.vlgmr.msrb.gmra.mxu2 %v10862_v6  ;;  %v7463_v6 = vor.u32 %v9985_v12, %v7460_v13  ;;  %v7191_v51 = vor.u32 %v9917_v4, %v7188_v21  ;;  %v14650_v57 = vadd.f32 %v5641_v47, %v5629_v43  ;;  %v7156_v8 = vld [vmem:[%s15664_s1 + $0x558] sm:$0xf0]  ;;  %v9937_v40 = vld [vmem:[%s15664_s1 + $0x62c] sm:$0xf] }
 0x27a   :  { %5905 = vmatpush.bf16.msra.mxu2 %v7495_v52  ;;  %v9869_v52 = vld [vmem:[%s15664_s1 + $0x40c] sm:$0xf]  ;;  %v7623_v12 = vor.u32 %v10025_v9, %v7620_v3  ;;  %v7284_v13 = vld [vmem:[%s15664_s1 + $0x658] sm:$0xf0]  ;;  %v7159_v4 = vor.u32 %v9909_v20, %v7156_v8 }
 0x27b   :  { %5870 = vmatpush.bf16.msrb.mxu3 %v7047_v2  ;;  %v9945_v2 = vld [vmem:[%s15664_s1 + $0x66c] sm:$0xf]  ;;  %v7287_v21 = vor.u32 %v9941_v10, %v7284_v13  ;;  %v7140_v32 = vld [vmem:[%s15664_s1 + $0x538] sm:$0xf0] }
 0x27c   :  { %5880 = vmatpush.bf16.msra.mxu0 %v7223_v63  ;;  %v9977_v63 = vld [vmem:[%s15664_s1 + $0x76c] sm:$0xf]  ;;  %v7303_v22 = vor.u32 %v9945_v2, %v7300_v62  ;;  %v5630_v39 = vpop.f32.mrf.mxu0  ;;  %v7268_v43 = vld [vmem:[%s15664_s1 + $0x638] sm:$0xf0] }
 0x27d   :  { %5893 = vmatpush.bf16.msra.mxu1 %v7351_v5  ;;  %v6999_v5 = vor.u32 %v9869_v52, %v6996_v54  ;;  %v7431_v1 = vor.u32 %v9977_v63, %v7428_v0  ;;  %v9969_v47 = vld [vmem:[%s15664_s1 + $0x72c] sm:$0xf]  ;;  %v7396_v48 = vld [vmem:[%s15664_s1 + $0x738] sm:$0xf0]  ;;  %v7143_v52 = vor.u32 %v9905_v27, %v7140_v32 }
 0x27e   :  { %5906 = vmatpush.bf16.msra.mxu2 %v7479_v60  ;;  %v7175_v60 = vor.u32 %v9913_v58, %v7172_v59  ;;  %v9901_v54 = vld [vmem:[%s15664_s1 + $0x50c] sm:$0xf]  ;;  %v7124_v61 = vld [vmem:[%s15664_s1 + $0x518] sm:$0xf0] }
 0x27f   :  { %5871 = vmatpush.bf16.msrb.mxu3 %v7031_v7  ;;  %v9973_v7 = vld [vmem:[%s15664_s1 + $0x74c] sm:$0xf]  ;;  %v7252_v58 = vld [vmem:[%s15664_s1 + $0x618] sm:$0xf0] }
 0x280   :  { %5881 = vmatpush.bf16.msra.mxu0 %v7207_v14  ;;  %v7412_v14 = vld [vmem:[%s15664_s1 + $0x758] sm:$0xf0]  ;;  %v9965_v59 = vld [vmem:[%s15664_s1 + $0x70c] sm:$0xf] }
 0x281   :  { %5894 = vmatpush.bf16.msra.mxu1 %v7335_v24  ;;  %v7604_v24 = vld [vmem:[%s15664_s1 + $0x8d8] sm:$0xf0]  ;;  %v7415_v26 = vor.u32 %v9973_v7, %v7412_v14  ;;  %v10013_v63 = vld [vmem:[%s15664_s1 + $0x88c] sm:$0xf] }
 0x282   :  { %5907 = vmatpush.bf16.msra.mxu2 %v7463_v6  ;;  %v5643_v6 = vpop.f32.mrf.mxu1  ;;  %v7607_v18 = vor.u32 %v10021_v34, %v7604_v24  ;;  %v7380_v62 = vld [vmem:[%s15664_s1 + $0x718] sm:$0xf0]  ;;  %v10057_v9 = vld [vmem:[%s15664_s1 + $0x9ec] sm:$0xf] }
 0x283   :  { %5872 = vmatpush.bf16.msrb.mxu3 %v7015_v50  ;;  %v10017_v50 = vld [vmem:[%s15664_s1 + $0x8ac] sm:$0xf]  ;;  %v7572_v0 = vld [vmem:[%s15664_s1 + $0x898] sm:$0xf0]  ;;  %v7383_v10 = vor.u32 %v9965_v59, %v7380_v62 }
 0x284   :  { %5882 = vmatpush.bf16.msra.mxu0 %v7191_v51  ;;  %v7588_v51 = vld [vmem:[%s15664_s1 + $0x8b8] sm:$0xf0]  ;;  %v10009_v7 = vld [vmem:[%s15664_s1 + $0x86c] sm:$0xf] }
 0x285   :  { %5895 = vmatpush.bf16.msra.mxu1 %v7319_v36  ;;  %v7399_v36 = vor.u32 %v9969_v47, %v7396_v48  ;;  %v7591_v2 = vor.u32 %v10017_v50, %v7588_v51  ;;  %v7748_v3 = vld [vmem:[%s15664_s1 + $0x9f8] sm:$0xf0]  ;;  %v10053_v24 = vld [vmem:[%s15664_s1 + $0x9cc] sm:$0xf] }
 0x286   :  { %5908 = vmatpush.bf16.msra.mxu2 %v7447_v55  ;;  %v9933_v55 = vld [vmem:[%s15664_s1 + $0x60c] sm:$0xf]  ;;  %v8004_v20 = vld [vmem:[%s15664_s1 + $0xbf8] sm:$0xf0]  ;;  %v7751_v13 = vor.u32 %v10057_v9, %v7748_v3 }
 0x287   :  { %5873 = vmatpush.bf16.msrb.mxu3 %v6999_v5  ;;  %v10089_v5 = vld [vmem:[%s15664_s1 + $0xaec] sm:$0xf]  ;;  %v7255_v8 = vor.u32 %v9933_v55, %v7252_v58  ;;  %v7556_v14 = vld [vmem:[%s15664_s1 + $0x878] sm:$0xf0] }
 0x288   :  { %5883 = vmatpush.bf16.msra.mxu0 %v7175_v60  ;;  %v7127_v60 = vor.u32 %v9901_v54, %v7124_v61  ;;  %v7732_v6 = vld [vmem:[%s15664_s1 + $0x9d8] sm:$0xf0]  ;;  %v10005_v48 = vld [vmem:[%s15664_s1 + $0x84c] sm:$0xf] }
 0x289   :  { %5896 = vmatpush.bf16.msra.mxu1 %v7303_v22  ;;  %v7876_v22 = vld [vmem:[%s15664_s1 + $0xaf8] sm:$0xf0]  ;;  %v10049_v54 = vld [vmem:[%s15664_s1 + $0x9ac] sm:$0xf] }
 0x28a   :  { %5909 = vmatpush.bf16.msra.mxu2 %v7431_v1  ;;  %5874 = vmatmul.bf16.vlgmr.msrb.gmra.mxu3 %v11048_v41  ;;  %v7271_v41 = vor.u32 %v9937_v40, %v7268_v43  ;;  %v10121_v1 = vld [vmem:[%s15664_s1 + $0xbec] sm:$0xf]  ;;  %v7879_v39 = vor.u32 %v10089_v5, %v7876_v22  ;;  %v7988_v27 = vld [vmem:[%s15664_s1 + $0xbd8] sm:$0xf0]  ;;  %v7559_v40 = vor.u32 %v10009_v7, %v7556_v14 }
 0x28b   :  { %5918 = vmatpush.bf16.msra.mxu3 %v7623_v12  ;;  %v7575_v12 = vor.u32 %v10013_v63, %v7572_v0  ;;  %v8007_v34 = vor.u32 %v10121_v1, %v8004_v20  ;;  %v7735_v43 = vor.u32 %v10053_v24, %v7732_v6  ;;  %v7540_v50 = vld [vmem:[%s15664_s1 + $0x858] sm:$0xf0]  ;;  %v10081_v61 = vld [vmem:[%s15664_s1 + $0xaac] sm:$0xf] }
 0x28c   :  { %5884 = vmatpush.bf16.msra.mxu0 %v7159_v4  ;;  %v10085_v4 = vld [vmem:[%s15664_s1 + $0xacc] sm:$0xf]  ;;  %v5654_v32 = vpop.f32.mrf.mxu2  ;;  %v7972_v58 = vld [vmem:[%s15664_s1 + $0xbb8] sm:$0xf0] }
 0x28d   :  { %5897 = vmatpush.bf16.msra.mxu1 %v7287_v21  ;;  %v7860_v21 = vld [vmem:[%s15664_s1 + $0xad8] sm:$0xf0]  ;;  %v5667_v47 = vpop.f32.mrf.mxu3  ;;  %v10113_v55 = vld [vmem:[%s15664_s1 + $0xbac] sm:$0xf] }
 0x28e   :  { %5910 = vmatpush.bf16.msra.mxu2 %v7415_v26  ;;  %v10117_v26 = vld [vmem:[%s15664_s1 + $0xbcc] sm:$0xf]  ;;  %v7863_v51 = vor.u32 %v10085_v4, %v7860_v21  ;;  %v7975_v63 = vor.u32 %v10113_v55, %v7972_v58  ;;  %v7700_v0 = vld [vmem:[%s15664_s1 + $0x998] sm:$0xf0] }
 0x28f   :  { %5919 = vmatpush.bf16.msra.mxu3 %v7607_v18  ;;  %v5655_v18 = vadd.f32 %v5654_v32, %v14650_v57  ;;  %v7716_v57 = vld [vmem:[%s15664_s1 + $0x9b8] sm:$0xf0]  ;;  %v10077_v9 = vld [vmem:[%s15664_s1 + $0xa8c] sm:$0xf] }
 0x290   :  { %5885 = vmatpush.bf16.msra.mxu0 %v7143_v52  ;;  %v7991_v52 = vor.u32 %v10117_v26, %v7988_v27  ;;  %v7719_v59 = vor.u32 %v10049_v54, %v7716_v57  ;;  %v7828_v5 = vld [vmem:[%s15664_s1 + $0xa98] sm:$0xf0]  ;;  %v10041_v6 = vld [vmem:[%s15664_s1 + $0x96c] sm:$0xf] }
 0x291   :  { %5898 = vmatpush.bf16.msra.mxu1 %v7271_v41  ;;  %v5668_v41 = vadd.f32 %v5667_v47, %v5655_v18  ;;  %v7956_v22 = vld [vmem:[%s15664_s1 + $0xb98] sm:$0xf0]  ;;  %v10073_v21 = vld [vmem:[%s15664_s1 + $0xa6c] sm:$0xf] }
 0x292   :  { %5911 = vmatpush.bf16.msra.mxu2 %v7399_v36  ;;  %v7844_v36 = vld [vmem:[%s15664_s1 + $0xab8] sm:$0xf0]  ;;  %v10105_v27 = vld [vmem:[%s15664_s1 + $0xb6c] sm:$0xf] }
 0x293   :  { %5920 = vmatpush.bf16.msra.mxu3 %v7591_v2  ;;  %v7524_v2 = vld [vmem:[%s15664_s1 + $0x838] sm:$0xf0]  ;;  %v7847_v62 = vor.u32 %v10081_v61, %v7844_v36  ;;  %v10069_v54 = vld [vmem:[%s15664_s1 + $0xa4c] sm:$0xf] }
 0x294   :  { %5886 = vmatpush.bf16.msra.mxu0 %v7127_v60  ;;  %v5680_v3 = vpop.f32.mrf.mxu0  ;;  %v10109_v60 = vld [vmem:[%s15664_s1 + $0xb8c] sm:$0xf]  ;;  %v7508_v7 = vld [vmem:[%s15664_s1 + $0x818] sm:$0xf0] }
 0x295   :  { %5899 = vmatpush.bf16.msra.mxu1 %v7255_v8  ;;  %v5681_v1 = vadd.f32 %v5680_v3, %v5668_v41  ;;  %v5693_v20 = vpop.f32.mrf.mxu1  ;;  %v5656_v8 = vpop.f32.mrf.mxu2  ;;  %v7684_v4 = vld [vmem:[%s15664_s1 + $0x978] sm:$0xf0]  ;;  %v10101_v41 = vld [vmem:[%s15664_s1 + $0xb4c] sm:$0xf] }
 0x296   :  { %5912 = vmatpush.bf16.msra.mxu2 %v7383_v10  ;;  %v5669_v14 = vpop.f32.mrf.mxu3  ;;  %v7812_v26 = vld [vmem:[%s15664_s1 + $0xa78] sm:$0xf0]  ;;  %v7687_v47 = vor.u32 %v10041_v6, %v7684_v4  ;;  %v10149_v58 = vld [vmem:[%s15664_s1 + $0xccc] sm:$0xf] }
 0x297   :  { %5921 = vmatpush.bf16.msra.mxu3 %v7575_v12  ;;  %5887 = vmatmul.bf16.vlgmr.msra.gmra.mxu0 %v11052_v44  ;;  %v10001_v44 = vld [vmem:[%s15664_s1 + $0x82c] sm:$0xf]  ;;  %v14849_v24 = vadd.f32 %v5693_v20, %v5681_v1  ;;  %v7940_v32 = vld [vmem:[%s15664_s1 + $0xb78] sm:$0xf0] }
 0x298   :  { %5931 = vmatpush.bf16.msrb.mxu0 %v7751_v13  ;;  %5900 = vmatmul.bf16.vlgmr.msra.gmra.mxu1 %v11040_v38  ;;  %v10045_v38 = vld [vmem:[%s15664_s1 + $0x98c] sm:$0xf]  ;;  %v7527_v10 = vor.u32 %v10001_v44, %v7524_v2  ;;  %v8132_v18 = vld [vmem:[%s15664_s1 + $0xcf8] sm:$0xf0] }
 0x299   :  { %5944 = vmatpush.bf16.msrb.mxu1 %v7879_v39  ;;  %5913 = vmatmul.bf16.vlgmr.msra.gmra.mxu2 %v11050_v42  ;;  %v7543_v42 = vor.u32 %v10005_v48, %v7540_v50  ;;  %v7703_v12 = vor.u32 %v10045_v38, %v7700_v0  ;;  %v9997_v13 = vld [vmem:[%s15664_s1 + $0x80c] sm:$0xf]  ;;  %v7831_v39 = vor.u32 %v10077_v9, %v7828_v5  ;;  %v7796_v61 = vld [vmem:[%s15664_s1 + $0xa58] sm:$0xf0] }
 0x29a   :  { %5957 = vmatpush.bf16.msrb.mxu2 %v8007_v34  ;;  %v7959_v34 = vor.u32 %v10109_v60, %v7956_v22  ;;  %v7815_v48 = vor.u32 %v10073_v21, %v7812_v26  ;;  %v7943_v50 = vor.u32 %v10105_v27, %v7940_v32  ;;  %v7924_v36 = vld [vmem:[%s15664_s1 + $0xb58] sm:$0xf0]  ;;  %v7799_v2 = vor.u32 %v10069_v54, %v7796_v61  ;;  %v10065_v0 = vld [vmem:[%s15664_s1 + $0xa2c] sm:$0xf] }
 0x29b   :  { %5922 = vmatpush.bf16.msra.mxu3 %v7559_v40  ;;  %v10153_v40 = vld [vmem:[%s15664_s1 + $0xcec] sm:$0xf]  ;;  %v7652_v38 = vld [vmem:[%s15664_s1 + $0x938] sm:$0xf0] }
 0x29c   :  { %5932 = vmatpush.bf16.msrb.mxu0 %v7735_v43  ;;  %v7511_v43 = vor.u32 %v9997_v13, %v7508_v7  ;;  %v8135_v57 = vor.u32 %v10153_v40, %v8132_v18  ;;  %v5682_v55 = vpop.f32.mrf.mxu0  ;;  %v7780_v3 = vld [vmem:[%s15664_s1 + $0xa38] sm:$0xf0]  ;;  %v10097_v5 = vld [vmem:[%s15664_s1 + $0xb2c] sm:$0xf] }
 0x29d   :  { %5945 = vmatpush.bf16.msrb.mxu1 %v7863_v51  ;;  %v10037_v51 = vld [vmem:[%s15664_s1 + $0x94c] sm:$0xf]  ;;  %v7908_v60 = vld [vmem:[%s15664_s1 + $0xb38] sm:$0xf0] }
 0x29e   :  { %5958 = vmatpush.bf16.msrb.mxu2 %v7991_v52  ;;  %v7668_v52 = vld [vmem:[%s15664_s1 + $0x958] sm:$0xf0]  ;;  %v10145_v22 = vld [vmem:[%s15664_s1 + $0xcac] sm:$0xf] }
 0x29f   :  { %5923 = vmatpush.bf16.msra.mxu3 %v7543_v42  ;;  %v8116_v42 = vld [vmem:[%s15664_s1 + $0xcd8] sm:$0xf0]  ;;  %v7671_v44 = vor.u32 %v10037_v51, %v7668_v52  ;;  %v10029_v8 = vld [vmem:[%s15664_s1 + $0x90c] sm:$0xf] }
 0x2a0   :  { %5933 = vmatpush.bf16.msrb.mxu0 %v7719_v59  ;;  %v5695_v59 = vpop.f32.mrf.mxu1  ;;  %v8119_v9 = vor.u32 %v10149_v58, %v8116_v42  ;;  %v8100_v1 = vld [vmem:[%s15664_s1 + $0xcb8] sm:$0xf0]  ;;  %v10061_v13 = vld [vmem:[%s15664_s1 + $0xa0c] sm:$0xf] }
 0x2a1   :  { %5946 = vmatpush.bf16.msrb.mxu1 %v7847_v62  ;;  %v7927_v62 = vor.u32 %v10101_v41, %v7924_v36  ;;  %v7764_v7 = vld [vmem:[%s15664_s1 + $0xa18] sm:$0xf0]  ;;  %v10093_v14 = vld [vmem:[%s15664_s1 + $0xb0c] sm:$0xf] }
 0x2a2   :  { %5959 = vmatpush.bf16.msrb.mxu2 %v7975_v63  ;;  %v10033_v63 = vld [vmem:[%s15664_s1 + $0x92c] sm:$0xf]  ;;  %v8084_v4 = vld [vmem:[%s15664_s1 + $0xc98] sm:$0xf0] }
 0x2a3   :  { %5924 = vmatpush.bf16.msra.mxu3 %v7527_v10  ;;  %v7655_v20 = vor.u32 %v10033_v63, %v7652_v38  ;;  %v7636_v10 = vld [vmem:[%s15664_s1 + $0x918] sm:$0xf0]  ;;  %v10141_v6 = vld [vmem:[%s15664_s1 + $0xc8c] sm:$0xf] }
 0x2a4   :  { %5934 = vmatpush.bf16.msrb.mxu0 %v7703_v12  ;;  %v7911_v12 = vor.u32 %v10097_v5, %v7908_v60  ;;  %v10185_v21 = vld [vmem:[%s15664_s1 + $0xdec] sm:$0xf]  ;;  %v8260_v26 = vld [vmem:[%s15664_s1 + $0xdf8] sm:$0xf0]  ;;  %v7639_v32 = vor.u32 %v10029_v8, %v7636_v10 }
 0x2a5   :  { %5947 = vmatpush.bf16.msrb.mxu1 %v7831_v39  ;;  %v8103_v39 = vor.u32 %v10145_v22, %v8100_v1  ;;  %v10217_v27 = vld [vmem:[%s15664_s1 + $0xeec] sm:$0xf]  ;;  %v8388_v40 = vld [vmem:[%s15664_s1 + $0xef8] sm:$0xf0]  ;;  %v8263_v51 = vor.u32 %v10185_v21, %v8260_v26 }
 0x2a6   :  { %5960 = vmatpush.bf16.msrb.mxu2 %v7959_v34  ;;  %v7892_v34 = vld [vmem:[%s15664_s1 + $0xb18] sm:$0xf0]  ;;  %v10249_v18 = vld [vmem:[%s15664_s1 + $0xfec] sm:$0xf] }
 0x2a7   :  { %5925 = vmatpush.bf16.msra.mxu3 %v7511_v43  ;;  %v8516_v43 = vld [vmem:[%s15664_s1 + $0xff8] sm:$0xf0]  ;;  %v10137_v52 = vld [vmem:[%s15664_s1 + $0xc6c] sm:$0xf] }
 0x2a8   :  { %5935 = vmatpush.bf16.msrb.mxu0 %v7687_v47  ;;  %v7767_v47 = vor.u32 %v10061_v13, %v7764_v7  ;;  %v8068_v54 = vld [vmem:[%s15664_s1 + $0xc78] sm:$0xf0]  ;;  %v8519_v61 = vor.u32 %v10249_v18, %v8516_v43  ;;  %v10181_v41 = vld [vmem:[%s15664_s1 + $0xdcc] sm:$0xf] }
 0x2a9   :  { %5948 = vmatpush.bf16.msrb.mxu1 %v7815_v48  ;;  %v7895_v48 = vor.u32 %v10093_v14, %v7892_v34  ;;  %v8244_v36 = vld [vmem:[%s15664_s1 + $0xdd8] sm:$0xf0]  ;;  %v10213_v55 = vld [vmem:[%s15664_s1 + $0xecc] sm:$0xf] }
 0x2aa   :  { %5961 = vmatpush.bf16.msrb.mxu2 %v7943_v50  ;;  %5926 = vmatmul.bf16.vlgmr.msra.gmra.mxu3 %v11241_v25  ;;  %v7783_v25 = vor.u32 %v10065_v0, %v7780_v3  ;;  %v8087_v50 = vor.u32 %v10141_v6, %v8084_v4  ;;  %v8372_v58 = vld [vmem:[%s15664_s1 + $0xed8] sm:$0xf0]  ;;  %v10245_v42 = vld [vmem:[%s15664_s1 + $0xfcc] sm:$0xf]  ;;  %v8247_v63 = vor.u32 %v10181_v41, %v8244_v36 }
 0x2ab   :  { %5970 = vmatpush.bf16.msrb.mxu3 %v8135_v57  ;;  %v8391_v57 = vor.u32 %v10217_v27, %v8388_v40  ;;  %v8500_v59 = vld [vmem:[%s15664_s1 + $0xfd8] sm:$0xf0]  ;;  %v10133_v0 = vld [vmem:[%s15664_s1 + $0xc4c] sm:$0xf]  ;;  %v8375_v3 = vor.u32 %v10213_v55, %v8372_v58 }
 0x2ac   :  { %5936 = vmatpush.bf16.msrb.mxu0 %v7671_v44  ;;  %v5706_v44 = vpop.f32.mrf.mxu2  ;;  %v8503_v5 = vor.u32 %v10245_v42, %v8500_v59  ;;  %v10177_v60 = vld [vmem:[%s15664_s1 + $0xdac] sm:$0xf]  ;;  %v8484_v10 = vld [vmem:[%s15664_s1 + $0xfb8] sm:$0xf0] }
 0x2ad   :  { %5949 = vmatpush.bf16.msrb.mxu1 %v7799_v2  ;;  %v8071_v2 = vor.u32 %v10137_v52, %v8068_v54  ;;  %v5719_v38 = vpop.f32.mrf.mxu3  ;;  %v10209_v22 = vld [vmem:[%s15664_s1 + $0xeac] sm:$0xf]  ;;  %v8212_v14 = vld [vmem:[%s15664_s1 + $0xd98] sm:$0xf0] }
 0x2ae   :  { %5962 = vmatpush.bf16.msrb.mxu2 %v7927_v62  ;;  %v5707_v62 = vadd.f32 %v5706_v44, %v14849_v24  ;;  %v8228_v24 = vld [vmem:[%s15664_s1 + $0xdb8] sm:$0xf0]  ;;  %v10241_v8 = vld [vmem:[%s15664_s1 + $0xfac] sm:$0xf] }
 0x2af   :  { %5971 = vmatpush.bf16.msrb.mxu3 %v8119_v9  ;;  %v8052_v9 = vld [vmem:[%s15664_s1 + $0xc58] sm:$0xf0]  ;;  %v8487_v7 = vor.u32 %v10241_v8, %v8484_v10  ;;  %v10237_v4 = vld [vmem:[%s15664_s1 + $0xf8c] sm:$0xf] }
 0x2b0   :  { %5937 = vmatpush.bf16.msrb.mxu0 %v7655_v20  ;;  %v5720_v1 = vadd.f32 %v5719_v38, %v5707_v62  ;;  %v8356_v20 = vld [vmem:[%s15664_s1 + $0xeb8] sm:$0xf0]  ;;  %v10125_v43 = vld [vmem:[%s15664_s1 + $0xc0c] sm:$0xf] }
 0x2b1   :  { %5950 = vmatpush.bf16.msrb.mxu1 %v7783_v25  ;;  %v8231_v25 = vor.u32 %v10177_v60, %v8228_v24  ;;  %v8359_v13 = vor.u32 %v10209_v22, %v8356_v20  ;;  %v8340_v6 = vld [vmem:[%s15664_s1 + $0xe98] sm:$0xf0]  ;;  %v10169_v54 = vld [vmem:[%s15664_s1 + $0xd6c] sm:$0xf] }
 0x2b2   :  { %5963 = vmatpush.bf16.msrb.mxu2 %v7911_v12  ;;  %v8036_v12 = vld [vmem:[%s15664_s1 + $0xc38] sm:$0xf0]  ;;  %v10233_v36 = vld [vmem:[%s15664_s1 + $0xf6c] sm:$0xf] }
 0x2b3   :  { %5972 = vmatpush.bf16.msrb.mxu3 %v8103_v39  ;;  %v10205_v39 = vld [vmem:[%s15664_s1 + $0xe8c] sm:$0xf]  ;;  %v8468_v21 = vld [vmem:[%s15664_s1 + $0xf98] sm:$0xf0] }
 0x2b4   :  { %5938 = vmatpush.bf16.msrb.mxu0 %v7639_v32  ;;  %v5732_v34 = vpop.f32.mrf.mxu0  ;;  %v5708_v32 = vpop.f32.mrf.mxu2  ;;  %v8324_v41 = vld [vmem:[%s15664_s1 + $0xe78] sm:$0xf0]  ;;  %v10281_v58 = vld [vmem:[%s15664_s1 + $0x10ec] sm:$0xf] }
 0x2b5   :  { %5951 = vmatpush.bf16.msrb.mxu1 %v7767_v47  ;;  %v5733_v26 = vadd.f32 %v5732_v34, %v5720_v1  ;;  %v5745_v27 = vpop.f32.mrf.mxu1  ;;  %v8020_v47 = vld [vmem:[%s15664_s1 + $0xc18] sm:$0xf0]  ;;  %v10277_v22 = vld [vmem:[%s15664_s1 + $0x10cc] sm:$0xf] }
 0x2b6   :  { %5964 = vmatpush.bf16.msrb.mxu2 %v7895_v48  ;;  %v5721_v48 = vpop.f32.mrf.mxu3  ;;  %v8452_v55 = vld [vmem:[%s15664_s1 + $0xf78] sm:$0xf0]  ;;  %v8023_v59 = vor.u32 %v10125_v43, %v8020_v47  ;;  %v10269_v47 = vld [vmem:[%s15664_s1 + $0x108c] sm:$0xf] }
 0x2b7   :  { %5973 = vmatpush.bf16.msrb.mxu3 %v8087_v50  ;;  %5939 = vmatmul.bf16.vlgmr.msrb.gmra.mxu0 %v11254_v30  ;;  %v8055_v30 = vor.u32 %v10133_v0, %v8052_v9  ;;  %v8343_v50 = vor.u32 %v10205_v39, %v8340_v6  ;;  %v15048_v52 = vadd.f32 %v5745_v27, %v5733_v26  ;;  %v8644_v42 = vld [vmem:[%s15664_s1 + $0x10f8] sm:$0xf0]  ;;  %v10197_v0 = vld [vmem:[%s15664_s1 + $0xe4c] sm:$0xf] }
 0x2b8   :  { %5983 = vmatpush.bf16.msra.mxu0 %v8263_v51  ;;  %5952 = vmatmul.bf16.vlgmr.msrb.gmra.mxu1 %v11252_v29  ;;  %v10173_v29 = vld [vmem:[%s15664_s1 + $0xd8c] sm:$0xf]  ;;  %v8471_v51 = vor.u32 %v10237_v4, %v8468_v21  ;;  %v8455_v62 = vor.u32 %v10233_v36, %v8452_v55  ;;  %v8180_v38 = vld [vmem:[%s15664_s1 + $0xd58] sm:$0xf0]  ;;  %v8647_v9 = vor.u32 %v10281_v58, %v8644_v42 }
 0x2b9   :  { %5996 = vmatpush.bf16.msra.mxu1 %v8391_v57  ;;  %5965 = vmatmul.bf16.vlgmr.msrb.gmra.mxu2 %v11262_v33  ;;  %v10129_v33 = vld [vmem:[%s15664_s1 + $0xc2c] sm:$0xf]  ;;  %v8215_v18 = vor.u32 %v10173_v29, %v8212_v14  ;;  %v8196_v57 = vld [vmem:[%s15664_s1 + $0xd78] sm:$0xf0] }
 0x2ba   :  { %6009 = vmatpush.bf16.msra.mxu2 %v8519_v61  ;;  %v8039_v40 = vor.u32 %v10129_v33, %v8036_v12  ;;  %v10201_v61 = vld [vmem:[%s15664_s1 + $0xe6c] sm:$0xf]  ;;  %v8199_v44 = vor.u32 %v10169_v54, %v8196_v57  ;;  %v8436_v60 = vld [vmem:[%s15664_s1 + $0xf58] sm:$0xf0] }
 0x2bb   :  { %5974 = vmatpush.bf16.msrb.mxu3 %v8071_v2  ;;  %v8327_v2 = vor.u32 %v10201_v61, %v8324_v41  ;;  %v8628_v1 = vld [vmem:[%s15664_s1 + $0x10d8] sm:$0xf0]  ;;  %v10193_v12 = vld [vmem:[%s15664_s1 + $0xe2c] sm:$0xf] }
 0x2bc   :  { %5984 = vmatpush.bf16.msra.mxu0 %v8247_v63  ;;  %v10165_v63 = vld [vmem:[%s15664_s1 + $0xd4c] sm:$0xf]  ;;  %v5734_v24 = vpop.f32.mrf.mxu0  ;;  %v8164_v33 = vld [vmem:[%s15664_s1 + $0xd38] sm:$0xf0] }
 0x2bd   :  { %5997 = vmatpush.bf16.msra.mxu1 %v8375_v3  ;;  %v8308_v3 = vld [vmem:[%s15664_s1 + $0xe58] sm:$0xf0]  ;;  %v5747_v20 = vpop.f32.mrf.mxu1  ;;  %v8183_v8 = vor.u32 %v10165_v63, %v8180_v38  ;;  %v10225_v29 = vld [vmem:[%s15664_s1 + $0xf2c] sm:$0xf] }
 0x2be   :  { %6010 = vmatpush.bf16.msra.mxu2 %v8503_v5  ;;  %v10229_v5 = vld [vmem:[%s15664_s1 + $0xf4c] sm:$0xf]  ;;  %v8311_v10 = vor.u32 %v10197_v0, %v8308_v3  ;;  %v8420_v14 = vld [vmem:[%s15664_s1 + $0xf38] sm:$0xf0] }
 0x2bf   :  { %5975 = vmatpush.bf16.msrb.mxu3 %v8055_v30  ;;  %v8439_v30 = vor.u32 %v10229_v5, %v8436_v60  ;;  %v10273_v39 = vld [vmem:[%s15664_s1 + $0x10ac] sm:$0xf]  ;;  %v8612_v34 = vld [vmem:[%s15664_s1 + $0x10b8] sm:$0xf0]  ;;  %v8423_v26 = vor.u32 %v10225_v29, %v8420_v14 }
 0x2c0   :  { %5985 = vmatpush.bf16.msra.mxu0 %v8231_v25  ;;  %v10161_v25 = vld [vmem:[%s15664_s1 + $0xd2c] sm:$0xf]  ;;  %v8148_v21 = vld [vmem:[%s15664_s1 + $0xd18] sm:$0xf0] }
 0x2c1   :  { %5998 = vmatpush.bf16.msra.mxu1 %v8359_v13  ;;  %v8631_v13 = vor.u32 %v10277_v22, %v8628_v1  ;;  %v8167_v6 = vor.u32 %v10161_v25, %v8164_v33  ;;  %v10157_v4 = vld [vmem:[%s15664_s1 + $0xd0c] sm:$0xf]  ;;  %v8276_v32 = vld [vmem:[%s15664_s1 + $0xe18] sm:$0xf0] }
 0x2c2   :  { %6011 = vmatpush.bf16.msra.mxu2 %v8487_v7  ;;  %v8292_v7 = vld [vmem:[%s15664_s1 + $0xe38] sm:$0xf0]  ;;  %v10189_v27 = vld [vmem:[%s15664_s1 + $0xe0c] sm:$0xf]  ;;  %v8151_v57 = vor.u32 %v10157_v4, %v8148_v21 }
 0x2c3   :  { %5976 = vmatpush.bf16.msrb.mxu3 %v8039_v40  ;;  %v10221_v40 = vld [vmem:[%s15664_s1 + $0xf0c] sm:$0xf]  ;;  %v8404_v43 = vld [vmem:[%s15664_s1 + $0xf18] sm:$0xf0]  ;;  %v8279_v55 = vor.u32 %v10189_v27, %v8276_v32 }
 0x2c4   :  { %5986 = vmatpush.bf16.msra.mxu0 %v8215_v18  ;;  %v8615_v18 = vor.u32 %v10273_v39, %v8612_v34  ;;  %v8596_v48 = vld [vmem:[%s15664_s1 + $0x1098] sm:$0xf0]  ;;  %v10345_v54 = vld [vmem:[%s15664_s1 + $0x12ec] sm:$0xf]  ;;  %v8407_v58 = vor.u32 %v10221_v40, %v8404_v43 }
 0x2c5   :  { %5999 = vmatpush.bf16.msra.mxu1 %v8343_v50  ;;  %v10313_v50 = vld [vmem:[%s15664_s1 + $0x11ec] sm:$0xf]  ;;  %v8900_v61 = vld [vmem:[%s15664_s1 + $0x12f8] sm:$0xf0]  ;;  %v8599_v42 = vor.u32 %v10269_v47, %v8596_v48 }
 0x2c6   :  { %6012 = vmatpush.bf16.msra.mxu2 %v8471_v51  ;;  %v8772_v51 = vld [vmem:[%s15664_s1 + $0x11f8] sm:$0xf0]  ;;  %v10377_v41 = vld [vmem:[%s15664_s1 + $0x13ec] sm:$0xf] }
 0x2c7   :  { %5977 = vmatpush.bf16.msrb.mxu3 %v8023_v59  ;;  %v9028_v36 = vld [vmem:[%s15664_s1 + $0x13f8] sm:$0xf0]  ;;  %v8775_v59 = vor.u32 %v10313_v50, %v8772_v51  ;;  %v10309_v38 = vld [vmem:[%s15664_s1 + $0x11cc] sm:$0xf] }
 0x2c8   :  { %5987 = vmatpush.bf16.msra.mxu0 %v8199_v44  ;;  %v10265_v44 = vld [vmem:[%s15664_s1 + $0x106c] sm:$0xf]  ;;  %v9031_v63 = vor.u32 %v10377_v41, %v9028_v36  ;;  %v8756_v0 = vld [vmem:[%s15664_s1 + $0x11d8] sm:$0xf0] }
 0x2c9   :  { %6000 = vmatpush.bf16.msra.mxu1 %v8327_v2  ;;  %v8580_v2 = vld [vmem:[%s15664_s1 + $0x1078] sm:$0xf0]  ;;  %v10373_v5 = vld [vmem:[%s15664_s1 + $0x13cc] sm:$0xf]  ;;  %v8759_v20 = vor.u32 %v10309_v38, %v8756_v0 }
 0x2ca   :  { %6013 = vmatpush.bf16.msra.mxu2 %v8455_v62  ;;  %5978 = vmatmul.bf16.vlgmr.msrb.gmra.mxu3 %v11451_v23  ;;  %v8295_v23 = vor.u32 %v10193_v12, %v8292_v7  ;;  %v8903_v62 = vor.u32 %v10345_v54, %v8900_v61  ;;  %v8884_v3 = vld [vmem:[%s15664_s1 + $0x12d8] sm:$0xf0]  ;;  %v8583_v22 = vor.u32 %v10265_v44, %v8580_v2  ;;  %v10305_v12 = vld [vmem:[%s15664_s1 + $0x11ac] sm:$0xf] }
 0x2cb   :  { %6022 = vmatpush.bf16.msra.mxu3 %v8647_v9  ;;  %v10341_v9 = vld [vmem:[%s15664_s1 + $0x12cc] sm:$0xf]  ;;  %v9012_v60 = vld [vmem:[%s15664_s1 + $0x13d8] sm:$0xf0] }
 0x2cc   :  { %5988 = vmatpush.bf16.msra.mxu0 %v8183_v8  ;;  %v5758_v24 = vpop.f32.mrf.mxu2  ;;  %v8887_v25 = vor.u32 %v10341_v9, %v8884_v3  ;;  %v9015_v33 = vor.u32 %v10373_v5, %v9012_v60  ;;  %v8868_v29 = vld [vmem:[%s15664_s1 + $0x12b8] sm:$0xf0]  ;;  %v10369_v14 = vld [vmem:[%s15664_s1 + $0x13ac] sm:$0xf] }
 0x2cd   :  { %6001 = vmatpush.bf16.msra.mxu1 %v8311_v10  ;;  %v5759_v1 = vadd.f32 %v5758_v24, %v15048_v52  ;;  %v5771_v8 = vpop.f32.mrf.mxu3  ;;  %v10261_v10 = vld [vmem:[%s15664_s1 + $0x104c] sm:$0xf]  ;;  %v8740_v52 = vld [vmem:[%s15664_s1 + $0x11b8] sm:$0xf0] }
 0x2ce   :  { %6014 = vmatpush.bf16.msra.mxu2 %v8439_v30  ;;  %v8564_v30 = vld [vmem:[%s15664_s1 + $0x1058] sm:$0xf0]  ;;  %v8743_v34 = vor.u32 %v10305_v12, %v8740_v52  ;;  %v10365_v32 = vld [vmem:[%s15664_s1 + $0x138c] sm:$0xf] }
 0x2cf   :  { %6023 = vmatpush.bf16.msra.mxu3 %v8631_v13  ;;  %v10337_v13 = vld [vmem:[%s15664_s1 + $0x12ac] sm:$0xf]  ;;  %v5772_v7 = vadd.f32 %v5771_v8, %v5759_v1  ;;  %v8996_v39 = vld [vmem:[%s15664_s1 + $0x13b8] sm:$0xf0] }
 0x2d0   :  { %5989 = vmatpush.bf16.msra.mxu0 %v8167_v6  ;;  %v8548_v6 = vld [vmem:[%s15664_s1 + $0x1038] sm:$0xf0]  ;;  %v8871_v4 = vor.u32 %v10337_v13, %v8868_v29  ;;  %v8999_v21 = vor.u32 %v10369_v14, %v8996_v39  ;;  %v10253_v54 = vld [vmem:[%s15664_s1 + $0x100c] sm:$0xf] }
 0x2d1   :  { %6002 = vmatpush.bf16.msra.mxu1 %v8295_v23  ;;  %v8724_v23 = vld [vmem:[%s15664_s1 + $0x1198] sm:$0xf0]  ;;  %v10361_v2 = vld [vmem:[%s15664_s1 + $0x136c] sm:$0xf] }
 0x2d2   :  { %6015 = vmatpush.bf16.msra.mxu2 %v8423_v26  ;;  %v10333_v26 = vld [vmem:[%s15664_s1 + $0x128c] sm:$0xf]  ;;  %v8852_v27 = vld [vmem:[%s15664_s1 + $0x1298] sm:$0xf0] }
 0x2d3   :  { %6024 = vmatpush.bf16.msra.mxu3 %v8615_v18  ;;  %v8980_v40 = vld [vmem:[%s15664_s1 + $0x1398] sm:$0xf0]  ;;  %v8855_v41 = vor.u32 %v10333_v26, %v8852_v27  ;;  %v10293_v60 = vld [vmem:[%s15664_s1 + $0x114c] sm:$0xf] }
 0x2d4   :  { %5990 = vmatpush.bf16.msra.mxu0 %v8151_v57  ;;  %v5784_v18 = vpop.f32.mrf.mxu0  ;;  %v5760_v43 = vpop.f32.mrf.mxu2  ;;  %v8532_v57 = vld [vmem:[%s15664_s1 + $0x1018] sm:$0xf0]  ;;  %v8983_v36 = vor.u32 %v10365_v32, %v8980_v40  ;;  %v10357_v8 = vld [vmem:[%s15664_s1 + $0x134c] sm:$0xf] }
 0x2d5   :  { %6003 = vmatpush.bf16.msra.mxu1 %v8279_v55  ;;  %v5785_v47 = vadd.f32 %v5784_v18, %v5772_v7  ;;  %v5797_v51 = vpop.f32.mrf.mxu1  ;;  %v5773_v61 = vpop.f32.mrf.mxu3  ;;  %v10297_v55 = vld [vmem:[%s15664_s1 + $0x116c] sm:$0xf]  ;;  %v8836_v44 = vld [vmem:[%s15664_s1 + $0x1278] sm:$0xf0]  ;;  %v8535_v0 = vor.u32 %v10253_v54, %v8532_v57 }
 0x2d6   :  { %6016 = vmatpush.bf16.msra.mxu2 %v8407_v58  ;;  %v8708_v58 = vld [vmem:[%s15664_s1 + $0x1178] sm:$0xf0]  ;;  %v10289_v14 = vld [vmem:[%s15664_s1 + $0x112c] sm:$0xf] }
 0x2d7   :  { %6025 = vmatpush.bf16.msra.mxu3 %v8599_v42  ;;  %5991 = vmatmul.bf16.vlgmr.msra.gmra.mxu0 %v11464_v31  ;;  %v8567_v31 = vor.u32 %v10261_v10, %v8564_v30  ;;  %v10329_v42 = vld [vmem:[%s15664_s1 + $0x126c] sm:$0xf]  ;;  %v9156_v38 = vld [vmem:[%s15664_s1 + $0x14f8] sm:$0xf0]  ;;  %v8711_v9 = vor.u32 %v10297_v55, %v8708_v58 }
 0x2d8   :  { %6035 = vmatpush.bf16.msrb.mxu0 %v8775_v59  ;;  %6004 = vmatmul.bf16.vlgmr.msra.gmra.mxu1 %v11462_v28  ;;  %v10301_v28 = vld [vmem:[%s15664_s1 + $0x118c] sm:$0xf]  ;;  %v5798_v59 = vadd.f32 %v5797_v51, %v5785_v47  ;;  %v8839_v3 = vor.u32 %v10329_v42, %v8836_v44  ;;  %v8692_v24 = vld [vmem:[%s15664_s1 + $0x1158] sm:$0xf0] }
 0x2d9   :  { %6048 = vmatpush.bf16.msrb.mxu1 %v8903_v62  ;;  %6017 = vmatmul.bf16.vlgmr.msra.gmra.mxu2 %v11472_v35  ;;  %v10257_v35 = vld [vmem:[%s15664_s1 + $0x102c] sm:$0xf]  ;;  %v8727_v50 = vor.u32 %v10301_v28, %v8724_v23  ;;  %v8964_v62 = vld [vmem:[%s15664_s1 + $0x1378] sm:$0xf0]  ;;  %v8695_v12 = vor.u32 %v10293_v60, %v8692_v24 }
 0x2da   :  { %6061 = vmatpush.bf16.msrb.mxu2 %v9031_v63  ;;  %v8551_v48 = vor.u32 %v10257_v35, %v8548_v6  ;;  %v10409_v63 = vld [vmem:[%s15664_s1 + $0x14ec] sm:$0xf]  ;;  %v8967_v5 = vor.u32 %v10361_v2, %v8964_v62  ;;  %v8948_v10 = vld [vmem:[%s15664_s1 + $0x1358] sm:$0xf0] }
 0x2db   :  { %6026 = vmatpush.bf16.msra.mxu3 %v8583_v22  ;;  %v10325_v22 = vld [vmem:[%s15664_s1 + $0x124c] sm:$0xf]  ;;  %v9159_v1 = vor.u32 %v10409_v63, %v9156_v38  ;;  %v8951_v29 = vor.u32 %v10357_v8, %v8948_v10  ;;  %v8676_v39 = vld [vmem:[%s15664_s1 + $0x1138] sm:$0xf0] }
 0x2dc   :  { %6036 = vmatpush.bf16.msrb.mxu0 %v8759_v20  ;;  %v8820_v20 = vld [vmem:[%s15664_s1 + $0x1258] sm:$0xf0]  ;;  %v10405_v30 = vld [vmem:[%s15664_s1 + $0x14cc] sm:$0xf]  ;;  %v5810_v13 = vpop.f32.mrf.mxu2  ;;  %v8679_v26 = vor.u32 %v10289_v14, %v8676_v39 }
 0x2dd   :  { %6049 = vmatpush.bf16.msrb.mxu1 %v8887_v25  ;;  %v9140_v25 = vld [vmem:[%s15664_s1 + $0x14d8] sm:$0xf0]  ;;  %v5799_v52 = vpop.f32.mrf.mxu1  ;;  %v8823_v7 = vor.u32 %v10325_v22, %v8820_v20  ;;  %v10401_v28 = vld [vmem:[%s15664_s1 + $0x14ac] sm:$0xf] }
 0x2de   :  { %6062 = vmatpush.bf16.msrb.mxu2 %v9015_v33  ;;  %v5786_v33 = vpop.f32.mrf.mxu0  ;;  %v9143_v35 = vor.u32 %v10405_v30, %v9140_v25  ;;  %v8804_v6 = vld [vmem:[%s15664_s1 + $0x1238] sm:$0xf0]  ;;  %v10285_v27 = vld [vmem:[%s15664_s1 + $0x110c] sm:$0xf] }
 0x2df   :  { %6027 = vmatpush.bf16.msra.mxu3 %v8567_v31  ;;  %v10321_v31 = vld [vmem:[%s15664_s1 + $0x122c] sm:$0xf]  ;;  %v9124_v23 = vld [vmem:[%s15664_s1 + $0x14b8] sm:$0xf0]  ;;  %v10559_v33 = vld [vmem:[%s15666_s2] sm:$0xf] }
 0x2e0   :  { %6037 = vmatpush.bf16.msrb.mxu0 %v8743_v34  ;;  %v15304_v34 = vadd.f32 %v5810_v13, %v5798_v59  ;;  %v8660_v32 = vld [vmem:[%s15664_s1 + $0x1118] sm:$0xf0]  ;;  %v10317_v18 = vld [vmem:[%s15664_s1 + $0x120c] sm:$0xf] }
 0x2e1   :  { %6050 = vmatpush.bf16.msrb.mxu1 %v8871_v4  ;;  %v10353_v4 = vld [vmem:[%s15664_s1 + $0x132c] sm:$0xf]  ;;  %v8788_v43 = vld [vmem:[%s15664_s1 + $0x1218] sm:$0xf0] }
 0x2e2   :  { %6063 = vmatpush.bf16.msrb.mxu2 %v8999_v21  ;;  %v8932_v21 = vld [vmem:[%s15664_s1 + $0x1338] sm:$0xf0]  ;;  %v10349_v47 = vld [vmem:[%s15664_s1 + $0x130c] sm:$0xf]  ;;  %v8791_v59 = vor.u32 %v10317_v18, %v8788_v43  ;;  %vm6141_vm3 = vcmp.gt.f32.partialorder %v15304_v34, 0.0 }
 0x2e3   :  { %6028 = vmatpush.bf16.msra.mxu3 %v8551_v48  ;;  %v8935_v40 = vor.u32 %v10353_v4, %v8932_v21  ;;  %v9127_v48 = vor.u32 %v10401_v28, %v9124_v23  ;;  %v10397_v51 = vld [vmem:[%s15664_s1 + $0x148c] sm:$0xf]  ;;  %v9108_v54 = vld [vmem:[%s15664_s1 + $0x1498] sm:$0xf0] }
 0x2e4   :  { %6038 = vmatpush.bf16.msrb.mxu0 %v8727_v50  ;;  %v8916_v50 = vld [vmem:[%s15664_s1 + $0x1318] sm:$0xf0]  ;;  %v10441_v57 = vld [vmem:[%s15664_s1 + $0x15ec] sm:$0xf]  ;;  %v5812_v2 = vpop.f32.mrf.mxu2  ;;  %v9111_v62 = vor.u32 %v10397_v51, %v9108_v54 }
 0x2e5   :  { %6051 = vmatpush.bf16.msrb.mxu1 %v8855_v41  ;;  %v9284_v61 = vld [vmem:[%s15664_s1 + $0x15f8] sm:$0xf0]  ;;  %v10473_v41 = vld [vmem:[%s15664_s1 + $0x16ec] sm:$0xf]  ;;  %v8919_v44 = vor.u32 %v10349_v47, %v8916_v50 }
 0x2e6   :  { %6064 = vmatpush.bf16.msrb.mxu2 %v8983_v36  ;;  %v8663_v36 = vor.u32 %v10285_v27, %v8660_v32  ;;  %v9412_v55 = vld [vmem:[%s15664_s1 + $0x16f8] sm:$0xf0]  ;;  %v10505_v58 = vld [vmem:[%s15664_s1 + $0x17ec] sm:$0xf]  ;;  %v9287_v63 = vor.u32 %v10441_v57, %v9284_v61 }
 0x2e7   :  { %6029 = vmatpush.bf16.msra.mxu3 %v8535_v0  ;;  %v9540_v42 = vld [vmem:[%s15664_s1 + $0x17f8] sm:$0xf0]  ;;  %v10393_v38 = vld [vmem:[%s15664_s1 + $0x146c] sm:$0xf] }
 0x2e8   :  { %6039 = vmatpush.bf16.msrb.mxu0 %v8711_v9  ;;  %v9092_v0 = vld [vmem:[%s15664_s1 + $0x1478] sm:$0xf0]  ;;  %v9415_v9 = vor.u32 %v10473_v41, %v9412_v55  ;;  %v10469_v24 = vld [vmem:[%s15664_s1 + $0x16cc] sm:$0xf] }
 0x2e9   :  { %6052 = vmatpush.bf16.msrb.mxu1 %v8839_v3  ;;  %v9543_v3 = vor.u32 %v10505_v58, %v9540_v42  ;;  %v9268_v60 = vld [vmem:[%s15664_s1 + $0x15d8] sm:$0xf0]  ;;  %v9095_v8 = vor.u32 %v10393_v38, %v9092_v0  ;;  %v10389_v30 = vld [vmem:[%s15664_s1 + $0x144c] sm:$0xf] }
 0x2ea   :  { %6065 = vmatpush.bf16.msrb.mxu2 %v8967_v5  ;;  %6030 = vmatmul.bf16.vlgmr.msra.gmra.mxu3 %v11661_v37  ;;  %v8807_v37 = vor.u32 %v10321_v31, %v8804_v6  ;;  %v10437_v5 = vld [vmem:[%s15664_s1 + $0x15cc] sm:$0xf]  ;;  %v9396_v22 = vld [vmem:[%s15664_s1 + $0x16d8] sm:$0xf0] }
 0x2eb   :  { %6074 = vmatpush.bf16.msrb.mxu3 %v9159_v1  ;;  %v10501_v1 = vld [vmem:[%s15664_s1 + $0x17cc] sm:$0xf]  ;;  %v9524_v20 = vld [vmem:[%s15664_s1 + $0x17d8] sm:$0xf0]  ;;  %v9271_v10 = vor.u32 %v10437_v5, %v9268_v60  ;;  %v9399_v13 = vor.u32 %v10469_v24, %v9396_v22 }
 0x2ec   :  { %6040 = vmatpush.bf16.msrb.mxu0 %v8695_v12  ;;  %v9076_v25 = vld [vmem:[%s15664_s1 + $0x1458] sm:$0xf0]  ;;  %v823_v12 = vperm.slane %v10559_v33, 3  ;;  %v10465_v39 = vld [vmem:[%s15664_s1 + $0x16ac] sm:$0xf] }
 0x2ed   :  { %6053 = vmatpush.bf16.msrb.mxu1 %v8823_v7  ;;  %v5823_v52 = vpop.f32.mrf.mxu3  ;;  %v9527_v7 = vor.u32 %v10501_v1, %v9524_v20  ;;  %v9252_v14 = vld [vmem:[%s15664_s1 + $0x15b8] sm:$0xf0]  ;;  %v9079_v4 = vor.u32 %v10389_v30, %v9076_v25  ;;  %v10461_v32 = vld [vmem:[%s15664_s1 + $0x168c] sm:$0xf] }
 0x2ee   :  { %6066 = vmatpush.bf16.msrb.mxu2 %v8951_v29  ;;  %v10433_v29 = vld [vmem:[%s15664_s1 + $0x15ac] sm:$0xf]  ;;  %v9380_v31 = vld [vmem:[%s15664_s1 + $0x16b8] sm:$0xf0]  ;;  %v5824_v28 = vadd.f32 %v5823_v52, %v823_v12 }
 0x2ef   :  { %6075 = vmatpush.bf16.msrb.mxu3 %v9143_v35  ;;  %v10497_v35 = vld [vmem:[%s15664_s1 + $0x17ac] sm:$0xf]  ;;  %v9508_v6 = vld [vmem:[%s15664_s1 + $0x17b8] sm:$0xf0]  ;;  %v9383_v23 = vor.u32 %v10465_v39, %v9380_v31 }
 0x2f0   :  { %6041 = vmatpush.bf16.msrb.mxu0 %v8679_v26  ;;  %v9060_v21 = vld [vmem:[%s15664_s1 + $0x1438] sm:$0xf0]  ;;  %v9511_v26 = vor.u32 %v10497_v35, %v9508_v6  ;;  %v10381_v50 = vld [vmem:[%s15664_s1 + $0x140c] sm:$0xf] }
 0x2f1   :  { %6054 = vmatpush.bf16.msrb.mxu1 %v8807_v37  ;;  %v9236_v27 = vld [vmem:[%s15664_s1 + $0x1598] sm:$0xf0]  ;;  %v10425_v55 = vld [vmem:[%s15664_s1 + $0x156c] sm:$0xf] }
 0x2f2   :  { %6067 = vmatpush.bf16.msrb.mxu2 %v8935_v40  ;;  %v9364_v37 = vld [vmem:[%s15664_s1 + $0x1698] sm:$0xf0]  ;;  %v10493_v40 = vld [vmem:[%s15664_s1 + $0x178c] sm:$0xf] }
 0x2f3   :  { %6076 = vmatpush.bf16.msrb.mxu3 %v9127_v48  ;;  %v9492_v18 = vld [vmem:[%s15664_s1 + $0x1798] sm:$0xf0]  ;;  %v9367_v41 = vor.u32 %v10461_v32, %v9364_v37  ;;  %v10457_v42 = vld [vmem:[%s15664_s1 + $0x166c] sm:$0xf] }
 0x2f4   :  { %6042 = vmatpush.bf16.msrb.mxu0 %v8663_v36  ;;  %v5836_v43 = vpop.f32.mrf.mxu0  ;;  %v9044_v51 = vld [vmem:[%s15664_s1 + $0x1418] sm:$0xf0]  ;;  %v9495_v36 = vor.u32 %v10493_v40, %v9492_v18  ;;  %v10421_v60 = vld [vmem:[%s15664_s1 + $0x154c] sm:$0xf] }
 0x2f5   :  { %6055 = vmatpush.bf16.msrb.mxu1 %v8791_v59  ;;  %v5837_v54 = vadd.f32 %v5836_v43, %v5824_v28  ;;  %v5849_v57 = vpop.f32.mrf.mxu1  ;;  %v5825_v61 = vpop.f32.mrf.mxu3  ;;  %v9220_v58 = vld [vmem:[%s15664_s1 + $0x1578] sm:$0xf0]  ;;  %v9047_v0 = vor.u32 %v10381_v50, %v9044_v51  ;;  %v10453_v22 = vld [vmem:[%s15664_s1 + $0x164c] sm:$0xf] }
 0x2f6   :  { %6068 = vmatpush.bf16.msrb.mxu2 %v8919_v44  ;;  %v9348_v59 = vld [vmem:[%s15664_s1 + $0x1678] sm:$0xf0]  ;;  %v10489_v44 = vld [vmem:[%s15664_s1 + $0x176c] sm:$0xf] }
 0x2f7   :  { %6077 = vmatpush.bf16.msrb.mxu3 %v9111_v62  ;;  %6043 = vmatmul.bf16.vlgmr.msrb.gmra.mxu0 %v11674_v46  ;;  %v9255_v46 = vor.u32 %v10433_v29, %v9252_v14  ;;  %v9476_v2 = vld [vmem:[%s15664_s1 + $0x1778] sm:$0xf0]  ;;  %v5850_v62 = vadd.f32 %v5849_v57, %v5837_v54  ;;  %v10517_v33 = vld [vmem:[%s15664_s1 + $0x184c] sm:$0xf] }
 0x2f8   :  { %6087 = vmatpush.bf16.msra.mxu0 %v9287_v63  ;;  %6056 = vmatmul.bf16.vlgmr.msrb.gmra.mxu1 %v11672_v45  ;;  %v10429_v45 = vld [vmem:[%s15664_s1 + $0x158c] sm:$0xf]  ;;  %v9604_v38 = vld [vmem:[%s15664_s1 + $0x1878] sm:$0xf0]  ;;  %v9479_v5 = vor.u32 %v10489_v44, %v9476_v2  ;;  %v10546_v44 = vld [vmem:[%s15667_s3 + $0xb0] sm:$0xff] }
 0x2f9   :  { %6100 = vmatpush.bf16.msra.mxu1 %v9415_v9  ;;  %6069 = vmatmul.bf16.vlgmr.msrb.gmra.mxu2 %v11682_v49  ;;  %v10385_v49 = vld [vmem:[%s15664_s1 + $0x142c] sm:$0xf]  ;;  %v9239_v48 = vor.u32 %v10429_v45, %v9236_v27  ;;  %v9223_v9 = vor.u32 %v10425_v55, %v9220_v58  ;;  %v9204_v24 = vld [vmem:[%s15664_s1 + $0x1558] sm:$0xf0]  ;;  %v10530_v58 = vld [vmem:[%s15667_s3 + $0x30] sm:$0xff] }
 0x2fa   :  { %6113 = vmatpush.bf16.msra.mxu2 %v9543_v3  ;;  %v9063_v47 = vor.u32 %v10385_v49, %v9060_v21  ;;  %v10521_v63 = vld [vmem:[%s15664_s1 + $0x186c] sm:$0xf]  ;;  %v9351_v3 = vor.u32 %v10457_v42, %v9348_v59  ;;  %v9460_v30 = vld [vmem:[%s15664_s1 + $0x1758] sm:$0xf0]  ;;  %v10538_v42 = vld [vmem:[%s15667_s3 + $0x70] sm:$0xff] }
 0x2fb   :  { %6078 = vmatpush.bf16.msrb.mxu3 %v9095_v8  ;;  %v9607_v20 = vor.u32 %v10521_v63, %v9604_v38  ;;  %v9332_v8 = vld [vmem:[%s15664_s1 + $0x1658] sm:$0xf0]  ;;  %v10417_v39 = vld [vmem:[%s15664_s1 + $0x152c] sm:$0xf]  ;;  %v10528_v38 = vld [vmem:[%s15667_s3 + $0x20] sm:$0xff] }
 0x2fc   :  { %6088 = vmatpush.bf16.msra.mxu0 %v9271_v10  ;;  %v5862_v1 = vpop.f32.mrf.mxu2  ;;  %v10485_v10 = vld [vmem:[%s15664_s1 + $0x174c] sm:$0xf]  ;;  %v9588_v12 = vld [vmem:[%s15664_s1 + $0x1858] sm:$0xf0]  ;;  %v5838_v52 = vpop.f32.mrf.mxu0  ;;  %v9335_v29 = vor.u32 %v10453_v22, %v9332_v8 }
 0x2fd   :  { %6101 = vmatpush.bf16.msra.mxu1 %v9399_v13  ;;  %v15490_v25 = vadd.f32 %v5862_v1, %v5850_v62  ;;  %v9207_v13 = vor.u32 %v10421_v60, %v9204_v24  ;;  %v9463_v14 = vor.u32 %v10485_v10, %v9460_v30  ;;  %v9188_v31 = vld [vmem:[%s15664_s1 + $0x1538] sm:$0xf0]  ;;  %v10449_v35 = vld [vmem:[%s15664_s1 + $0x162c] sm:$0xf]  ;;  %v9591_v6 = vor.u32 %v10517_v33, %v9588_v12  ;;  %v10526_v10 = vld [vmem:[%s15667_s3 + $0x10] sm:$0xff] }
 0x2fe   :  { %6114 = vmatpush.bf16.msra.mxu2 %v9527_v7  ;;  %v5851_v7 = vpop.f32.mrf.mxu1  ;;  %v9444_v49 = vld [vmem:[%s15664_s1 + $0x1738] sm:$0xf0]  ;;  %v10513_v21 = vld [vmem:[%s15664_s1 + $0x182c] sm:$0xf]  ;;  %v10534_v30 = vld [vmem:[%s15667_s3 + $0x50] sm:$0xff] }
 0x2ff   :  { %6079 = vmatpush.bf16.msrb.mxu3 %v9079_v4  ;;  %v9316_v4 = vld [vmem:[%s15664_s1 + $0x1638] sm:$0xf0]  ;;  %v10413_v27 = vld [vmem:[%s15664_s1 + $0x150c] sm:$0xf]  ;;  %v10542_v33 = vld [vmem:[%s15667_s3 + $0x90] sm:$0xff] }
 0x300   :  { %6089 = vmatpush.bf16.msra.mxu0 %v9255_v46  ;;  %v10481_v46 = vld [vmem:[%s15664_s1 + $0x172c] sm:$0xf]  ;;  %v9572_v28 = vld [vmem:[%s15664_s1 + $0x1838] sm:$0xf0] }
 0x301   :  { %6102 = vmatpush.bf16.msra.mxu1 %v9383_v23  ;;  %v9191_v23 = vor.u32 %v10417_v39, %v9188_v31  ;;  %v9447_v45 = vor.u32 %v10481_v46, %v9444_v49  ;;  %v10445_v32 = vld [vmem:[%s15664_s1 + $0x160c] sm:$0xf]  ;;  %v9575_v40 = vor.u32 %v10513_v21, %v9572_v28  ;;  %v9300_v18 = vld [vmem:[%s15664_s1 + $0x1618] sm:$0xf0]  ;;  %v6145_v39 = vmul.f32 0.01, %v15304_v34 }
 0x302   :  { %6115 = vmatpush.bf16.msra.mxu2 %v9511_v26  ;;  %v9319_v26 = vor.u32 %v10449_v35, %v9316_v4  ;;  %v10477_v43 = vld [vmem:[%s15664_s1 + $0x170c] sm:$0xf]  ;;  %v9556_v51 = vld [vmem:[%s15664_s1 + $0x1818] sm:$0xf0]  ;;  %v9303_v54 = vor.u32 %v10445_v32, %v9300_v18  ;;  %v10524_v31 = vld [vmem:[%s15667_s3] sm:$0xff] }
 0x303   :  { %6080 = vmatpush.bf16.msrb.mxu3 %v9063_v47  ;;  %v9428_v47 = vld [vmem:[%s15664_s1 + $0x1718] sm:$0xf0]  ;;  %v10509_v50 = vld [vmem:[%s15664_s1 + $0x180c] sm:$0xf]  ;;  %v10532_v35 = vld [vmem:[%s15667_s3 + $0x40] sm:$0xff]  ;;  %v6149_v49 = vsel %vm6141_vm3, %v15304_v34, %v6145_v39 }
 0x304   :  { %6090 = vmatpush.bf16.msra.mxu0 %v9239_v48  ;;  %v5864_v37 = vpop.f32.mrf.mxu2  ;;  %v9431_v57 = vor.u32 %v10477_v43, %v9428_v47  ;;  %v10531_v61 = vld [vmem:[%s15667_s3 + $0x38] sm:$0xff]  ;;  %v9559_v55 = vor.u32 %v10509_v50, %v9556_v51  ;;  %v10529_v62 = vld [vmem:[%s15667_s3 + $0x28] sm:$0xff] }
 0x305   :  { %6103 = vmatpush.bf16.msra.mxu1 %v9367_v41  ;;  %v10539_v41 = vld [vmem:[%s15667_s3 + $0x78] sm:$0xff]  ;;  %v10537_v63 = vld [vmem:[%s15667_s3 + $0x68] sm:$0xff] }
 0x306   :  { %6116 = vmatpush.bf16.msra.mxu2 %v9495_v36  ;;  %v10547_v36 = vld [vmem:[%s15667_s3 + $0xb8] sm:$0xff]  ;;  %v10525_v12 = vld [vmem:[%s15667_s3 + $0x8] sm:$0xff] }
 0x307   :  { %6081 = vmatpush.bf16.msrb.mxu3 %v9047_v0  ;;  %v10536_v0 = vld [vmem:[%s15667_s3 + $0x60] sm:$0xff]  ;;  %v10527_v60 = vld [vmem:[%s15667_s3 + $0x18] sm:$0xff]  ;;  %v10533_v52 = vld [vmem:[%s15667_s3 + $0x48] sm:$0xff] }
 0x308   :  { %6091 = vmatpush.bf16.msra.mxu0 %v9223_v9  ;;  %v10535_v24 = vld [vmem:[%s15667_s3 + $0x58] sm:$0xff] }
 0x309   :  { %6104 = vmatpush.bf16.msra.mxu1 %v9351_v3  ;;  %v10543_v22 = vld [vmem:[%s15667_s3 + $0x98] sm:$0xff] }
 0x30a   :  { %6117 = vmatpush.bf16.msra.mxu2 %v9479_v5  ;;  %6082 = vmatmul.bf16.vlgmr.msrb.gmra.mxu3 %v11876_v11  ;;  %v9172_v11 = vld [vmem:[%s15664_s1 + $0x1518] sm:$0xf0] }
 0x30b   :  { %6130 = vmatpush.bf16.msra.mxu3 %v9607_v20  ;;  %v9175_v48 = vor.u32 %v10413_v27, %v9172_v11 }
 0x30c   :  { %6092 = vmatpush.bf16.msra.mxu0 %v9207_v13  ;;  %v10541_v13 = vld [vmem:[%s15667_s3 + $0x88] sm:$0xff] }
 0x30d   :  { %6105 = vmatpush.bf16.msra.mxu1 %v9335_v29  ;;  %v5875_v59 = vpop.f32.mrf.mxu3  ;;  %v6143_v29 = vmul.f32 0.01, %v12869_v53 }
 0x30e   :  { %6118 = vmatpush.bf16.msra.mxu2 %v9463_v14  ;;  %v5876_v2 = vadd.f32 %v5875_v59, %v15490_v25  ;;  %v6144_v14 = vmul.f32 0.01, %v14073_v17  ;;  %v10552_v59 = vld [vmem:[%s15667_s3 + $0xe0] sm:$0xff] }
 0x30f   :  { %6131 = vmatpush.bf16.msra.mxu3 %v9591_v6  ;;  %v10540_v6 = vld [vmem:[%s15667_s3 + $0x80] sm:$0xff]  ;;  %v6147_v4 = vsel %vm6139_vm1, %v12869_v53, %v6143_v29 }
 0x310   :  { %6093 = vmatpush.bf16.msra.mxu0 %v9191_v23  ;;  %v6148_v46 = vsel %vm6140_vm2, %v14073_v17, %v6144_v14  ;;  %v6151_v21 = vpack.c.bf16 %v6147_v4, %v6147_v4  ;;  %v6153_v23 = vpack.c.bf16 %v6149_v49, %v6149_v49 }
 0x311   :  { %6106 = vmatpush.bf16.msra.mxu1 %v9319_v26  ;;  %v6152_v28 = vpack.c.bf16 %v6148_v46, %v6148_v46 }
 0x312   :  { %6119 = vmatpush.bf16.msra.mxu2 %v9447_v45 }
 0x313   :  { %6132 = vmatpush.bf16.msra.mxu3 %v9575_v40 }
 0x314   :  { %6094 = vmatpush.bf16.msra.mxu0 %v9175_v48 }
 0x315   :  { %6107 = vmatpush.bf16.msra.mxu1 %v9303_v54  ;;  %v5901_v9 = vpop.f32.mrf.mxu1  ;;  %v5877_v3 = vpop.f32.mrf.mxu3  ;;  %v10555_v54 = vld [vmem:[%s15667_s3 + $0xf8] sm:$0xff] }
 0x316   :  { %6120 = vmatpush.bf16.msra.mxu2 %v9431_v57  ;;  %v10548_v3 = vld [vmem:[%s15667_s3 + $0xc0] sm:$0xff] }
 0x317   :  { %6133 = vmatpush.bf16.msra.mxu3 %v9559_v55  ;;  %6095 = vmatmul.bf16.vlgmr.msra.gmra.mxu0 %v11889_v16  ;;  %v5888_v16 = vpop.f32.mrf.mxu0 }
 0x318   :  { %6415 = vmatpush.bf16.msrb.mxu0 %v10531_v61  ;;  %6108 = vmatmul.bf16.vlgmr.msra.gmra.mxu1 %v11887_v15  ;;  %v10545_v15 = vld [vmem:[%s15667_s3 + $0xa8] sm:$0xff]  ;;  %v10554_v61 = vld [vmem:[%s15667_s3 + $0xf0] sm:$0xff] }
 0x319   :  { %6428 = vmatpush.bf16.msrb.mxu1 %v10539_v41  ;;  %6121 = vmatmul.bf16.vlgmr.msra.gmra.mxu2 %v11897_v19  ;;  %v5889_v19 = vadd.f32 %v5888_v16, %v5876_v2 }
 0x31a   :  { %6441 = vmatpush.bf16.msrb.mxu2 %v10547_v36  ;;  %9611 = vmatmul.msk.bf16.vlgmr.msra.gmra.mxu3 %vm4835_vm0, %v12000_v56  ;;  %v10544_v56 = vld [vmem:[%s15667_s3 + $0xa0] sm:$0xff] }
 0x31b   :  { %v5902_v5 = vadd.f32 %v5901_v9, %v5889_v19  ;;  %6454 = vmatpush.bf16.msrb.mxu3 %v10555_v54  ;;  %v10549_v19 = vld [vmem:[%s15667_s3 + $0xc8] sm:$0xff] }
 0x31c   :  { %6416 = vmatpush.bf16.msrb.mxu0 %v10530_v58  ;;  %v5914_v1 = vpop.f32.mrf.mxu2  ;;  %v10553_v58 = vld [vmem:[%s15667_s3 + $0xe8] sm:$0xff] }
 0x31d   :  { %6429 = vmatpush.bf16.msrb.mxu1 %v10538_v42  ;;  %v5915_v20 = vadd.f32 %v5914_v1, %v5902_v5  ;;  %v5903_v25 = vpop.f32.mrf.mxu1 }
 0x31e   :  { %6442 = vmatpush.bf16.msrb.mxu2 %v10546_v44  ;;  %v10551_v44 = vld [vmem:[%s15667_s3 + $0xd8] sm:$0xff] }
 0x31f   :  { %v5890_v8 = vpop.f32.mrf.mxu0  ;;  %6455 = vmatpush.bf16.msrb.mxu3 %v10554_v61 }
 0x320   :  { %6417 = vmatpush.bf16.msrb.mxu0 %v10529_v62 }
 0x321   :  { %6430 = vmatpush.bf16.msrb.mxu1 %v10537_v63 }
 0x322   :  { %6443 = vmatpush.bf16.msrb.mxu2 %v10545_v15  ;;  %v10550_v15 = vld [vmem:[%s15667_s3 + $0xd0] sm:$0xff] }
 0x323   :  { %6456 = vmatpush.bf16.msrb.mxu3 %v10553_v58 }
 0x324   :  { %6418 = vmatpush.bf16.msrb.mxu0 %v10528_v38  ;;  %v5916_v7 = vpop.f32.mrf.mxu2 }
 0x325   :  { %6431 = vmatpush.bf16.msrb.mxu1 %v10536_v0 }
 0x326   :  { %6444 = vmatpush.bf16.msrb.mxu2 %v10544_v56 }
 0x327   :  { %6457 = vmatpush.bf16.msrb.mxu3 %v10552_v59 }
 0x328   :  { %6419 = vmatpush.bf16.msrb.mxu0 %v10527_v60 }
 0x329   :  { %6432 = vmatpush.bf16.msrb.mxu1 %v10535_v24 }
 0x32a   :  { %6445 = vmatpush.bf16.msrb.mxu2 %v10543_v22 }
 0x32b   :  { %6458 = vmatpush.bf16.msrb.mxu3 %v10551_v44 }
 0x32c   :  { %6420 = vmatpush.bf16.msrb.mxu0 %v10526_v10 }
 0x32d   :  { %6433 = vmatpush.bf16.msrb.mxu1 %v10534_v30  ;;  %v5927_v26 = vpop.f32.mrf.mxu3 }
 0x32e   :  { %6446 = vmatpush.bf16.msrb.mxu2 %v10542_v33  ;;  %v5928_v45 = vadd.f32 %v5927_v26, %v5915_v20 }
 0x32f   :  { %6459 = vmatpush.bf16.msrb.mxu3 %v10550_v15 }
 0x330   :  { %6421 = vmatpush.bf16.msrb.mxu0 %v10525_v12 }
 0x331   :  { %6434 = vmatpush.bf16.msrb.mxu1 %v10533_v52 }
 0x332   :  { %6447 = vmatpush.bf16.msrb.mxu2 %v10541_v13 }
 0x333   :  { %6460 = vmatpush.bf16.msrb.mxu3 %v10549_v19 }
 0x334   :  { %6422 = vmatpush.bf16.msrb.mxu0 %v10524_v31  ;;  %v5940_v27 = vpop.f32.mrf.mxu0 }
 0x335   :  { %6435 = vmatpush.bf16.msrb.mxu1 %v10532_v35  ;;  %v5941_v11 = vadd.f32 %v5940_v27, %v5928_v45  ;;  %v5953_v32 = vpop.f32.mrf.mxu1  ;;  %v5929_v37 = vpop.f32.mrf.mxu3 }
 0x336   :  { %6448 = vmatpush.bf16.msrb.mxu2 %v10540_v6 }
 0x337   :  { %6423 = vmatmul.bf16.vlgmr.msrb.gmra.mxu0 %v6151_v21  ;;  %v5954_v53 = vadd.f32 %v5953_v32, %v5941_v11  ;;  %6461 = vmatpush.bf16.msrb.mxu3 %v10548_v3 }
 0x338   :  { %6436 = vmatmul.bf16.vlgmr.msrb.gmra.mxu1 %v6152_v28  ;;  %v10556_v28 = vld [vmem:[%s15668_s4] ss:$0 sm:$0xff] }
 0x339   :  { %6449 = vmatmul.bf16.vlgmr.msrb.gmra.mxu2 %v6153_v23 }
 0x33c   :  { %v5966_v40 = vpop.f32.mrf.mxu2  ;;  %v5942_v18 = vpop.f32.mrf.mxu0 }
 0x33d   :  { %v5967_v17 = vadd.f32 %v5966_v40, %v5954_v53  ;;  %v5955_v34 = vpop.f32.mrf.mxu1 }
 0x344   :  { %v5968_v43 = vpop.f32.mrf.mxu2 }
 0x34d   :  { %v5979_v47 = vpop.f32.mrf.mxu3 }
 0x34e   :  { %v5980_v9 = vadd.f32 %v5979_v47, %v5967_v17 }
 0x354   :  { %v5992_v48 = vpop.f32.mrf.mxu0 }
 0x355   :  { %v6005_v50 = vpop.f32.mrf.mxu1  ;;  %v5981_v51 = vpop.f32.mrf.mxu3  ;;  %v5993_v56 = vadd.f32 %v5992_v48, %v5980_v9 }
 0x357   :  { %v6006_v60 = vadd.f32 %v6005_v50, %v5993_v56 }
 0x35c   :  { %v6018_v57 = vpop.f32.mrf.mxu2  ;;  %v5994_v41 = vpop.f32.mrf.mxu0 }
 0x35d   :  { %v6007_v36 = vpop.f32.mrf.mxu1  ;;  %v6019_v24 = vadd.f32 %v6018_v57, %v6006_v60 }
 0x364   :  { %v6020_v55 = vpop.f32.mrf.mxu2 }
 0x36d   :  { %v6031_v42 = vpop.f32.mrf.mxu3 }
 0x36e   :  { %v6032_v22 = vadd.f32 %v6031_v42, %v6019_v24 }
 0x374   :  { %v6044_v2 = vpop.f32.mrf.mxu0 }
 0x375   :  { %v6057_v62 = vpop.f32.mrf.mxu1  ;;  %v6033_v63 = vpop.f32.mrf.mxu3  ;;  %v6045_v1 = vadd.f32 %v6044_v2, %v6032_v22 }
 0x377   :  { %v6058_v8 = vadd.f32 %v6057_v62, %v6045_v1 }
 0x37c   :  { %v6070_v16 = vpop.f32.mrf.mxu2  ;;  %v6046_v38 = vpop.f32.mrf.mxu0 }
 0x37d   :  { %v6059_v0 = vpop.f32.mrf.mxu1  ;;  %v6071_v10 = vadd.f32 %v6070_v16, %v6058_v8 }
 0x384   :  { %v6072_v5 = vpop.f32.mrf.mxu2 }
 0x38d   :  { %v6083_v20 = vpop.f32.mrf.mxu3 }
 0x38e   :  { %v6084_v30 = vadd.f32 %v6083_v20, %v6071_v10 }
 0x394   :  { %v6096_v25 = vpop.f32.mrf.mxu0 }
 0x395   :  { %v6109_v33 = vpop.f32.mrf.mxu1  ;;  %v6085_v12 = vpop.f32.mrf.mxu3  ;;  %v6097_v52 = vadd.f32 %v6096_v25, %v6084_v30 }
 0x397   :  { %v6110_v13 = vadd.f32 %v6109_v33, %v6097_v52 }
 0x39c   :  { %v6122_v7 = vpop.f32.mrf.mxu2  ;;  %v6098_v14 = vpop.f32.mrf.mxu0 }
 0x39d   :  { %v6123_v29 = vadd.f32 %v6122_v7, %v6110_v13  ;;  %v6111_v39 = vpop.f32.mrf.mxu1  ;;  %v6135_v31 = vpop.f32.mrf.mxu3 }
 0x39f   :  { %v6136_v35 = vadd.f32 %v6135_v31, %v6123_v29 }
 0x3a1   :  { %vm6142_vm4 = vcmp.gt.f32.partialorder %v6136_v35, 0.0  ;;  %v6146_v6 = vmul.f32 0.01, %v6136_v35 }
 0x3a3   :  { %v6150_v4 = vsel %vm6142_vm4, %v6136_v35, %v6146_v6 }
 0x3a4   :  { %v6154_v46 = vpack.c.bf16 %v6150_v4, %v6150_v4  ;;  %v6124_v49 = vpop.f32.mrf.mxu2 }
 0x3a5   :  { %v6137_v21 = vpop.f32.mrf.mxu3 }
 0x3a6   :  { %6462 = vmatmul.bf16.vlgmr.msrb.gmra.mxu3 %v6154_v46 }
 0x3b4   :  { %v6424_v23 = vpop.f32.mrf.mxu0 }
 0x3b5   :  { %v6437_v26 = vpop.f32.mrf.mxu1  ;;  %v6425_v45 = vadd.f32 %v10556_v28, %v6424_v23 }
 0x3b7   :  { %v6438_v27 = vadd.f32 %v6437_v26, %v6425_v45 }
 0x3bc   :  { %v6450_v11 = vpop.f32.mrf.mxu2  ;;  %v6426_v37 = vpop.f32.mrf.mxu0 }
 0x3bd   :  { %v6451_v32 = vadd.f32 %v6450_v11, %v6438_v27  ;;  %v6439_v53 = vpop.f32.mrf.mxu1 }
 0x3c4   :  { %v6452_v40 = vpop.f32.mrf.mxu2 }
 0x429   :  { %v6463_v17 = vpop.f32.mrf.mxu3 }
 0x42a   :  { %v6464_v18 = vadd.f32 %v6463_v17, %v6451_v32 }
 0x42c   :  { %6467 = vst [vmem:[%s15669_s5] sm:$0xff] %v6464_v18 }
 0x431   :  { %v6465_v34 = vpop.f32.mrf.mxu3 }

</bundles_post_ra>
